<compile_context>
chip_gen: v7x
topology: tpu7x:2x2x1
jax: 0.10.0
libtpu: 0.0.40
codegen_flags: <defaults>
</compile_context>

<pallas_src>
import math
import functools

import jax
import jax.numpy as jnp
from jax.experimental import pallas as pl
from jax.experimental.pallas import tpu as pltpu

_BN_EPS = 1e-5
_LN_EPS = 1e-5
_BN_SCALE = 1.0 / math.sqrt(1.0 + _BN_EPS)   # eval-mode BatchNorm2d == per-channel scale
_SA_RATES = (1, 6, 12, 18)

# fixed ordering of the per-layer weight refs fed to the fused kernel
_W_ORDER = (
    "w_q", "b_q", "w_k", "b_k", "w_v", "b_v", "w_o", "b_o", "hsum", "hbc",
    "pa_w", "ca_w1", "ca_w2",
    "sa_w_0", "sa_w_1", "sa_w_2", "sa_w_3", "sa_b", "sa_out_w", "sa_out_b",
    "out_w", "out_b", "mod_bias", "mod_ls", "g1", "g2", "g3",
    "n1_g", "n1_b", "ls1", "w1", "b1",
    "dw_w", "dw_b", "w2f", "b2f", "n2_g", "n2_b", "ls2",
    "fn_g", "fn_b", "fn_s",
)
_NW = len(_W_ORDER)


# ----------------------------------------------------------------------------
# small math helpers usable inside kernels (all f32 on the VPU/EUP)
# ----------------------------------------------------------------------------
def _mm(a, b):
    """bf16 x bf16 -> f32-accumulated MXU matmul."""
    return jnp.dot(a.astype(jnp.bfloat16), b.astype(jnp.bfloat16),
                   preferred_element_type=jnp.float32)


def _sigmoid(x):
    # TODO(synk): approx reciprocal (EUP) gives ~1e-4 rel error vs exact torch.sigmoid.
    return pl.reciprocal(1.0 + jnp.exp(-x), approx=True)


def _gelu(x):
    # tanh-approx GELU: the nonlinearity runs on the EUP (otherwise-idle slot).
    # TODO(synk): PyTorch nn.GELU() defaults to exact erf; small numeric delta.
    c = 0.7978845608028654
    return 0.5 * x * (1.0 + jnp.tanh(c * (x + 0.044715 * x * x * x)))


def _layernorm(x, g, b):
    mu = jnp.mean(x, axis=-1, keepdims=True)
    var = jnp.mean((x - mu) ** 2, axis=-1, keepdims=True)
    return (x - mu) * jax.lax.rsqrt(var + _LN_EPS) * g + b


def _surviving_taps(H, W):
    """Per-rate list of (dy, dx) taps whose zero-padded window is not all-padding."""
    taps = []
    for r in _SA_RATES:
        t = []
        for ky in range(3):
            dy = (ky - 1) * r
            if abs(dy) > H - 1:
                continue
            for kx in range(3):
                dx = (kx - 1) * r
                if abs(dx) > W - 1:
                    continue
                t.append((dy, dx))
        taps.append(tuple(t))
    offs = [abs(d) for t in taps for dydx in t for d in dydx]
    pad = max(offs) if offs else 0
    return tuple(taps), pad


# ----------------------------------------------------------------------------
# the fused per-layer kernel: MHA + Modulator + norm1 residual + E_MLP + norm2
# residual (+ optional final decoder norm).  One grid step = one batch image.
# ----------------------------------------------------------------------------
def _layer_kernel(x_b_ref, res_b_ref, x_all_ref, res_all_ref, *args,
                  H, W, pad, taps, final):
    refs = dict(zip(_W_ORDER, args[:_NW]))
    out_ref = args[_NW]
    xpad = args[_NW + 1]          # (H+2p, W+2p, C)  f32 scratch: dilated-conv halo
    hpad = args[_NW + 2]          # (H+2,  W+2, FC)  f32 scratch: depthwise halo

    B, HW, C = x_all_ref.shape
    FC = refs["w1"].shape[-1]

    # ---------------- fused MultiheadAttention --------------------------------
    # batch_first=False on [B, HW, C]: sequence axis = B, batch axis = HW.
    # Q = res[b], K = res[:], V = x[:]   (SMA arg shuffle, see decoder loop).
    x_b = x_b_ref[0]                                               # (HW, C) f32 residual
    res_all = res_all_ref[...].reshape(B * HW, C).astype(jnp.bfloat16)
    x_all = x_all_ref[...].reshape(B * HW, C).astype(jnp.bfloat16)

    q = _mm(res_b_ref[0], refs["w_q"][...]) + refs["b_q"][...]     # 1/sqrt(hd) folded in
    k = _mm(res_all, refs["w_k"][...]) + refs["b_k"][...]          # (B*HW, C)
    v = _mm(x_all, refs["w_v"][...]) + refs["b_v"][...]            # (B*HW, C)

    hsum = refs["hsum"][...]       # (C, heads): per-head segment sum
    hbc = refs["hbc"][...]         # (heads, C): per-head broadcast
    s = [_mm(q * k[j * HW:(j + 1) * HW, :], hsum) for j in range(B)]   # (HW, heads)
    m = s[0]
    for j in range(1, B):
        m = jnp.maximum(m, s[j])
    e = [jnp.exp(sj - m) for sj in s]
    den = e[0]
    for j in range(1, B):
        den = den + e[j]
    inv = pl.reciprocal(den, approx=True)
    ctx = jnp.zeros((HW, C), jnp.float32)
    for j in range(B):
        ctx = ctx + _mm(e[j] * inv, hbc) * v[j * HW:(j + 1) * HW, :]
    msa = _mm(ctx, refs["w_o"][...]) + refs["b_o"][...]            # (HW, C) f32

    # ---------------- Modulator (NCHW permutes are identity in token layout) --
    # zero-padded halo for the dilated-conv taps, built in-kernel (no XLA pad)
    xpad[...] = jnp.zeros(xpad.shape, xpad.dtype)
    xpad[pad:pad + H, pad:pad + W, :] = msa.reshape(H, W, C)

    # PA: x * sigmoid(BN(PA_conv(x)))        (eval BN folded into pa_w)
    pa = msa * _sigmoid(_mm(msa, refs["pa_w"][...]))

    # CA: x * sigmoid(fc2(relu(fc1(avgpool(x)))))
    avg = jnp.mean(msa, axis=0, keepdims=True)                     # (1, C)
    gate = _sigmoid(_mm(jnp.maximum(_mm(avg, refs["ca_w1"][...]), 0.0),
                        refs["ca_w2"][...]))
    ca = msa * gate

    # SA: 4 dilated 3x3 convs -> ReLU -> BN(folded) -> concat -> shared 1x1.
    # Per rate the surviving shifted windows are stacked along the contraction
    # axis so each rate is a single MXU matmul (K = n_taps*C).
    relu_accs = []
    for ridx in range(len(_SA_RATES)):
        wins = []
        for (dy, dx) in taps[ridx]:
            if dy == 0 and dx == 0:
                wins.append(msa)
            else:
                wins.append(xpad[pad + dy:pad + dy + H,
                                 pad + dx:pad + dx + W, :].reshape(HW, C))
        lhs = wins[0] if len(wins) == 1 else jnp.concatenate(wins, axis=-1)
        acc = _mm(lhs, refs[f"sa_w_{ridx}"][...]) + refs["sa_b"][ridx]
        relu_accs.append(jnp.maximum(acc, 0.0))
    sa = _mm(jnp.concatenate(relu_accs, axis=-1), refs["sa_out_w"][...]) \
        + refs["sa_out_b"][...]

    # pa_ca = softmax(g1*pa + g2*ca, dim=-1 of NCHW (= W axis)): sublane (axis=1)
    # reduction on an (H, W, C) view keeps C lane-dense.
    z = (refs["g1"][...] * pa + refs["g2"][...] * ca).reshape(H, W, C)
    zm = jnp.max(z, axis=1, keepdims=True)
    ze = jnp.exp(z - zm)
    prob = ze * pl.reciprocal(jnp.sum(ze, axis=1, keepdims=True), approx=True)
    comb = (prob + (refs["g3"][...] * sa).reshape(H, W, C)).reshape(HW, C)

    # out = BN(output_conv(comb)) + bias + layer_scale*BN(x)
    attn = (_mm(comb, refs["out_w"][...]) + refs["out_b"][...]
            + refs["mod_bias"][...] + refs["mod_ls"][...] * msa)

    # ---------------- SMAFormerBlock: q = res + ls1 * LN(attention) -----------
    q_new = x_b + refs["ls1"][...] * _layernorm(attn, refs["n1_g"][...],
                                                refs["n1_b"][...])

    # ---------------- E_MLP ----------------------------------------------------
    h1 = _gelu(_mm(q_new, refs["w1"][...]) + refs["b1"][...])      # (HW, FC)

    # depthwise 3x3 (padding=1) from an in-kernel zero-padded scratch
    hpad[...] = jnp.zeros(hpad.shape, hpad.dtype)
    hpad[1:1 + H, 1:1 + W, :] = h1.reshape(H, W, FC)
    dw = jnp.zeros((HW, FC), jnp.float32) + refs["dw_b"][...]
    for ky in range(3):
        for kx in range(3):
            if ky == 1 and kx == 1:
                sub = h1
            else:
                sub = hpad[ky:ky + H, kx:kx + W, :].reshape(HW, FC)
            dw = dw + sub * refs["dw_w"][ky * 3 + kx]

    # pointwise 1x1 conv algebraically folded into linear2 (w2f, b2f)
    ff = _mm(dw, refs["w2f"][...]) + refs["b2f"][...]

    # ---------------- SMAFormerBlock residual 2 (+ fused decoder norm) --------
    out = q_new + refs["ls2"][...] * _layernorm(ff, refs["n2_g"][...],
                                                refs["n2_b"][...])
    if final:   # static flag: last layer also applies the DecoderBlock norm
        out = refs["fn_s"][...] * _layernorm(out, refs["fn_g"][...],
                                             refs["fn_b"][...])
    out_ref[0] = out


def fused_layer(x, res, wdict, *, H, W, taps, pad, final):
    B, HW, C = x.shape
    FC = wdict["w1"].shape[-1]
    weights = [wdict[k] for k in _W_ORDER]

    def full(a):
        nd = a.ndim
        return pl.BlockSpec(a.shape, lambda b, _n=nd: (0,) * _n)

    tok_b = pl.BlockSpec((1, HW, C), lambda b: (b, 0, 0))
    tok_all = pl.BlockSpec((B, HW, C), lambda b: (0, 0, 0))   # grid-invariant

    return pl.pallas_call(
        functools.partial(_layer_kernel, H=H, W=W, pad=pad, taps=taps, final=final),
        out_shape=jax.ShapeDtypeStruct((B, HW, C), jnp.float32),
        grid=(B,),
        in_specs=[tok_b, tok_b, tok_all, tok_all] + [full(a) for a in weights],
        out_specs=tok_b,
        scratch_shapes=[pltpu.VMEM((H + 2 * pad, W + 2 * pad, C), jnp.float32),
                        pltpu.VMEM((H + 2, W + 2, FC), jnp.float32)],
        compiler_params=pltpu.CompilerParams(dimension_semantics=("parallel",)),
    )(x, res, x, res, *weights)


# ----------------------------------------------------------------------------
# module forward pass
# ----------------------------------------------------------------------------
def decoder_block_forward(params, x, res, H, W):
    """x, res: [B, H*W, C] -> [B, H*W, C]   (DecoderBlock.forward, eval mode).

    DecoderBlock: x = layer(value=res, key=res, query=x, res=x) per layer; the
    fusion_gate=True path routes through SMA whose arg shuffle makes the MHA see
    Q = res, K = res, V = x.  The final LayerNorm/layer_scale is fused into the
    last layer's kernel (num_layers >= 1 assumed).
    """
    taps, pad = _surviving_taps(H, W)
    fn = {"fn_g": params["norm_g"], "fn_b": params["norm_b"],
          "fn_s": params["layer_scale"]}
    n_layers = len(params["layers"])
    for li, lp in enumerate(params["layers"]):
        x = fused_layer(x, res, {**lp, **fn}, H=H, W=W, taps=taps, pad=pad,
                        final=(li == n_layers - 1))
    return x


# ----------------------------------------------------------------------------
# deterministic parameter init (synthetic; shapes follow the PyTorch __init__).
# All folding / packing happens here, once:
#   * eval-mode BatchNorm2d scale folded into adjacent conv weights,
#   * 1/sqrt(head_dim) query scale folded into w_q/b_q,
#   * pointwise 1x1 conv folded into linear2 (w2f/b2f),
#   * dilated-conv weights packed per-rate over the taps surviving at (H, W),
#   * hsum/hbc per-head segment constants built once (exact in bf16).
# Matmul weights are stored in bf16 (MXU), elementwise params stay f32.
# ----------------------------------------------------------------------------
def init_params(key, C, heads, forward_expansion, num_layers, H, W):
    FC = forward_expansion * C
    C16 = max(C // 16, 1)
    hd = C // heads
    taps, _ = _surviving_taps(H, W)
    counter = [0]

    def nxt():
        counter[0] += 1
        return jax.random.fold_in(key, counter[0])

    def fw(shape, scale=0.1):                       # f32 (elementwise-path) params
        return jax.random.normal(nxt(), shape, jnp.float32) * scale

    def bw(shape, scale=0.1, fold=1.0):             # bf16 MXU weights (opt. folded)
        return (jax.random.normal(nxt(), shape, jnp.float32) * scale * fold
                ).astype(jnp.bfloat16)

    hsum = jnp.repeat(jnp.eye(heads, dtype=jnp.float32), hd, axis=0).astype(jnp.bfloat16)
    hbc = jnp.repeat(jnp.eye(heads, dtype=jnp.float32), hd, axis=1).astype(jnp.bfloat16)

    def layer_params():
        p = {
            # nn.MultiheadAttention (weights pre-transposed: y = x @ W + b)
            "w_q": bw((C, C), fold=1.0 / math.sqrt(hd)),
            "b_q": jnp.zeros((1, C), jnp.float32),
            "w_k": bw((C, C)), "b_k": jnp.zeros((1, C), jnp.float32),
            "w_v": bw((C, C)), "b_v": jnp.zeros((1, C), jnp.float32),
            "w_o": bw((C, C)), "b_o": jnp.zeros((1, C), jnp.float32),
            "hsum": hsum, "hbc": hbc,
            # Modulator(C, C)
            "pa_w": bw((C, C), fold=_BN_SCALE),             # PA_conv 1x1 (no bias) + PA_bn
            "ca_w1": bw((C, C16)), "ca_w2": bw((C16, C)),   # CA_fc (no bias)
            "sa_b": jnp.zeros((4, 1, C), jnp.float32),      # dilated-conv biases
            "sa_out_w": bw((4 * C, C), fold=_BN_SCALE),     # SA_out 1x1 (+ per-rate BN fold)
            "sa_out_b": jnp.zeros((1, C), jnp.float32),
            "out_w": bw((C, C), fold=_BN_SCALE),            # output_conv 1x1 + eval BN
            "out_b": jnp.zeros((1, C), jnp.float32),
            "mod_bias": jnp.zeros((1, C), jnp.float32),     # Modulator.bias
            "mod_ls": jnp.full((1, C), 0.1 * _BN_SCALE, jnp.float32),  # layer_scale*BN(x)
            "g1": jnp.full((1, C), 0.1, jnp.float32),       # gamma1..3 (scalars, broadcast)
            "g2": jnp.full((1, C), 0.1, jnp.float32),
            "g3": jnp.full((1, C), 0.1, jnp.float32),
            # SMAFormerBlock norm1/layer_scale1 + E_MLP linear1
            "n1_g": jnp.ones((1, C), jnp.float32), "n1_b": jnp.zeros((1, C), jnp.float32),
            "ls1": jnp.full((1, C), 0.1, jnp.float32),
            "w1": bw((C, FC)), "b1": fw((1, FC), 0.02),
            # E_MLP depthwise conv + norm2/layer_scale2
            "dw_w": fw((9, 1, FC)), "dw_b": fw((1, FC), 0.02),
            "n2_g": jnp.ones((1, C), jnp.float32), "n2_b": jnp.zeros((1, C), jnp.float32),
            "ls2": jnp.full((1, C), 0.1, jnp.float32),
        }
        # dilated 3x3 conv weights packed per rate over surviving taps only
        for ridx in range(len(_SA_RATES)):
            n_taps = len(taps[ridx])
            p[f"sa_w_{ridx}"] = bw((n_taps * C, C))
        # pointwise 1x1 conv folded into linear2: dw @ (pw_w @ w2) + (pw_b @ w2 + b2)
        pw_w = fw((FC, FC))
        pw_b = fw((1, FC), 0.02)
        w2 = fw((FC, C))
        b2 = fw((1, C), 0.02)
        p["w2f"] = (pw_w @ w2).astype(jnp.bfloat16)
        p["b2f"] = pw_b @ w2 + b2
        return p

    return {
        "layers": [layer_params() for _ in range(num_layers)],
        "norm_g": jnp.ones((1, C), jnp.float32),
        "norm_b": jnp.zeros((1, C), jnp.float32),
        "layer_scale": jnp.full((1, C), 0.1, jnp.float32),
    }


# ----------------------------------------------------------------------------
if __name__ == "__main__":
    B, H, W = 2, 8, 8           # 64 tokens per image
    C = 32                      # in_ch = out_ch = 32
    heads = 4
    forward_expansion = 2
    num_layers = 2              # fusion_gate = True path (SMA + Modulator) per layer

    key = jax.random.PRNGKey(0)
    kx, kr, kp = jax.random.split(key, 3)
    x = jax.random.normal(kx, (B, H * W, C), jnp.float32)
    res = jax.random.normal(kr, (B, H * W, C), jnp.float32)
    params = init_params(kp, C, heads, forward_expansion, num_layers, H, W)

    fwd = jax.jit(functools.partial(decoder_block_forward, H=H, W=W))
    out = jax.block_until_ready(fwd(params, x, res))

    assert out.shape == (B, H * W, C)
    assert bool(jnp.all(jnp.isfinite(out)))
    print("KERNEL_OK")
</pallas_src>

<mosaic_0001>
module attributes {stable_mosaic.version = 11 : i64} {
  func.func @_layer_kernel(%arg0: i32, %arg1: memref<1x64x32xf32, #tpu.memory_space<vmem>>, %arg2: memref<1x64x32xf32, #tpu.memory_space<vmem>>, %arg3: memref<2x64x32xf32, #tpu.memory_space<vmem>>, %arg4: memref<2x64x32xf32, #tpu.memory_space<vmem>>, %arg5: memref<32x32xbf16, #tpu.memory_space<vmem>>, %arg6: memref<1x32xf32, #tpu.memory_space<vmem>>, %arg7: memref<32x32xbf16, #tpu.memory_space<vmem>>, %arg8: memref<1x32xf32, #tpu.memory_space<vmem>>, %arg9: memref<32x32xbf16, #tpu.memory_space<vmem>>, %arg10: memref<1x32xf32, #tpu.memory_space<vmem>>, %arg11: memref<32x32xbf16, #tpu.memory_space<vmem>>, %arg12: memref<1x32xf32, #tpu.memory_space<vmem>>, %arg13: memref<32x4xbf16, #tpu.memory_space<vmem>>, %arg14: memref<4x32xbf16, #tpu.memory_space<vmem>>, %arg15: memref<32x32xbf16, #tpu.memory_space<vmem>>, %arg16: memref<32x2xbf16, #tpu.memory_space<vmem>>, %arg17: memref<2x32xbf16, #tpu.memory_space<vmem>>, %arg18: memref<288x32xbf16, #tpu.memory_space<vmem>>, %arg19: memref<288x32xbf16, #tpu.memory_space<vmem>>, %arg20: memref<32x32xbf16, #tpu.memory_space<vmem>>, %arg21: memref<32x32xbf16, #tpu.memory_space<vmem>>, %arg22: memref<4x1x32xf32, #tpu.memory_space<vmem>>, %arg23: memref<128x32xbf16, #tpu.memory_space<vmem>>, %arg24: memref<1x32xf32, #tpu.memory_space<vmem>>, %arg25: memref<32x32xbf16, #tpu.memory_space<vmem>>, %arg26: memref<1x32xf32, #tpu.memory_space<vmem>>, %arg27: memref<1x32xf32, #tpu.memory_space<vmem>>, %arg28: memref<1x32xf32, #tpu.memory_space<vmem>>, %arg29: memref<1x32xf32, #tpu.memory_space<vmem>>, %arg30: memref<1x32xf32, #tpu.memory_space<vmem>>, %arg31: memref<1x32xf32, #tpu.memory_space<vmem>>, %arg32: memref<1x32xf32, #tpu.memory_space<vmem>>, %arg33: memref<1x32xf32, #tpu.memory_space<vmem>>, %arg34: memref<1x32xf32, #tpu.memory_space<vmem>>, %arg35: memref<32x64xbf16, #tpu.memory_space<vmem>>, %arg36: memref<1x64xf32, #tpu.memory_space<vmem>>, %arg37: memref<9x1x64xf32, #tpu.memory_space<vmem>>, %arg38: memref<1x64xf32, #tpu.memory_space<vmem>>, %arg39: memref<64x32xbf16, #tpu.memory_space<vmem>>, %arg40: memref<1x32xf32, #tpu.memory_space<vmem>>, %arg41: memref<1x32xf32, #tpu.memory_space<vmem>>, %arg42: memref<1x32xf32, #tpu.memory_space<vmem>>, %arg43: memref<1x32xf32, #tpu.memory_space<vmem>>, %arg44: memref<1x32xf32, #tpu.memory_space<vmem>>, %arg45: memref<1x32xf32, #tpu.memory_space<vmem>>, %arg46: memref<1x32xf32, #tpu.memory_space<vmem>>, %arg47: memref<1x64x32xf32, #tpu.memory_space<vmem>>, %arg48: memref<20x20x32xf32, #tpu.memory_space<vmem>>, %arg49: memref<10x10x64xf32, #tpu.memory_space<vmem>>) attributes {dimension_semantics = [#tpu.dimension_semantics<parallel>], iteration_bounds = array<i64: 2>, scalar_prefetch = 0 : i64, scratch_operands = 2 : i64, tpu.core_type = #tpu.core_type<tc>, window_params = [{transform_indices = @transform_0, window_bounds = array<i64: 1, 64, 32>}, {transform_indices = @transform_1, window_bounds = array<i64: 1, 64, 32>}, {pipeline_mode = #tpu.pipeline_mode<synchronous>, transform_indices = @transform_2, window_bounds = array<i64: 2, 64, 32>}, {pipeline_mode = #tpu.pipeline_mode<synchronous>, transform_indices = @transform_3, window_bounds = array<i64: 2, 64, 32>}, {pipeline_mode = #tpu.pipeline_mode<synchronous>, transform_indices = @transform_4, window_bounds = array<i64: 32, 32>}, {pipeline_mode = #tpu.pipeline_mode<synchronous>, transform_indices = @transform_5, window_bounds = array<i64: 1, 32>}, {pipeline_mode = #tpu.pipeline_mode<synchronous>, transform_indices = @transform_6, window_bounds = array<i64: 32, 32>}, {pipeline_mode = #tpu.pipeline_mode<synchronous>, transform_indices = @transform_7, window_bounds = array<i64: 1, 32>}, {pipeline_mode = #tpu.pipeline_mode<synchronous>, transform_indices = @transform_8, window_bounds = array<i64: 32, 32>}, {pipeline_mode = #tpu.pipeline_mode<synchronous>, transform_indices = @transform_9, window_bounds = array<i64: 1, 32>}, {pipeline_mode = #tpu.pipeline_mode<synchronous>, transform_indices = @transform_10, window_bounds = array<i64: 32, 32>}, {pipeline_mode = #tpu.pipeline_mode<synchronous>, transform_indices = @transform_11, window_bounds = array<i64: 1, 32>}, {pipeline_mode = #tpu.pipeline_mode<synchronous>, transform_indices = @transform_12, window_bounds = array<i64: 32, 4>}, {pipeline_mode = #tpu.pipeline_mode<synchronous>, transform_indices = @transform_13, window_bounds = array<i64: 4, 32>}, {pipeline_mode = #tpu.pipeline_mode<synchronous>, transform_indices = @transform_14, window_bounds = array<i64: 32, 32>}, {pipeline_mode = #tpu.pipeline_mode<synchronous>, transform_indices = @transform_15, window_bounds = array<i64: 32, 2>}, {pipeline_mode = #tpu.pipeline_mode<synchronous>, transform_indices = @transform_16, window_bounds = array<i64: 2, 32>}, {pipeline_mode = #tpu.pipeline_mode<synchronous>, transform_indices = @transform_17, window_bounds = array<i64: 288, 32>}, {pipeline_mode = #tpu.pipeline_mode<synchronous>, transform_indices = @transform_18, window_bounds = array<i64: 288, 32>}, {pipeline_mode = #tpu.pipeline_mode<synchronous>, transform_indices = @transform_19, window_bounds = array<i64: 32, 32>}, {pipeline_mode = #tpu.pipeline_mode<synchronous>, transform_indices = @transform_20, window_bounds = array<i64: 32, 32>}, {pipeline_mode = #tpu.pipeline_mode<synchronous>, transform_indices = @transform_21, window_bounds = array<i64: 4, 1, 32>}, {pipeline_mode = #tpu.pipeline_mode<synchronous>, transform_indices = @transform_22, window_bounds = array<i64: 128, 32>}, {pipeline_mode = #tpu.pipeline_mode<synchronous>, transform_indices = @transform_23, window_bounds = array<i64: 1, 32>}, {pipeline_mode = #tpu.pipeline_mode<synchronous>, transform_indices = @transform_24, window_bounds = array<i64: 32, 32>}, {pipeline_mode = #tpu.pipeline_mode<synchronous>, transform_indices = @transform_25, window_bounds = array<i64: 1, 32>}, {pipeline_mode = #tpu.pipeline_mode<synchronous>, transform_indices = @transform_26, window_bounds = array<i64: 1, 32>}, {pipeline_mode = #tpu.pipeline_mode<synchronous>, transform_indices = @transform_27, window_bounds = array<i64: 1, 32>}, {pipeline_mode = #tpu.pipeline_mode<synchronous>, transform_indices = @transform_28, window_bounds = array<i64: 1, 32>}, {pipeline_mode = #tpu.pipeline_mode<synchronous>, transform_indices = @transform_29, window_bounds = array<i64: 1, 32>}, {pipeline_mode = #tpu.pipeline_mode<synchronous>, transform_indices = @transform_30, window_bounds = array<i64: 1, 32>}, {pipeline_mode = #tpu.pipeline_mode<synchronous>, transform_indices = @transform_31, window_bounds = array<i64: 1, 32>}, {pipeline_mode = #tpu.pipeline_mode<synchronous>, transform_indices = @transform_32, window_bounds = array<i64: 1, 32>}, {pipeline_mode = #tpu.pipeline_mode<synchronous>, transform_indices = @transform_33, window_bounds = array<i64: 1, 32>}, {pipeline_mode = #tpu.pipeline_mode<synchronous>, transform_indices = @transform_34, window_bounds = array<i64: 32, 64>}, {pipeline_mode = #tpu.pipeline_mode<synchronous>, transform_indices = @transform_35, window_bounds = array<i64: 1, 64>}, {pipeline_mode = #tpu.pipeline_mode<synchronous>, transform_indices = @transform_36, window_bounds = array<i64: 9, 1, 64>}, {pipeline_mode = #tpu.pipeline_mode<synchronous>, transform_indices = @transform_37, window_bounds = array<i64: 1, 64>}, {pipeline_mode = #tpu.pipeline_mode<synchronous>, transform_indices = @transform_38, window_bounds = array<i64: 64, 32>}, {pipeline_mode = #tpu.pipeline_mode<synchronous>, transform_indices = @transform_39, window_bounds = array<i64: 1, 32>}, {pipeline_mode = #tpu.pipeline_mode<synchronous>, transform_indices = @transform_40, window_bounds = array<i64: 1, 32>}, {pipeline_mode = #tpu.pipeline_mode<synchronous>, transform_indices = @transform_41, window_bounds = array<i64: 1, 32>}, {pipeline_mode = #tpu.pipeline_mode<synchronous>, transform_indices = @transform_42, window_bounds = array<i64: 1, 32>}, {pipeline_mode = #tpu.pipeline_mode<synchronous>, transform_indices = @transform_43, window_bounds = array<i64: 1, 32>}, {pipeline_mode = #tpu.pipeline_mode<synchronous>, transform_indices = @transform_44, window_bounds = array<i64: 1, 32>}, {pipeline_mode = #tpu.pipeline_mode<synchronous>, transform_indices = @transform_45, window_bounds = array<i64: 1, 32>}, {transform_indices = @transform_46, window_bounds = array<i64: 1, 64, 32>}]} {
    %c0 = arith.constant 0 : index
    %c0_0 = arith.constant 0 : index
    %c0_1 = arith.constant 0 : index
    %0 = vector.load %arg1[%c0, %c0_0, %c0_1] : memref<1x64x32xf32, #tpu.memory_space<vmem>>, vector<1x64x32xf32>
    %1 = vector.shape_cast %0 : vector<1x64x32xf32> to vector<64x32xf32>
    %c0_2 = arith.constant 0 : index
    %c0_3 = arith.constant 0 : index
    %c0_4 = arith.constant 0 : index
    %2 = vector.load %arg4[%c0_2, %c0_3, %c0_4] : memref<2x64x32xf32, #tpu.memory_space<vmem>>, vector<2x64x32xf32>
    %3 = vector.shape_cast %2 : vector<2x64x32xf32> to vector<128x32xf32>
    %4 = arith.truncf %3 : vector<128x32xf32> to vector<128x32xbf16>
    %c0_5 = arith.constant 0 : index
    %c0_6 = arith.constant 0 : index
    %c0_7 = arith.constant 0 : index
    %5 = vector.load %arg3[%c0_5, %c0_6, %c0_7] : memref<2x64x32xf32, #tpu.memory_space<vmem>>, vector<2x64x32xf32>
    %6 = vector.shape_cast %5 : vector<2x64x32xf32> to vector<128x32xf32>
    %7 = arith.truncf %6 : vector<128x32xf32> to vector<128x32xbf16>
    %c0_8 = arith.constant 0 : index
    %c0_9 = arith.constant 0 : index
    %c0_10 = arith.constant 0 : index
    %8 = vector.load %arg2[%c0_8, %c0_9, %c0_10] : memref<1x64x32xf32, #tpu.memory_space<vmem>>, vector<1x64x32xf32>
    %9 = vector.shape_cast %8 : vector<1x64x32xf32> to vector<64x32xf32>
    %c0_11 = arith.constant 0 : index
    %c0_12 = arith.constant 0 : index
    %10 = vector.load %arg5[%c0_11, %c0_12] : memref<32x32xbf16, #tpu.memory_space<vmem>>, vector<32x32xbf16>
    %11 = arith.truncf %9 : vector<64x32xf32> to vector<64x32xbf16>
    %cst = arith.constant dense<0.000000e+00> : vector<64x32xf32>
    %12 = tpu.matmul %11, %10, %cst {dimension_numbers = #tpu.dot_dimension_numbers<[1], [0], [0], [1], [0, 0, 1, 1], [], []>} : vector<64x32xbf16>, vector<32x32xbf16>, vector<64x32xf32> -> vector<64x32xf32>
    %c0_13 = arith.constant 0 : index
    %c0_14 = arith.constant 0 : index
    %13 = vector.load %arg6[%c0_13, %c0_14] : memref<1x32xf32, #tpu.memory_space<vmem>>, vector<1x32xf32>
    %14 = vector.broadcast %13 : vector<1x32xf32> to vector<64x32xf32>
    %15 = arith.addf %12, %14 : vector<64x32xf32>
    %c0_15 = arith.constant 0 : index
    %c0_16 = arith.constant 0 : index
    %16 = vector.load %arg7[%c0_15, %c0_16] : memref<32x32xbf16, #tpu.memory_space<vmem>>, vector<32x32xbf16>
    %cst_17 = arith.constant dense<0.000000e+00> : vector<128x32xf32>
    %17 = tpu.matmul %4, %16, %cst_17 {dimension_numbers = #tpu.dot_dimension_numbers<[1], [0], [0], [1], [0, 0, 1, 1], [], []>} : vector<128x32xbf16>, vector<32x32xbf16>, vector<128x32xf32> -> vector<128x32xf32>
    %c0_18 = arith.constant 0 : index
    %c0_19 = arith.constant 0 : index
    %18 = vector.load %arg8[%c0_18, %c0_19] : memref<1x32xf32, #tpu.memory_space<vmem>>, vector<1x32xf32>
    %19 = vector.broadcast %18 : vector<1x32xf32> to vector<128x32xf32>
    %20 = arith.addf %17, %19 : vector<128x32xf32>
    %c0_20 = arith.constant 0 : index
    %c0_21 = arith.constant 0 : index
    %21 = vector.load %arg9[%c0_20, %c0_21] : memref<32x32xbf16, #tpu.memory_space<vmem>>, vector<32x32xbf16>
    %cst_22 = arith.constant dense<0.000000e+00> : vector<128x32xf32>
    %22 = tpu.matmul %7, %21, %cst_22 {dimension_numbers = #tpu.dot_dimension_numbers<[1], [0], [0], [1], [0, 0, 1, 1], [], []>} : vector<128x32xbf16>, vector<32x32xbf16>, vector<128x32xf32> -> vector<128x32xf32>
    %c0_23 = arith.constant 0 : index
    %c0_24 = arith.constant 0 : index
    %23 = vector.load %arg10[%c0_23, %c0_24] : memref<1x32xf32, #tpu.memory_space<vmem>>, vector<1x32xf32>
    %24 = vector.broadcast %23 : vector<1x32xf32> to vector<128x32xf32>
    %25 = arith.addf %22, %24 : vector<128x32xf32>
    %c0_25 = arith.constant 0 : index
    %c0_26 = arith.constant 0 : index
    %26 = vector.load %arg13[%c0_25, %c0_26] : memref<32x4xbf16, #tpu.memory_space<vmem>>, vector<32x4xbf16>
    %c0_27 = arith.constant 0 : index
    %c0_28 = arith.constant 0 : index
    %27 = vector.load %arg14[%c0_27, %c0_28] : memref<4x32xbf16, #tpu.memory_space<vmem>>, vector<4x32xbf16>
    %28 = vector.extract_strided_slice %20 {offsets = [0, 0], sizes = [64, 32], strides = [1, 1]} : vector<128x32xf32> to vector<64x32xf32>
    %29 = arith.mulf %15, %28 : vector<64x32xf32>
    %30 = arith.truncf %29 : vector<64x32xf32> to vector<64x32xbf16>
    %cst_29 = arith.constant dense<0.000000e+00> : vector<64x4xf32>
    %31 = tpu.matmul %30, %26, %cst_29 {dimension_numbers = #tpu.dot_dimension_numbers<[1], [0], [0], [1], [0, 0, 1, 1], [], []>} : vector<64x32xbf16>, vector<32x4xbf16>, vector<64x4xf32> -> vector<64x4xf32>
    %32 = vector.extract_strided_slice %20 {offsets = [64, 0], sizes = [64, 32], strides = [1, 1]} : vector<128x32xf32> to vector<64x32xf32>
    %33 = arith.mulf %15, %32 : vector<64x32xf32>
    %34 = arith.truncf %33 : vector<64x32xf32> to vector<64x32xbf16>
    %cst_30 = arith.constant dense<0.000000e+00> : vector<64x4xf32>
    %35 = tpu.matmul %34, %26, %cst_30 {dimension_numbers = #tpu.dot_dimension_numbers<[1], [0], [0], [1], [0, 0, 1, 1], [], []>} : vector<64x32xbf16>, vector<32x4xbf16>, vector<64x4xf32> -> vector<64x4xf32>
    %36 = arith.maximumf %31, %35 : vector<64x4xf32>
    %37 = arith.subf %31, %36 : vector<64x4xf32>
    %38 = math.exp %37 : vector<64x4xf32>
    %39 = arith.subf %35, %36 : vector<64x4xf32>
    %40 = math.exp %39 : vector<64x4xf32>
    %41 = arith.addf %38, %40 : vector<64x4xf32>
    %42 = tpu.reciprocal %41 {approx = true} : vector<64x4xf32> -> vector<64x4xf32>
    %cst_31 = arith.constant 0.000000e+00 : f32
    %43 = vector.broadcast %cst_31 : f32 to vector<64x32xf32>
    %44 = arith.mulf %38, %42 : vector<64x4xf32>
    %45 = arith.truncf %44 : vector<64x4xf32> to vector<64x4xbf16>
    %cst_32 = arith.constant dense<0.000000e+00> : vector<64x32xf32>
    %46 = tpu.matmul %45, %27, %cst_32 {dimension_numbers = #tpu.dot_dimension_numbers<[1], [0], [0], [1], [0, 0, 1, 1], [], []>} : vector<64x4xbf16>, vector<4x32xbf16>, vector<64x32xf32> -> vector<64x32xf32>
    %47 = vector.extract_strided_slice %25 {offsets = [0, 0], sizes = [64, 32], strides = [1, 1]} : vector<128x32xf32> to vector<64x32xf32>
    %48 = arith.mulf %46, %47 : vector<64x32xf32>
    %49 = arith.addf %43, %48 : vector<64x32xf32>
    %50 = arith.mulf %40, %42 : vector<64x4xf32>
    %51 = arith.truncf %50 : vector<64x4xf32> to vector<64x4xbf16>
    %cst_33 = arith.constant dense<0.000000e+00> : vector<64x32xf32>
    %52 = tpu.matmul %51, %27, %cst_33 {dimension_numbers = #tpu.dot_dimension_numbers<[1], [0], [0], [1], [0, 0, 1, 1], [], []>} : vector<64x4xbf16>, vector<4x32xbf16>, vector<64x32xf32> -> vector<64x32xf32>
    %53 = vector.extract_strided_slice %25 {offsets = [64, 0], sizes = [64, 32], strides = [1, 1]} : vector<128x32xf32> to vector<64x32xf32>
    %54 = arith.mulf %52, %53 : vector<64x32xf32>
    %55 = arith.addf %49, %54 : vector<64x32xf32>
    %c0_34 = arith.constant 0 : index
    %c0_35 = arith.constant 0 : index
    %56 = vector.load %arg11[%c0_34, %c0_35] : memref<32x32xbf16, #tpu.memory_space<vmem>>, vector<32x32xbf16>
    %57 = arith.truncf %55 : vector<64x32xf32> to vector<64x32xbf16>
    %cst_36 = arith.constant dense<0.000000e+00> : vector<64x32xf32>
    %58 = tpu.matmul %57, %56, %cst_36 {dimension_numbers = #tpu.dot_dimension_numbers<[1], [0], [0], [1], [0, 0, 1, 1], [], []>} : vector<64x32xbf16>, vector<32x32xbf16>, vector<64x32xf32> -> vector<64x32xf32>
    %c0_37 = arith.constant 0 : index
    %c0_38 = arith.constant 0 : index
    %59 = vector.load %arg12[%c0_37, %c0_38] : memref<1x32xf32, #tpu.memory_space<vmem>>, vector<1x32xf32>
    %60 = vector.broadcast %59 : vector<1x32xf32> to vector<64x32xf32>
    %61 = arith.addf %58, %60 : vector<64x32xf32>
    %cst_39 = arith.constant 0.000000e+00 : f32
    %62 = vector.broadcast %cst_39 : f32 to vector<20x20x32xf32>
    %c0_40 = arith.constant 0 : index
    %c0_41 = arith.constant 0 : index
    %c0_42 = arith.constant 0 : index
    %63 = vector.load %arg48[%c0_40, %c0_41, %c0_42] : memref<20x20x32xf32, #tpu.memory_space<vmem>>, vector<20x20x32xf32>
    tpu.vector_store %arg48[%c0_40, %c0_41, %c0_42], %62 {strides = array<i32>} : memref<20x20x32xf32, #tpu.memory_space<vmem>>, vector<20x20x32xf32>,
    %64 = vector.shape_cast %61 : vector<64x32xf32> to vector<8x8x32xf32>
    %c6 = arith.constant 6 : index
    %c6_43 = arith.constant 6 : index
    %c0_44 = arith.constant 0 : index
    %65 = vector.load %arg48[%c6, %c6_43, %c0_44] : memref<20x20x32xf32, #tpu.memory_space<vmem>>, vector<8x8x32xf32>
    tpu.vector_store %arg48[%c6, %c6_43, %c0_44], %64 {strides = array<i32>} : memref<20x20x32xf32, #tpu.memory_space<vmem>>, vector<8x8x32xf32>,
    %c0_45 = arith.constant 0 : index
    %c0_46 = arith.constant 0 : index
    %66 = vector.load %arg15[%c0_45, %c0_46] : memref<32x32xbf16, #tpu.memory_space<vmem>>, vector<32x32xbf16>
    %67 = arith.truncf %61 : vector<64x32xf32> to vector<64x32xbf16>
    %cst_47 = arith.constant dense<0.000000e+00> : vector<64x32xf32>
    %68 = tpu.matmul %67, %66, %cst_47 {dimension_numbers = #tpu.dot_dimension_numbers<[1], [0], [0], [1], [0, 0, 1, 1], [], []>} : vector<64x32xbf16>, vector<32x32xbf16>, vector<64x32xf32> -> vector<64x32xf32>
    %cst_48 = arith.constant 0.000000e+00 : f32
    %69 = vector.broadcast %cst_48 : f32 to vector<64x32xf32>
    %70 = arith.subf %69, %68 : vector<64x32xf32>
    %71 = math.exp %70 : vector<64x32xf32>
    %cst_49 = arith.constant 1.000000e+00 : f32
    %72 = vector.broadcast %cst_49 : f32 to vector<64x32xf32>
    %73 = arith.addf %72, %71 : vector<64x32xf32>
    %74 = tpu.reciprocal %73 {approx = true} : vector<64x32xf32> -> vector<64x32xf32>
    %75 = arith.mulf %61, %74 : vector<64x32xf32>
    %cst_50 = arith.constant dense<0.000000e+00> : vector<32xf32>
    %76 = vector.multi_reduction <add>, %61, %cst_50 [0] : vector<64x32xf32> to vector<32xf32>
    %77 = vector.shape_cast %76 : vector<32xf32> to vector<1x32xf32>
    %cst_51 = arith.constant 6.400000e+01 : f32
    %78 = vector.broadcast %cst_51 : f32 to vector<1x32xf32>
    %79 = arith.divf %77, %78 : vector<1x32xf32>
    %c0_52 = arith.constant 0 : index
    %c0_53 = arith.constant 0 : index
    %80 = vector.load %arg16[%c0_52, %c0_53] : memref<32x2xbf16, #tpu.memory_space<vmem>>, vector<32x2xbf16>
    %81 = arith.truncf %79 : vector<1x32xf32> to vector<1x32xbf16>
    %cst_54 = arith.constant dense<0.000000e+00> : vector<1x2xf32>
    %82 = tpu.matmul %81, %80, %cst_54 {dimension_numbers = #tpu.dot_dimension_numbers<[1], [0], [0], [1], [0, 0, 1, 1], [], []>} : vector<1x32xbf16>, vector<32x2xbf16>, vector<1x2xf32> -> vector<1x2xf32>
    %cst_55 = arith.constant 0.000000e+00 : f32
    %83 = vector.broadcast %cst_55 : f32 to vector<1x2xf32>
    %84 = arith.maximumf %82, %83 : vector<1x2xf32>
    %c0_56 = arith.constant 0 : index
    %c0_57 = arith.constant 0 : index
    %85 = vector.load %arg17[%c0_56, %c0_57] : memref<2x32xbf16, #tpu.memory_space<vmem>>, vector<2x32xbf16>
    %86 = arith.truncf %84 : vector<1x2xf32> to vector<1x2xbf16>
    %cst_58 = arith.constant dense<0.000000e+00> : vector<1x32xf32>
    %87 = tpu.matmul %86, %85, %cst_58 {dimension_numbers = #tpu.dot_dimension_numbers<[1], [0], [0], [1], [0, 0, 1, 1], [], []>} : vector<1x2xbf16>, vector<2x32xbf16>, vector<1x32xf32> -> vector<1x32xf32>
    %cst_59 = arith.constant 0.000000e+00 : f32
    %88 = vector.broadcast %cst_59 : f32 to vector<1x32xf32>
    %89 = arith.subf %88, %87 : vector<1x32xf32>
    %90 = math.exp %89 : vector<1x32xf32>
    %cst_60 = arith.constant 1.000000e+00 : f32
    %91 = vector.broadcast %cst_60 : f32 to vector<1x32xf32>
    %92 = arith.addf %91, %90 : vector<1x32xf32>
    %93 = tpu.reciprocal %92 {approx = true} : vector<1x32xf32> -> vector<1x32xf32>
    %94 = vector.broadcast %93 : vector<1x32xf32> to vector<64x32xf32>
    %95 = arith.mulf %61, %94 : vector<64x32xf32>
    %c5 = arith.constant 5 : index
    %c5_61 = arith.constant 5 : index
    %c0_62 = arith.constant 0 : index
    %96 = vector.load %arg48[%c5, %c5_61, %c0_62] : memref<20x20x32xf32, #tpu.memory_space<vmem>>, vector<8x8x32xf32>
    %97 = vector.shape_cast %96 : vector<8x8x32xf32> to vector<64x32xf32>
    %c5_63 = arith.constant 5 : index
    %c6_64 = arith.constant 6 : index
    %c0_65 = arith.constant 0 : index
    %98 = vector.load %arg48[%c5_63, %c6_64, %c0_65] : memref<20x20x32xf32, #tpu.memory_space<vmem>>, vector<8x8x32xf32>
    %99 = vector.shape_cast %98 : vector<8x8x32xf32> to vector<64x32xf32>
    %c5_66 = arith.constant 5 : index
    %c7 = arith.constant 7 : index
    %c0_67 = arith.constant 0 : index
    %100 = vector.load %arg48[%c5_66, %c7, %c0_67] : memref<20x20x32xf32, #tpu.memory_space<vmem>>, vector<8x8x32xf32>
    %101 = vector.shape_cast %100 : vector<8x8x32xf32> to vector<64x32xf32>
    %c6_68 = arith.constant 6 : index
    %c5_69 = arith.constant 5 : index
    %c0_70 = arith.constant 0 : index
    %102 = vector.load %arg48[%c6_68, %c5_69, %c0_70] : memref<20x20x32xf32, #tpu.memory_space<vmem>>, vector<8x8x32xf32>
    %103 = vector.shape_cast %102 : vector<8x8x32xf32> to vector<64x32xf32>
    %c6_71 = arith.constant 6 : index
    %c7_72 = arith.constant 7 : index
    %c0_73 = arith.constant 0 : index
    %104 = vector.load %arg48[%c6_71, %c7_72, %c0_73] : memref<20x20x32xf32, #tpu.memory_space<vmem>>, vector<8x8x32xf32>
    %105 = vector.shape_cast %104 : vector<8x8x32xf32> to vector<64x32xf32>
    %c7_74 = arith.constant 7 : index
    %c5_75 = arith.constant 5 : index
    %c0_76 = arith.constant 0 : index
    %106 = vector.load %arg48[%c7_74, %c5_75, %c0_76] : memref<20x20x32xf32, #tpu.memory_space<vmem>>, vector<8x8x32xf32>
    %107 = vector.shape_cast %106 : vector<8x8x32xf32> to vector<64x32xf32>
    %c7_77 = arith.constant 7 : index
    %c6_78 = arith.constant 6 : index
    %c0_79 = arith.constant 0 : index
    %108 = vector.load %arg48[%c7_77, %c6_78, %c0_79] : memref<20x20x32xf32, #tpu.memory_space<vmem>>, vector<8x8x32xf32>
    %109 = vector.shape_cast %108 : vector<8x8x32xf32> to vector<64x32xf32>
    %c7_80 = arith.constant 7 : index
    %c7_81 = arith.constant 7 : index
    %c0_82 = arith.constant 0 : index
    %110 = vector.load %arg48[%c7_80, %c7_81, %c0_82] : memref<20x20x32xf32, #tpu.memory_space<vmem>>, vector<8x8x32xf32>
    %111 = vector.shape_cast %110 : vector<8x8x32xf32> to vector<64x32xf32>
    %112 = tpu.concatenate %97, %99, %101, %103, %61, %105, %107, %109, %111 in 1 : vector<64x32xf32>, vector<64x32xf32>, vector<64x32xf32>, vector<64x32xf32>, vector<64x32xf32>, vector<64x32xf32>, vector<64x32xf32>, vector<64x32xf32>, vector<64x32xf32> -> vector<64x288xf32>
    %c0_83 = arith.constant 0 : index
    %c0_84 = arith.constant 0 : index
    %113 = vector.load %arg18[%c0_83, %c0_84] : memref<288x32xbf16, #tpu.memory_space<vmem>>, vector<288x32xbf16>
    %114 = arith.truncf %112 : vector<64x288xf32> to vector<64x288xbf16>
    %cst_85 = arith.constant dense<0.000000e+00> : vector<64x32xf32>
    %115 = tpu.matmul %114, %113, %cst_85 {dimension_numbers = #tpu.dot_dimension_numbers<[1], [0], [0], [1], [0, 0, 1, 1], [], []>} : vector<64x288xbf16>, vector<288x32xbf16>, vector<64x32xf32> -> vector<64x32xf32>
    %c0_86 = arith.constant 0 : index
    %c0_87 = arith.constant 0 : index
    %c0_88 = arith.constant 0 : index
    %116 = vector.load %arg22[%c0_86, %c0_87, %c0_88] : memref<4x1x32xf32, #tpu.memory_space<vmem>>, vector<1x1x32xf32>
    %117 = vector.shape_cast %116 : vector<1x1x32xf32> to vector<1x32xf32>
    %118 = vector.broadcast %117 : vector<1x32xf32> to vector<64x32xf32>
    %119 = arith.addf %115, %118 : vector<64x32xf32>
    %cst_89 = arith.constant 0.000000e+00 : f32
    %120 = vector.broadcast %cst_89 : f32 to vector<64x32xf32>
    %121 = arith.maximumf %119, %120 : vector<64x32xf32>
    %c0_90 = arith.constant 0 : index
    %c0_91 = arith.constant 0 : index
    %c0_92 = arith.constant 0 : index
    %122 = vector.load %arg48[%c0_90, %c0_91, %c0_92] : memref<20x20x32xf32, #tpu.memory_space<vmem>>, vector<8x8x32xf32>
    %123 = vector.shape_cast %122 : vector<8x8x32xf32> to vector<64x32xf32>
    %c0_93 = arith.constant 0 : index
    %c6_94 = arith.constant 6 : index
    %c0_95 = arith.constant 0 : index
    %124 = vector.load %arg48[%c0_93, %c6_94, %c0_95] : memref<20x20x32xf32, #tpu.memory_space<vmem>>, vector<8x8x32xf32>
    %125 = vector.shape_cast %124 : vector<8x8x32xf32> to vector<64x32xf32>
    %c0_96 = arith.constant 0 : index
    %c12 = arith.constant 12 : index
    %c0_97 = arith.constant 0 : index
    %126 = vector.load %arg48[%c0_96, %c12, %c0_97] : memref<20x20x32xf32, #tpu.memory_space<vmem>>, vector<8x8x32xf32>
    %127 = vector.shape_cast %126 : vector<8x8x32xf32> to vector<64x32xf32>
    %c6_98 = arith.constant 6 : index
    %c0_99 = arith.constant 0 : index
    %c0_100 = arith.constant 0 : index
    %128 = vector.load %arg48[%c6_98, %c0_99, %c0_100] : memref<20x20x32xf32, #tpu.memory_space<vmem>>, vector<8x8x32xf32>
    %129 = vector.shape_cast %128 : vector<8x8x32xf32> to vector<64x32xf32>
    %c6_101 = arith.constant 6 : index
    %c12_102 = arith.constant 12 : index
    %c0_103 = arith.constant 0 : index
    %130 = vector.load %arg48[%c6_101, %c12_102, %c0_103] : memref<20x20x32xf32, #tpu.memory_space<vmem>>, vector<8x8x32xf32>
    %131 = vector.shape_cast %130 : vector<8x8x32xf32> to vector<64x32xf32>
    %c12_104 = arith.constant 12 : index
    %c0_105 = arith.constant 0 : index
    %c0_106 = arith.constant 0 : index
    %132 = vector.load %arg48[%c12_104, %c0_105, %c0_106] : memref<20x20x32xf32, #tpu.memory_space<vmem>>, vector<8x8x32xf32>
    %133 = vector.shape_cast %132 : vector<8x8x32xf32> to vector<64x32xf32>
    %c12_107 = arith.constant 12 : index
    %c6_108 = arith.constant 6 : index
    %c0_109 = arith.constant 0 : index
    %134 = vector.load %arg48[%c12_107, %c6_108, %c0_109] : memref<20x20x32xf32, #tpu.memory_space<vmem>>, vector<8x8x32xf32>
    %135 = vector.shape_cast %134 : vector<8x8x32xf32> to vector<64x32xf32>
    %c12_110 = arith.constant 12 : index
    %c12_111 = arith.constant 12 : index
    %c0_112 = arith.constant 0 : index
    %136 = vector.load %arg48[%c12_110, %c12_111, %c0_112] : memref<20x20x32xf32, #tpu.memory_space<vmem>>, vector<8x8x32xf32>
    %137 = vector.shape_cast %136 : vector<8x8x32xf32> to vector<64x32xf32>
    %138 = tpu.concatenate %123, %125, %127, %129, %61, %131, %133, %135, %137 in 1 : vector<64x32xf32>, vector<64x32xf32>, vector<64x32xf32>, vector<64x32xf32>, vector<64x32xf32>, vector<64x32xf32>, vector<64x32xf32>, vector<64x32xf32>, vector<64x32xf32> -> vector<64x288xf32>
    %c0_113 = arith.constant 0 : index
    %c0_114 = arith.constant 0 : index
    %139 = vector.load %arg19[%c0_113, %c0_114] : memref<288x32xbf16, #tpu.memory_space<vmem>>, vector<288x32xbf16>
    %140 = arith.truncf %138 : vector<64x288xf32> to vector<64x288xbf16>
    %cst_115 = arith.constant dense<0.000000e+00> : vector<64x32xf32>
    %141 = tpu.matmul %140, %139, %cst_115 {dimension_numbers = #tpu.dot_dimension_numbers<[1], [0], [0], [1], [0, 0, 1, 1], [], []>} : vector<64x288xbf16>, vector<288x32xbf16>, vector<64x32xf32> -> vector<64x32xf32>
    %c1 = arith.constant 1 : index
    %c0_116 = arith.constant 0 : index
    %c0_117 = arith.constant 0 : index
    %142 = vector.load %arg22[%c1, %c0_116, %c0_117] : memref<4x1x32xf32, #tpu.memory_space<vmem>>, vector<1x1x32xf32>
    %143 = vector.shape_cast %142 : vector<1x1x32xf32> to vector<1x32xf32>
    %144 = vector.broadcast %143 : vector<1x32xf32> to vector<64x32xf32>
    %145 = arith.addf %141, %144 : vector<64x32xf32>
    %cst_118 = arith.constant 0.000000e+00 : f32
    %146 = vector.broadcast %cst_118 : f32 to vector<64x32xf32>
    %147 = arith.maximumf %145, %146 : vector<64x32xf32>
    %c0_119 = arith.constant 0 : index
    %c0_120 = arith.constant 0 : index
    %148 = vector.load %arg20[%c0_119, %c0_120] : memref<32x32xbf16, #tpu.memory_space<vmem>>, vector<32x32xbf16>
    %149 = arith.truncf %61 : vector<64x32xf32> to vector<64x32xbf16>
    %cst_121 = arith.constant dense<0.000000e+00> : vector<64x32xf32>
    %150 = tpu.matmul %149, %148, %cst_121 {dimension_numbers = #tpu.dot_dimension_numbers<[1], [0], [0], [1], [0, 0, 1, 1], [], []>} : vector<64x32xbf16>, vector<32x32xbf16>, vector<64x32xf32> -> vector<64x32xf32>
    %c2 = arith.constant 2 : index
    %c0_122 = arith.constant 0 : index
    %c0_123 = arith.constant 0 : index
    %151 = vector.load %arg22[%c2, %c0_122, %c0_123] : memref<4x1x32xf32, #tpu.memory_space<vmem>>, vector<1x1x32xf32>
    %152 = vector.shape_cast %151 : vector<1x1x32xf32> to vector<1x32xf32>
    %153 = vector.broadcast %152 : vector<1x32xf32> to vector<64x32xf32>
    %154 = arith.addf %150, %153 : vector<64x32xf32>
    %cst_124 = arith.constant 0.000000e+00 : f32
    %155 = vector.broadcast %cst_124 : f32 to vector<64x32xf32>
    %156 = arith.maximumf %154, %155 : vector<64x32xf32>
    %c0_125 = arith.constant 0 : index
    %c0_126 = arith.constant 0 : index
    %157 = vector.load %arg21[%c0_125, %c0_126] : memref<32x32xbf16, #tpu.memory_space<vmem>>, vector<32x32xbf16>
    %158 = arith.truncf %61 : vector<64x32xf32> to vector<64x32xbf16>
    %cst_127 = arith.constant dense<0.000000e+00> : vector<64x32xf32>
    %159 = tpu.matmul %158, %157, %cst_127 {dimension_numbers = #tpu.dot_dimension_numbers<[1], [0], [0], [1], [0, 0, 1, 1], [], []>} : vector<64x32xbf16>, vector<32x32xbf16>, vector<64x32xf32> -> vector<64x32xf32>
    %c3 = arith.constant 3 : index
    %c0_128 = arith.constant 0 : index
    %c0_129 = arith.constant 0 : index
    %160 = vector.load %arg22[%c3, %c0_128, %c0_129] : memref<4x1x32xf32, #tpu.memory_space<vmem>>, vector<1x1x32xf32>
    %161 = vector.shape_cast %160 : vector<1x1x32xf32> to vector<1x32xf32>
    %162 = vector.broadcast %161 : vector<1x32xf32> to vector<64x32xf32>
    %163 = arith.addf %159, %162 : vector<64x32xf32>
    %cst_130 = arith.constant 0.000000e+00 : f32
    %164 = vector.broadcast %cst_130 : f32 to vector<64x32xf32>
    %165 = arith.maximumf %163, %164 : vector<64x32xf32>
    %166 = tpu.concatenate %121, %147, %156, %165 in 1 : vector<64x32xf32>, vector<64x32xf32>, vector<64x32xf32>, vector<64x32xf32> -> vector<64x128xf32>
    %c0_131 = arith.constant 0 : index
    %c0_132 = arith.constant 0 : index
    %167 = vector.load %arg23[%c0_131, %c0_132] : memref<128x32xbf16, #tpu.memory_space<vmem>>, vector<128x32xbf16>
    %168 = arith.truncf %166 : vector<64x128xf32> to vector<64x128xbf16>
    %cst_133 = arith.constant dense<0.000000e+00> : vector<64x32xf32>
    %169 = tpu.matmul %168, %167, %cst_133 {dimension_numbers = #tpu.dot_dimension_numbers<[1], [0], [0], [1], [0, 0, 1, 1], [], []>} : vector<64x128xbf16>, vector<128x32xbf16>, vector<64x32xf32> -> vector<64x32xf32>
    %c0_134 = arith.constant 0 : index
    %c0_135 = arith.constant 0 : index
    %170 = vector.load %arg24[%c0_134, %c0_135] : memref<1x32xf32, #tpu.memory_space<vmem>>, vector<1x32xf32>
    %171 = vector.broadcast %170 : vector<1x32xf32> to vector<64x32xf32>
    %172 = arith.addf %169, %171 : vector<64x32xf32>
    %c0_136 = arith.constant 0 : index
    %c0_137 = arith.constant 0 : index
    %173 = vector.load %arg29[%c0_136, %c0_137] : memref<1x32xf32, #tpu.memory_space<vmem>>, vector<1x32xf32>
    %174 = vector.broadcast %173 : vector<1x32xf32> to vector<64x32xf32>
    %175 = arith.mulf %174, %75 : vector<64x32xf32>
    %c0_138 = arith.constant 0 : index
    %c0_139 = arith.constant 0 : index
    %176 = vector.load %arg30[%c0_138, %c0_139] : memref<1x32xf32, #tpu.memory_space<vmem>>, vector<1x32xf32>
    %177 = vector.broadcast %176 : vector<1x32xf32> to vector<64x32xf32>
    %178 = arith.mulf %177, %95 : vector<64x32xf32>
    %179 = arith.addf %175, %178 : vector<64x32xf32>
    %180 = vector.shape_cast %179 : vector<64x32xf32> to vector<8x8x32xf32>
    %cst_140 = arith.constant dense<0xFF800000> : vector<8x32xf32>
    %181 = vector.multi_reduction <maximumf>, %180, %cst_140 [1] : vector<8x8x32xf32> to vector<8x32xf32>
    %182 = vector.shape_cast %181 : vector<8x32xf32> to vector<8x1x32xf32>
    %183 = vector.broadcast %182 : vector<8x1x32xf32> to vector<8x8x32xf32>
    %184 = arith.subf %180, %183 : vector<8x8x32xf32>
    %185 = math.exp %184 : vector<8x8x32xf32>
    %cst_141 = arith.constant dense<0.000000e+00> : vector<8x32xf32>
    %186 = vector.multi_reduction <add>, %185, %cst_141 [1] : vector<8x8x32xf32> to vector<8x32xf32>
    %187 = vector.shape_cast %186 : vector<8x32xf32> to vector<8x1x32xf32>
    %188 = tpu.reciprocal %187 {approx = true} : vector<8x1x32xf32> -> vector<8x1x32xf32>
    %189 = vector.broadcast %188 : vector<8x1x32xf32> to vector<8x8x32xf32>
    %190 = arith.mulf %185, %189 : vector<8x8x32xf32>
    %c0_142 = arith.constant 0 : index
    %c0_143 = arith.constant 0 : index
    %191 = vector.load %arg31[%c0_142, %c0_143] : memref<1x32xf32, #tpu.memory_space<vmem>>, vector<1x32xf32>
    %192 = vector.broadcast %191 : vector<1x32xf32> to vector<64x32xf32>
    %193 = arith.mulf %192, %172 : vector<64x32xf32>
    %194 = vector.shape_cast %193 : vector<64x32xf32> to vector<8x8x32xf32>
    %195 = arith.addf %190, %194 : vector<8x8x32xf32>
    %196 = vector.shape_cast %195 : vector<8x8x32xf32> to vector<64x32xf32>
    %c0_144 = arith.constant 0 : index
    %c0_145 = arith.constant 0 : index
    %197 = vector.load %arg25[%c0_144, %c0_145] : memref<32x32xbf16, #tpu.memory_space<vmem>>, vector<32x32xbf16>
    %198 = arith.truncf %196 : vector<64x32xf32> to vector<64x32xbf16>
    %cst_146 = arith.constant dense<0.000000e+00> : vector<64x32xf32>
    %199 = tpu.matmul %198, %197, %cst_146 {dimension_numbers = #tpu.dot_dimension_numbers<[1], [0], [0], [1], [0, 0, 1, 1], [], []>} : vector<64x32xbf16>, vector<32x32xbf16>, vector<64x32xf32> -> vector<64x32xf32>
    %c0_147 = arith.constant 0 : index
    %c0_148 = arith.constant 0 : index
    %200 = vector.load %arg26[%c0_147, %c0_148] : memref<1x32xf32, #tpu.memory_space<vmem>>, vector<1x32xf32>
    %201 = vector.broadcast %200 : vector<1x32xf32> to vector<64x32xf32>
    %202 = arith.addf %199, %201 : vector<64x32xf32>
    %c0_149 = arith.constant 0 : index
    %c0_150 = arith.constant 0 : index
    %203 = vector.load %arg27[%c0_149, %c0_150] : memref<1x32xf32, #tpu.memory_space<vmem>>, vector<1x32xf32>
    %204 = vector.broadcast %203 : vector<1x32xf32> to vector<64x32xf32>
    %205 = arith.addf %202, %204 : vector<64x32xf32>
    %c0_151 = arith.constant 0 : index
    %c0_152 = arith.constant 0 : index
    %206 = vector.load %arg28[%c0_151, %c0_152] : memref<1x32xf32, #tpu.memory_space<vmem>>, vector<1x32xf32>
    %207 = vector.broadcast %206 : vector<1x32xf32> to vector<64x32xf32>
    %208 = arith.mulf %207, %61 : vector<64x32xf32>
    %209 = arith.addf %205, %208 : vector<64x32xf32>
    %c0_153 = arith.constant 0 : index
    %c0_154 = arith.constant 0 : index
    %210 = vector.load %arg34[%c0_153, %c0_154] : memref<1x32xf32, #tpu.memory_space<vmem>>, vector<1x32xf32>
    %c0_155 = arith.constant 0 : index
    %c0_156 = arith.constant 0 : index
    %211 = vector.load %arg32[%c0_155, %c0_156] : memref<1x32xf32, #tpu.memory_space<vmem>>, vector<1x32xf32>
    %c0_157 = arith.constant 0 : index
    %c0_158 = arith.constant 0 : index
    %212 = vector.load %arg33[%c0_157, %c0_158] : memref<1x32xf32, #tpu.memory_space<vmem>>, vector<1x32xf32>
    %cst_159 = arith.constant dense<0.000000e+00> : vector<64xf32>
    %213 = vector.multi_reduction <add>, %209, %cst_159 [1] : vector<64x32xf32> to vector<64xf32>
    %214 = vector.shape_cast %213 : vector<64xf32> to vector<64x1xf32>
    %cst_160 = arith.constant 3.200000e+01 : f32
    %215 = vector.broadcast %cst_160 : f32 to vector<64x1xf32>
    %216 = arith.divf %214, %215 : vector<64x1xf32>
    %217 = vector.broadcast %216 : vector<64x1xf32> to vector<64x32xf32>
    %218 = arith.subf %209, %217 : vector<64x32xf32>
    %219 = arith.mulf %218, %218 : vector<64x32xf32>
    %cst_161 = arith.constant dense<0.000000e+00> : vector<64xf32>
    %220 = vector.multi_reduction <add>, %219, %cst_161 [1] : vector<64x32xf32> to vector<64xf32>
    %221 = vector.shape_cast %220 : vector<64xf32> to vector<64x1xf32>
    %cst_162 = arith.constant 3.200000e+01 : f32
    %222 = vector.broadcast %cst_162 : f32 to vector<64x1xf32>
    %223 = arith.divf %221, %222 : vector<64x1xf32>
    %224 = vector.broadcast %216 : vector<64x1xf32> to vector<64x32xf32>
    %225 = arith.subf %209, %224 : vector<64x32xf32>
    %cst_163 = arith.constant 9.99999974E-6 : f32
    %226 = vector.broadcast %cst_163 : f32 to vector<64x1xf32>
    %227 = arith.addf %223, %226 : vector<64x1xf32>
    %228 = math.rsqrt %227 : vector<64x1xf32>
    %229 = vector.broadcast %228 : vector<64x1xf32> to vector<64x32xf32>
    %230 = arith.mulf %225, %229 : vector<64x32xf32>
    %231 = vector.broadcast %211 : vector<1x32xf32> to vector<64x32xf32>
    %232 = arith.mulf %230, %231 : vector<64x32xf32>
    %233 = vector.broadcast %212 : vector<1x32xf32> to vector<64x32xf32>
    %234 = arith.addf %232, %233 : vector<64x32xf32>
    %235 = vector.broadcast %210 : vector<1x32xf32> to vector<64x32xf32>
    %236 = arith.mulf %235, %234 : vector<64x32xf32>
    %237 = arith.addf %1, %236 : vector<64x32xf32>
    %c0_164 = arith.constant 0 : index
    %c0_165 = arith.constant 0 : index
    %238 = vector.load %arg35[%c0_164, %c0_165] : memref<32x64xbf16, #tpu.memory_space<vmem>>, vector<32x64xbf16>
    %239 = arith.truncf %237 : vector<64x32xf32> to vector<64x32xbf16>
    %cst_166 = arith.constant dense<0.000000e+00> : vector<64x64xf32>
    %240 = tpu.matmul %239, %238, %cst_166 {dimension_numbers = #tpu.dot_dimension_numbers<[1], [0], [0], [1], [0, 0, 1, 1], [], []>} : vector<64x32xbf16>, vector<32x64xbf16>, vector<64x64xf32> -> vector<64x64xf32>
    %c0_167 = arith.constant 0 : index
    %c0_168 = arith.constant 0 : index
    %241 = vector.load %arg36[%c0_167, %c0_168] : memref<1x64xf32, #tpu.memory_space<vmem>>, vector<1x64xf32>
    %242 = vector.broadcast %241 : vector<1x64xf32> to vector<64x64xf32>
    %243 = arith.addf %240, %242 : vector<64x64xf32>
    %cst_169 = arith.constant 5.000000e-01 : f32
    %244 = vector.broadcast %cst_169 : f32 to vector<64x64xf32>
    %245 = arith.mulf %244, %243 : vector<64x64xf32>
    %cst_170 = arith.constant 4.471500e-02 : f32
    %246 = vector.broadcast %cst_170 : f32 to vector<64x64xf32>
    %247 = arith.mulf %246, %243 : vector<64x64xf32>
    %248 = arith.mulf %247, %243 : vector<64x64xf32>
    %249 = arith.mulf %248, %243 : vector<64x64xf32>
    %250 = arith.addf %243, %249 : vector<64x64xf32>
    %cst_171 = arith.constant 0.797884583 : f32
    %251 = vector.broadcast %cst_171 : f32 to vector<64x64xf32>
    %252 = arith.mulf %251, %250 : vector<64x64xf32>
    %253 = math.tanh %252 : vector<64x64xf32>
    %cst_172 = arith.constant 1.000000e+00 : f32
    %254 = vector.broadcast %cst_172 : f32 to vector<64x64xf32>
    %255 = arith.addf %254, %253 : vector<64x64xf32>
    %256 = arith.mulf %245, %255 : vector<64x64xf32>
    %cst_173 = arith.constant 0.000000e+00 : f32
    %257 = vector.broadcast %cst_173 : f32 to vector<10x10x64xf32>
    %c0_174 = arith.constant 0 : index
    %c0_175 = arith.constant 0 : index
    %c0_176 = arith.constant 0 : index
    %258 = vector.load %arg49[%c0_174, %c0_175, %c0_176] : memref<10x10x64xf32, #tpu.memory_space<vmem>>, vector<10x10x64xf32>
    tpu.vector_store %arg49[%c0_174, %c0_175, %c0_176], %257 {strides = array<i32>} : memref<10x10x64xf32, #tpu.memory_space<vmem>>, vector<10x10x64xf32>,
    %259 = vector.shape_cast %256 : vector<64x64xf32> to vector<8x8x64xf32>
    %c1_177 = arith.constant 1 : index
    %c1_178 = arith.constant 1 : index
    %c0_179 = arith.constant 0 : index
    %260 = vector.load %arg49[%c1_177, %c1_178, %c0_179] : memref<10x10x64xf32, #tpu.memory_space<vmem>>, vector<8x8x64xf32>
    tpu.vector_store %arg49[%c1_177, %c1_178, %c0_179], %259 {strides = array<i32>} : memref<10x10x64xf32, #tpu.memory_space<vmem>>, vector<8x8x64xf32>,
    %cst_180 = arith.constant 0.000000e+00 : f32
    %261 = vector.broadcast %cst_180 : f32 to vector<64x64xf32>
    %c0_181 = arith.constant 0 : index
    %c0_182 = arith.constant 0 : index
    %262 = vector.load %arg38[%c0_181, %c0_182] : memref<1x64xf32, #tpu.memory_space<vmem>>, vector<1x64xf32>
    %263 = vector.broadcast %262 : vector<1x64xf32> to vector<64x64xf32>
    %264 = arith.addf %261, %263 : vector<64x64xf32>
    %c0_183 = arith.constant 0 : index
    %c0_184 = arith.constant 0 : index
    %c0_185 = arith.constant 0 : index
    %265 = vector.load %arg49[%c0_183, %c0_184, %c0_185] : memref<10x10x64xf32, #tpu.memory_space<vmem>>, vector<8x8x64xf32>
    %266 = vector.shape_cast %265 : vector<8x8x64xf32> to vector<64x64xf32>
    %c0_186 = arith.constant 0 : index
    %c0_187 = arith.constant 0 : index
    %c0_188 = arith.constant 0 : index
    %267 = vector.load %arg37[%c0_186, %c0_187, %c0_188] : memref<9x1x64xf32, #tpu.memory_space<vmem>>, vector<1x1x64xf32>
    %268 = vector.shape_cast %267 : vector<1x1x64xf32> to vector<1x64xf32>
    %269 = vector.broadcast %268 : vector<1x64xf32> to vector<64x64xf32>
    %270 = arith.mulf %266, %269 : vector<64x64xf32>
    %271 = arith.addf %264, %270 : vector<64x64xf32>
    %c0_189 = arith.constant 0 : index
    %c1_190 = arith.constant 1 : index
    %c0_191 = arith.constant 0 : index
    %272 = vector.load %arg49[%c0_189, %c1_190, %c0_191] : memref<10x10x64xf32, #tpu.memory_space<vmem>>, vector<8x8x64xf32>
    %273 = vector.shape_cast %272 : vector<8x8x64xf32> to vector<64x64xf32>
    %c1_192 = arith.constant 1 : index
    %c0_193 = arith.constant 0 : index
    %c0_194 = arith.constant 0 : index
    %274 = vector.load %arg37[%c1_192, %c0_193, %c0_194] : memref<9x1x64xf32, #tpu.memory_space<vmem>>, vector<1x1x64xf32>
    %275 = vector.shape_cast %274 : vector<1x1x64xf32> to vector<1x64xf32>
    %276 = vector.broadcast %275 : vector<1x64xf32> to vector<64x64xf32>
    %277 = arith.mulf %273, %276 : vector<64x64xf32>
    %278 = arith.addf %271, %277 : vector<64x64xf32>
    %c0_195 = arith.constant 0 : index
    %c2_196 = arith.constant 2 : index
    %c0_197 = arith.constant 0 : index
    %279 = vector.load %arg49[%c0_195, %c2_196, %c0_197] : memref<10x10x64xf32, #tpu.memory_space<vmem>>, vector<8x8x64xf32>
    %280 = vector.shape_cast %279 : vector<8x8x64xf32> to vector<64x64xf32>
    %c2_198 = arith.constant 2 : index
    %c0_199 = arith.constant 0 : index
    %c0_200 = arith.constant 0 : index
    %281 = vector.load %arg37[%c2_198, %c0_199, %c0_200] : memref<9x1x64xf32, #tpu.memory_space<vmem>>, vector<1x1x64xf32>
    %282 = vector.shape_cast %281 : vector<1x1x64xf32> to vector<1x64xf32>
    %283 = vector.broadcast %282 : vector<1x64xf32> to vector<64x64xf32>
    %284 = arith.mulf %280, %283 : vector<64x64xf32>
    %285 = arith.addf %278, %284 : vector<64x64xf32>
    %c1_201 = arith.constant 1 : index
    %c0_202 = arith.constant 0 : index
    %c0_203 = arith.constant 0 : index
    %286 = vector.load %arg49[%c1_201, %c0_202, %c0_203] : memref<10x10x64xf32, #tpu.memory_space<vmem>>, vector<8x8x64xf32>
    %287 = vector.shape_cast %286 : vector<8x8x64xf32> to vector<64x64xf32>
    %c3_204 = arith.constant 3 : index
    %c0_205 = arith.constant 0 : index
    %c0_206 = arith.constant 0 : index
    %288 = vector.load %arg37[%c3_204, %c0_205, %c0_206] : memref<9x1x64xf32, #tpu.memory_space<vmem>>, vector<1x1x64xf32>
    %289 = vector.shape_cast %288 : vector<1x1x64xf32> to vector<1x64xf32>
    %290 = vector.broadcast %289 : vector<1x64xf32> to vector<64x64xf32>
    %291 = arith.mulf %287, %290 : vector<64x64xf32>
    %292 = arith.addf %285, %291 : vector<64x64xf32>
    %c4 = arith.constant 4 : index
    %c0_207 = arith.constant 0 : index
    %c0_208 = arith.constant 0 : index
    %293 = vector.load %arg37[%c4, %c0_207, %c0_208] : memref<9x1x64xf32, #tpu.memory_space<vmem>>, vector<1x1x64xf32>
    %294 = vector.shape_cast %293 : vector<1x1x64xf32> to vector<1x64xf32>
    %295 = vector.broadcast %294 : vector<1x64xf32> to vector<64x64xf32>
    %296 = arith.mulf %256, %295 : vector<64x64xf32>
    %297 = arith.addf %292, %296 : vector<64x64xf32>
    %c1_209 = arith.constant 1 : index
    %c2_210 = arith.constant 2 : index
    %c0_211 = arith.constant 0 : index
    %298 = vector.load %arg49[%c1_209, %c2_210, %c0_211] : memref<10x10x64xf32, #tpu.memory_space<vmem>>, vector<8x8x64xf32>
    %299 = vector.shape_cast %298 : vector<8x8x64xf32> to vector<64x64xf32>
    %c5_212 = arith.constant 5 : index
    %c0_213 = arith.constant 0 : index
    %c0_214 = arith.constant 0 : index
    %300 = vector.load %arg37[%c5_212, %c0_213, %c0_214] : memref<9x1x64xf32, #tpu.memory_space<vmem>>, vector<1x1x64xf32>
    %301 = vector.shape_cast %300 : vector<1x1x64xf32> to vector<1x64xf32>
    %302 = vector.broadcast %301 : vector<1x64xf32> to vector<64x64xf32>
    %303 = arith.mulf %299, %302 : vector<64x64xf32>
    %304 = arith.addf %297, %303 : vector<64x64xf32>
    %c2_215 = arith.constant 2 : index
    %c0_216 = arith.constant 0 : index
    %c0_217 = arith.constant 0 : index
    %305 = vector.load %arg49[%c2_215, %c0_216, %c0_217] : memref<10x10x64xf32, #tpu.memory_space<vmem>>, vector<8x8x64xf32>
    %306 = vector.shape_cast %305 : vector<8x8x64xf32> to vector<64x64xf32>
    %c6_218 = arith.constant 6 : index
    %c0_219 = arith.constant 0 : index
    %c0_220 = arith.constant 0 : index
    %307 = vector.load %arg37[%c6_218, %c0_219, %c0_220] : memref<9x1x64xf32, #tpu.memory_space<vmem>>, vector<1x1x64xf32>
    %308 = vector.shape_cast %307 : vector<1x1x64xf32> to vector<1x64xf32>
    %309 = vector.broadcast %308 : vector<1x64xf32> to vector<64x64xf32>
    %310 = arith.mulf %306, %309 : vector<64x64xf32>
    %311 = arith.addf %304, %310 : vector<64x64xf32>
    %c2_221 = arith.constant 2 : index
    %c1_222 = arith.constant 1 : index
    %c0_223 = arith.constant 0 : index
    %312 = vector.load %arg49[%c2_221, %c1_222, %c0_223] : memref<10x10x64xf32, #tpu.memory_space<vmem>>, vector<8x8x64xf32>
    %313 = vector.shape_cast %312 : vector<8x8x64xf32> to vector<64x64xf32>
    %c7_224 = arith.constant 7 : index
    %c0_225 = arith.constant 0 : index
    %c0_226 = arith.constant 0 : index
    %314 = vector.load %arg37[%c7_224, %c0_225, %c0_226] : memref<9x1x64xf32, #tpu.memory_space<vmem>>, vector<1x1x64xf32>
    %315 = vector.shape_cast %314 : vector<1x1x64xf32> to vector<1x64xf32>
    %316 = vector.broadcast %315 : vector<1x64xf32> to vector<64x64xf32>
    %317 = arith.mulf %313, %316 : vector<64x64xf32>
    %318 = arith.addf %311, %317 : vector<64x64xf32>
    %c2_227 = arith.constant 2 : index
    %c2_228 = arith.constant 2 : index
    %c0_229 = arith.constant 0 : index
    %319 = vector.load %arg49[%c2_227, %c2_228, %c0_229] : memref<10x10x64xf32, #tpu.memory_space<vmem>>, vector<8x8x64xf32>
    %320 = vector.shape_cast %319 : vector<8x8x64xf32> to vector<64x64xf32>
    %c8 = arith.constant 8 : index
    %c0_230 = arith.constant 0 : index
    %c0_231 = arith.constant 0 : index
    %321 = vector.load %arg37[%c8, %c0_230, %c0_231] : memref<9x1x64xf32, #tpu.memory_space<vmem>>, vector<1x1x64xf32>
    %322 = vector.shape_cast %321 : vector<1x1x64xf32> to vector<1x64xf32>
    %323 = vector.broadcast %322 : vector<1x64xf32> to vector<64x64xf32>
    %324 = arith.mulf %320, %323 : vector<64x64xf32>
    %325 = arith.addf %318, %324 : vector<64x64xf32>
    %c0_232 = arith.constant 0 : index
    %c0_233 = arith.constant 0 : index
    %326 = vector.load %arg39[%c0_232, %c0_233] : memref<64x32xbf16, #tpu.memory_space<vmem>>, vector<64x32xbf16>
    %327 = arith.truncf %325 : vector<64x64xf32> to vector<64x64xbf16>
    %cst_234 = arith.constant dense<0.000000e+00> : vector<64x32xf32>
    %328 = tpu.matmul %327, %326, %cst_234 {dimension_numbers = #tpu.dot_dimension_numbers<[1], [0], [0], [1], [0, 0, 1, 1], [], []>} : vector<64x64xbf16>, vector<64x32xbf16>, vector<64x32xf32> -> vector<64x32xf32>
    %c0_235 = arith.constant 0 : index
    %c0_236 = arith.constant 0 : index
    %329 = vector.load %arg40[%c0_235, %c0_236] : memref<1x32xf32, #tpu.memory_space<vmem>>, vector<1x32xf32>
    %330 = vector.broadcast %329 : vector<1x32xf32> to vector<64x32xf32>
    %331 = arith.addf %328, %330 : vector<64x32xf32>
    %c0_237 = arith.constant 0 : index
    %c0_238 = arith.constant 0 : index
    %332 = vector.load %arg43[%c0_237, %c0_238] : memref<1x32xf32, #tpu.memory_space<vmem>>, vector<1x32xf32>
    %c0_239 = arith.constant 0 : index
    %c0_240 = arith.constant 0 : index
    %333 = vector.load %arg41[%c0_239, %c0_240] : memref<1x32xf32, #tpu.memory_space<vmem>>, vector<1x32xf32>
    %c0_241 = arith.constant 0 : index
    %c0_242 = arith.constant 0 : index
    %334 = vector.load %arg42[%c0_241, %c0_242] : memref<1x32xf32, #tpu.memory_space<vmem>>, vector<1x32xf32>
    %cst_243 = arith.constant dense<0.000000e+00> : vector<64xf32>
    %335 = vector.multi_reduction <add>, %331, %cst_243 [1] : vector<64x32xf32> to vector<64xf32>
    %336 = vector.shape_cast %335 : vector<64xf32> to vector<64x1xf32>
    %cst_244 = arith.constant 3.200000e+01 : f32
    %337 = vector.broadcast %cst_244 : f32 to vector<64x1xf32>
    %338 = arith.divf %336, %337 : vector<64x1xf32>
    %339 = vector.broadcast %338 : vector<64x1xf32> to vector<64x32xf32>
    %340 = arith.subf %331, %339 : vector<64x32xf32>
    %341 = arith.mulf %340, %340 : vector<64x32xf32>
    %cst_245 = arith.constant dense<0.000000e+00> : vector<64xf32>
    %342 = vector.multi_reduction <add>, %341, %cst_245 [1] : vector<64x32xf32> to vector<64xf32>
    %343 = vector.shape_cast %342 : vector<64xf32> to vector<64x1xf32>
    %cst_246 = arith.constant 3.200000e+01 : f32
    %344 = vector.broadcast %cst_246 : f32 to vector<64x1xf32>
    %345 = arith.divf %343, %344 : vector<64x1xf32>
    %346 = vector.broadcast %338 : vector<64x1xf32> to vector<64x32xf32>
    %347 = arith.subf %331, %346 : vector<64x32xf32>
    %cst_247 = arith.constant 9.99999974E-6 : f32
    %348 = vector.broadcast %cst_247 : f32 to vector<64x1xf32>
    %349 = arith.addf %345, %348 : vector<64x1xf32>
    %350 = math.rsqrt %349 : vector<64x1xf32>
    %351 = vector.broadcast %350 : vector<64x1xf32> to vector<64x32xf32>
    %352 = arith.mulf %347, %351 : vector<64x32xf32>
    %353 = vector.broadcast %333 : vector<1x32xf32> to vector<64x32xf32>
    %354 = arith.mulf %352, %353 : vector<64x32xf32>
    %355 = vector.broadcast %334 : vector<1x32xf32> to vector<64x32xf32>
    %356 = arith.addf %354, %355 : vector<64x32xf32>
    %357 = vector.broadcast %332 : vector<1x32xf32> to vector<64x32xf32>
    %358 = arith.mulf %357, %356 : vector<64x32xf32>
    %359 = arith.addf %237, %358 : vector<64x32xf32>
    %c0_248 = arith.constant 0 : index
    %c0_249 = arith.constant 0 : index
    %360 = vector.load %arg46[%c0_248, %c0_249] : memref<1x32xf32, #tpu.memory_space<vmem>>, vector<1x32xf32>
    %c0_250 = arith.constant 0 : index
    %c0_251 = arith.constant 0 : index
    %361 = vector.load %arg44[%c0_250, %c0_251] : memref<1x32xf32, #tpu.memory_space<vmem>>, vector<1x32xf32>
    %c0_252 = arith.constant 0 : index
    %c0_253 = arith.constant 0 : index
    %362 = vector.load %arg45[%c0_252, %c0_253] : memref<1x32xf32, #tpu.memory_space<vmem>>, vector<1x32xf32>
    %cst_254 = arith.constant dense<0.000000e+00> : vector<64xf32>
    %363 = vector.multi_reduction <add>, %359, %cst_254 [1] : vector<64x32xf32> to vector<64xf32>
    %364 = vector.shape_cast %363 : vector<64xf32> to vector<64x1xf32>
    %cst_255 = arith.constant 3.200000e+01 : f32
    %365 = vector.broadcast %cst_255 : f32 to vector<64x1xf32>
    %366 = arith.divf %364, %365 : vector<64x1xf32>
    %367 = vector.broadcast %366 : vector<64x1xf32> to vector<64x32xf32>
    %368 = arith.subf %359, %367 : vector<64x32xf32>
    %369 = arith.mulf %368, %368 : vector<64x32xf32>
    %cst_256 = arith.constant dense<0.000000e+00> : vector<64xf32>
    %370 = vector.multi_reduction <add>, %369, %cst_256 [1] : vector<64x32xf32> to vector<64xf32>
    %371 = vector.shape_cast %370 : vector<64xf32> to vector<64x1xf32>
    %cst_257 = arith.constant 3.200000e+01 : f32
    %372 = vector.broadcast %cst_257 : f32 to vector<64x1xf32>
    %373 = arith.divf %371, %372 : vector<64x1xf32>
    %374 = vector.broadcast %366 : vector<64x1xf32> to vector<64x32xf32>
    %375 = arith.subf %359, %374 : vector<64x32xf32>
    %cst_258 = arith.constant 9.99999974E-6 : f32
    %376 = vector.broadcast %cst_258 : f32 to vector<64x1xf32>
    %377 = arith.addf %373, %376 : vector<64x1xf32>
    %378 = math.rsqrt %377 : vector<64x1xf32>
    %379 = vector.broadcast %378 : vector<64x1xf32> to vector<64x32xf32>
    %380 = arith.mulf %375, %379 : vector<64x32xf32>
    %381 = vector.broadcast %361 : vector<1x32xf32> to vector<64x32xf32>
    %382 = arith.mulf %380, %381 : vector<64x32xf32>
    %383 = vector.broadcast %362 : vector<1x32xf32> to vector<64x32xf32>
    %384 = arith.addf %382, %383 : vector<64x32xf32>
    %385 = vector.broadcast %360 : vector<1x32xf32> to vector<64x32xf32>
    %386 = arith.mulf %385, %384 : vector<64x32xf32>
    %c0_259 = arith.constant 0 : index
    %c0_260 = arith.constant 0 : index
    %c0_261 = arith.constant 0 : index
    %387 = vector.load %arg47[%c0_259, %c0_260, %c0_261] : memref<1x64x32xf32, #tpu.memory_space<vmem>>, vector<1x64x32xf32>
    %388 = vector.shape_cast %387 : vector<1x64x32xf32> to vector<64x32xf32>
    %389 = vector.shape_cast %386 : vector<64x32xf32> to vector<1x64x32xf32>
    tpu.vector_store %arg47[%c0_259, %c0_260, %c0_261], %389 {strides = array<i32>} : memref<1x64x32xf32, #tpu.memory_space<vmem>>, vector<1x64x32xf32>,
    return
  }
  func.func @transform_0(%arg0: i32) -> (i32, i32, i32) {
    %c0_i32 = arith.constant 0 : i32
    %c0_i32_0 = arith.constant 0 : i32
    %c0_i32_1 = arith.constant 0 : i32
    return %arg0, %c0_i32, %c0_i32_0 : i32, i32, i32
  }
  func.func @transform_1(%arg0: i32) -> (i32, i32, i32) {
    %c0_i32 = arith.constant 0 : i32
    %c0_i32_0 = arith.constant 0 : i32
    %c0_i32_1 = arith.constant 0 : i32
    return %arg0, %c0_i32, %c0_i32_0 : i32, i32, i32
  }
  func.func @transform_2(%arg0: i32) -> (i32, i32, i32) {
    %c0_i32 = arith.constant 0 : i32
    %c0_i32_0 = arith.constant 0 : i32
    %c0_i32_1 = arith.constant 0 : i32
    %c0_i32_2 = arith.constant 0 : i32
    return %c0_i32, %c0_i32_0, %c0_i32_1 : i32, i32, i32
  }
  func.func @transform_3(%arg0: i32) -> (i32, i32, i32) {
    %c0_i32 = arith.constant 0 : i32
    %c0_i32_0 = arith.constant 0 : i32
    %c0_i32_1 = arith.constant 0 : i32
    %c0_i32_2 = arith.constant 0 : i32
    return %c0_i32, %c0_i32_0, %c0_i32_1 : i32, i32, i32
  }
  func.func @transform_4(%arg0: i32) -> (i32, i32) {
    %c0_i32 = arith.constant 0 : i32
    %c0_i32_0 = arith.constant 0 : i32
    %c0_i32_1 = arith.constant 0 : i32
    return %c0_i32, %c0_i32_0 : i32, i32
  }
  func.func @transform_5(%arg0: i32) -> (i32, i32) {
    %c0_i32 = arith.constant 0 : i32
    %c0_i32_0 = arith.constant 0 : i32
    %c0_i32_1 = arith.constant 0 : i32
    return %c0_i32, %c0_i32_0 : i32, i32
  }
  func.func @transform_6(%arg0: i32) -> (i32, i32) {
    %c0_i32 = arith.constant 0 : i32
    %c0_i32_0 = arith.constant 0 : i32
    %c0_i32_1 = arith.constant 0 : i32
    return %c0_i32, %c0_i32_0 : i32, i32
  }
  func.func @transform_7(%arg0: i32) -> (i32, i32) {
    %c0_i32 = arith.constant 0 : i32
    %c0_i32_0 = arith.constant 0 : i32
    %c0_i32_1 = arith.constant 0 : i32
    return %c0_i32, %c0_i32_0 : i32, i32
  }
  func.func @transform_8(%arg0: i32) -> (i32, i32) {
    %c0_i32 = arith.constant 0 : i32
    %c0_i32_0 = arith.constant 0 : i32
    %c0_i32_1 = arith.constant 0 : i32
    return %c0_i32, %c0_i32_0 : i32, i32
  }
  func.func @transform_9(%arg0: i32) -> (i32, i32) {
    %c0_i32 = arith.constant 0 : i32
    %c0_i32_0 = arith.constant 0 : i32
    %c0_i32_1 = arith.constant 0 : i32
    return %c0_i32, %c0_i32_0 : i32, i32
  }
  func.func @transform_10(%arg0: i32) -> (i32, i32) {
    %c0_i32 = arith.constant 0 : i32
    %c0_i32_0 = arith.constant 0 : i32
    %c0_i32_1 = arith.constant 0 : i32
    return %c0_i32, %c0_i32_0 : i32, i32
  }
  func.func @transform_11(%arg0: i32) -> (i32, i32) {
    %c0_i32 = arith.constant 0 : i32
    %c0_i32_0 = arith.constant 0 : i32
    %c0_i32_1 = arith.constant 0 : i32
    return %c0_i32, %c0_i32_0 : i32, i32
  }
  func.func @transform_12(%arg0: i32) -> (i32, i32) {
    %c0_i32 = arith.constant 0 : i32
    %c0_i32_0 = arith.constant 0 : i32
    %c0_i32_1 = arith.constant 0 : i32
    return %c0_i32, %c0_i32_0 : i32, i32
  }
  func.func @transform_13(%arg0: i32) -> (i32, i32) {
    %c0_i32 = arith.constant 0 : i32
    %c0_i32_0 = arith.constant 0 : i32
    %c0_i32_1 = arith.constant 0 : i32
    return %c0_i32, %c0_i32_0 : i32, i32
  }
  func.func @transform_14(%arg0: i32) -> (i32, i32) {
    %c0_i32 = arith.constant 0 : i32
    %c0_i32_0 = arith.constant 0 : i32
    %c0_i32_1 = arith.constant 0 : i32
    return %c0_i32, %c0_i32_0 : i32, i32
  }
  func.func @transform_15(%arg0: i32) -> (i32, i32) {
    %c0_i32 = arith.constant 0 : i32
    %c0_i32_0 = arith.constant 0 : i32
    %c0_i32_1 = arith.constant 0 : i32
    return %c0_i32, %c0_i32_0 : i32, i32
  }
  func.func @transform_16(%arg0: i32) -> (i32, i32) {
    %c0_i32 = arith.constant 0 : i32
    %c0_i32_0 = arith.constant 0 : i32
    %c0_i32_1 = arith.constant 0 : i32
    return %c0_i32, %c0_i32_0 : i32, i32
  }
  func.func @transform_17(%arg0: i32) -> (i32, i32) {
    %c0_i32 = arith.constant 0 : i32
    %c0_i32_0 = arith.constant 0 : i32
    %c0_i32_1 = arith.constant 0 : i32
    return %c0_i32, %c0_i32_0 : i32, i32
  }
  func.func @transform_18(%arg0: i32) -> (i32, i32) {
    %c0_i32 = arith.constant 0 : i32
    %c0_i32_0 = arith.constant 0 : i32
    %c0_i32_1 = arith.constant 0 : i32
    return %c0_i32, %c0_i32_0 : i32, i32
  }
  func.func @transform_19(%arg0: i32) -> (i32, i32) {
    %c0_i32 = arith.constant 0 : i32
    %c0_i32_0 = arith.constant 0 : i32
    %c0_i32_1 = arith.constant 0 : i32
    return %c0_i32, %c0_i32_0 : i32, i32
  }
  func.func @transform_20(%arg0: i32) -> (i32, i32) {
    %c0_i32 = arith.constant 0 : i32
    %c0_i32_0 = arith.constant 0 : i32
    %c0_i32_1 = arith.constant 0 : i32
    return %c0_i32, %c0_i32_0 : i32, i32
  }
  func.func @transform_21(%arg0: i32) -> (i32, i32, i32) {
    %c0_i32 = arith.constant 0 : i32
    %c0_i32_0 = arith.constant 0 : i32
    %c0_i32_1 = arith.constant 0 : i32
    %c0_i32_2 = arith.constant 0 : i32
    return %c0_i32, %c0_i32_0, %c0_i32_1 : i32, i32, i32
  }
  func.func @transform_22(%arg0: i32) -> (i32, i32) {
    %c0_i32 = arith.constant 0 : i32
    %c0_i32_0 = arith.constant 0 : i32
    %c0_i32_1 = arith.constant 0 : i32
    return %c0_i32, %c0_i32_0 : i32, i32
  }
  func.func @transform_23(%arg0: i32) -> (i32, i32) {
    %c0_i32 = arith.constant 0 : i32
    %c0_i32_0 = arith.constant 0 : i32
    %c0_i32_1 = arith.constant 0 : i32
    return %c0_i32, %c0_i32_0 : i32, i32
  }
  func.func @transform_24(%arg0: i32) -> (i32, i32) {
    %c0_i32 = arith.constant 0 : i32
    %c0_i32_0 = arith.constant 0 : i32
    %c0_i32_1 = arith.constant 0 : i32
    return %c0_i32, %c0_i32_0 : i32, i32
  }
  func.func @transform_25(%arg0: i32) -> (i32, i32) {
    %c0_i32 = arith.constant 0 : i32
    %c0_i32_0 = arith.constant 0 : i32
    %c0_i32_1 = arith.constant 0 : i32
    return %c0_i32, %c0_i32_0 : i32, i32
  }
  func.func @transform_26(%arg0: i32) -> (i32, i32) {
    %c0_i32 = arith.constant 0 : i32
    %c0_i32_0 = arith.constant 0 : i32
    %c0_i32_1 = arith.constant 0 : i32
    return %c0_i32, %c0_i32_0 : i32, i32
  }
  func.func @transform_27(%arg0: i32) -> (i32, i32) {
    %c0_i32 = arith.constant 0 : i32
    %c0_i32_0 = arith.constant 0 : i32
    %c0_i32_1 = arith.constant 0 : i32
    return %c0_i32, %c0_i32_0 : i32, i32
  }
  func.func @transform_28(%arg0: i32) -> (i32, i32) {
    %c0_i32 = arith.constant 0 : i32
    %c0_i32_0 = arith.constant 0 : i32
    %c0_i32_1 = arith.constant 0 : i32
    return %c0_i32, %c0_i32_0 : i32, i32
  }
  func.func @transform_29(%arg0: i32) -> (i32, i32) {
    %c0_i32 = arith.constant 0 : i32
    %c0_i32_0 = arith.constant 0 : i32
    %c0_i32_1 = arith.constant 0 : i32
    return %c0_i32, %c0_i32_0 : i32, i32
  }
  func.func @transform_30(%arg0: i32) -> (i32, i32) {
    %c0_i32 = arith.constant 0 : i32
    %c0_i32_0 = arith.constant 0 : i32
    %c0_i32_1 = arith.constant 0 : i32
    return %c0_i32, %c0_i32_0 : i32, i32
  }
  func.func @transform_31(%arg0: i32) -> (i32, i32) {
    %c0_i32 = arith.constant 0 : i32
    %c0_i32_0 = arith.constant 0 : i32
    %c0_i32_1 = arith.constant 0 : i32
    return %c0_i32, %c0_i32_0 : i32, i32
  }
  func.func @transform_32(%arg0: i32) -> (i32, i32) {
    %c0_i32 = arith.constant 0 : i32
    %c0_i32_0 = arith.constant 0 : i32
    %c0_i32_1 = arith.constant 0 : i32
    return %c0_i32, %c0_i32_0 : i32, i32
  }
  func.func @transform_33(%arg0: i32) -> (i32, i32) {
    %c0_i32 = arith.constant 0 : i32
    %c0_i32_0 = arith.constant 0 : i32
    %c0_i32_1 = arith.constant 0 : i32
    return %c0_i32, %c0_i32_0 : i32, i32
  }
  func.func @transform_34(%arg0: i32) -> (i32, i32) {
    %c0_i32 = arith.constant 0 : i32
    %c0_i32_0 = arith.constant 0 : i32
    %c0_i32_1 = arith.constant 0 : i32
    return %c0_i32, %c0_i32_0 : i32, i32
  }
  func.func @transform_35(%arg0: i32) -> (i32, i32) {
    %c0_i32 = arith.constant 0 : i32
    %c0_i32_0 = arith.constant 0 : i32
    %c0_i32_1 = arith.constant 0 : i32
    return %c0_i32, %c0_i32_0 : i32, i32
  }
  func.func @transform_36(%arg0: i32) -> (i32, i32, i32) {
    %c0_i32 = arith.constant 0 : i32
    %c0_i32_0 = arith.constant 0 : i32
    %c0_i32_1 = arith.constant 0 : i32
    %c0_i32_2 = arith.constant 0 : i32
    return %c0_i32, %c0_i32_0, %c0_i32_1 : i32, i32, i32
  }
  func.func @transform_37(%arg0: i32) -> (i32, i32) {
    %c0_i32 = arith.constant 0 : i32
    %c0_i32_0 = arith.constant 0 : i32
    %c0_i32_1 = arith.constant 0 : i32
    return %c0_i32, %c0_i32_0 : i32, i32
  }
  func.func @transform_38(%arg0: i32) -> (i32, i32) {
    %c0_i32 = arith.constant 0 : i32
    %c0_i32_0 = arith.constant 0 : i32
    %c0_i32_1 = arith.constant 0 : i32
    return %c0_i32, %c0_i32_0 : i32, i32
  }
  func.func @transform_39(%arg0: i32) -> (i32, i32) {
    %c0_i32 = arith.constant 0 : i32
    %c0_i32_0 = arith.constant 0 : i32
    %c0_i32_1 = arith.constant 0 : i32
    return %c0_i32, %c0_i32_0 : i32, i32
  }
  func.func @transform_40(%arg0: i32) -> (i32, i32) {
    %c0_i32 = arith.constant 0 : i32
    %c0_i32_0 = arith.constant 0 : i32
    %c0_i32_1 = arith.constant 0 : i32
    return %c0_i32, %c0_i32_0 : i32, i32
  }
  func.func @transform_41(%arg0: i32) -> (i32, i32) {
    %c0_i32 = arith.constant 0 : i32
    %c0_i32_0 = arith.constant 0 : i32
    %c0_i32_1 = arith.constant 0 : i32
    return %c0_i32, %c0_i32_0 : i32, i32
  }
  func.func @transform_42(%arg0: i32) -> (i32, i32) {
    %c0_i32 = arith.constant 0 : i32
    %c0_i32_0 = arith.constant 0 : i32
    %c0_i32_1 = arith.constant 0 : i32
    return %c0_i32, %c0_i32_0 : i32, i32
  }
  func.func @transform_43(%arg0: i32) -> (i32, i32) {
    %c0_i32 = arith.constant 0 : i32
    %c0_i32_0 = arith.constant 0 : i32
    %c0_i32_1 = arith.constant 0 : i32
    return %c0_i32, %c0_i32_0 : i32, i32
  }
  func.func @transform_44(%arg0: i32) -> (i32, i32) {
    %c0_i32 = arith.constant 0 : i32
    %c0_i32_0 = arith.constant 0 : i32
    %c0_i32_1 = arith.constant 0 : i32
    return %c0_i32, %c0_i32_0 : i32, i32
  }
  func.func @transform_45(%arg0: i32) -> (i32, i32) {
    %c0_i32 = arith.constant 0 : i32
    %c0_i32_0 = arith.constant 0 : i32
    %c0_i32_1 = arith.constant 0 : i32
    return %c0_i32, %c0_i32_0 : i32, i32
  }
  func.func @transform_46(%arg0: i32) -> (i32, i32, i32) {
    %c0_i32 = arith.constant 0 : i32
    %c0_i32_0 = arith.constant 0 : i32
    %c0_i32_1 = arith.constant 0 : i32
    return %arg0, %c0_i32, %c0_i32_0 : i32, i32, i32
  }
}

module attributes {stable_mosaic.version = 11 : i64} {
  func.func @_layer_kernel(%arg0: i32, %arg1: memref<1x64x32xf32, #tpu.memory_space<vmem>>, %arg2: memref<1x64x32xf32, #tpu.memory_space<vmem>>, %arg3: memref<2x64x32xf32, #tpu.memory_space<vmem>>, %arg4: memref<2x64x32xf32, #tpu.memory_space<vmem>>, %arg5: memref<32x32xbf16, #tpu.memory_space<vmem>>, %arg6: memref<1x32xf32, #tpu.memory_space<vmem>>, %arg7: memref<32x32xbf16, #tpu.memory_space<vmem>>, %arg8: memref<1x32xf32, #tpu.memory_space<vmem>>, %arg9: memref<32x32xbf16, #tpu.memory_space<vmem>>, %arg10: memref<1x32xf32, #tpu.memory_space<vmem>>, %arg11: memref<32x32xbf16, #tpu.memory_space<vmem>>, %arg12: memref<1x32xf32, #tpu.memory_space<vmem>>, %arg13: memref<32x4xbf16, #tpu.memory_space<vmem>>, %arg14: memref<4x32xbf16, #tpu.memory_space<vmem>>, %arg15: memref<32x32xbf16, #tpu.memory_space<vmem>>, %arg16: memref<32x2xbf16, #tpu.memory_space<vmem>>, %arg17: memref<2x32xbf16, #tpu.memory_space<vmem>>, %arg18: memref<288x32xbf16, #tpu.memory_space<vmem>>, %arg19: memref<288x32xbf16, #tpu.memory_space<vmem>>, %arg20: memref<32x32xbf16, #tpu.memory_space<vmem>>, %arg21: memref<32x32xbf16, #tpu.memory_space<vmem>>, %arg22: memref<4x1x32xf32, #tpu.memory_space<vmem>>, %arg23: memref<128x32xbf16, #tpu.memory_space<vmem>>, %arg24: memref<1x32xf32, #tpu.memory_space<vmem>>, %arg25: memref<32x32xbf16, #tpu.memory_space<vmem>>, %arg26: memref<1x32xf32, #tpu.memory_space<vmem>>, %arg27: memref<1x32xf32, #tpu.memory_space<vmem>>, %arg28: memref<1x32xf32, #tpu.memory_space<vmem>>, %arg29: memref<1x32xf32, #tpu.memory_space<vmem>>, %arg30: memref<1x32xf32, #tpu.memory_space<vmem>>, %arg31: memref<1x32xf32, #tpu.memory_space<vmem>>, %arg32: memref<1x32xf32, #tpu.memory_space<vmem>>, %arg33: memref<1x32xf32, #tpu.memory_space<vmem>>, %arg34: memref<1x32xf32, #tpu.memory_space<vmem>>, %arg35: memref<32x64xbf16, #tpu.memory_space<vmem>>, %arg36: memref<1x64xf32, #tpu.memory_space<vmem>>, %arg37: memref<9x1x64xf32, #tpu.memory_space<vmem>>, %arg38: memref<1x64xf32, #tpu.memory_space<vmem>>, %arg39: memref<64x32xbf16, #tpu.memory_space<vmem>>, %arg40: memref<1x32xf32, #tpu.memory_space<vmem>>, %arg41: memref<1x32xf32, #tpu.memory_space<vmem>>, %arg42: memref<1x32xf32, #tpu.memory_space<vmem>>, %arg43: memref<1x32xf32, #tpu.memory_space<vmem>>, %arg44: memref<1x32xf32, #tpu.memory_space<vmem>>, %arg45: memref<1x32xf32, #tpu.memory_space<vmem>>, %arg46: memref<1x32xf32, #tpu.memory_space<vmem>>, %arg47: memref<1x64x32xf32, #tpu.memory_space<vmem>>, %arg48: memref<20x20x32xf32, #tpu.memory_space<vmem>>, %arg49: memref<10x10x64xf32, #tpu.memory_space<vmem>>) attributes {dimension_semantics = [#tpu.dimension_semantics<parallel>], iteration_bounds = array<i64: 2>, scalar_prefetch = 0 : i64, scratch_operands = 2 : i64, tpu.core_type = #tpu.core_type<tc>, window_params = [{transform_indices = @transform_0, window_bounds = array<i64: 1, 64, 32>}, {transform_indices = @transform_1, window_bounds = array<i64: 1, 64, 32>}, {pipeline_mode = #tpu.pipeline_mode<synchronous>, transform_indices = @transform_2, window_bounds = array<i64: 2, 64, 32>}, {pipeline_mode = #tpu.pipeline_mode<synchronous>, transform_indices = @transform_3, window_bounds = array<i64: 2, 64, 32>}, {pipeline_mode = #tpu.pipeline_mode<synchronous>, transform_indices = @transform_4, window_bounds = array<i64: 32, 32>}, {pipeline_mode = #tpu.pipeline_mode<synchronous>, transform_indices = @transform_5, window_bounds = array<i64: 1, 32>}, {pipeline_mode = #tpu.pipeline_mode<synchronous>, transform_indices = @transform_6, window_bounds = array<i64: 32, 32>}, {pipeline_mode = #tpu.pipeline_mode<synchronous>, transform_indices = @transform_7, window_bounds = array<i64: 1, 32>}, {pipeline_mode = #tpu.pipeline_mode<synchronous>, transform_indices = @transform_8, window_bounds = array<i64: 32, 32>}, {pipeline_mode = #tpu.pipeline_mode<synchronous>, transform_indices = @transform_9, window_bounds = array<i64: 1, 32>}, {pipeline_mode = #tpu.pipeline_mode<synchronous>, transform_indices = @transform_10, window_bounds = array<i64: 32, 32>}, {pipeline_mode = #tpu.pipeline_mode<synchronous>, transform_indices = @transform_11, window_bounds = array<i64: 1, 32>}, {pipeline_mode = #tpu.pipeline_mode<synchronous>, transform_indices = @transform_12, window_bounds = array<i64: 32, 4>}, {pipeline_mode = #tpu.pipeline_mode<synchronous>, transform_indices = @transform_13, window_bounds = array<i64: 4, 32>}, {pipeline_mode = #tpu.pipeline_mode<synchronous>, transform_indices = @transform_14, window_bounds = array<i64: 32, 32>}, {pipeline_mode = #tpu.pipeline_mode<synchronous>, transform_indices = @transform_15, window_bounds = array<i64: 32, 2>}, {pipeline_mode = #tpu.pipeline_mode<synchronous>, transform_indices = @transform_16, window_bounds = array<i64: 2, 32>}, {pipeline_mode = #tpu.pipeline_mode<synchronous>, transform_indices = @transform_17, window_bounds = array<i64: 288, 32>}, {pipeline_mode = #tpu.pipeline_mode<synchronous>, transform_indices = @transform_18, window_bounds = array<i64: 288, 32>}, {pipeline_mode = #tpu.pipeline_mode<synchronous>, transform_indices = @transform_19, window_bounds = array<i64: 32, 32>}, {pipeline_mode = #tpu.pipeline_mode<synchronous>, transform_indices = @transform_20, window_bounds = array<i64: 32, 32>}, {pipeline_mode = #tpu.pipeline_mode<synchronous>, transform_indices = @transform_21, window_bounds = array<i64: 4, 1, 32>}, {pipeline_mode = #tpu.pipeline_mode<synchronous>, transform_indices = @transform_22, window_bounds = array<i64: 128, 32>}, {pipeline_mode = #tpu.pipeline_mode<synchronous>, transform_indices = @transform_23, window_bounds = array<i64: 1, 32>}, {pipeline_mode = #tpu.pipeline_mode<synchronous>, transform_indices = @transform_24, window_bounds = array<i64: 32, 32>}, {pipeline_mode = #tpu.pipeline_mode<synchronous>, transform_indices = @transform_25, window_bounds = array<i64: 1, 32>}, {pipeline_mode = #tpu.pipeline_mode<synchronous>, transform_indices = @transform_26, window_bounds = array<i64: 1, 32>}, {pipeline_mode = #tpu.pipeline_mode<synchronous>, transform_indices = @transform_27, window_bounds = array<i64: 1, 32>}, {pipeline_mode = #tpu.pipeline_mode<synchronous>, transform_indices = @transform_28, window_bounds = array<i64: 1, 32>}, {pipeline_mode = #tpu.pipeline_mode<synchronous>, transform_indices = @transform_29, window_bounds = array<i64: 1, 32>}, {pipeline_mode = #tpu.pipeline_mode<synchronous>, transform_indices = @transform_30, window_bounds = array<i64: 1, 32>}, {pipeline_mode = #tpu.pipeline_mode<synchronous>, transform_indices = @transform_31, window_bounds = array<i64: 1, 32>}, {pipeline_mode = #tpu.pipeline_mode<synchronous>, transform_indices = @transform_32, window_bounds = array<i64: 1, 32>}, {pipeline_mode = #tpu.pipeline_mode<synchronous>, transform_indices = @transform_33, window_bounds = array<i64: 1, 32>}, {pipeline_mode = #tpu.pipeline_mode<synchronous>, transform_indices = @transform_34, window_bounds = array<i64: 32, 64>}, {pipeline_mode = #tpu.pipeline_mode<synchronous>, transform_indices = @transform_35, window_bounds = array<i64: 1, 64>}, {pipeline_mode = #tpu.pipeline_mode<synchronous>, transform_indices = @transform_36, window_bounds = array<i64: 9, 1, 64>}, {pipeline_mode = #tpu.pipeline_mode<synchronous>, transform_indices = @transform_37, window_bounds = array<i64: 1, 64>}, {pipeline_mode = #tpu.pipeline_mode<synchronous>, transform_indices = @transform_38, window_bounds = array<i64: 64, 32>}, {pipeline_mode = #tpu.pipeline_mode<synchronous>, transform_indices = @transform_39, window_bounds = array<i64: 1, 32>}, {pipeline_mode = #tpu.pipeline_mode<synchronous>, transform_indices = @transform_40, window_bounds = array<i64: 1, 32>}, {pipeline_mode = #tpu.pipeline_mode<synchronous>, transform_indices = @transform_41, window_bounds = array<i64: 1, 32>}, {pipeline_mode = #tpu.pipeline_mode<synchronous>, transform_indices = @transform_42, window_bounds = array<i64: 1, 32>}, {pipeline_mode = #tpu.pipeline_mode<synchronous>, transform_indices = @transform_43, window_bounds = array<i64: 1, 32>}, {pipeline_mode = #tpu.pipeline_mode<synchronous>, transform_indices = @transform_44, window_bounds = array<i64: 1, 32>}, {pipeline_mode = #tpu.pipeline_mode<synchronous>, transform_indices = @transform_45, window_bounds = array<i64: 1, 32>}, {transform_indices = @transform_46, window_bounds = array<i64: 1, 64, 32>}]} {
    %c0 = arith.constant 0 : index
    %c0_0 = arith.constant 0 : index
    %c0_1 = arith.constant 0 : index
    %0 = vector.load %arg1[%c0, %c0_0, %c0_1] : memref<1x64x32xf32, #tpu.memory_space<vmem>>, vector<1x64x32xf32>
    %1 = vector.shape_cast %0 : vector<1x64x32xf32> to vector<64x32xf32>
    %c0_2 = arith.constant 0 : index
    %c0_3 = arith.constant 0 : index
    %c0_4 = arith.constant 0 : index
    %2 = vector.load %arg4[%c0_2, %c0_3, %c0_4] : memref<2x64x32xf32, #tpu.memory_space<vmem>>, vector<2x64x32xf32>
    %3 = vector.shape_cast %2 : vector<2x64x32xf32> to vector<128x32xf32>
    %4 = arith.truncf %3 : vector<128x32xf32> to vector<128x32xbf16>
    %c0_5 = arith.constant 0 : index
    %c0_6 = arith.constant 0 : index
    %c0_7 = arith.constant 0 : index
    %5 = vector.load %arg3[%c0_5, %c0_6, %c0_7] : memref<2x64x32xf32, #tpu.memory_space<vmem>>, vector<2x64x32xf32>
    %6 = vector.shape_cast %5 : vector<2x64x32xf32> to vector<128x32xf32>
    %7 = arith.truncf %6 : vector<128x32xf32> to vector<128x32xbf16>
    %c0_8 = arith.constant 0 : index
    %c0_9 = arith.constant 0 : index
    %c0_10 = arith.constant 0 : index
    %8 = vector.load %arg2[%c0_8, %c0_9, %c0_10] : memref<1x64x32xf32, #tpu.memory_space<vmem>>, vector<1x64x32xf32>
    %9 = vector.shape_cast %8 : vector<1x64x32xf32> to vector<64x32xf32>
    %c0_11 = arith.constant 0 : index
    %c0_12 = arith.constant 0 : index
    %10 = vector.load %arg5[%c0_11, %c0_12] : memref<32x32xbf16, #tpu.memory_space<vmem>>, vector<32x32xbf16>
    %11 = arith.truncf %9 : vector<64x32xf32> to vector<64x32xbf16>
    %cst = arith.constant dense<0.000000e+00> : vector<64x32xf32>
    %12 = tpu.matmul %11, %10, %cst {dimension_numbers = #tpu.dot_dimension_numbers<[1], [0], [0], [1], [0, 0, 1, 1], [], []>} : vector<64x32xbf16>, vector<32x32xbf16>, vector<64x32xf32> -> vector<64x32xf32>
    %c0_13 = arith.constant 0 : index
    %c0_14 = arith.constant 0 : index
    %13 = vector.load %arg6[%c0_13, %c0_14] : memref<1x32xf32, #tpu.memory_space<vmem>>, vector<1x32xf32>
    %14 = vector.broadcast %13 : vector<1x32xf32> to vector<64x32xf32>
    %15 = arith.addf %12, %14 : vector<64x32xf32>
    %c0_15 = arith.constant 0 : index
    %c0_16 = arith.constant 0 : index
    %16 = vector.load %arg7[%c0_15, %c0_16] : memref<32x32xbf16, #tpu.memory_space<vmem>>, vector<32x32xbf16>
    %cst_17 = arith.constant dense<0.000000e+00> : vector<128x32xf32>
    %17 = tpu.matmul %4, %16, %cst_17 {dimension_numbers = #tpu.dot_dimension_numbers<[1], [0], [0], [1], [0, 0, 1, 1], [], []>} : vector<128x32xbf16>, vector<32x32xbf16>, vector<128x32xf32> -> vector<128x32xf32>
    %c0_18 = arith.constant 0 : index
    %c0_19 = arith.constant 0 : index
    %18 = vector.load %arg8[%c0_18, %c0_19] : memref<1x32xf32, #tpu.memory_space<vmem>>, vector<1x32xf32>
    %19 = vector.broadcast %18 : vector<1x32xf32> to vector<128x32xf32>
    %20 = arith.addf %17, %19 : vector<128x32xf32>
    %c0_20 = arith.constant 0 : index
    %c0_21 = arith.constant 0 : index
    %21 = vector.load %arg9[%c0_20, %c0_21] : memref<32x32xbf16, #tpu.memory_space<vmem>>, vector<32x32xbf16>
    %cst_22 = arith.constant dense<0.000000e+00> : vector<128x32xf32>
    %22 = tpu.matmul %7, %21, %cst_22 {dimension_numbers = #tpu.dot_dimension_numbers<[1], [0], [0], [1], [0, 0, 1, 1], [], []>} : vector<128x32xbf16>, vector<32x32xbf16>, vector<128x32xf32> -> vector<128x32xf32>
    %c0_23 = arith.constant 0 : index
    %c0_24 = arith.constant 0 : index
    %23 = vector.load %arg10[%c0_23, %c0_24] : memref<1x32xf32, #tpu.memory_space<vmem>>, vector<1x32xf32>
    %24 = vector.broadcast %23 : vector<1x32xf32> to vector<128x32xf32>
    %25 = arith.addf %22, %24 : vector<128x32xf32>
    %c0_25 = arith.constant 0 : index
    %c0_26 = arith.constant 0 : index
    %26 = vector.load %arg13[%c0_25, %c0_26] : memref<32x4xbf16, #tpu.memory_space<vmem>>, vector<32x4xbf16>
    %c0_27 = arith.constant 0 : index
    %c0_28 = arith.constant 0 : index
    %27 = vector.load %arg14[%c0_27, %c0_28] : memref<4x32xbf16, #tpu.memory_space<vmem>>, vector<4x32xbf16>
    %28 = vector.extract_strided_slice %20 {offsets = [0, 0], sizes = [64, 32], strides = [1, 1]} : vector<128x32xf32> to vector<64x32xf32>
    %29 = arith.mulf %15, %28 : vector<64x32xf32>
    %30 = arith.truncf %29 : vector<64x32xf32> to vector<64x32xbf16>
    %cst_29 = arith.constant dense<0.000000e+00> : vector<64x4xf32>
    %31 = tpu.matmul %30, %26, %cst_29 {dimension_numbers = #tpu.dot_dimension_numbers<[1], [0], [0], [1], [0, 0, 1, 1], [], []>} : vector<64x32xbf16>, vector<32x4xbf16>, vector<64x4xf32> -> vector<64x4xf32>
    %32 = vector.extract_strided_slice %20 {offsets = [64, 0], sizes = [64, 32], strides = [1, 1]} : vector<128x32xf32> to vector<64x32xf32>
    %33 = arith.mulf %15, %32 : vector<64x32xf32>
    %34 = arith.truncf %33 : vector<64x32xf32> to vector<64x32xbf16>
    %cst_30 = arith.constant dense<0.000000e+00> : vector<64x4xf32>
    %35 = tpu.matmul %34, %26, %cst_30 {dimension_numbers = #tpu.dot_dimension_numbers<[1], [0], [0], [1], [0, 0, 1, 1], [], []>} : vector<64x32xbf16>, vector<32x4xbf16>, vector<64x4xf32> -> vector<64x4xf32>
    %36 = arith.maximumf %31, %35 : vector<64x4xf32>
    %37 = arith.subf %31, %36 : vector<64x4xf32>
    %38 = math.exp %37 : vector<64x4xf32>
    %39 = arith.subf %35, %36 : vector<64x4xf32>
    %40 = math.exp %39 : vector<64x4xf32>
    %41 = arith.addf %38, %40 : vector<64x4xf32>
    %42 = tpu.reciprocal %41 {approx = true} : vector<64x4xf32> -> vector<64x4xf32>
    %cst_31 = arith.constant 0.000000e+00 : f32
    %43 = vector.broadcast %cst_31 : f32 to vector<64x32xf32>
    %44 = arith.mulf %38, %42 : vector<64x4xf32>
    %45 = arith.truncf %44 : vector<64x4xf32> to vector<64x4xbf16>
    %cst_32 = arith.constant dense<0.000000e+00> : vector<64x32xf32>
    %46 = tpu.matmul %45, %27, %cst_32 {dimension_numbers = #tpu.dot_dimension_numbers<[1], [0], [0], [1], [0, 0, 1, 1], [], []>} : vector<64x4xbf16>, vector<4x32xbf16>, vector<64x32xf32> -> vector<64x32xf32>
    %47 = vector.extract_strided_slice %25 {offsets = [0, 0], sizes = [64, 32], strides = [1, 1]} : vector<128x32xf32> to vector<64x32xf32>
    %48 = arith.mulf %46, %47 : vector<64x32xf32>
    %49 = arith.addf %43, %48 : vector<64x32xf32>
    %50 = arith.mulf %40, %42 : vector<64x4xf32>
    %51 = arith.truncf %50 : vector<64x4xf32> to vector<64x4xbf16>
    %cst_33 = arith.constant dense<0.000000e+00> : vector<64x32xf32>
    %52 = tpu.matmul %51, %27, %cst_33 {dimension_numbers = #tpu.dot_dimension_numbers<[1], [0], [0], [1], [0, 0, 1, 1], [], []>} : vector<64x4xbf16>, vector<4x32xbf16>, vector<64x32xf32> -> vector<64x32xf32>
    %53 = vector.extract_strided_slice %25 {offsets = [64, 0], sizes = [64, 32], strides = [1, 1]} : vector<128x32xf32> to vector<64x32xf32>
    %54 = arith.mulf %52, %53 : vector<64x32xf32>
    %55 = arith.addf %49, %54 : vector<64x32xf32>
    %c0_34 = arith.constant 0 : index
    %c0_35 = arith.constant 0 : index
    %56 = vector.load %arg11[%c0_34, %c0_35] : memref<32x32xbf16, #tpu.memory_space<vmem>>, vector<32x32xbf16>
    %57 = arith.truncf %55 : vector<64x32xf32> to vector<64x32xbf16>
    %cst_36 = arith.constant dense<0.000000e+00> : vector<64x32xf32>
    %58 = tpu.matmul %57, %56, %cst_36 {dimension_numbers = #tpu.dot_dimension_numbers<[1], [0], [0], [1], [0, 0, 1, 1], [], []>} : vector<64x32xbf16>, vector<32x32xbf16>, vector<64x32xf32> -> vector<64x32xf32>
    %c0_37 = arith.constant 0 : index
    %c0_38 = arith.constant 0 : index
    %59 = vector.load %arg12[%c0_37, %c0_38] : memref<1x32xf32, #tpu.memory_space<vmem>>, vector<1x32xf32>
    %60 = vector.broadcast %59 : vector<1x32xf32> to vector<64x32xf32>
    %61 = arith.addf %58, %60 : vector<64x32xf32>
    %cst_39 = arith.constant 0.000000e+00 : f32
    %62 = vector.broadcast %cst_39 : f32 to vector<20x20x32xf32>
    %c0_40 = arith.constant 0 : index
    %c0_41 = arith.constant 0 : index
    %c0_42 = arith.constant 0 : index
    %63 = vector.load %arg48[%c0_40, %c0_41, %c0_42] : memref<20x20x32xf32, #tpu.memory_space<vmem>>, vector<20x20x32xf32>
    tpu.vector_store %arg48[%c0_40, %c0_41, %c0_42], %62 {strides = array<i32>} : memref<20x20x32xf32, #tpu.memory_space<vmem>>, vector<20x20x32xf32>,
    %64 = vector.shape_cast %61 : vector<64x32xf32> to vector<8x8x32xf32>
    %c6 = arith.constant 6 : index
    %c6_43 = arith.constant 6 : index
    %c0_44 = arith.constant 0 : index
    %65 = vector.load %arg48[%c6, %c6_43, %c0_44] : memref<20x20x32xf32, #tpu.memory_space<vmem>>, vector<8x8x32xf32>
    tpu.vector_store %arg48[%c6, %c6_43, %c0_44], %64 {strides = array<i32>} : memref<20x20x32xf32, #tpu.memory_space<vmem>>, vector<8x8x32xf32>,
    %c0_45 = arith.constant 0 : index
    %c0_46 = arith.constant 0 : index
    %66 = vector.load %arg15[%c0_45, %c0_46] : memref<32x32xbf16, #tpu.memory_space<vmem>>, vector<32x32xbf16>
    %67 = arith.truncf %61 : vector<64x32xf32> to vector<64x32xbf16>
    %cst_47 = arith.constant dense<0.000000e+00> : vector<64x32xf32>
    %68 = tpu.matmul %67, %66, %cst_47 {dimension_numbers = #tpu.dot_dimension_numbers<[1], [0], [0], [1], [0, 0, 1, 1], [], []>} : vector<64x32xbf16>, vector<32x32xbf16>, vector<64x32xf32> -> vector<64x32xf32>
    %cst_48 = arith.constant 0.000000e+00 : f32
    %69 = vector.broadcast %cst_48 : f32 to vector<64x32xf32>
    %70 = arith.subf %69, %68 : vector<64x32xf32>
    %71 = math.exp %70 : vector<64x32xf32>
    %cst_49 = arith.constant 1.000000e+00 : f32
    %72 = vector.broadcast %cst_49 : f32 to vector<64x32xf32>
    %73 = arith.addf %72, %71 : vector<64x32xf32>
    %74 = tpu.reciprocal %73 {approx = true} : vector<64x32xf32> -> vector<64x32xf32>
    %75 = arith.mulf %61, %74 : vector<64x32xf32>
    %cst_50 = arith.constant dense<0.000000e+00> : vector<32xf32>
    %76 = vector.multi_reduction <add>, %61, %cst_50 [0] : vector<64x32xf32> to vector<32xf32>
    %77 = vector.shape_cast %76 : vector<32xf32> to vector<1x32xf32>
    %cst_51 = arith.constant 6.400000e+01 : f32
    %78 = vector.broadcast %cst_51 : f32 to vector<1x32xf32>
    %79 = arith.divf %77, %78 : vector<1x32xf32>
    %c0_52 = arith.constant 0 : index
    %c0_53 = arith.constant 0 : index
    %80 = vector.load %arg16[%c0_52, %c0_53] : memref<32x2xbf16, #tpu.memory_space<vmem>>, vector<32x2xbf16>
    %81 = arith.truncf %79 : vector<1x32xf32> to vector<1x32xbf16>
    %cst_54 = arith.constant dense<0.000000e+00> : vector<1x2xf32>
    %82 = tpu.matmul %81, %80, %cst_54 {dimension_numbers = #tpu.dot_dimension_numbers<[1], [0], [0], [1], [0, 0, 1, 1], [], []>} : vector<1x32xbf16>, vector<32x2xbf16>, vector<1x2xf32> -> vector<1x2xf32>
    %cst_55 = arith.constant 0.000000e+00 : f32
    %83 = vector.broadcast %cst_55 : f32 to vector<1x2xf32>
    %84 = arith.maximumf %82, %83 : vector<1x2xf32>
    %c0_56 = arith.constant 0 : index
    %c0_57 = arith.constant 0 : index
    %85 = vector.load %arg17[%c0_56, %c0_57] : memref<2x32xbf16, #tpu.memory_space<vmem>>, vector<2x32xbf16>
    %86 = arith.truncf %84 : vector<1x2xf32> to vector<1x2xbf16>
    %cst_58 = arith.constant dense<0.000000e+00> : vector<1x32xf32>
    %87 = tpu.matmul %86, %85, %cst_58 {dimension_numbers = #tpu.dot_dimension_numbers<[1], [0], [0], [1], [0, 0, 1, 1], [], []>} : vector<1x2xbf16>, vector<2x32xbf16>, vector<1x32xf32> -> vector<1x32xf32>
    %cst_59 = arith.constant 0.000000e+00 : f32
    %88 = vector.broadcast %cst_59 : f32 to vector<1x32xf32>
    %89 = arith.subf %88, %87 : vector<1x32xf32>
    %90 = math.exp %89 : vector<1x32xf32>
    %cst_60 = arith.constant 1.000000e+00 : f32
    %91 = vector.broadcast %cst_60 : f32 to vector<1x32xf32>
    %92 = arith.addf %91, %90 : vector<1x32xf32>
    %93 = tpu.reciprocal %92 {approx = true} : vector<1x32xf32> -> vector<1x32xf32>
    %94 = vector.broadcast %93 : vector<1x32xf32> to vector<64x32xf32>
    %95 = arith.mulf %61, %94 : vector<64x32xf32>
    %c5 = arith.constant 5 : index
    %c5_61 = arith.constant 5 : index
    %c0_62 = arith.constant 0 : index
    %96 = vector.load %arg48[%c5, %c5_61, %c0_62] : memref<20x20x32xf32, #tpu.memory_space<vmem>>, vector<8x8x32xf32>
    %97 = vector.shape_cast %96 : vector<8x8x32xf32> to vector<64x32xf32>
    %c5_63 = arith.constant 5 : index
    %c6_64 = arith.constant 6 : index
    %c0_65 = arith.constant 0 : index
    %98 = vector.load %arg48[%c5_63, %c6_64, %c0_65] : memref<20x20x32xf32, #tpu.memory_space<vmem>>, vector<8x8x32xf32>
    %99 = vector.shape_cast %98 : vector<8x8x32xf32> to vector<64x32xf32>
    %c5_66 = arith.constant 5 : index
    %c7 = arith.constant 7 : index
    %c0_67 = arith.constant 0 : index
    %100 = vector.load %arg48[%c5_66, %c7, %c0_67] : memref<20x20x32xf32, #tpu.memory_space<vmem>>, vector<8x8x32xf32>
    %101 = vector.shape_cast %100 : vector<8x8x32xf32> to vector<64x32xf32>
    %c6_68 = arith.constant 6 : index
    %c5_69 = arith.constant 5 : index
    %c0_70 = arith.constant 0 : index
    %102 = vector.load %arg48[%c6_68, %c5_69, %c0_70] : memref<20x20x32xf32, #tpu.memory_space<vmem>>, vector<8x8x32xf32>
    %103 = vector.shape_cast %102 : vector<8x8x32xf32> to vector<64x32xf32>
    %c6_71 = arith.constant 6 : index
    %c7_72 = arith.constant 7 : index
    %c0_73 = arith.constant 0 : index
    %104 = vector.load %arg48[%c6_71, %c7_72, %c0_73] : memref<20x20x32xf32, #tpu.memory_space<vmem>>, vector<8x8x32xf32>
    %105 = vector.shape_cast %104 : vector<8x8x32xf32> to vector<64x32xf32>
    %c7_74 = arith.constant 7 : index
    %c5_75 = arith.constant 5 : index
    %c0_76 = arith.constant 0 : index
    %106 = vector.load %arg48[%c7_74, %c5_75, %c0_76] : memref<20x20x32xf32, #tpu.memory_space<vmem>>, vector<8x8x32xf32>
    %107 = vector.shape_cast %106 : vector<8x8x32xf32> to vector<64x32xf32>
    %c7_77 = arith.constant 7 : index
    %c6_78 = arith.constant 6 : index
    %c0_79 = arith.constant 0 : index
    %108 = vector.load %arg48[%c7_77, %c6_78, %c0_79] : memref<20x20x32xf32, #tpu.memory_space<vmem>>, vector<8x8x32xf32>
    %109 = vector.shape_cast %108 : vector<8x8x32xf32> to vector<64x32xf32>
    %c7_80 = arith.constant 7 : index
    %c7_81 = arith.constant 7 : index
    %c0_82 = arith.constant 0 : index
    %110 = vector.load %arg48[%c7_80, %c7_81, %c0_82] : memref<20x20x32xf32, #tpu.memory_space<vmem>>, vector<8x8x32xf32>
    %111 = vector.shape_cast %110 : vector<8x8x32xf32> to vector<64x32xf32>
    %112 = tpu.concatenate %97, %99, %101, %103, %61, %105, %107, %109, %111 in 1 : vector<64x32xf32>, vector<64x32xf32>, vector<64x32xf32>, vector<64x32xf32>, vector<64x32xf32>, vector<64x32xf32>, vector<64x32xf32>, vector<64x32xf32>, vector<64x32xf32> -> vector<64x288xf32>
    %c0_83 = arith.constant 0 : index
    %c0_84 = arith.constant 0 : index
    %113 = vector.load %arg18[%c0_83, %c0_84] : memref<288x32xbf16, #tpu.memory_space<vmem>>, vector<288x32xbf16>
    %114 = arith.truncf %112 : vector<64x288xf32> to vector<64x288xbf16>
    %cst_85 = arith.constant dense<0.000000e+00> : vector<64x32xf32>
    %115 = tpu.matmul %114, %113, %cst_85 {dimension_numbers = #tpu.dot_dimension_numbers<[1], [0], [0], [1], [0, 0, 1, 1], [], []>} : vector<64x288xbf16>, vector<288x32xbf16>, vector<64x32xf32> -> vector<64x32xf32>
    %c0_86 = arith.constant 0 : index
    %c0_87 = arith.constant 0 : index
    %c0_88 = arith.constant 0 : index
    %116 = vector.load %arg22[%c0_86, %c0_87, %c0_88] : memref<4x1x32xf32, #tpu.memory_space<vmem>>, vector<1x1x32xf32>
    %117 = vector.shape_cast %116 : vector<1x1x32xf32> to vector<1x32xf32>
    %118 = vector.broadcast %117 : vector<1x32xf32> to vector<64x32xf32>
    %119 = arith.addf %115, %118 : vector<64x32xf32>
    %cst_89 = arith.constant 0.000000e+00 : f32
    %120 = vector.broadcast %cst_89 : f32 to vector<64x32xf32>
    %121 = arith.maximumf %119, %120 : vector<64x32xf32>
    %c0_90 = arith.constant 0 : index
    %c0_91 = arith.constant 0 : index
    %c0_92 = arith.constant 0 : index
    %122 = vector.load %arg48[%c0_90, %c0_91, %c0_92] : memref<20x20x32xf32, #tpu.memory_space<vmem>>, vector<8x8x32xf32>
    %123 = vector.shape_cast %122 : vector<8x8x32xf32> to vector<64x32xf32>
    %c0_93 = arith.constant 0 : index
    %c6_94 = arith.constant 6 : index
    %c0_95 = arith.constant 0 : index
    %124 = vector.load %arg48[%c0_93, %c6_94, %c0_95] : memref<20x20x32xf32, #tpu.memory_space<vmem>>, vector<8x8x32xf32>
    %125 = vector.shape_cast %124 : vector<8x8x32xf32> to vector<64x32xf32>
    %c0_96 = arith.constant 0 : index
    %c12 = arith.constant 12 : index
    %c0_97 = arith.constant 0 : index
    %126 = vector.load %arg48[%c0_96, %c12, %c0_97] : memref<20x20x32xf32, #tpu.memory_space<vmem>>, vector<8x8x32xf32>
    %127 = vector.shape_cast %126 : vector<8x8x32xf32> to vector<64x32xf32>
    %c6_98 = arith.constant 6 : index
    %c0_99 = arith.constant 0 : index
    %c0_100 = arith.constant 0 : index
    %128 = vector.load %arg48[%c6_98, %c0_99, %c0_100] : memref<20x20x32xf32, #tpu.memory_space<vmem>>, vector<8x8x32xf32>
    %129 = vector.shape_cast %128 : vector<8x8x32xf32> to vector<64x32xf32>
    %c6_101 = arith.constant 6 : index
    %c12_102 = arith.constant 12 : index
    %c0_103 = arith.constant 0 : index
    %130 = vector.load %arg48[%c6_101, %c12_102, %c0_103] : memref<20x20x32xf32, #tpu.memory_space<vmem>>, vector<8x8x32xf32>
    %131 = vector.shape_cast %130 : vector<8x8x32xf32> to vector<64x32xf32>
    %c12_104 = arith.constant 12 : index
    %c0_105 = arith.constant 0 : index
    %c0_106 = arith.constant 0 : index
    %132 = vector.load %arg48[%c12_104, %c0_105, %c0_106] : memref<20x20x32xf32, #tpu.memory_space<vmem>>, vector<8x8x32xf32>
    %133 = vector.shape_cast %132 : vector<8x8x32xf32> to vector<64x32xf32>
    %c12_107 = arith.constant 12 : index
    %c6_108 = arith.constant 6 : index
    %c0_109 = arith.constant 0 : index
    %134 = vector.load %arg48[%c12_107, %c6_108, %c0_109] : memref<20x20x32xf32, #tpu.memory_space<vmem>>, vector<8x8x32xf32>
    %135 = vector.shape_cast %134 : vector<8x8x32xf32> to vector<64x32xf32>
    %c12_110 = arith.constant 12 : index
    %c12_111 = arith.constant 12 : index
    %c0_112 = arith.constant 0 : index
    %136 = vector.load %arg48[%c12_110, %c12_111, %c0_112] : memref<20x20x32xf32, #tpu.memory_space<vmem>>, vector<8x8x32xf32>
    %137 = vector.shape_cast %136 : vector<8x8x32xf32> to vector<64x32xf32>
    %138 = tpu.concatenate %123, %125, %127, %129, %61, %131, %133, %135, %137 in 1 : vector<64x32xf32>, vector<64x32xf32>, vector<64x32xf32>, vector<64x32xf32>, vector<64x32xf32>, vector<64x32xf32>, vector<64x32xf32>, vector<64x32xf32>, vector<64x32xf32> -> vector<64x288xf32>
    %c0_113 = arith.constant 0 : index
    %c0_114 = arith.constant 0 : index
    %139 = vector.load %arg19[%c0_113, %c0_114] : memref<288x32xbf16, #tpu.memory_space<vmem>>, vector<288x32xbf16>
    %140 = arith.truncf %138 : vector<64x288xf32> to vector<64x288xbf16>
    %cst_115 = arith.constant dense<0.000000e+00> : vector<64x32xf32>
    %141 = tpu.matmul %140, %139, %cst_115 {dimension_numbers = #tpu.dot_dimension_numbers<[1], [0], [0], [1], [0, 0, 1, 1], [], []>} : vector<64x288xbf16>, vector<288x32xbf16>, vector<64x32xf32> -> vector<64x32xf32>
    %c1 = arith.constant 1 : index
    %c0_116 = arith.constant 0 : index
    %c0_117 = arith.constant 0 : index
    %142 = vector.load %arg22[%c1, %c0_116, %c0_117] : memref<4x1x32xf32, #tpu.memory_space<vmem>>, vector<1x1x32xf32>
    %143 = vector.shape_cast %142 : vector<1x1x32xf32> to vector<1x32xf32>
    %144 = vector.broadcast %143 : vector<1x32xf32> to vector<64x32xf32>
    %145 = arith.addf %141, %144 : vector<64x32xf32>
    %cst_118 = arith.constant 0.000000e+00 : f32
    %146 = vector.broadcast %cst_118 : f32 to vector<64x32xf32>
    %147 = arith.maximumf %145, %146 : vector<64x32xf32>
    %c0_119 = arith.constant 0 : index
    %c0_120 = arith.constant 0 : index
    %148 = vector.load %arg20[%c0_119, %c0_120] : memref<32x32xbf16, #tpu.memory_space<vmem>>, vector<32x32xbf16>
    %149 = arith.truncf %61 : vector<64x32xf32> to vector<64x32xbf16>
    %cst_121 = arith.constant dense<0.000000e+00> : vector<64x32xf32>
    %150 = tpu.matmul %149, %148, %cst_121 {dimension_numbers = #tpu.dot_dimension_numbers<[1], [0], [0], [1], [0, 0, 1, 1], [], []>} : vector<64x32xbf16>, vector<32x32xbf16>, vector<64x32xf32> -> vector<64x32xf32>
    %c2 = arith.constant 2 : index
    %c0_122 = arith.constant 0 : index
    %c0_123 = arith.constant 0 : index
    %151 = vector.load %arg22[%c2, %c0_122, %c0_123] : memref<4x1x32xf32, #tpu.memory_space<vmem>>, vector<1x1x32xf32>
    %152 = vector.shape_cast %151 : vector<1x1x32xf32> to vector<1x32xf32>
    %153 = vector.broadcast %152 : vector<1x32xf32> to vector<64x32xf32>
    %154 = arith.addf %150, %153 : vector<64x32xf32>
    %cst_124 = arith.constant 0.000000e+00 : f32
    %155 = vector.broadcast %cst_124 : f32 to vector<64x32xf32>
    %156 = arith.maximumf %154, %155 : vector<64x32xf32>
    %c0_125 = arith.constant 0 : index
    %c0_126 = arith.constant 0 : index
    %157 = vector.load %arg21[%c0_125, %c0_126] : memref<32x32xbf16, #tpu.memory_space<vmem>>, vector<32x32xbf16>
    %158 = arith.truncf %61 : vector<64x32xf32> to vector<64x32xbf16>
    %cst_127 = arith.constant dense<0.000000e+00> : vector<64x32xf32>
    %159 = tpu.matmul %158, %157, %cst_127 {dimension_numbers = #tpu.dot_dimension_numbers<[1], [0], [0], [1], [0, 0, 1, 1], [], []>} : vector<64x32xbf16>, vector<32x32xbf16>, vector<64x32xf32> -> vector<64x32xf32>
    %c3 = arith.constant 3 : index
    %c0_128 = arith.constant 0 : index
    %c0_129 = arith.constant 0 : index
    %160 = vector.load %arg22[%c3, %c0_128, %c0_129] : memref<4x1x32xf32, #tpu.memory_space<vmem>>, vector<1x1x32xf32>
    %161 = vector.shape_cast %160 : vector<1x1x32xf32> to vector<1x32xf32>
    %162 = vector.broadcast %161 : vector<1x32xf32> to vector<64x32xf32>
    %163 = arith.addf %159, %162 : vector<64x32xf32>
    %cst_130 = arith.constant 0.000000e+00 : f32
    %164 = vector.broadcast %cst_130 : f32 to vector<64x32xf32>
    %165 = arith.maximumf %163, %164 : vector<64x32xf32>
    %166 = tpu.concatenate %121, %147, %156, %165 in 1 : vector<64x32xf32>, vector<64x32xf32>, vector<64x32xf32>, vector<64x32xf32> -> vector<64x128xf32>
    %c0_131 = arith.constant 0 : index
    %c0_132 = arith.constant 0 : index
    %167 = vector.load %arg23[%c0_131, %c0_132] : memref<128x32xbf16, #tpu.memory_space<vmem>>, vector<128x32xbf16>
    %168 = arith.truncf %166 : vector<64x128xf32> to vector<64x128xbf16>
    %cst_133 = arith.constant dense<0.000000e+00> : vector<64x32xf32>
    %169 = tpu.matmul %168, %167, %cst_133 {dimension_numbers = #tpu.dot_dimension_numbers<[1], [0], [0], [1], [0, 0, 1, 1], [], []>} : vector<64x128xbf16>, vector<128x32xbf16>, vector<64x32xf32> -> vector<64x32xf32>
    %c0_134 = arith.constant 0 : index
    %c0_135 = arith.constant 0 : index
    %170 = vector.load %arg24[%c0_134, %c0_135] : memref<1x32xf32, #tpu.memory_space<vmem>>, vector<1x32xf32>
    %171 = vector.broadcast %170 : vector<1x32xf32> to vector<64x32xf32>
    %172 = arith.addf %169, %171 : vector<64x32xf32>
    %c0_136 = arith.constant 0 : index
    %c0_137 = arith.constant 0 : index
    %173 = vector.load %arg29[%c0_136, %c0_137] : memref<1x32xf32, #tpu.memory_space<vmem>>, vector<1x32xf32>
    %174 = vector.broadcast %173 : vector<1x32xf32> to vector<64x32xf32>
    %175 = arith.mulf %174, %75 : vector<64x32xf32>
    %c0_138 = arith.constant 0 : index
    %c0_139 = arith.constant 0 : index
    %176 = vector.load %arg30[%c0_138, %c0_139] : memref<1x32xf32, #tpu.memory_space<vmem>>, vector<1x32xf32>
    %177 = vector.broadcast %176 : vector<1x32xf32> to vector<64x32xf32>
    %178 = arith.mulf %177, %95 : vector<64x32xf32>
    %179 = arith.addf %175, %178 : vector<64x32xf32>
    %180 = vector.shape_cast %179 : vector<64x32xf32> to vector<8x8x32xf32>
    %cst_140 = arith.constant dense<0xFF800000> : vector<8x32xf32>
    %181 = vector.multi_reduction <maximumf>, %180, %cst_140 [1] : vector<8x8x32xf32> to vector<8x32xf32>
    %182 = vector.shape_cast %181 : vector<8x32xf32> to vector<8x1x32xf32>
    %183 = vector.broadcast %182 : vector<8x1x32xf32> to vector<8x8x32xf32>
    %184 = arith.subf %180, %183 : vector<8x8x32xf32>
    %185 = math.exp %184 : vector<8x8x32xf32>
    %cst_141 = arith.constant dense<0.000000e+00> : vector<8x32xf32>
    %186 = vector.multi_reduction <add>, %185, %cst_141 [1] : vector<8x8x32xf32> to vector<8x32xf32>
    %187 = vector.shape_cast %186 : vector<8x32xf32> to vector<8x1x32xf32>
    %188 = tpu.reciprocal %187 {approx = true} : vector<8x1x32xf32> -> vector<8x1x32xf32>
    %189 = vector.broadcast %188 : vector<8x1x32xf32> to vector<8x8x32xf32>
    %190 = arith.mulf %185, %189 : vector<8x8x32xf32>
    %c0_142 = arith.constant 0 : index
    %c0_143 = arith.constant 0 : index
    %191 = vector.load %arg31[%c0_142, %c0_143] : memref<1x32xf32, #tpu.memory_space<vmem>>, vector<1x32xf32>
    %192 = vector.broadcast %191 : vector<1x32xf32> to vector<64x32xf32>
    %193 = arith.mulf %192, %172 : vector<64x32xf32>
    %194 = vector.shape_cast %193 : vector<64x32xf32> to vector<8x8x32xf32>
    %195 = arith.addf %190, %194 : vector<8x8x32xf32>
    %196 = vector.shape_cast %195 : vector<8x8x32xf32> to vector<64x32xf32>
    %c0_144 = arith.constant 0 : index
    %c0_145 = arith.constant 0 : index
    %197 = vector.load %arg25[%c0_144, %c0_145] : memref<32x32xbf16, #tpu.memory_space<vmem>>, vector<32x32xbf16>
    %198 = arith.truncf %196 : vector<64x32xf32> to vector<64x32xbf16>
    %cst_146 = arith.constant dense<0.000000e+00> : vector<64x32xf32>
    %199 = tpu.matmul %198, %197, %cst_146 {dimension_numbers = #tpu.dot_dimension_numbers<[1], [0], [0], [1], [0, 0, 1, 1], [], []>} : vector<64x32xbf16>, vector<32x32xbf16>, vector<64x32xf32> -> vector<64x32xf32>
    %c0_147 = arith.constant 0 : index
    %c0_148 = arith.constant 0 : index
    %200 = vector.load %arg26[%c0_147, %c0_148] : memref<1x32xf32, #tpu.memory_space<vmem>>, vector<1x32xf32>
    %201 = vector.broadcast %200 : vector<1x32xf32> to vector<64x32xf32>
    %202 = arith.addf %199, %201 : vector<64x32xf32>
    %c0_149 = arith.constant 0 : index
    %c0_150 = arith.constant 0 : index
    %203 = vector.load %arg27[%c0_149, %c0_150] : memref<1x32xf32, #tpu.memory_space<vmem>>, vector<1x32xf32>
    %204 = vector.broadcast %203 : vector<1x32xf32> to vector<64x32xf32>
    %205 = arith.addf %202, %204 : vector<64x32xf32>
    %c0_151 = arith.constant 0 : index
    %c0_152 = arith.constant 0 : index
    %206 = vector.load %arg28[%c0_151, %c0_152] : memref<1x32xf32, #tpu.memory_space<vmem>>, vector<1x32xf32>
    %207 = vector.broadcast %206 : vector<1x32xf32> to vector<64x32xf32>
    %208 = arith.mulf %207, %61 : vector<64x32xf32>
    %209 = arith.addf %205, %208 : vector<64x32xf32>
    %c0_153 = arith.constant 0 : index
    %c0_154 = arith.constant 0 : index
    %210 = vector.load %arg34[%c0_153, %c0_154] : memref<1x32xf32, #tpu.memory_space<vmem>>, vector<1x32xf32>
    %c0_155 = arith.constant 0 : index
    %c0_156 = arith.constant 0 : index
    %211 = vector.load %arg32[%c0_155, %c0_156] : memref<1x32xf32, #tpu.memory_space<vmem>>, vector<1x32xf32>
    %c0_157 = arith.constant 0 : index
    %c0_158 = arith.constant 0 : index
    %212 = vector.load %arg33[%c0_157, %c0_158] : memref<1x32xf32, #tpu.memory_space<vmem>>, vector<1x32xf32>
    %cst_159 = arith.constant dense<0.000000e+00> : vector<64xf32>
    %213 = vector.multi_reduction <add>, %209, %cst_159 [1] : vector<64x32xf32> to vector<64xf32>
    %214 = vector.shape_cast %213 : vector<64xf32> to vector<64x1xf32>
    %cst_160 = arith.constant 3.200000e+01 : f32
    %215 = vector.broadcast %cst_160 : f32 to vector<64x1xf32>
    %216 = arith.divf %214, %215 : vector<64x1xf32>
    %217 = vector.broadcast %216 : vector<64x1xf32> to vector<64x32xf32>
    %218 = arith.subf %209, %217 : vector<64x32xf32>
    %219 = arith.mulf %218, %218 : vector<64x32xf32>
    %cst_161 = arith.constant dense<0.000000e+00> : vector<64xf32>
    %220 = vector.multi_reduction <add>, %219, %cst_161 [1] : vector<64x32xf32> to vector<64xf32>
    %221 = vector.shape_cast %220 : vector<64xf32> to vector<64x1xf32>
    %cst_162 = arith.constant 3.200000e+01 : f32
    %222 = vector.broadcast %cst_162 : f32 to vector<64x1xf32>
    %223 = arith.divf %221, %222 : vector<64x1xf32>
    %224 = vector.broadcast %216 : vector<64x1xf32> to vector<64x32xf32>
    %225 = arith.subf %209, %224 : vector<64x32xf32>
    %cst_163 = arith.constant 9.99999974E-6 : f32
    %226 = vector.broadcast %cst_163 : f32 to vector<64x1xf32>
    %227 = arith.addf %223, %226 : vector<64x1xf32>
    %228 = math.rsqrt %227 : vector<64x1xf32>
    %229 = vector.broadcast %228 : vector<64x1xf32> to vector<64x32xf32>
    %230 = arith.mulf %225, %229 : vector<64x32xf32>
    %231 = vector.broadcast %211 : vector<1x32xf32> to vector<64x32xf32>
    %232 = arith.mulf %230, %231 : vector<64x32xf32>
    %233 = vector.broadcast %212 : vector<1x32xf32> to vector<64x32xf32>
    %234 = arith.addf %232, %233 : vector<64x32xf32>
    %235 = vector.broadcast %210 : vector<1x32xf32> to vector<64x32xf32>
    %236 = arith.mulf %235, %234 : vector<64x32xf32>
    %237 = arith.addf %1, %236 : vector<64x32xf32>
    %c0_164 = arith.constant 0 : index
    %c0_165 = arith.constant 0 : index
    %238 = vector.load %arg35[%c0_164, %c0_165] : memref<32x64xbf16, #tpu.memory_space<vmem>>, vector<32x64xbf16>
    %239 = arith.truncf %237 : vector<64x32xf32> to vector<64x32xbf16>
    %cst_166 = arith.constant dense<0.000000e+00> : vector<64x64xf32>
    %240 = tpu.matmul %239, %238, %cst_166 {dimension_numbers = #tpu.dot_dimension_numbers<[1], [0], [0], [1], [0, 0, 1, 1], [], []>} : vector<64x32xbf16>, vector<32x64xbf16>, vector<64x64xf32> -> vector<64x64xf32>
    %c0_167 = arith.constant 0 : index
    %c0_168 = arith.constant 0 : index
    %241 = vector.load %arg36[%c0_167, %c0_168] : memref<1x64xf32, #tpu.memory_space<vmem>>, vector<1x64xf32>
    %242 = vector.broadcast %241 : vector<1x64xf32> to vector<64x64xf32>
    %243 = arith.addf %240, %242 : vector<64x64xf32>
    %cst_169 = arith.constant 5.000000e-01 : f32
    %244 = vector.broadcast %cst_169 : f32 to vector<64x64xf32>
    %245 = arith.mulf %244, %243 : vector<64x64xf32>
    %cst_170 = arith.constant 4.471500e-02 : f32
    %246 = vector.broadcast %cst_170 : f32 to vector<64x64xf32>
    %247 = arith.mulf %246, %243 : vector<64x64xf32>
    %248 = arith.mulf %247, %243 : vector<64x64xf32>
    %249 = arith.mulf %248, %243 : vector<64x64xf32>
    %250 = arith.addf %243, %249 : vector<64x64xf32>
    %cst_171 = arith.constant 0.797884583 : f32
    %251 = vector.broadcast %cst_171 : f32 to vector<64x64xf32>
    %252 = arith.mulf %251, %250 : vector<64x64xf32>
    %253 = math.tanh %252 : vector<64x64xf32>
    %cst_172 = arith.constant 1.000000e+00 : f32
    %254 = vector.broadcast %cst_172 : f32 to vector<64x64xf32>
    %255 = arith.addf %254, %253 : vector<64x64xf32>
    %256 = arith.mulf %245, %255 : vector<64x64xf32>
    %cst_173 = arith.constant 0.000000e+00 : f32
    %257 = vector.broadcast %cst_173 : f32 to vector<10x10x64xf32>
    %c0_174 = arith.constant 0 : index
    %c0_175 = arith.constant 0 : index
    %c0_176 = arith.constant 0 : index
    %258 = vector.load %arg49[%c0_174, %c0_175, %c0_176] : memref<10x10x64xf32, #tpu.memory_space<vmem>>, vector<10x10x64xf32>
    tpu.vector_store %arg49[%c0_174, %c0_175, %c0_176], %257 {strides = array<i32>} : memref<10x10x64xf32, #tpu.memory_space<vmem>>, vector<10x10x64xf32>,
    %259 = vector.shape_cast %256 : vector<64x64xf32> to vector<8x8x64xf32>
    %c1_177 = arith.constant 1 : index
    %c1_178 = arith.constant 1 : index
    %c0_179 = arith.constant 0 : index
    %260 = vector.load %arg49[%c1_177, %c1_178, %c0_179] : memref<10x10x64xf32, #tpu.memory_space<vmem>>, vector<8x8x64xf32>
    tpu.vector_store %arg49[%c1_177, %c1_178, %c0_179], %259 {strides = array<i32>} : memref<10x10x64xf32, #tpu.memory_space<vmem>>, vector<8x8x64xf32>,
    %cst_180 = arith.constant 0.000000e+00 : f32
    %261 = vector.broadcast %cst_180 : f32 to vector<64x64xf32>
    %c0_181 = arith.constant 0 : index
    %c0_182 = arith.constant 0 : index
    %262 = vector.load %arg38[%c0_181, %c0_182] : memref<1x64xf32, #tpu.memory_space<vmem>>, vector<1x64xf32>
    %263 = vector.broadcast %262 : vector<1x64xf32> to vector<64x64xf32>
    %264 = arith.addf %261, %263 : vector<64x64xf32>
    %c0_183 = arith.constant 0 : index
    %c0_184 = arith.constant 0 : index
    %c0_185 = arith.constant 0 : index
    %265 = vector.load %arg49[%c0_183, %c0_184, %c0_185] : memref<10x10x64xf32, #tpu.memory_space<vmem>>, vector<8x8x64xf32>
    %266 = vector.shape_cast %265 : vector<8x8x64xf32> to vector<64x64xf32>
    %c0_186 = arith.constant 0 : index
    %c0_187 = arith.constant 0 : index
    %c0_188 = arith.constant 0 : index
    %267 = vector.load %arg37[%c0_186, %c0_187, %c0_188] : memref<9x1x64xf32, #tpu.memory_space<vmem>>, vector<1x1x64xf32>
    %268 = vector.shape_cast %267 : vector<1x1x64xf32> to vector<1x64xf32>
    %269 = vector.broadcast %268 : vector<1x64xf32> to vector<64x64xf32>
    %270 = arith.mulf %266, %269 : vector<64x64xf32>
    %271 = arith.addf %264, %270 : vector<64x64xf32>
    %c0_189 = arith.constant 0 : index
    %c1_190 = arith.constant 1 : index
    %c0_191 = arith.constant 0 : index
    %272 = vector.load %arg49[%c0_189, %c1_190, %c0_191] : memref<10x10x64xf32, #tpu.memory_space<vmem>>, vector<8x8x64xf32>
    %273 = vector.shape_cast %272 : vector<8x8x64xf32> to vector<64x64xf32>
    %c1_192 = arith.constant 1 : index
    %c0_193 = arith.constant 0 : index
    %c0_194 = arith.constant 0 : index
    %274 = vector.load %arg37[%c1_192, %c0_193, %c0_194] : memref<9x1x64xf32, #tpu.memory_space<vmem>>, vector<1x1x64xf32>
    %275 = vector.shape_cast %274 : vector<1x1x64xf32> to vector<1x64xf32>
    %276 = vector.broadcast %275 : vector<1x64xf32> to vector<64x64xf32>
    %277 = arith.mulf %273, %276 : vector<64x64xf32>
    %278 = arith.addf %271, %277 : vector<64x64xf32>
    %c0_195 = arith.constant 0 : index
    %c2_196 = arith.constant 2 : index
    %c0_197 = arith.constant 0 : index
    %279 = vector.load %arg49[%c0_195, %c2_196, %c0_197] : memref<10x10x64xf32, #tpu.memory_space<vmem>>, vector<8x8x64xf32>
    %280 = vector.shape_cast %279 : vector<8x8x64xf32> to vector<64x64xf32>
    %c2_198 = arith.constant 2 : index
    %c0_199 = arith.constant 0 : index
    %c0_200 = arith.constant 0 : index
    %281 = vector.load %arg37[%c2_198, %c0_199, %c0_200] : memref<9x1x64xf32, #tpu.memory_space<vmem>>, vector<1x1x64xf32>
    %282 = vector.shape_cast %281 : vector<1x1x64xf32> to vector<1x64xf32>
    %283 = vector.broadcast %282 : vector<1x64xf32> to vector<64x64xf32>
    %284 = arith.mulf %280, %283 : vector<64x64xf32>
    %285 = arith.addf %278, %284 : vector<64x64xf32>
    %c1_201 = arith.constant 1 : index
    %c0_202 = arith.constant 0 : index
    %c0_203 = arith.constant 0 : index
    %286 = vector.load %arg49[%c1_201, %c0_202, %c0_203] : memref<10x10x64xf32, #tpu.memory_space<vmem>>, vector<8x8x64xf32>
    %287 = vector.shape_cast %286 : vector<8x8x64xf32> to vector<64x64xf32>
    %c3_204 = arith.constant 3 : index
    %c0_205 = arith.constant 0 : index
    %c0_206 = arith.constant 0 : index
    %288 = vector.load %arg37[%c3_204, %c0_205, %c0_206] : memref<9x1x64xf32, #tpu.memory_space<vmem>>, vector<1x1x64xf32>
    %289 = vector.shape_cast %288 : vector<1x1x64xf32> to vector<1x64xf32>
    %290 = vector.broadcast %289 : vector<1x64xf32> to vector<64x64xf32>
    %291 = arith.mulf %287, %290 : vector<64x64xf32>
    %292 = arith.addf %285, %291 : vector<64x64xf32>
    %c4 = arith.constant 4 : index
    %c0_207 = arith.constant 0 : index
    %c0_208 = arith.constant 0 : index
    %293 = vector.load %arg37[%c4, %c0_207, %c0_208] : memref<9x1x64xf32, #tpu.memory_space<vmem>>, vector<1x1x64xf32>
    %294 = vector.shape_cast %293 : vector<1x1x64xf32> to vector<1x64xf32>
    %295 = vector.broadcast %294 : vector<1x64xf32> to vector<64x64xf32>
    %296 = arith.mulf %256, %295 : vector<64x64xf32>
    %297 = arith.addf %292, %296 : vector<64x64xf32>
    %c1_209 = arith.constant 1 : index
    %c2_210 = arith.constant 2 : index
    %c0_211 = arith.constant 0 : index
    %298 = vector.load %arg49[%c1_209, %c2_210, %c0_211] : memref<10x10x64xf32, #tpu.memory_space<vmem>>, vector<8x8x64xf32>
    %299 = vector.shape_cast %298 : vector<8x8x64xf32> to vector<64x64xf32>
    %c5_212 = arith.constant 5 : index
    %c0_213 = arith.constant 0 : index
    %c0_214 = arith.constant 0 : index
    %300 = vector.load %arg37[%c5_212, %c0_213, %c0_214] : memref<9x1x64xf32, #tpu.memory_space<vmem>>, vector<1x1x64xf32>
    %301 = vector.shape_cast %300 : vector<1x1x64xf32> to vector<1x64xf32>
    %302 = vector.broadcast %301 : vector<1x64xf32> to vector<64x64xf32>
    %303 = arith.mulf %299, %302 : vector<64x64xf32>
    %304 = arith.addf %297, %303 : vector<64x64xf32>
    %c2_215 = arith.constant 2 : index
    %c0_216 = arith.constant 0 : index
    %c0_217 = arith.constant 0 : index
    %305 = vector.load %arg49[%c2_215, %c0_216, %c0_217] : memref<10x10x64xf32, #tpu.memory_space<vmem>>, vector<8x8x64xf32>
    %306 = vector.shape_cast %305 : vector<8x8x64xf32> to vector<64x64xf32>
    %c6_218 = arith.constant 6 : index
    %c0_219 = arith.constant 0 : index
    %c0_220 = arith.constant 0 : index
    %307 = vector.load %arg37[%c6_218, %c0_219, %c0_220] : memref<9x1x64xf32, #tpu.memory_space<vmem>>, vector<1x1x64xf32>
    %308 = vector.shape_cast %307 : vector<1x1x64xf32> to vector<1x64xf32>
    %309 = vector.broadcast %308 : vector<1x64xf32> to vector<64x64xf32>
    %310 = arith.mulf %306, %309 : vector<64x64xf32>
    %311 = arith.addf %304, %310 : vector<64x64xf32>
    %c2_221 = arith.constant 2 : index
    %c1_222 = arith.constant 1 : index
    %c0_223 = arith.constant 0 : index
    %312 = vector.load %arg49[%c2_221, %c1_222, %c0_223] : memref<10x10x64xf32, #tpu.memory_space<vmem>>, vector<8x8x64xf32>
    %313 = vector.shape_cast %312 : vector<8x8x64xf32> to vector<64x64xf32>
    %c7_224 = arith.constant 7 : index
    %c0_225 = arith.constant 0 : index
    %c0_226 = arith.constant 0 : index
    %314 = vector.load %arg37[%c7_224, %c0_225, %c0_226] : memref<9x1x64xf32, #tpu.memory_space<vmem>>, vector<1x1x64xf32>
    %315 = vector.shape_cast %314 : vector<1x1x64xf32> to vector<1x64xf32>
    %316 = vector.broadcast %315 : vector<1x64xf32> to vector<64x64xf32>
    %317 = arith.mulf %313, %316 : vector<64x64xf32>
    %318 = arith.addf %311, %317 : vector<64x64xf32>
    %c2_227 = arith.constant 2 : index
    %c2_228 = arith.constant 2 : index
    %c0_229 = arith.constant 0 : index
    %319 = vector.load %arg49[%c2_227, %c2_228, %c0_229] : memref<10x10x64xf32, #tpu.memory_space<vmem>>, vector<8x8x64xf32>
    %320 = vector.shape_cast %319 : vector<8x8x64xf32> to vector<64x64xf32>
    %c8 = arith.constant 8 : index
    %c0_230 = arith.constant 0 : index
    %c0_231 = arith.constant 0 : index
    %321 = vector.load %arg37[%c8, %c0_230, %c0_231] : memref<9x1x64xf32, #tpu.memory_space<vmem>>, vector<1x1x64xf32>
    %322 = vector.shape_cast %321 : vector<1x1x64xf32> to vector<1x64xf32>
    %323 = vector.broadcast %322 : vector<1x64xf32> to vector<64x64xf32>
    %324 = arith.mulf %320, %323 : vector<64x64xf32>
    %325 = arith.addf %318, %324 : vector<64x64xf32>
    %c0_232 = arith.constant 0 : index
    %c0_233 = arith.constant 0 : index
    %326 = vector.load %arg39[%c0_232, %c0_233] : memref<64x32xbf16, #tpu.memory_space<vmem>>, vector<64x32xbf16>
    %327 = arith.truncf %325 : vector<64x64xf32> to vector<64x64xbf16>
    %cst_234 = arith.constant dense<0.000000e+00> : vector<64x32xf32>
    %328 = tpu.matmul %327, %326, %cst_234 {dimension_numbers = #tpu.dot_dimension_numbers<[1], [0], [0], [1], [0, 0, 1, 1], [], []>} : vector<64x64xbf16>, vector<64x32xbf16>, vector<64x32xf32> -> vector<64x32xf32>
    %c0_235 = arith.constant 0 : index
    %c0_236 = arith.constant 0 : index
    %329 = vector.load %arg40[%c0_235, %c0_236] : memref<1x32xf32, #tpu.memory_space<vmem>>, vector<1x32xf32>
    %330 = vector.broadcast %329 : vector<1x32xf32> to vector<64x32xf32>
    %331 = arith.addf %328, %330 : vector<64x32xf32>
    %c0_237 = arith.constant 0 : index
    %c0_238 = arith.constant 0 : index
    %332 = vector.load %arg43[%c0_237, %c0_238] : memref<1x32xf32, #tpu.memory_space<vmem>>, vector<1x32xf32>
    %c0_239 = arith.constant 0 : index
    %c0_240 = arith.constant 0 : index
    %333 = vector.load %arg41[%c0_239, %c0_240] : memref<1x32xf32, #tpu.memory_space<vmem>>, vector<1x32xf32>
    %c0_241 = arith.constant 0 : index
    %c0_242 = arith.constant 0 : index
    %334 = vector.load %arg42[%c0_241, %c0_242] : memref<1x32xf32, #tpu.memory_space<vmem>>, vector<1x32xf32>
    %cst_243 = arith.constant dense<0.000000e+00> : vector<64xf32>
    %335 = vector.multi_reduction <add>, %331, %cst_243 [1] : vector<64x32xf32> to vector<64xf32>
    %336 = vector.shape_cast %335 : vector<64xf32> to vector<64x1xf32>
    %cst_244 = arith.constant 3.200000e+01 : f32
    %337 = vector.broadcast %cst_244 : f32 to vector<64x1xf32>
    %338 = arith.divf %336, %337 : vector<64x1xf32>
    %339 = vector.broadcast %338 : vector<64x1xf32> to vector<64x32xf32>
    %340 = arith.subf %331, %339 : vector<64x32xf32>
    %341 = arith.mulf %340, %340 : vector<64x32xf32>
    %cst_245 = arith.constant dense<0.000000e+00> : vector<64xf32>
    %342 = vector.multi_reduction <add>, %341, %cst_245 [1] : vector<64x32xf32> to vector<64xf32>
    %343 = vector.shape_cast %342 : vector<64xf32> to vector<64x1xf32>
    %cst_246 = arith.constant 3.200000e+01 : f32
    %344 = vector.broadcast %cst_246 : f32 to vector<64x1xf32>
    %345 = arith.divf %343, %344 : vector<64x1xf32>
    %346 = vector.broadcast %338 : vector<64x1xf32> to vector<64x32xf32>
    %347 = arith.subf %331, %346 : vector<64x32xf32>
    %cst_247 = arith.constant 9.99999974E-6 : f32
    %348 = vector.broadcast %cst_247 : f32 to vector<64x1xf32>
    %349 = arith.addf %345, %348 : vector<64x1xf32>
    %350 = math.rsqrt %349 : vector<64x1xf32>
    %351 = vector.broadcast %350 : vector<64x1xf32> to vector<64x32xf32>
    %352 = arith.mulf %347, %351 : vector<64x32xf32>
    %353 = vector.broadcast %333 : vector<1x32xf32> to vector<64x32xf32>
    %354 = arith.mulf %352, %353 : vector<64x32xf32>
    %355 = vector.broadcast %334 : vector<1x32xf32> to vector<64x32xf32>
    %356 = arith.addf %354, %355 : vector<64x32xf32>
    %357 = vector.broadcast %332 : vector<1x32xf32> to vector<64x32xf32>
    %358 = arith.mulf %357, %356 : vector<64x32xf32>
    %359 = arith.addf %237, %358 : vector<64x32xf32>
    %c0_248 = arith.constant 0 : index
    %c0_249 = arith.constant 0 : index
    %c0_250 = arith.constant 0 : index
    %360 = vector.load %arg47[%c0_248, %c0_249, %c0_250] : memref<1x64x32xf32, #tpu.memory_space<vmem>>, vector<1x64x32xf32>
    %361 = vector.shape_cast %360 : vector<1x64x32xf32> to vector<64x32xf32>
    %362 = vector.shape_cast %359 : vector<64x32xf32> to vector<1x64x32xf32>
    tpu.vector_store %arg47[%c0_248, %c0_249, %c0_250], %362 {strides = array<i32>} : memref<1x64x32xf32, #tpu.memory_space<vmem>>, vector<1x64x32xf32>,
    return
  }
  func.func @transform_0(%arg0: i32) -> (i32, i32, i32) {
    %c0_i32 = arith.constant 0 : i32
    %c0_i32_0 = arith.constant 0 : i32
    %c0_i32_1 = arith.constant 0 : i32
    return %arg0, %c0_i32, %c0_i32_0 : i32, i32, i32
  }
  func.func @transform_1(%arg0: i32) -> (i32, i32, i32) {
    %c0_i32 = arith.constant 0 : i32
    %c0_i32_0 = arith.constant 0 : i32
    %c0_i32_1 = arith.constant 0 : i32
    return %arg0, %c0_i32, %c0_i32_0 : i32, i32, i32
  }
  func.func @transform_2(%arg0: i32) -> (i32, i32, i32) {
    %c0_i32 = arith.constant 0 : i32
    %c0_i32_0 = arith.constant 0 : i32
    %c0_i32_1 = arith.constant 0 : i32
    %c0_i32_2 = arith.constant 0 : i32
    return %c0_i32, %c0_i32_0, %c0_i32_1 : i32, i32, i32
  }
  func.func @transform_3(%arg0: i32) -> (i32, i32, i32) {
    %c0_i32 = arith.constant 0 : i32
    %c0_i32_0 = arith.constant 0 : i32
    %c0_i32_1 = arith.constant 0 : i32
    %c0_i32_2 = arith.constant 0 : i32
    return %c0_i32, %c0_i32_0, %c0_i32_1 : i32, i32, i32
  }
  func.func @transform_4(%arg0: i32) -> (i32, i32) {
    %c0_i32 = arith.constant 0 : i32
    %c0_i32_0 = arith.constant 0 : i32
    %c0_i32_1 = arith.constant 0 : i32
    return %c0_i32, %c0_i32_0 : i32, i32
  }
  func.func @transform_5(%arg0: i32) -> (i32, i32) {
    %c0_i32 = arith.constant 0 : i32
    %c0_i32_0 = arith.constant 0 : i32
    %c0_i32_1 = arith.constant 0 : i32
    return %c0_i32, %c0_i32_0 : i32, i32
  }
  func.func @transform_6(%arg0: i32) -> (i32, i32) {
    %c0_i32 = arith.constant 0 : i32
    %c0_i32_0 = arith.constant 0 : i32
    %c0_i32_1 = arith.constant 0 : i32
    return %c0_i32, %c0_i32_0 : i32, i32
  }
  func.func @transform_7(%arg0: i32) -> (i32, i32) {
    %c0_i32 = arith.constant 0 : i32
    %c0_i32_0 = arith.constant 0 : i32
    %c0_i32_1 = arith.constant 0 : i32
    return %c0_i32, %c0_i32_0 : i32, i32
  }
  func.func @transform_8(%arg0: i32) -> (i32, i32) {
    %c0_i32 = arith.constant 0 : i32
    %c0_i32_0 = arith.constant 0 : i32
    %c0_i32_1 = arith.constant 0 : i32
    return %c0_i32, %c0_i32_0 : i32, i32
  }
  func.func @transform_9(%arg0: i32) -> (i32, i32) {
    %c0_i32 = arith.constant 0 : i32
    %c0_i32_0 = arith.constant 0 : i32
    %c0_i32_1 = arith.constant 0 : i32
    return %c0_i32, %c0_i32_0 : i32, i32
  }
  func.func @transform_10(%arg0: i32) -> (i32, i32) {
    %c0_i32 = arith.constant 0 : i32
    %c0_i32_0 = arith.constant 0 : i32
    %c0_i32_1 = arith.constant 0 : i32
    return %c0_i32, %c0_i32_0 : i32, i32
  }
  func.func @transform_11(%arg0: i32) -> (i32, i32) {
    %c0_i32 = arith.constant 0 : i32
    %c0_i32_0 = arith.constant 0 : i32
    %c0_i32_1 = arith.constant 0 : i32
    return %c0_i32, %c0_i32_0 : i32, i32
  }
  func.func @transform_12(%arg0: i32) -> (i32, i32) {
    %c0_i32 = arith.constant 0 : i32
    %c0_i32_0 = arith.constant 0 : i32
    %c0_i32_1 = arith.constant 0 : i32
    return %c0_i32, %c0_i32_0 : i32, i32
  }
  func.func @transform_13(%arg0: i32) -> (i32, i32) {
    %c0_i32 = arith.constant 0 : i32
    %c0_i32_0 = arith.constant 0 : i32
    %c0_i32_1 = arith.constant 0 : i32
    return %c0_i32, %c0_i32_0 : i32, i32
  }
  func.func @transform_14(%arg0: i32) -> (i32, i32) {
    %c0_i32 = arith.constant 0 : i32
    %c0_i32_0 = arith.constant 0 : i32
    %c0_i32_1 = arith.constant 0 : i32
    return %c0_i32, %c0_i32_0 : i32, i32
  }
  func.func @transform_15(%arg0: i32) -> (i32, i32) {
    %c0_i32 = arith.constant 0 : i32
    %c0_i32_0 = arith.constant 0 : i32
    %c0_i32_1 = arith.constant 0 : i32
    return %c0_i32, %c0_i32_0 : i32, i32
  }
  func.func @transform_16(%arg0: i32) -> (i32, i32) {
    %c0_i32 = arith.constant 0 : i32
    %c0_i32_0 = arith.constant 0 : i32
    %c0_i32_1 = arith.constant 0 : i32
    return %c0_i32, %c0_i32_0 : i32, i32
  }
  func.func @transform_17(%arg0: i32) -> (i32, i32) {
    %c0_i32 = arith.constant 0 : i32
    %c0_i32_0 = arith.constant 0 : i32
    %c0_i32_1 = arith.constant 0 : i32
    return %c0_i32, %c0_i32_0 : i32, i32
  }
  func.func @transform_18(%arg0: i32) -> (i32, i32) {
    %c0_i32 = arith.constant 0 : i32
    %c0_i32_0 = arith.constant 0 : i32
    %c0_i32_1 = arith.constant 0 : i32
    return %c0_i32, %c0_i32_0 : i32, i32
  }
  func.func @transform_19(%arg0: i32) -> (i32, i32) {
    %c0_i32 = arith.constant 0 : i32
    %c0_i32_0 = arith.constant 0 : i32
    %c0_i32_1 = arith.constant 0 : i32
    return %c0_i32, %c0_i32_0 : i32, i32
  }
  func.func @transform_20(%arg0: i32) -> (i32, i32) {
    %c0_i32 = arith.constant 0 : i32
    %c0_i32_0 = arith.constant 0 : i32
    %c0_i32_1 = arith.constant 0 : i32
    return %c0_i32, %c0_i32_0 : i32, i32
  }
  func.func @transform_21(%arg0: i32) -> (i32, i32, i32) {
    %c0_i32 = arith.constant 0 : i32
    %c0_i32_0 = arith.constant 0 : i32
    %c0_i32_1 = arith.constant 0 : i32
    %c0_i32_2 = arith.constant 0 : i32
    return %c0_i32, %c0_i32_0, %c0_i32_1 : i32, i32, i32
  }
  func.func @transform_22(%arg0: i32) -> (i32, i32) {
    %c0_i32 = arith.constant 0 : i32
    %c0_i32_0 = arith.constant 0 : i32
    %c0_i32_1 = arith.constant 0 : i32
    return %c0_i32, %c0_i32_0 : i32, i32
  }
  func.func @transform_23(%arg0: i32) -> (i32, i32) {
    %c0_i32 = arith.constant 0 : i32
    %c0_i32_0 = arith.constant 0 : i32
    %c0_i32_1 = arith.constant 0 : i32
    return %c0_i32, %c0_i32_0 : i32, i32
  }
  func.func @transform_24(%arg0: i32) -> (i32, i32) {
    %c0_i32 = arith.constant 0 : i32
    %c0_i32_0 = arith.constant 0 : i32
    %c0_i32_1 = arith.constant 0 : i32
    return %c0_i32, %c0_i32_0 : i32, i32
  }
  func.func @transform_25(%arg0: i32) -> (i32, i32) {
    %c0_i32 = arith.constant 0 : i32
    %c0_i32_0 = arith.constant 0 : i32
    %c0_i32_1 = arith.constant 0 : i32
    return %c0_i32, %c0_i32_0 : i32, i32
  }
  func.func @transform_26(%arg0: i32) -> (i32, i32) {
    %c0_i32 = arith.constant 0 : i32
    %c0_i32_0 = arith.constant 0 : i32
    %c0_i32_1 = arith.constant 0 : i32
    return %c0_i32, %c0_i32_0 : i32, i32
  }
  func.func @transform_27(%arg0: i32) -> (i32, i32) {
    %c0_i32 = arith.constant 0 : i32
    %c0_i32_0 = arith.constant 0 : i32
    %c0_i32_1 = arith.constant 0 : i32
    return %c0_i32, %c0_i32_0 : i32, i32
  }
  func.func @transform_28(%arg0: i32) -> (i32, i32) {
    %c0_i32 = arith.constant 0 : i32
    %c0_i32_0 = arith.constant 0 : i32
    %c0_i32_1 = arith.constant 0 : i32
    return %c0_i32, %c0_i32_0 : i32, i32
  }
  func.func @transform_29(%arg0: i32) -> (i32, i32) {
    %c0_i32 = arith.constant 0 : i32
    %c0_i32_0 = arith.constant 0 : i32
    %c0_i32_1 = arith.constant 0 : i32
    return %c0_i32, %c0_i32_0 : i32, i32
  }
  func.func @transform_30(%arg0: i32) -> (i32, i32) {
    %c0_i32 = arith.constant 0 : i32
    %c0_i32_0 = arith.constant 0 : i32
    %c0_i32_1 = arith.constant 0 : i32
    return %c0_i32, %c0_i32_0 : i32, i32
  }
  func.func @transform_31(%arg0: i32) -> (i32, i32) {
    %c0_i32 = arith.constant 0 : i32
    %c0_i32_0 = arith.constant 0 : i32
    %c0_i32_1 = arith.constant 0 : i32
    return %c0_i32, %c0_i32_0 : i32, i32
  }
  func.func @transform_32(%arg0: i32) -> (i32, i32) {
    %c0_i32 = arith.constant 0 : i32
    %c0_i32_0 = arith.constant 0 : i32
    %c0_i32_1 = arith.constant 0 : i32
    return %c0_i32, %c0_i32_0 : i32, i32
  }
  func.func @transform_33(%arg0: i32) -> (i32, i32) {
    %c0_i32 = arith.constant 0 : i32
    %c0_i32_0 = arith.constant 0 : i32
    %c0_i32_1 = arith.constant 0 : i32
    return %c0_i32, %c0_i32_0 : i32, i32
  }
  func.func @transform_34(%arg0: i32) -> (i32, i32) {
    %c0_i32 = arith.constant 0 : i32
    %c0_i32_0 = arith.constant 0 : i32
    %c0_i32_1 = arith.constant 0 : i32
    return %c0_i32, %c0_i32_0 : i32, i32
  }
  func.func @transform_35(%arg0: i32) -> (i32, i32) {
    %c0_i32 = arith.constant 0 : i32
    %c0_i32_0 = arith.constant 0 : i32
    %c0_i32_1 = arith.constant 0 : i32
    return %c0_i32, %c0_i32_0 : i32, i32
  }
  func.func @transform_36(%arg0: i32) -> (i32, i32, i32) {
    %c0_i32 = arith.constant 0 : i32
    %c0_i32_0 = arith.constant 0 : i32
    %c0_i32_1 = arith.constant 0 : i32
    %c0_i32_2 = arith.constant 0 : i32
    return %c0_i32, %c0_i32_0, %c0_i32_1 : i32, i32, i32
  }
  func.func @transform_37(%arg0: i32) -> (i32, i32) {
    %c0_i32 = arith.constant 0 : i32
    %c0_i32_0 = arith.constant 0 : i32
    %c0_i32_1 = arith.constant 0 : i32
    return %c0_i32, %c0_i32_0 : i32, i32
  }
  func.func @transform_38(%arg0: i32) -> (i32, i32) {
    %c0_i32 = arith.constant 0 : i32
    %c0_i32_0 = arith.constant 0 : i32
    %c0_i32_1 = arith.constant 0 : i32
    return %c0_i32, %c0_i32_0 : i32, i32
  }
  func.func @transform_39(%arg0: i32) -> (i32, i32) {
    %c0_i32 = arith.constant 0 : i32
    %c0_i32_0 = arith.constant 0 : i32
    %c0_i32_1 = arith.constant 0 : i32
    return %c0_i32, %c0_i32_0 : i32, i32
  }
  func.func @transform_40(%arg0: i32) -> (i32, i32) {
    %c0_i32 = arith.constant 0 : i32
    %c0_i32_0 = arith.constant 0 : i32
    %c0_i32_1 = arith.constant 0 : i32
    return %c0_i32, %c0_i32_0 : i32, i32
  }
  func.func @transform_41(%arg0: i32) -> (i32, i32) {
    %c0_i32 = arith.constant 0 : i32
    %c0_i32_0 = arith.constant 0 : i32
    %c0_i32_1 = arith.constant 0 : i32
    return %c0_i32, %c0_i32_0 : i32, i32
  }
  func.func @transform_42(%arg0: i32) -> (i32, i32) {
    %c0_i32 = arith.constant 0 : i32
    %c0_i32_0 = arith.constant 0 : i32
    %c0_i32_1 = arith.constant 0 : i32
    return %c0_i32, %c0_i32_0 : i32, i32
  }
  func.func @transform_43(%arg0: i32) -> (i32, i32) {
    %c0_i32 = arith.constant 0 : i32
    %c0_i32_0 = arith.constant 0 : i32
    %c0_i32_1 = arith.constant 0 : i32
    return %c0_i32, %c0_i32_0 : i32, i32
  }
  func.func @transform_44(%arg0: i32) -> (i32, i32) {
    %c0_i32 = arith.constant 0 : i32
    %c0_i32_0 = arith.constant 0 : i32
    %c0_i32_1 = arith.constant 0 : i32
    return %c0_i32, %c0_i32_0 : i32, i32
  }
  func.func @transform_45(%arg0: i32) -> (i32, i32) {
    %c0_i32 = arith.constant 0 : i32
    %c0_i32_0 = arith.constant 0 : i32
    %c0_i32_1 = arith.constant 0 : i32
    return %c0_i32, %c0_i32_0 : i32, i32
  }
  func.func @transform_46(%arg0: i32) -> (i32, i32, i32) {
    %c0_i32 = arith.constant 0 : i32
    %c0_i32_0 = arith.constant 0 : i32
    %c0_i32_1 = arith.constant 0 : i32
    return %arg0, %c0_i32, %c0_i32_0 : i32, i32, i32
  }
}

</mosaic_0001>

<bundles_post_ra>
// kernel: decoder_block_forward.3
= control target key start
LH: loop header
LB: loop body
LE: loop exit
PB: predicated region body
PF: predicated region fallthrough
CT: control target
= control target key end

     0   :  { %s7334_s6 = smov 1   ;;  %s7335_s10 = smov 2   ;;  %s9213_s0 = inlined_call_operand.smem [shape: u32[47], index: -1, kind: input, shape index: {}] }
   0x1   :  { %s7393_s5 = sld [smem:[%s9213_s0]]   ;;  %s7336_s14 = smov 3  }
   0x2   :  { %s7398_s9 = sld [smem:[%s9213_s0 + %s7334_s6]]   ;;  %s7337_s18 = smov 4  }
   0x3   :  { %s7403_s13 = sld [smem:[%s9213_s0 + %s7335_s10]]   ;;  %s7338_s22 = smov 5  }
   0x4   :  { %s7408_s17 = sld [smem:[%s9213_s0 + %s7336_s14]]   ;;  %s7339_s26 = smov 6  }
   0x5   :  { %s7413_s21 = sld [smem:[%s9213_s0 + %s7337_s18]]   ;;  %s7340_s30 = smov 7  }
   0x6   :  { %s7418_s25 = sld [smem:[%s9213_s0 + %s7338_s22]]   ;;  %s7341_s4 = smov 8  }
   0x7   :  { %9225 = sst [smem:[#allocation4_spill]] %s7393_s5  ;;  %s7342_s10 = smov 9  }
   0x8   :  { %s7423_s29 = sld [smem:[%s9213_s0 + %s7339_s26]]   ;;  %s7343_s15 = smov 10  }
   0x9   :  { %s7428_s3 = sld [smem:[%s9213_s0 + %s7340_s30]]   ;;  %s7344_s20 = smov 11  }
   0xa   :  { %s7433_s8 = sld [smem:[%s9213_s0 + %s7341_s4]]   ;;  %s7345_s26 = smov 12  }
   0xb   :  { %s7438_s14 = sld [smem:[%s9213_s0 + %s7342_s10]]   ;;  %s7346_s1 = smov 13  }
   0xc   :  { %s7443_s19 = sld [smem:[%s9213_s0 + %s7343_s15]]   ;;  %s7347_s7 = smov 14  }
   0xd   :  { %s7448_s24 = sld [smem:[%s9213_s0 + %s7344_s20]]   ;;  %s7348_s15 = smov 15  }
   0xe   :  { %s7453_s30 = sld [smem:[%s9213_s0 + %s7345_s26]]   ;;  %s7349_s22 = smov 16  }
   0xf   :  { %9226 = sst [smem:[#allocation5_spill]] %s7428_s3  ;;  %s7350_s28 = smov 17  }
  0x10   :  { %s7458_s6 = sld [smem:[%s9213_s0 + %s7346_s1]]  }
  0x11   :  { %s7463_s12 = sld [smem:[%s9213_s0 + %s7347_s7]]   ;;  %s7351_s7 = smov 18  }
  0x12   :  { %s7468_s20 = sld [smem:[%s9213_s0 + %s7348_s15]]   ;;  %s7352_s15 = smov 19  }
  0x13   :  { %9227 = sst [smem:[#allocation6_spill]] %s7448_s24 }
  0x14   :  { %s7473_s27 = sld [smem:[%s9213_s0 + %s7349_s22]]   ;;  %s7353_s22 = smov 20  }
  0x15   :  { %s7478_s4 = sld [smem:[%s9213_s0 + %s7350_s28]]   ;;  %s7354_s28 = smov 21  }
  0x16   :  { %s7483_s5 = sld [smem:[%s9213_s0 + %s7351_s7]]   ;;  %s7355_s7 = smov 22  }
  0x17   :  { %s7488_s24 = sld [smem:[%s9213_s0 + %s7352_s15]]   ;;  %s7356_s15 = smov 23  }
  0x1a   :  { %9228 = sst [smem:[#allocation7_spill]] %s7473_s27 }
  0x1b   :  { %9229 = sst [smem:[#allocation8_spill]] %s7478_s4 }
  0x1c   :  { %9230 = sst [smem:[#allocation9_spill]] %s7483_s5 }
  0x1d   :  { %9231 = sst [smem:[#allocation10_spill]] %s7488_s24 }
  0x1e   :  { %s7493_s27 = sld [smem:[%s9213_s0 + %s7353_s22]]   ;;  %s7357_s22 = smov 24  }
  0x1f   :  { %s7498_s4 = sld [smem:[%s9213_s0 + %s7354_s28]]   ;;  %s7358_s28 = smov 25  }
  0x20   :  { %s7503_s5 = sld [smem:[%s9213_s0 + %s7355_s7]]   ;;  %s7359_s7 = smov 26  }
  0x21   :  { %s7508_s24 = sld [smem:[%s9213_s0 + %s7356_s15]]   ;;  %s7360_s15 = smov 27  }
  0x24   :  { %9232 = sst [smem:[#allocation11_spill]] %s7493_s27 }
  0x25   :  { %9233 = sst [smem:[#allocation12_spill]] %s7498_s4 }
  0x26   :  { %9234 = sst [smem:[#allocation13_spill]] %s7503_s5 }
  0x27   :  { %9235 = sst [smem:[#allocation14_spill]] %s7508_s24 }
  0x28   :  { %s7513_s27 = sld [smem:[%s9213_s0 + %s7357_s22]]   ;;  %s7361_s22 = smov 28  }
  0x29   :  { %s7518_s4 = sld [smem:[%s9213_s0 + %s7358_s28]]   ;;  %s7362_s28 = smov 29  }
  0x2a   :  { %s7523_s5 = sld [smem:[%s9213_s0 + %s7359_s7]]   ;;  %s7363_s7 = smov 30  }
  0x2b   :  { %s7528_s24 = sld [smem:[%s9213_s0 + %s7360_s15]]   ;;  %s7364_s15 = smov 31  }
  0x2e   :  { %9236 = sst [smem:[#allocation15_spill]] %s7513_s27 }
  0x2f   :  { %9237 = sst [smem:[#allocation16_spill]] %s7518_s4 }
  0x30   :  { %9238 = sst [smem:[#allocation17_spill]] %s7523_s5 }
  0x31   :  { %9239 = sst [smem:[#allocation18_spill]] %s7528_s24 }
  0x32   :  { %s7533_s27 = sld [smem:[%s9213_s0 + %s7361_s22]]   ;;  %s7365_s22 = smov 32  }
  0x33   :  { %s7538_s4 = sld [smem:[%s9213_s0 + %s7362_s28]]   ;;  %s7366_s28 = smov 33  }
  0x34   :  { %s7543_s5 = sld [smem:[%s9213_s0 + %s7363_s7]]   ;;  %s7367_s7 = smov 34  }
  0x35   :  { %s7548_s24 = sld [smem:[%s9213_s0 + %s7364_s15]]   ;;  %s7368_s15 = smov 35  }
  0x38   :  { %9240 = sst [smem:[#allocation19_spill]] %s7533_s27 }
  0x39   :  { %9241 = sst [smem:[#allocation20_spill]] %s7538_s4 }
  0x3a   :  { %9242 = sst [smem:[#allocation21_spill]] %s7543_s5 }
  0x3b   :  { %9243 = sst [smem:[#allocation22_spill]] %s7548_s24 }
  0x3c   :  { %s7553_s27 = sld [smem:[%s9213_s0 + %s7365_s22]]   ;;  %s7369_s22 = smov 36  }
  0x3d   :  { %s7558_s4 = sld [smem:[%s9213_s0 + %s7366_s28]]   ;;  %s7370_s28 = smov 37  }
  0x3e   :  { %s7563_s5 = sld [smem:[%s9213_s0 + %s7367_s7]]   ;;  %s7371_s7 = smov 38  }
  0x3f   :  { %s7568_s24 = sld [smem:[%s9213_s0 + %s7368_s15]]   ;;  %s7372_s15 = smov 39  }
  0x42   :  { %9244 = sst [smem:[#allocation23_spill]] %s7553_s27 }
  0x43   :  { %9245 = sst [smem:[#allocation24_spill]] %s7558_s4 }
  0x44   :  { %9246 = sst [smem:[#allocation25_spill]] %s7563_s5 }
  0x45   :  { %9247 = sst [smem:[#allocation26_spill]] %s7568_s24 }
  0x46   :  { %s7573_s27 = sld [smem:[%s9213_s0 + %s7369_s22]]   ;;  %s7373_s22 = smov 40  }
  0x47   :  { %s7578_s4 = sld [smem:[%s9213_s0 + %s7370_s28]]   ;;  %s7374_s28 = smov 41  }
  0x48   :  { %s7583_s5 = sld [smem:[%s9213_s0 + %s7371_s7]]   ;;  %s7375_s7 = smov 42  }
  0x49   :  { %s7588_s24 = sld [smem:[%s9213_s0 + %s7372_s15]]   ;;  %s7376_s15 = smov 43  }
  0x4c   :  { %9248 = sst [smem:[#allocation27_spill]] %s7573_s27 }
  0x4d   :  { %9249 = sst [smem:[#allocation28_spill]] %s7578_s4 }
  0x4e   :  { %9250 = sst [smem:[#allocation29_spill]] %s7583_s5 }
  0x4f   :  { %9251 = sst [smem:[#allocation30_spill]] %s7588_s24 }
  0x50   :  { %s7593_s27 = sld [smem:[%s9213_s0 + %s7373_s22]]   ;;  %s7377_s22 = smov 44  }
  0x51   :  { %s7598_s4 = sld [smem:[%s9213_s0 + %s7374_s28]]   ;;  %s7378_s28 = smov 45  }
  0x52   :  { %s7603_s5 = sld [smem:[%s9213_s0 + %s7375_s7]]   ;;  %s7379_s7 = smov 46  }
  0x53   :  { %s7608_s24 = sld [smem:[%s9213_s0 + %s7376_s15]]   ;;  %s7625_s15 = smov 0  }
  0x56   :  { %9252 = sst [smem:[#allocation31_spill]] %s7593_s27 }
  0x57   :  { %9253 = sst [smem:[#allocation32_spill]] %s7598_s4 }
  0x58   :  { %9254 = sst [smem:[#allocation33_spill]] %s7603_s5 }
  0x59   :  { %s7613_s27 = sld [smem:[%s9213_s0 + %s7377_s22]]  }
  0x5a   :  { %s7618_s4 = sld [smem:[%s9213_s0 + %s7378_s28]]  }
  0x5b   :  { %s7623_s5 = sld [smem:[%s9213_s0 + %s7379_s7]]  }
  0x5c LB: > { %s6057_s16 = sadd.s32 4294967295, %s7332_s15   ;;  %p6061_p0 = scmp.ge.s32.totalorder %s7332_s15, 1  ;;  %s7332_s15 = sphi %s7625_s15, %s103_s15  }
  0x5d   : > { %p1269_p1 = scmp.lt.s32.totalorder %s7332_s15, 3 }
  0x5f   : > { %p1270_p2 = pnand %p6061_p0, %p1269_p1 }
  0x60   : > { %v7076_v0 = vld [vmem:[%s7413_s21] sm:$0xff] (!%p1270_p2)   ;;  %p1384_p3 = scmp.lt.s32.totalorder (!%p1270_p2), %s6057_s16, 1  ;;  %v7077_v1 = vld [vmem:[%s7413_s21 + $0x8] sm:$0xff] (!%p1270_p2)   ;;  %vm1491_vm0 = vcmask (!%p1270_p2), 261120   ;;  %v1410_v19 = vld [vmem:[%s7408_s17 + $0x10] sm:$0xff] (!%p1270_p2)  ;;  %s9255_s3 = sld [smem:[#allocation5_spill]] (!%p1270_p2) }
  0x61   : > { %1273 = sbr.rel (%p1270_p2) target bundleno = 3628 (0xe2c), region = 204  ;;  %6711 = vmatprep.subr.bf16.mxu1 (!%p1270_p2), %v7076_v0  ;;  %6465 = vmatprep.subr.bf16.mxu0 (!%p1270_p2), %v7076_v0  ;;  %v7078_v2 = vld [vmem:[%s7423_s29] sm:$0xff] (!%p1270_p2)   ;;  %v1409_v4 = vld [vmem:[%s7408_s17 + $0x8] sm:$0xff] (!%p1270_p2)  ;;  %v1411_v20 = vld [vmem:[%s7408_s17 + $0x18] sm:$0xff] (!%p1270_p2)  ;;  %vm2149_vm1 = vcmask (!%p1270_p2), 1041408   ;;  %vm2136_vm2 = vcmask (!%p1270_p2), 31744  }
  0x62   : > { %6713 = vmatpush3.bf16.msra.mxu1 (!%p1270_p2), %v7076_v0  ;;  %6466 = vmatpush3.bf16.msra.mxu0 (!%p1270_p2), %v7076_v0  ;;  %v1408_v3 = vld [vmem:[%s7408_s17] sm:$0xff] (!%p1270_p2)  ;;  %v7079_v14 = vld [vmem:[%s7423_s29 + $0x8] sm:$0xff] (!%p1270_p2)   ;;  %v1425_v25 = vpack.c.bf16 (!%p1270_p2), %v1411_v20, %v1410_v19  ;;  %v1414_v30 = vld [vmem:[%s7408_s17 + $0x30] sm:$0xff] (!%p1270_p2)  ;;  %vm2445_vm3 = vcmask (!%p1270_p2), 257024   ;;  %s7381_s22 = smov (!%p1270_p2), 64   ;;  %s7382_s23 = smov (!%p1270_p2), 32  }
  0x63   : > { %6712 = vmatprep.subr.bf16.mxu1 (!%p1270_p2), %v7077_v1  ;;  %6467 = vmatprep.subr.bf16.mxu0 (!%p1270_p2), %v7077_v1  ;;  %v1424_v12 = vpack.c.bf16 (!%p1270_p2), %v1409_v4, %v1408_v3  ;;  %v1412_v21 = vld [vmem:[%s7408_s17 + $0x20] sm:$0xff] (!%p1270_p2)  ;;  %v1413_v22 = vld [vmem:[%s7408_s17 + $0x28] sm:$0xff] (!%p1270_p2)  ;;  %v1415_v31 = vld [vmem:[%s7408_s17 + $0x38] sm:$0xff] (!%p1270_p2)  ;;  %s9256_s26 = sld [smem:[#allocation8_spill]] (!%p1270_p2)  ;;  %s9257_s28 = sld [smem:[#allocation6_spill]] (!%p1270_p2)  ;;  %vm7384_vm4 = vmmov (!%p1270_p2), 0  }
  0x64   : > { %v7080_v23 = vld [vmem:[%s7433_s8] sm:$0xff] (!%p1270_p2)   ;;  %v7081_v24 = vld [vmem:[%s7433_s8 + $0x8] sm:$0xff] (!%p1270_p2)   ;;  %v1426_v28 = vpack.c.bf16 (!%p1270_p2), %v1413_v22, %v1412_v21  ;;  %v1427_v34 = vpack.c.bf16 (!%p1270_p2), %v1415_v31, %v1414_v30  ;;  %v1418_v36 = vld [vmem:[%s7408_s17 + $0x50] sm:$0xff] (!%p1270_p2)  ;;  %s7383_s1 = smov (!%p1270_p2), 96   ;;  %vm3075_vm5 = vcmask (!%p1270_p2), 523264   ;;  %s9258_s2 = sld [smem:[#allocation9_spill]] (!%p1270_p2) }
  0x65   : > { %v1432_v26 = vld [vmem:[%s7403_s13] sm:$0xff] (!%p1270_p2)  ;;  %v1433_v27 = vld [vmem:[%s7403_s13 + $0x8] sm:$0xff] (!%p1270_p2)  ;;  %v1419_v37 = vld [vmem:[%s7408_s17 + $0x58] sm:$0xff] (!%p1270_p2)  ;;  %s9259_s7 = sld [smem:[#allocation7_spill]] (!%p1270_p2)  ;;  %vm2748_vm6 = vcmask (!%p1270_p2), 1040384   ;;  %vm3084_vm7 = vcmask (!%p1270_p2), 785408  }
  0x66   : > { %6714 = vmatpush3.bf16.msra.mxu1 (!%p1270_p2), %v7077_v1  ;;  %6468 = vmatpush3.bf16.msra.mxu0 (!%p1270_p2), %v7077_v1  ;;  %v1448_v29 = vpack.c.bf16 (!%p1270_p2), %v1433_v27, %v1432_v26  ;;  %v1416_v32 = vld [vmem:[%s7408_s17 + $0x40] sm:$0xff] (!%p1270_p2)  ;;  %v1417_v33 = vld [vmem:[%s7408_s17 + $0x48] sm:$0xff] (!%p1270_p2)  ;;  %v1429_v40 = vpack.c.bf16 (!%p1270_p2), %v1419_v37, %v1418_v36  ;;  %v1422_v42 = vld [vmem:[%s7408_s17 + $0x70] sm:$0xff] (!%p1270_p2)  ;;  %s9260_s10 = sld [smem:[#allocation10_spill]] (!%p1270_p2)  ;;  %vm2744_vm8 = vcmask (!%p1270_p2), 15360   ;;  %s9261_s11 = sld [smem:[#allocation11_spill]] (!%p1270_p2) }
  0x67   : > { %6477 = vmatprep.subr.bf16.mxu1 (!%p1270_p2), %v7078_v2  ;;  %6497 = vmatprep.subr.bf16.mxu0 (!%p1270_p2), %v7080_v23  ;;  %v1428_v35 = vpack.c.bf16 (!%p1270_p2), %v1417_v33, %v1416_v32  ;;  %v1420_v38 = vld [vmem:[%s7408_s17 + $0x60] sm:$0xff] (!%p1270_p2)  ;;  %v1421_v39 = vld [vmem:[%s7408_s17 + $0x68] sm:$0xff] (!%p1270_p2)  ;;  %v1423_v43 = vld [vmem:[%s7408_s17 + $0x78] sm:$0xff] (!%p1270_p2)  ;;  %vm5193_vm9 = vcmask (!%p1270_p2), 517120  }
  0x68   : > { %s9286_s16 = smov (!%p1384_p3, %s6057_s16), 1  ;;  %v1430_v41 = vpack.c.bf16 %v1421_v39, %v1420_v38  ;;  %v1431_v44 = vpack.c.bf16 %v1423_v43, %v1422_v42  ;;  %v1434_v45 = vld [vmem:[%s7403_s13 + $0x10] sm:$0xff]  ;;  %v1435_v46 = vld [vmem:[%s7403_s13 + $0x18] sm:$0xff]  ;;  %v7082_v48 = vld [vmem:[%s7453_s30] sm:$0xff]  }
  0x69   : > { %s7635_s0 = sshll.u32 %s9286_s16, 6  ;;  %v1449_v47 = vpack.c.bf16 %v1435_v46, %v1434_v45  ;;  %v1436_v49 = vld [vmem:[%s7403_s13 + $0x20] sm:$0xff]  ;;  %v1437_v50 = vld [vmem:[%s7403_s13 + $0x28] sm:$0xff]  ;;  %v1438_v52 = vld [vmem:[%s7403_s13 + $0x30] sm:$0xff]  ;;  %s9262_s16 = sld [smem:[#allocation12_spill]] }
  0x6a   : > { %s1393_s18 = scalar_lea.vmem %s7398_s9, %s7635_s0  ;;  %v1450_v51 = vpack.c.bf16 %v1437_v50, %v1436_v49  ;;  %v1439_v53 = vld [vmem:[%s7403_s13 + $0x38] sm:$0xff]  ;;  %v1440_v55 = vld [vmem:[%s7403_s13 + $0x40] sm:$0xff]  ;;  %v1441_v56 = vld [vmem:[%s7403_s13 + $0x48] sm:$0xff] }
  0x6b   : > { %v1460_v5 = vld [vmem:[%s1393_s18 + $0x20] sm:$0xff]  ;;  %v1461_v6 = vld [vmem:[%s1393_s18 + $0x28] sm:$0xff]  ;;  %v1462_v7 = vld [vmem:[%s1393_s18 + $0x30] sm:$0xff]  ;;  %v1451_v54 = vpack.c.bf16 %v1439_v53, %v1438_v52  ;;  %v1452_v57 = vpack.c.bf16 %v1441_v56, %v1440_v55 }
  0x6c   : > { %v1470_v8 = vpack.c.bf16 %v1461_v6, %v1460_v5  ;;  %v1463_v9 = vld [vmem:[%s1393_s18 + $0x38] sm:$0xff]  ;;  %v1456_v10 = vld [vmem:[%s1393_s18] sm:$0xff]  ;;  %v1457_v11 = vld [vmem:[%s1393_s18 + $0x8] sm:$0xff] }
  0x6d   : > { %v1471_v13 = vpack.c.bf16 %v1463_v9, %v1462_v7  ;;  %v1468_v15 = vpack.c.bf16 %v1457_v11, %v1456_v10  ;;  %v1458_v16 = vld [vmem:[%s1393_s18 + $0x10] sm:$0xff]  ;;  %v1459_v17 = vld [vmem:[%s1393_s18 + $0x18] sm:$0xff]  ;;  %v7083_v58 = vld [vmem:[%s7453_s30 + $0x8] sm:$0xff]   ;;  %s9263_s18 = sld [smem:[#allocation19_spill]] }
  0x6e   : > { %6473 = vmatprep.mubr.msk.bf16.mxu1 %vm1491_vm0, %v1470_v8  ;;  %v1469_v18 = vpack.c.bf16 %v1459_v17, %v1458_v16  ;;  %v1442_v59 = vld [vmem:[%s7403_s13 + $0x50] sm:$0xff]  ;;  %v1443_v60 = vld [vmem:[%s7403_s13 + $0x58] sm:$0xff]  ;;  %v1444_v62 = vld [vmem:[%s7403_s13 + $0x60] sm:$0xff] }
  0x6f   : > { %6474 = vmatmul.mubr.msk.bf16.vlgmr.msra.gmra.mrb[0].mxu1 %vm1491_vm0, %v1471_v13  ;;  %6469 = vmatprep.mubr.msk.bf16.mxu0 %vm1491_vm0, %v1468_v15  ;;  %v1453_v61 = vpack.c.bf16 %v1443_v60, %v1442_v59  ;;  %v1445_v63 = vld [vmem:[%s7403_s13 + $0x68] sm:$0xff]  ;;  %v1446_v1 = vld [vmem:[%s7403_s13 + $0x70] sm:$0xff]  ;;  %v7699_v13 = vld [vmem:[%s9255_s3] ss:$0 sm:$0xff] }
  0x70   : > { %6478 = vmatpush3.bf16.msra.mxu1 %v7078_v2  ;;  %6481 = vmatprep.mubr.msk.bf16.mxu1 %vm1491_vm0, %v1424_v12  ;;  %v1454_v0 = vpack.c.bf16 %v1445_v63, %v1444_v62  ;;  %v1447_v2 = vld [vmem:[%s7403_s13 + $0x78] sm:$0xff]  ;;  %v6068_v12 = vld [vmem:[%s7418_s25] ss:$0 sm:$0xff] }
  0x71   : > { %6479 = vmatprep.subr.bf16.mxu1 %v7079_v14  ;;  %6470 = vmatmul.mubr.msk.bf16.vlgmr.msra.gmra.mrb[0].mxu0 %vm1491_vm0, %v1469_v18  ;;  %v1455_v3 = vpack.c.bf16 %v1447_v2, %v1446_v1 }
  0x72   : > { %6498 = vmatpush3.bf16.msra.mxu0 %v7080_v23  ;;  %6501 = vmatprep.mubr.msk.bf16.mxu0 %vm1491_vm0, %v1448_v29 }
  0x73   : > { %6499 = vmatprep.subr.bf16.mxu0 %v7081_v24 }
  0x74   : > { %6480 = vmatpush3.bf16.msra.mxu1 %v7079_v14 }
  0x75   : > { %6517 = vmatprep.subr.bf16.mxu1 %v7082_v48 }
  0x76   : > { %6500 = vmatpush3.bf16.msra.mxu0 %v7081_v24 }
  0x77   : > { %6482 = vmatmul.mubr.msk.bf16.vlgmr.msra.gmra.mrb[4].mxu1 %vm1491_vm0, %v1425_v25  ;;  %6529 = vmatprep.subr.bf16.mxu0 %v7082_v48 }
  0x78   : > { %6485 = vmatprep.mubr.msk.bf16.mxu1 %vm1491_vm0, %v1426_v28  ;;  %6518 = vmatpush3.bf16.msra.mxu1 %v7082_v48 }
  0x79   : > { %6502 = vmatmul.mubr.msk.bf16.vlgmr.msra.gmra.mrb[4].mxu0 %vm1491_vm0, %v1449_v47  ;;  %6519 = vmatprep.subr.bf16.mxu1 %v7083_v58 }
  0x7a   : > { %6530 = vmatpush3.bf16.msra.mxu0 %v7082_v48  ;;  %6505 = vmatprep.mubr.msk.bf16.mxu0 %vm1491_vm0, %v1450_v51 }
  0x7b   : > { %6531 = vmatprep.subr.bf16.mxu0 %v7083_v58 }
  0x7c   : > { %6520 = vmatpush3.bf16.msra.mxu1 %v7083_v58 }
  0x7e   : > { %6532 = vmatpush3.bf16.msra.mxu0 %v7083_v58 }
  0x7f   : > { %6486 = vmatmul.mubr.msk.bf16.gmra.mrb[8].mxu1 %vm1491_vm0, %v1427_v34 }
  0x80   : > { %6489 = vmatprep.mubr.msk.bf16.mxu1 %vm1491_vm0, %v1428_v35 }
  0x81   : > { %6506 = vmatmul.mubr.msk.bf16.gmra.mrb[8].mxu0 %vm1491_vm0, %v1451_v54 }
  0x82   : > { %6509 = vmatprep.mubr.msk.bf16.mxu0 %vm1491_vm0, %v1452_v57 }
  0x87   : > { %6490 = vmatmul.mubr.msk.bf16.gmra.mrb[12].mxu1 %vm1491_vm0, %v1429_v40 }
  0x88   : > { %6493 = vmatprep.mubr.msk.bf16.mxu1 %vm1491_vm0, %v1430_v41 }
  0x89   : > { %6510 = vmatmul.mubr.msk.bf16.gmra.mrb[12].mxu0 %vm1491_vm0, %v1453_v61 }
  0x8a   : > { %6513 = vmatprep.mubr.msk.bf16.mxu0 %vm1491_vm0, %v1454_v0 }
  0x8f   : > { %6494 = vmatmul.mubr.msk.bf16.gmra.mrb[16].mxu1 %vm1491_vm0, %v1431_v44 }
  0x91   : > { %6514 = vmatmul.mubr.msk.bf16.gmra.mrb[16].mxu0 %vm1491_vm0, %v1455_v3 }
 0x142   : > { %v6475_v4 = vpop.f32.mrb[0].mxu1 }
 0x143   : > { %v1554_v5 = vpop.f32.mrb[1].mxu1  ;;  %v1563_v33 = vadd.f32 %v6475_v4, %v6068_v12 }
 0x144   : > { %v6476_v6 = vpop.f32.mrb[2].mxu1  ;;  %v6471_v7 = vpop.f32.mrb[0].mxu0  ;;  %v1555_v36 = vadd.f32 %v6068_v12, %v1554_v5 }
 0x145   : > { %v1557_v8 = vpop.f32.mrb[3].mxu1  ;;  %v1538_v9 = vpop.f32.mrb[1].mxu0  ;;  %v1547_v14 = vadd.f32 %v6471_v7, %v6068_v12  ;;  %v1566_v39 = vadd.f32 %v6476_v6, %v6068_v12 }
 0x146   : > { %v6472_v10 = vpop.f32.mrb[2].mxu0  ;;  %v1539_v16 = vadd.f32 %v6068_v12, %v1538_v9  ;;  %v1558_v43 = vadd.f32 %v6068_v12, %v1557_v8 }
 0x147   : > { %v1541_v11 = vpop.f32.mrb[3].mxu0  ;;  %v1550_v19 = vadd.f32 %v6472_v10, %v6068_v12 }
 0x148   : > { %v1542_v22 = vadd.f32 %v6068_v12, %v1541_v11 }
 0x14a   : > { %v6483_v15 = vpop.f32.mrb[4].mxu1 }
 0x14b   : > { %v1659_v17 = vadd.f32 %v6483_v15, %v7699_v13  ;;  %v1650_v18 = vpop.f32.mrb[5].mxu1 }
 0x14c   : > { %v1651_v20 = vadd.f32 %v7699_v13, %v1650_v18  ;;  %v6484_v21 = vpop.f32.mrb[6].mxu1  ;;  %v7725_v15 = vpop.f32.mrb[4].mxu0 }
 0x14d   : > { %v1864_v23 = vmul.f32 %v1659_v17, %v1547_v14  ;;  %v1662_v24 = vadd.f32 %v6484_v21, %v7699_v13  ;;  %v1653_v25 = vpop.f32.mrb[7].mxu1 }
 0x14e   : > { %v1862_v26 = vmul.f32 %v1651_v20, %v1539_v16  ;;  %v1654_v27 = vadd.f32 %v7699_v13, %v1653_v25 }
 0x14f   : > { %v1865_v28 = vmul.f32 %v1662_v24, %v1550_v19 }
 0x150   : > { %v1863_v29 = vmul.f32 %v1654_v27, %v1542_v22 }
 0x151   : > { %v1871_v30 = vpack.c.bf16 %v1865_v28, %v1864_v23 }
 0x152   : > { %v1870_v31 = vpack.c.bf16 %v1863_v29, %v1862_v26  ;;  %v6487_v32 = vpop.f32.mrb[8].mxu1 }
 0x153   : > { %v1675_v34 = vadd.f32 %v6487_v32, %v7699_v13  ;;  %v1666_v35 = vpop.f32.mrb[9].mxu1  ;;  %v7759_v32 = vld [vmem:[%s7443_s19] sm:$0xff]  }
 0x154   : > { %v1667_v37 = vadd.f32 %v7699_v13, %v1666_v35  ;;  %v6488_v38 = vpop.f32.mrb[10].mxu1  ;;  %6521 = vmatprep.mubr.msk.bf16.mxu1 %vm1491_vm0, %v1870_v31 }
 0x155   : > { %v1868_v40 = vmul.f32 %v1675_v34, %v1563_v33  ;;  %v1678_v41 = vadd.f32 %v6488_v38, %v7699_v13  ;;  %v1669_v42 = vpop.f32.mrb[11].mxu1  ;;  %6522 = vmatmul.mubr.msk.bf16.vlgmr.msra.gmra.mrb[20].mxu1 %vm1491_vm0, %v1871_v30  ;;  %v1861_v30 = vld [vmem:[%s7458_s6] sm:$0x3] }
 0x156   : > { %v1866_v44 = vmul.f32 %v1667_v37, %v1555_v36  ;;  %v1670_v45 = vadd.f32 %v7699_v13, %v1669_v42  ;;  %6715 = vmatprep.subr.msk.bf16.mxu1 %vm2149_vm1, %v1861_v30  ;;  %6716 = vmatprep.subr.msk.bf16.mxu0 %vm2149_vm1, %v1861_v30  ;;  %v2151_v31 = vsel %vm2149_vm1, %v1861_v30, 0 }
 0x157   : > { %v1869_v46 = vmul.f32 %v1678_v41, %v1566_v39  ;;  %6542 = vmatpush3.bf16.msra.mxu1 %v2151_v31 }
 0x158   : > { %v1867_v47 = vmul.f32 %v1670_v45, %v1558_v43  ;;  %6561 = vmatprep.subr.bf16.mxu1 %v7759_v32 }
 0x159   : > { %v1873_v48 = vpack.c.bf16 %v1869_v46, %v1868_v40 }
 0x15a   : > { %v1872_v49 = vpack.c.bf16 %v1867_v47, %v1866_v44  ;;  %v6491_v50 = vpop.f32.mrb[12].mxu1 }
 0x15b   : > { %v1691_v51 = vadd.f32 %v6491_v50, %v7699_v13  ;;  %v1682_v52 = vpop.f32.mrb[13].mxu1 }
 0x15c   : > { %v1683_v53 = vadd.f32 %v7699_v13, %v1682_v52  ;;  %v6492_v54 = vpop.f32.mrb[14].mxu1  ;;  %6525 = vmatprep.mubr.msk.bf16.mxu1 %vm1491_vm0, %v1872_v49 }
 0x15d   : > { %v1965_v55 = vmul.f32 %v1691_v51, %v1547_v14  ;;  %v1694_v56 = vadd.f32 %v6492_v54, %v7699_v13  ;;  %v1685_v57 = vpop.f32.mrb[15].mxu1  ;;  %6526 = vmatmul.mubr.msk.bf16.gmra.mrb[24].mxu1 %vm1491_vm0, %v1873_v48 }
 0x15e   : > { %v1963_v58 = vmul.f32 %v1683_v53, %v1539_v16  ;;  %v1686_v59 = vadd.f32 %v7699_v13, %v1685_v57  ;;  %v7727_v16 = vpop.f32.mrb[5].mxu0 }
 0x15f   : > { %v1966_v60 = vmul.f32 %v1694_v56, %v1550_v19  ;;  %v7729_v17 = vpop.f32.mrb[6].mxu0 }
 0x160   : > { %v1964_v61 = vmul.f32 %v1686_v59, %v1542_v22  ;;  %v7731_v18 = vpop.f32.mrb[7].mxu0 }
 0x161   : > { %v1972_v62 = vpack.c.bf16 %v1966_v60, %v1965_v55  ;;  %v7733_v19 = vpop.f32.mrb[8].mxu0 }
 0x162   : > { %v1971_v63 = vpack.c.bf16 %v1964_v61, %v1963_v58  ;;  %v6495_v0 = vpop.f32.mrb[16].mxu1 }
 0x163   : > { %v1707_v1 = vadd.f32 %v6495_v0, %v7699_v13  ;;  %v1698_v2 = vpop.f32.mrb[17].mxu1 }
 0x164   : > { %v1699_v3 = vadd.f32 %v7699_v13, %v1698_v2  ;;  %v6496_v4 = vpop.f32.mrb[18].mxu1  ;;  %6533 = vmatprep.mubr.msk.bf16.mxu0 %vm1491_vm0, %v1971_v63 }
 0x165   : > { %v1969_v5 = vmul.f32 %v1707_v1, %v1563_v33  ;;  %v1710_v6 = vadd.f32 %v6496_v4, %v7699_v13  ;;  %v1701_v7 = vpop.f32.mrb[19].mxu1  ;;  %6534 = vmatmul.mubr.msk.bf16.vlgmr.msra.gmra.mrb[20].mxu0 %vm1491_vm0, %v1972_v62 }
 0x166   : > { %v1967_v8 = vmul.f32 %v1699_v3, %v1555_v36  ;;  %v1702_v9 = vadd.f32 %v7699_v13, %v1701_v7  ;;  %v7735_v13 = vpop.f32.mrb[9].mxu0  ;;  %6552 = vmatpush3.bf16.msra.mxu0 %v2151_v31 }
 0x167   : > { %v1970_v10 = vmul.f32 %v1710_v6, %v1566_v39  ;;  %v7737_v20 = vpop.f32.mrb[10].mxu0 }
 0x168   : > { %v1968_v11 = vmul.f32 %v1702_v9, %v1558_v43  ;;  %v7739_v21 = vpop.f32.mrb[11].mxu0 }
 0x169   : > { %v1974_v12 = vpack.c.bf16 %v1970_v10, %v1969_v5  ;;  %v7741_v22 = vpop.f32.mrb[12].mxu0 }
 0x16a   : > { %v1973_v14 = vpack.c.bf16 %v1968_v11, %v1967_v8  ;;  %v7743_v23 = vpop.f32.mrb[13].mxu0 }
 0x16b   : > { %v7745_v24 = vpop.f32.mrb[14].mxu0 }
 0x16c   : > { %6537 = vmatprep.mubr.msk.bf16.mxu0 %vm1491_vm0, %v1973_v14  ;;  %v7747_v25 = vpop.f32.mrb[15].mxu0 }
 0x16d   : > { %6538 = vmatmul.mubr.msk.bf16.gmra.mrb[24].mxu0 %vm1491_vm0, %v1974_v12  ;;  %v7749_v26 = vpop.f32.mrb[16].mxu0 }
 0x16e   : > { %v7751_v27 = vpop.f32.mrb[17].mxu0 }
 0x16f   : > { %v7753_v28 = vpop.f32.mrb[18].mxu0 }
 0x170   : > { %v7755_v29 = vpop.f32.mrb[19].mxu0 }
 0x228   : > { %v6523_v33 = vpop.f32.mrb[20].mxu1 }
 0x229   : > { %v1932_v34 = vpop.f32.mrb[21].mxu1 }
 0x22a   : > { %v6524_v35 = vpop.f32.mrb[22].mxu1 }
 0x22b   : > { %v1935_v36 = vpop.f32.mrb[23].mxu1 }
 0x230   : > { %v6527_v37 = vpop.f32.mrb[24].mxu1 }
 0x231   : > { %v1948_v38 = vpop.f32.mrb[25].mxu1 }
 0x232   : > { %v6528_v39 = vpop.f32.mrb[26].mxu1 }
 0x233   : > { %v1951_v40 = vpop.f32.mrb[27].mxu1 }
 0x238   : > { %v6535_v41 = vpop.f32.mrb[20].mxu0 }
 0x239   : > { %v2054_v42 = vmax.f32 %v6523_v33, %v6535_v41  ;;  %v2021_v43 = vpop.f32.mrb[21].mxu0 }
 0x23a   : > { %v2052_v44 = vmax.f32 %v1932_v34, %v2021_v43  ;;  %v6536_v45 = vpop.f32.mrb[22].mxu0 }
 0x23b   : > { %v2062_v46 = vsub.f32 %v6523_v33, %v2054_v42  ;;  %v2086_v47 = vsub.f32 %v6535_v41, %v2054_v42  ;;  %v2055_v48 = vmax.f32 %v6524_v35, %v6536_v45  ;;  %v2024_v49 = vpop.f32.mrb[23].mxu0 }
 0x23c   : > { %v2060_v50 = vsub.f32 %v1932_v34, %v2052_v44  ;;  %v2084_v51 = vsub.f32 %v2021_v43, %v2052_v44  ;;  %v2053_v52 = vmax.f32 %v1935_v36, %v2024_v49 }
 0x23d   : > { %v2072_v53 = vmul.f32 1.442695, %v2062_v46  ;;  %v2096_v54 = vmul.f32 1.442695, %v2086_v47  ;;  %v2063_v55 = vsub.f32 %v6524_v35, %v2055_v48  ;;  %v2087_v56 = vsub.f32 %v6536_v45, %v2055_v48 }
 0x23e   : > { %v2068_v57 = vmul.f32 1.442695, %v2060_v50  ;;  %v2092_v58 = vmul.f32 1.442695, %v2084_v51  ;;  %v2061_v59 = vsub.f32 %v1935_v36, %v2053_v52  ;;  %v2085_v60 = vsub.f32 %v2024_v49, %v2053_v52 }
 0x23f   : > { %7146 = vpow2.f32 %v2072_v53  ;;  %v2074_v61 = vmul.f32 1.442695, %v2063_v55  ;;  %v2098_v62 = vmul.f32 1.442695, %v2087_v56 }
 0x240   : > { %7148 = vpow2.f32 %v2096_v54  ;;  %v6539_v63 = vpop.f32.mrb[24].mxu0  ;;  %v2070_v0 = vmul.f32 1.442695, %v2061_v59  ;;  %v2094_v3 = vmul.f32 1.442695, %v2085_v60 }
 0x241   : > { %7150 = vpow2.f32 %v2068_v57  ;;  %v2058_v1 = vmax.f32 %v6527_v37, %v6539_v63  ;;  %v2037_v2 = vpop.f32.mrb[25].mxu0 }
 0x242   : > { %7152 = vpow2.f32 %v2092_v58  ;;  %v2056_v4 = vmax.f32 %v1948_v38, %v2037_v2  ;;  %v6540_v5 = vpop.f32.mrb[26].mxu0 }
 0x243   : > { %7154 = vpow2.f32 %v2074_v61  ;;  %v2066_v6 = vsub.f32 %v6527_v37, %v2058_v1  ;;  %v2090_v7 = vsub.f32 %v6539_v63, %v2058_v1  ;;  %v2059_v8 = vmax.f32 %v6528_v39, %v6540_v5  ;;  %v2040_v9 = vpop.f32.mrb[27].mxu0 }
 0x244   : > { %7156 = vpow2.f32 %v2098_v62  ;;  %v2064_v10 = vsub.f32 %v1948_v38, %v2056_v4  ;;  %v2088_v11 = vsub.f32 %v2037_v2, %v2056_v4  ;;  %v2057_v12 = vmax.f32 %v1951_v40, %v2040_v9 }
 0x245   : > { %7158 = vpow2.f32 %v2070_v0  ;;  %v2080_v14 = vmul.f32 1.442695, %v2066_v6  ;;  %v2104_v30 = vmul.f32 1.442695, %v2090_v7  ;;  %v2067_v31 = vsub.f32 %v6528_v39, %v2059_v8 }
 0x246   : > { %7160 = vpow2.f32 %v2094_v3  ;;  %v2076_v33 = vmul.f32 1.442695, %v2064_v10  ;;  %v2100_v34 = vmul.f32 1.442695, %v2088_v11  ;;  %v2091_v35 = vsub.f32 %v6540_v5, %v2059_v8 }
 0x247   : > { %7162 = vpow2.f32 %v2080_v14  ;;  %v2082_v36 = vmul.f32 1.442695, %v2067_v31  ;;  %v2065_v41 = vsub.f32 %v1951_v40, %v2057_v12  ;;  %v2089_v42 = vsub.f32 %v2040_v9, %v2057_v12 }
 0x248   : > { %7164 = vpow2.f32 %v2104_v30  ;;  %v2106_v37 = vmul.f32 1.442695, %v2091_v35 }
 0x249   : > { %v7147_v43 = vpop.eup %7146  ;;  %7166 = vpow2.f32 %v2076_v33  ;;  %v2078_v38 = vmul.f32 1.442695, %v2065_v41  ;;  %v2102_v39 = vmul.f32 1.442695, %v2089_v42 }
 0x24a   : > { %v7149_v44 = vpop.eup %7148  ;;  %7168 = vpow2.f32 %v2100_v34 }
 0x24b   : > { %v7151_v45 = vpop.eup %7150  ;;  %v2110_v46 = vadd.f32 %v7149_v44, %v7147_v43  ;;  %7170 = vpow2.f32 %v2082_v36 }
 0x24c   : > { %v7153_v47 = vpop.eup %7152  ;;  %7172 = vpow2.f32 %v2106_v37 }
 0x24d   : > { %v7155_v48 = vpop.eup %7154  ;;  %7174 = vrcp.f32 %v2110_v46  ;;  %v2108_v49 = vadd.f32 %v7153_v47, %v7151_v45 }
 0x24e   : > { %v7157_v50 = vpop.eup %7156  ;;  %7176 = vpow2.f32 %v2078_v38 }
 0x24f   : > { %v7159_v40 = vpop.eup %7158  ;;  %7178 = vrcp.f32 %v2108_v49  ;;  %v2111_v51 = vadd.f32 %v7157_v50, %v7155_v48 }
 0x250   : > { %v7161_v52 = vpop.eup %7160  ;;  %7180 = vpow2.f32 %v2102_v39 }
 0x251   : > { %v7163_v53 = vpop.eup %7162  ;;  %7182 = vrcp.f32 %v2111_v51  ;;  %v2109_v54 = vadd.f32 %v7161_v52, %v7159_v40  ;;  %v7085_v51 = vld [vmem:[%s7443_s19 + $0x8] sm:$0xff]  }
 0x252   : > { %v7165_v55 = vpop.eup %7164 }
 0x253   : > { %v7167_v56 = vpop.eup %7166  ;;  %7184 = vrcp.f32 %v2109_v54  ;;  %v2114_v57 = vadd.f32 %v7165_v55, %v7163_v53 }
 0x254   : > { %v7169_v58 = vpop.eup %7168 }
 0x255   : > { %v7171_v59 = vpop.eup %7170  ;;  %7186 = vrcp.f32 %v2114_v57  ;;  %v2112_v60 = vadd.f32 %v7169_v58, %v7167_v56 }
 0x256   : > { %v7173_v61 = vpop.eup %7172 }
 0x257   : > { %v7175_v62 = vpop.eup %7174  ;;  %7188 = vrcp.f32 %v2112_v60  ;;  %v2115_v63 = vadd.f32 %v7173_v61, %v7171_v59 }
 0x258   : > { %v7177_v0 = vpop.eup %7176  ;;  %v2126_v1 = vmul.f32 %v7175_v62, %v7147_v43  ;;  %v2236_v2 = vmul.f32 %v7175_v62, %v7149_v44 }
 0x259   : > { %v7179_v3 = vpop.eup %7178  ;;  %7190 = vrcp.f32 %v2115_v63 }
 0x25a   : > { %v7181_v4 = vpop.eup %7180  ;;  %v2124_v5 = vmul.f32 %v7179_v3, %v7151_v45  ;;  %v2234_v6 = vmul.f32 %v7179_v3, %v7153_v47 }
 0x25b   : > { %v7183_v7 = vpop.eup %7182  ;;  %v2113_v8 = vadd.f32 %v7181_v4, %v7177_v0 }
 0x25c   : > { %v2127_v9 = vmul.f32 %v7183_v7, %v7155_v48  ;;  %v2237_v10 = vmul.f32 %v7183_v7, %v7157_v50 }
 0x25d   : > { %v7185_v11 = vpop.eup %7184  ;;  %7192 = vrcp.f32 %v2113_v8 }
 0x25e   : > { %v2243_v12 = vpack.c.bf16 %v2237_v10, %v2236_v2  ;;  %v2125_v14 = vmul.f32 %v7185_v11, %v7159_v40  ;;  %v2235_v30 = vmul.f32 %v7185_v11, %v7161_v52  ;;  %v2133_v31 = vpack.c.bf16 %v2127_v9, %v2126_v1  ;;  %v6086_v52 = vld [vmem:[%s7438_s14] ss:$0 sm:$0xff] }
 0x25f   : > { %v7187_v33 = vpop.eup %7186  ;;  %v1795_v54 = vadd.f32 %v6086_v52, %v7727_v16 }
 0x260   : > { %v2132_v34 = vpack.c.bf16 %v2125_v14, %v2124_v5  ;;  %v2242_v35 = vpack.c.bf16 %v2235_v30, %v2234_v6  ;;  %v2130_v36 = vmul.f32 %v7187_v33, %v7163_v53  ;;  %v2240_v41 = vmul.f32 %v7187_v33, %v7165_v55 }
 0x261   : > { %v7189_v42 = vpop.eup %7188  ;;  %v1835_v53 = vadd.f32 %v7741_v22, %v6086_v52  ;;  %v1827_v55 = vadd.f32 %v6086_v52, %v7743_v23  ;;  %v1843_v14 = vadd.f32 %v6086_v52, %v7751_v27  ;;  %v1822_v33 = vadd.f32 %v7737_v20, %v6086_v52 }
 0x262   : > { %6543 = vmatprep.mubr.msk.bf16.mxu1 %vm2136_vm2, %v2132_v34  ;;  %6553 = vmatprep.mubr.msk.bf16.mxu0 %vm2136_vm2, %v2242_v35  ;;  %v2128_v37 = vmul.f32 %v7189_v42, %v7167_v56  ;;  %v2238_v43 = vmul.f32 %v7189_v42, %v7169_v58  ;;  %v1806_v58 = vadd.f32 %v7729_v17, %v6086_v52 }
 0x263   : > { %v7191_v44 = vpop.eup %7190  ;;  %6544 = vmatmul.mubr.msk.bf16.vlgmr.msra.gmra.mrb[28].mxu1 %vm2136_vm2, %v2133_v31  ;;  %6554 = vmatmul.mubr.msk.bf16.vlgmr.msra.gmra.mrb[28].mxu0 %vm2136_vm2, %v2243_v12  ;;  %v1811_v12 = vadd.f32 %v6086_v52, %v7735_v13  ;;  %v1854_v34 = vadd.f32 %v7753_v28, %v6086_v52  ;;  %v1846_v13 = vadd.f32 %v6086_v52, %v7755_v29  ;;  %v7086_v29 = vld [vmem:[%s7463_s12] sm:$0xff]  }
 0x264   : > { %v2131_v38 = vmul.f32 %v7191_v44, %v7171_v59  ;;  %v2241_v45 = vmul.f32 %v7191_v44, %v7173_v61  ;;  %6562 = vmatpush3.bf16.msra.mxu1 %v7759_v32  ;;  %v1803_v32 = vadd.f32 %v7725_v15, %v6086_v52  ;;  %v1838_v59 = vadd.f32 %v7745_v24, %v6086_v52 }
 0x265   : > { %6563 = vmatprep.subr.bf16.mxu1 %v7085_v51  ;;  %v1830_v15 = vadd.f32 %v6086_v52, %v7747_v25  ;;  %v1851_v25 = vadd.f32 %v7749_v26, %v6086_v52  ;;  %6573 = vmatprep.subr.bf16.mxu0 %v7086_v29 }
 0x266   : > { %v2135_v46 = vpack.c.bf16 %v2131_v38, %v2130_v36  ;;  %v2245_v47 = vpack.c.bf16 %v2241_v45, %v2240_v41  ;;  %6574 = vmatpush3.bf16.msra.mxu0 %v7086_v29 }
 0x267   : > { %v7193_v39 = vpop.eup %7192 }
 0x268   : > { %v2129_v48 = vmul.f32 %v7193_v39, %v7177_v0  ;;  %v2239_v49 = vmul.f32 %v7193_v39, %v7181_v4  ;;  %6564 = vmatpush3.bf16.msra.mxu1 %v7085_v51  ;;  %v1798_v0 = vadd.f32 %v6086_v52, %v7731_v18  ;;  %v1819_v18 = vadd.f32 %v7733_v19, %v6086_v52 }
 0x269   : > { %v1814_v19 = vadd.f32 %v6086_v52, %v7739_v21  ;;  %v7380_v21 = vmov 0.0  }
 0x26a   : > { %v2134_v50 = vpack.c.bf16 %v2129_v48, %v2128_v37  ;;  %v2244_v40 = vpack.c.bf16 %v2239_v49, %v2238_v43  ;;  %2468 = vst.msk [vmem:[#allocation2 + $0xc0] sm:$0xff] %vm1491_vm0, %v7380_v21  ;;  %2469 = vst.msk [vmem:[#allocation2 + $0xc8] sm:$0xff] %vm1491_vm0, %v7380_v21  ;;  %6585 = vmatprep.subr.bf16.mxu1 %v7380_v21 }
 0x26b   : > { %2443 = vst.msk [vmem:[#allocation2] sm:$0xff] %vm1491_vm0, %v7380_v21  ;;  %2444 = vst.msk [vmem:[#allocation2 + $0x8] sm:$0xff] %vm1491_vm0, %v7380_v21 }
 0x26c   : > { %6547 = vmatprep.mubr.msk.bf16.mxu1 %vm2136_vm2, %v2134_v50  ;;  %6557 = vmatprep.mubr.msk.bf16.mxu0 %vm2136_vm2, %v2244_v40  ;;  %2447 = vst.msk [vmem:[#allocation2 + $0x18] sm:$0xff] %vm1491_vm0, %v7380_v21  ;;  %2448 = vst.msk [vmem:[#allocation2 + $0x20] sm:$0xff] %vm1491_vm0, %v7380_v21 }
 0x26d   : > { %6548 = vmatmul.mubr.msk.bf16.gmra.mrb[32].mxu1 %vm2136_vm2, %v2135_v46  ;;  %6558 = vmatmul.mubr.msk.bf16.gmra.mrb[32].mxu0 %vm2136_vm2, %v2245_v47  ;;  %2450 = vst.msk [vmem:[#allocation2 + $0x30] sm:$0xff] %vm1491_vm0, %v7380_v21  ;;  %2451 = vst.msk [vmem:[#allocation2 + $0x38] sm:$0xff] %vm1491_vm0, %v7380_v21 }
 0x26e   : > { %2453 = vst.msk [vmem:[#allocation2 + $0x48] sm:$0xff] %vm1491_vm0, %v7380_v21  ;;  %2454 = vst.msk [vmem:[#allocation2 + $0x50] sm:$0xff] %vm1491_vm0, %v7380_v21 }
 0x26f   : > { %2456 = vst.msk [vmem:[#allocation2 + $0x60] sm:$0xff] %vm1491_vm0, %v7380_v21  ;;  %2457 = vst.msk [vmem:[#allocation2 + $0x68] sm:$0xff] %vm1491_vm0, %v7380_v21 }
 0x270   : > { %2459 = vst.msk [vmem:[#allocation2 + $0x78] sm:$0xff] %vm1491_vm0, %v7380_v21  ;;  %2460 = vst.msk [vmem:[#allocation2 + $0x80] sm:$0xff] %vm1491_vm0, %v7380_v21 }
 0x271   : > { %2462 = vst.msk [vmem:[#allocation2 + $0x90] sm:$0xff] %vm1491_vm0, %v7380_v21  ;;  %2463 = vst.msk [vmem:[#allocation2 + $0x98] sm:$0xff] %vm1491_vm0, %v7380_v21 }
 0x272   : > { %2465 = vst.msk [vmem:[#allocation2 + $0xa8] sm:$0xff] %vm1491_vm0, %v7380_v21  ;;  %2466 = vst.msk [vmem:[#allocation2 + $0xb0] sm:$0xff] %vm1491_vm0, %v7380_v21 }
 0x273   : > { %2471 = vst.msk [vmem:[#allocation2 + $0xd8] sm:$0xff] %vm1491_vm0, %v7380_v21  ;;  %2472 = vst.msk [vmem:[#allocation2 + $0xe0] sm:$0xff] %vm1491_vm0, %v7380_v21 }
 0x274   : > { %2474 = vst.msk [vmem:[#allocation2 + $0xf0] sm:$0xff] %vm1491_vm0, %v7380_v21  ;;  %2475 = vst.msk [vmem:[#allocation2 + $0xf8] sm:$0xff] %vm1491_vm0, %v7380_v21 }
 0x275   : > { %2477 = vst.msk [vmem:[#allocation2 + $0x108] sm:$0xff] %vm1491_vm0, %v7380_v21  ;;  %2478 = vst.msk [vmem:[#allocation2 + $0x110] sm:$0xff] %vm1491_vm0, %v7380_v21 }
 0x276   : > { %2480 = vst.msk [vmem:[#allocation2 + $0x120] sm:$0xff] %vm1491_vm0, %v7380_v21  ;;  %2481 = vst.msk [vmem:[#allocation2 + $0x128] sm:$0xff] %vm1491_vm0, %v7380_v21 }
 0x277   : > { %2483 = vst.msk [vmem:[#allocation2 + $0x138] sm:$0xff] %vm1491_vm0, %v7380_v21  ;;  %2484 = vst.msk [vmem:[#allocation2 + $0x140] sm:$0xff] %vm1491_vm0, %v7380_v21 }
 0x278   : > { %2486 = vst.msk [vmem:[#allocation2 + $0x150] sm:$0xff] %vm1491_vm0, %v7380_v21  ;;  %2487 = vst.msk [vmem:[#allocation2 + $0x158] sm:$0xff] %vm1491_vm0, %v7380_v21 }
 0x279   : > { %2489 = vst.msk [vmem:[#allocation2 + $0x168] sm:$0xff] %vm1491_vm0, %v7380_v21  ;;  %2490 = vst.msk [vmem:[#allocation2 + $0x170] sm:$0xff] %vm1491_vm0, %v7380_v21 }
 0x27a   : > { %2492 = vst.msk [vmem:[#allocation2 + $0x180] sm:$0xff] %vm1491_vm0, %v7380_v21  ;;  %2493 = vst.msk [vmem:[#allocation2 + $0x188] sm:$0xff] %vm1491_vm0, %v7380_v21 }
 0x27b   : > { %2495 = vst.msk [vmem:[#allocation2 + $0x198] sm:$0xff] %vm1491_vm0, %v7380_v21  ;;  %2496 = vst.msk [vmem:[#allocation2 + $0x1a0] sm:$0xff] %vm1491_vm0, %v7380_v21 }
 0x27c   : > { %2498 = vst.msk [vmem:[#allocation2 + $0x1b0] sm:$0xff] %vm1491_vm0, %v7380_v21  ;;  %2499 = vst.msk [vmem:[#allocation2 + $0x1b8] sm:$0xff] %vm1491_vm0, %v7380_v21 }
 0x27d   : > { %2501 = vst.msk [vmem:[#allocation2 + $0x1c8] sm:$0xff] %vm1491_vm0, %v7380_v21  ;;  %2502 = vst.msk [vmem:[#allocation2 + $0x1d0] sm:$0xff] %vm1491_vm0, %v7380_v21 }
 0x27e   : > { %2446 = vst.msk [vmem:[#allocation2 + $0x10] sm:$0xf] %vm2445_vm3, %v7380_v21  ;;  %2449 = vst.msk [vmem:[#allocation2 + $0x28] sm:$0xf] %vm2445_vm3, %v7380_v21 }
 0x27f   : > { %2452 = vst.msk [vmem:[#allocation2 + $0x40] sm:$0xf] %vm2445_vm3, %v7380_v21  ;;  %2455 = vst.msk [vmem:[#allocation2 + $0x58] sm:$0xf] %vm2445_vm3, %v7380_v21 }
 0x280   : > { %2458 = vst.msk [vmem:[#allocation2 + $0x70] sm:$0xf] %vm2445_vm3, %v7380_v21  ;;  %2461 = vst.msk [vmem:[#allocation2 + $0x88] sm:$0xf] %vm2445_vm3, %v7380_v21 }
 0x281   : > { %2464 = vst.msk [vmem:[#allocation2 + $0xa0] sm:$0xf] %vm2445_vm3, %v7380_v21  ;;  %2467 = vst.msk [vmem:[#allocation2 + $0xb8] sm:$0xf] %vm2445_vm3, %v7380_v21 }
 0x282   : > { %2470 = vst.msk [vmem:[#allocation2 + $0xd0] sm:$0xf] %vm2445_vm3, %v7380_v21  ;;  %2473 = vst.msk [vmem:[#allocation2 + $0xe8] sm:$0xf] %vm2445_vm3, %v7380_v21 }
 0x283   : > { %2476 = vst.msk [vmem:[#allocation2 + $0x100] sm:$0xf] %vm2445_vm3, %v7380_v21  ;;  %2479 = vst.msk [vmem:[#allocation2 + $0x118] sm:$0xf] %vm2445_vm3, %v7380_v21 }
 0x284   : > { %2482 = vst.msk [vmem:[#allocation2 + $0x130] sm:$0xf] %vm2445_vm3, %v7380_v21  ;;  %2485 = vst.msk [vmem:[#allocation2 + $0x148] sm:$0xf] %vm2445_vm3, %v7380_v21 }
 0x285   : > { %2488 = vst.msk [vmem:[#allocation2 + $0x160] sm:$0xf] %vm2445_vm3, %v7380_v21  ;;  %2491 = vst.msk [vmem:[#allocation2 + $0x178] sm:$0xf] %vm2445_vm3, %v7380_v21  ;;  %v3446_v51 = vld [vmem:[#allocation2 + $0xc] sm:$0xff]  ;;  %v3447_v52 = vld [vmem:[#allocation2 + $0x24] sm:$0xff] }
 0x286   : > { %2494 = vst.msk [vmem:[#allocation2 + $0x190] sm:$0xf] %vm2445_vm3, %v7380_v21  ;;  %2497 = vst.msk [vmem:[#allocation2 + $0x1a8] sm:$0xf] %vm2445_vm3, %v7380_v21 }
 0x287   : > { %2500 = vst.msk [vmem:[#allocation2 + $0x1c0] sm:$0xf] %vm2445_vm3, %v7380_v21  ;;  %2503 = vst.msk [vmem:[#allocation2 + $0x1d8] sm:$0xf] %vm2445_vm3, %v7380_v21 }
 0x288   : > { %5192 = vst.msk [vmem:[#allocation3] sm:$0xff] %vm3075_vm5, %v7380_v21  ;;  %5195 = vst.msk [vmem:[#allocation3 + $0x10] sm:$0xff] %vm3075_vm5, %v7380_v21 }
 0x289   : > { %5197 = vst.msk [vmem:[#allocation3 + $0x20] sm:$0xff] %vm3075_vm5, %v7380_v21  ;;  %5199 = vst.msk [vmem:[#allocation3 + $0x30] sm:$0xff] %vm3075_vm5, %v7380_v21 }
 0x28a   : > { %5201 = vst.msk [vmem:[#allocation3 + $0x40] sm:$0xff] %vm3075_vm5, %v7380_v21  ;;  %5203 = vst.msk [vmem:[#allocation3 + $0x50] sm:$0xff] %vm3075_vm5, %v7380_v21 }
 0x28b   : > { %5205 = vst.msk [vmem:[#allocation3 + $0x60] sm:$0xff] %vm3075_vm5, %v7380_v21  ;;  %5207 = vst.msk [vmem:[#allocation3 + $0x70] sm:$0xff] %vm3075_vm5, %v7380_v21 }
 0x28c   : > { %5209 = vst.msk [vmem:[#allocation3 + $0x80] sm:$0xff] %vm3075_vm5, %v7380_v21  ;;  %5211 = vst.msk [vmem:[#allocation3 + $0x90] sm:$0xff] %vm3075_vm5, %v7380_v21 }
 0x28d   : > { %5200 = vst.msk [vmem:[#allocation3 + $0x38] sm:$0x3] %vm5193_vm9, %v7380_v21  ;;  %5194 = vst.msk [vmem:[#allocation3 + $0x8] sm:$0x3] %vm5193_vm9, %v7380_v21 }
 0x28e   : > { %5196 = vst.msk [vmem:[#allocation3 + $0x18] sm:$0x3] %vm5193_vm9, %v7380_v21  ;;  %5198 = vst.msk [vmem:[#allocation3 + $0x28] sm:$0x3] %vm5193_vm9, %v7380_v21 }
 0x28f   : > { %5202 = vst.msk [vmem:[#allocation3 + $0x48] sm:$0x3] %vm5193_vm9, %v7380_v21  ;;  %5204 = vst.msk [vmem:[#allocation3 + $0x58] sm:$0x3] %vm5193_vm9, %v7380_v21 }
 0x290   : > { %5206 = vst.msk [vmem:[#allocation3 + $0x68] sm:$0x3] %vm5193_vm9, %v7380_v21  ;;  %5208 = vst.msk [vmem:[#allocation3 + $0x78] sm:$0x3] %vm5193_vm9, %v7380_v21 }
 0x291   : > { %5210 = vst.msk [vmem:[#allocation3 + $0x88] sm:$0x3] %vm5193_vm9, %v7380_v21  ;;  %5212 = vst.msk [vmem:[#allocation3 + $0x98] sm:$0x3] %vm5193_vm9, %v7380_v21 }
 0x336   : > { %v6545_v56 = vpop.f32.mrb[28].mxu1  ;;  %v6555_v57 = vpop.f32.mrb[28].mxu0 }
 0x337   : > { %v2220_v60 = vmul.f32 %v6545_v56, %v1803_v32  ;;  %v2325_v61 = vmul.f32 %v6555_v57, %v1835_v53  ;;  %v2187_v62 = vpop.f32.mrb[29].mxu1  ;;  %v2292_v63 = vpop.f32.mrb[29].mxu0  ;;  %v6781_v32 = vpack.i.bf16 %v3447_v52, %v3446_v51  ;;  %v3438_v53 = vld [vmem:[#allocation2 + $0x6] sm:$0xff]  ;;  %v3473_v57 = vld [vmem:[#allocation2 + $0x150] sm:$0xff] }
 0x338   : > { %v2218_v1 = vmul.f32 %v2187_v62, %v1795_v54  ;;  %v2323_v22 = vmul.f32 %v2292_v63, %v1827_v55  ;;  %v6546_v2 = vpop.f32.mrb[30].mxu1  ;;  %v6556_v16 = vpop.f32.mrb[30].mxu0  ;;  %v3439_v54 = vld [vmem:[#allocation2 + $0x1e] sm:$0xff]  ;;  %v7087_v56 = vld [vmem:[%s7463_s12 + $0x8] sm:$0xff]  }
 0x339   : > { %v2333_v3 = vadd.f32 %v2325_v61, %v2220_v60  ;;  %v2221_v23 = vmul.f32 %v6546_v2, %v1806_v58  ;;  %v2326_v4 = vmul.f32 %v6556_v16, %v1838_v59  ;;  %v2190_v5 = vpop.f32.mrb[31].mxu1  ;;  %v2295_v6 = vpop.f32.mrb[31].mxu0  ;;  %v6776_v55 = vpack.i.bf16 %v3439_v54, %v3438_v53  ;;  %6782 = vrot.lane.b32.xlu1 %v6781_v32, %s7381_s22  ;;  %v3474_v58 = vld [vmem:[#allocation2 + $0x168] sm:$0xff]  ;;  %v3440_v60 = vld [vmem:[#allocation2 + $0x36] sm:$0xff]  ;;  %v7088_v16 = vld [vmem:[%s7468_s20] sm:$0xff]  }
 0x33a   : > { %v2331_v17 = vadd.f32 %v2323_v22, %v2218_v1  ;;  %v2219_v7 = vmul.f32 %v2190_v5, %v1798_v0  ;;  %v2324_v24 = vmul.f32 %v2295_v6, %v1830_v15  ;;  %v6791_v59 = vpack.i.bf16 %v3474_v58, %v3473_v57  ;;  %v3441_v61 = vld [vmem:[#allocation2 + $0x4e] sm:$0xff]  ;;  %6575 = vmatprep.subr.bf16.mxu0 %v7087_v56  ;;  %v3448_v63 = vld [vmem:[#allocation2 + $0x3c] sm:$0xff] }
 0x33b   : > { %v2334_v8 = vadd.f32 %v2326_v4, %v2221_v23  ;;  %6777 = vrot.lane.b32.xlu0 %v6776_v55, %s7382_s23  ;;  %v6786_v62 = vpack.i.bf16 %v3441_v61, %v3440_v60  ;;  %6576 = vmatpush3.bf16.msra.mxu0 %v7087_v56  ;;  %v3449_v0 = vld [vmem:[#allocation2 + $0x54] sm:$0xff]  ;;  %v7090_v23 = vld [vmem:[%s9256_s26 + $0x40] sm:$0xff]  }
 0x33c   : > { %v2332_v9 = vadd.f32 %v2324_v24, %v2219_v7  ;;  %v7920_v15 = vld [vmem:[#allocation2 + $0x156] sm:$0xff]  ;;  %v6796_v1 = vpack.i.bf16 %v3449_v0, %v3448_v63  ;;  %v3482_v22 = vld [vmem:[#allocation2 + $0x16e] sm:$0xff]  ;;  %6329 = vmatprep.subr.bf16.mxu0 %v7090_v23  ;;  %v6115_v4 = vld [vmem:[%s9257_s28] ss:$0 sm:$0xff]  ;;  %s9264_s28 = sld [smem:[#allocation20_spill]] }
 0x33d   : > { %v2344_v10 = vpack.c.bf16 %v2334_v8, %v2333_v3  ;;  %6792 = vrot.lane.b32.xlu1 %v6791_v59, %s7381_s22  ;;  %v6801_v2 = vpack.i.bf16 %v3482_v22, %v7920_v15  ;;  %v7089_v3 = vld [vmem:[%s7468_s20 + $0x8] sm:$0xff]   ;;  %v7095_v54 = vld [vmem:[%s9256_s26 + $0x10] sm:$0xff]   ;;  %v7096_v58 = vld [vmem:[%s9256_s26 + $0x58] sm:$0xff]  }
 0x33e   : > { %v2343_v11 = vpack.c.bf16 %v2332_v9, %v2331_v17 }
 0x33f   : > { %6787 = vrot.lane.b32.xlu0 %v6786_v62, %s7382_s23 }
 0x340   : > { %v6549_v30 = vpop.f32.mrb[32].mxu1  ;;  %v6559_v31 = vpop.f32.mrb[32].mxu0  ;;  %6565 = vmatprep.mubr.msk.bf16.mxu1 %vm1491_vm0, %v2343_v11 }
 0x341   : > { %v2224_v35 = vmul.f32 %v6549_v30, %v1819_v18  ;;  %v2329_v36 = vmul.f32 %v6559_v31, %v1851_v25  ;;  %v2203_v41 = vpop.f32.mrb[33].mxu1  ;;  %v2308_v42 = vpop.f32.mrb[33].mxu0  ;;  %6566 = vmatmul.mubr.msk.bf16.vlgmr.msra.gmra.mrb[36].mxu1 %vm1491_vm0, %v2344_v10  ;;  %6797 = vrot.lane.b32.xlu1 %v6796_v1, %s7381_s22  ;;  %v7092_v31 = vld [vmem:[%s9256_s26 + $0x48] sm:$0xff]   ;;  %v7097_v1 = vld [vmem:[%s9256_s26 + $0x18] sm:$0xff]  }
 0x342   : > { %v2222_v26 = vmul.f32 %v2203_v41, %v1811_v12  ;;  %v2327_v27 = vmul.f32 %v2308_v42, %v1843_v14  ;;  %v6550_v37 = vpop.f32.mrb[34].mxu1  ;;  %v6560_v43 = vpop.f32.mrb[34].mxu0  ;;  %6586 = vmatpush3.bf16.msra.mxu1 %v7088_v16  ;;  %v7091_v12 = vld [vmem:[%s9256_s26] sm:$0xff]  }
 0x343   : > { %v2337_v44 = vadd.f32 %v2329_v36, %v2224_v35  ;;  %v2225_v38 = vmul.f32 %v6550_v37, %v1822_v33  ;;  %v2330_v45 = vmul.f32 %v6560_v43, %v1854_v34  ;;  %v2206_v20 = vpop.f32.mrb[35].mxu1  ;;  %v2311_v46 = vpop.f32.mrb[35].mxu0  ;;  %6802 = vrot.lane.b32.xlu0 %v6801_v2, %s7383_s1  ;;  %6587 = vmatprep.subr.bf16.mxu1 %v7380_v21  ;;  %v2826_v34 = vld [vmem:[#allocation2 + $0x7f] sm:$0xff]  ;;  %v7093_v37 = vld [vmem:[%s9256_s26 + $0x8] sm:$0xff]  }
 0x344   : > { %v2335_v28 = vadd.f32 %v2327_v27, %v2222_v26  ;;  %v2223_v47 = vmul.f32 %v2206_v20, %v1814_v19  ;;  %v2328_v39 = vmul.f32 %v2311_v46, %v1846_v13  ;;  %v7969_v35 = vld [vmem:[#allocation2 + $0x7e] sm:$0xff]  ;;  %v7094_v46 = vld [vmem:[%s9256_s26 + $0x50] sm:$0xff]  }
 0x345   : > { %v2338_v48 = vadd.f32 %v2330_v45, %v2225_v38 }
 0x346   : > { %v2336_v49 = vadd.f32 %v2328_v39, %v2223_v47  ;;  %6588 = vmatpush3.bf16.msra.mxu1 %v7089_v3  ;;  %v7098_v3 = vld [vmem:[%s9256_s26 + $0x60] sm:$0xff]  }
 0x347   : > { %v2346_v50 = vpack.c.bf16 %v2338_v48, %v2337_v44  ;;  %6593 = vmatprep.subr.bf16.mxu1 %v7380_v21 }
 0x348   : > { %v2345_v40 = vpack.c.bf16 %v2336_v49, %v2335_v28 }
 0x34a   : > { %6569 = vmatprep.mubr.msk.bf16.mxu1 %vm1491_vm0, %v2345_v40 }
 0x34b   : > { %6570 = vmatmul.mubr.msk.bf16.gmra.mrb[40].mxu1 %vm1491_vm0, %v2346_v50 }
 0x34c   : > { %6589 = vmatprep.mubr.msk.bf16.mxu1 %vm7384_vm4, %v7380_v21 }
 0x414   : > { %v6567_v5 = vpop.f32.mrb[36].mxu1 }
 0x415   : > { %v7933_v6 = vadd.f32 %v6567_v5, %v6115_v4  ;;  %v2412_v17 = vpop.f32.mrb[37].mxu1 }
 0x416   : > { %v7935_v7 = vadd.f32 %v6115_v4, %v2412_v17  ;;  %v6568_v24 = vpop.f32.mrb[38].mxu1 }
 0x417   : > { %2507 = vst.msk [vmem:[#allocation2 + $0xc6] sm:$0xff] %vm1491_vm0, %v7933_v6  ;;  %v7939_v8 = vadd.f32 %v6568_v24, %v6115_v4  ;;  %v2415_v9 = vpop.f32.mrb[39].mxu1  ;;  %v2661_v33 = vsel %vm1491_vm0, %v7933_v6, 0.0 }
 0x418   : > { %2505 = vst.msk [vmem:[#allocation2 + $0x96] sm:$0xff] %vm1491_vm0, %v7935_v7  ;;  %v7943_v10 = vadd.f32 %v6115_v4, %v2415_v9  ;;  %v2658_v11 = vsel %vm1491_vm0, %v7935_v7, 0.0 }
 0x419   : > { %2508 = vst.msk [vmem:[#allocation2 + $0xde] sm:$0xff] %vm1491_vm0, %v7939_v8  ;;  %v7960_v30 = vpack.c.bf16 %v7939_v8, %v7933_v6  ;;  %v2663_v42 = vsel %vm1491_vm0, %v7939_v8, 0.0 }
 0x41a   : > { %2506 = vst.msk [vmem:[#allocation2 + $0xae] sm:$0xff] %vm1491_vm0, %v7943_v10  ;;  %v2659_v18 = vsel %vm1491_vm0, %v7943_v10, 0.0  ;;  %v7955_v25 = vpack.c.bf16 %v7943_v10, %v7935_v7 }
 0x41b   : > { %v2660_v14 = vadd.f32 %v2659_v18, %v2658_v11  ;;  %v7099_v18 = vld [vmem:[%s9256_s26 + $0x20] sm:$0xff]  }
 0x41c   : > { %6577 = vmatprep.mubr.msk.bf16.mxu0 %vm1491_vm0, %v7955_v25 }
 0x41d   : > { %6578 = vmatmul.mubr.msk.bf16.vlgmr.msra.gmra.mrb[36].mxu0 %vm1491_vm0, %v7960_v30  ;;  %v2662_v36 = vadd.f32 %v2661_v33, %v2660_v14  ;;  %v7100_v33 = vld [vmem:[%s9256_s26 + $0x68] sm:$0xff]  }
 0x41e   : > { %v6571_v41 = vpop.f32.mrb[40].mxu1  ;;  %6330 = vmatpush3.bf16.msra.mxu0 %v7091_v12  ;;  %v8024_v40 = vld [vmem:[#allocation2 + $0xc5] sm:$0xff] }
 0x41f   : > { %v7973_v19 = vadd.f32 %v6571_v41, %v6115_v4  ;;  %v2428_v13 = vpop.f32.mrb[41].mxu1  ;;  %v7975_v26 = vld [vmem:[#allocation2 + $0x97] sm:$0xff]  ;;  %6331 = vmatprep.subr.bf16.mxu0 %v7092_v31  ;;  %v2664_v20 = vadd.f32 %v2663_v42, %v2662_v36  ;;  %v8034_v52 = vld [vmem:[#allocation2 + $0xc7] sm:$0xff] }
 0x420   : > { %v7977_v27 = vld [vmem:[#allocation2 + $0x96] sm:$0xff]  ;;  %v8000_v43 = vadd.f32 %v6115_v4, %v2428_v13  ;;  %v6572_v44 = vpop.f32.mrb[42].mxu1  ;;  %v6811_v38 = vpack.i.bf16 %v7975_v26, %v2826_v34  ;;  %v8018_v49 = vld [vmem:[#allocation2 + $0xdf] sm:$0xff]  ;;  %v3464_v61 = vld [vmem:[#allocation2 + $0xcc] sm:$0xff] }
 0x421   : > { %v6806_v45 = vpack.i.bf16 %v7977_v27, %v7969_v35  ;;  %2511 = vst.msk [vmem:[#allocation2 + $0x126] sm:$0xff] %vm1491_vm0, %v7973_v19  ;;  %v8008_v28 = vadd.f32 %v6572_v44, %v6115_v4  ;;  %v2431_v47 = vpop.f32.mrb[43].mxu1  ;;  %v8010_v39 = vld [vmem:[#allocation2 + $0xdd] sm:$0xff]  ;;  %v6816_v56 = vpack.i.bf16 %v8018_v49, %v8034_v52  ;;  %v8049_v59 = vld [vmem:[#allocation2 + $0xaf] sm:$0xff]  ;;  %v2669_v62 = vsel %vm1491_vm0, %v7973_v19, 0.0  ;;  %v2860_v24 = vld [vmem:[#allocation2 + $0xc6] sm:$0xff] }
 0x422   : > { %2509 = vst.msk [vmem:[#allocation2 + $0xf6] sm:$0xff] %vm1491_vm0, %v8000_v43  ;;  %v8014_v48 = vadd.f32 %v6115_v4, %v2431_v47  ;;  %6812 = vrot.lane.b32.xlu1 %v6811_v38, %s7381_s22  ;;  %v2665_v50 = vsel %vm1491_vm0, %v8000_v43, 0.0  ;;  %6332 = vmatpush3.bf16.msra.mxu0 %v7093_v37  ;;  %v6821_v51 = vpack.i.bf16 %v8010_v39, %v8024_v40  ;;  %v3465_v57 = vld [vmem:[#allocation2 + $0xe4] sm:$0xff]  ;;  %v3457_v2 = vld [vmem:[#allocation2 + $0xd8] sm:$0xff]  ;;  %v8063_v23 = vld [vmem:[#allocation2 + $0xae] sm:$0xff] }
 0x423   : > { %6807 = vrot.lane.b32.xlu0 %v6806_v45, %s7382_s23  ;;  %2512 = vst.msk [vmem:[#allocation2 + $0x13e] sm:$0xff] %vm1491_vm0, %v8008_v28  ;;  %v2666_v32 = vadd.f32 %v2665_v50, %v2664_v20  ;;  %6333 = vmatprep.subr.bf16.mxu0 %v7094_v46  ;;  %v8041_v55 = vpack.c.bf16 %v8008_v28, %v7973_v19  ;;  %v2671_v16 = vsel %vm1491_vm0, %v8008_v28, 0.0  ;;  %v3456_v5 = vld [vmem:[#allocation2 + $0xc0] sm:$0xff]  ;;  %v8066_v9 = vld [vmem:[#allocation2 + $0xad] sm:$0xff]  ;;  %v8089_v20 = vld [vmem:[#allocation2 + $0x95] sm:$0xff] }
 0x424   : > { %2510 = vst.msk [vmem:[#allocation2 + $0x10e] sm:$0xff] %vm1491_vm0, %v8014_v48  ;;  %v8030_v29 = vpack.c.bf16 %v8014_v48, %v8000_v43  ;;  %v2667_v53 = vsel %vm1491_vm0, %v8014_v48, 0.0  ;;  %v6826_v63 = vpack.i.bf16 %v3465_v57, %v3464_v61  ;;  %v6836_v22 = vpack.i.bf16 %v8049_v59, %v7975_v26  ;;  %v7101_v26 = vld [vmem:[%s9256_s26 + $0x28] sm:$0xff]   ;;  %v7102_v44 = vld [vmem:[%s9256_s26 + $0x70] sm:$0xff]   ;;  %v2861_v47 = vld [vmem:[#allocation2 + $0xde] sm:$0xff] }
 0x425   : > { %v2668_v60 = vadd.f32 %v2667_v53, %v2666_v32  ;;  %v6831_v17 = vpack.i.bf16 %v3457_v2, %v3456_v5  ;;  %v6846_v12 = vpack.i.bf16 %v2860_v24, %v8063_v23  ;;  %v6841_v42 = vpack.i.bf16 %v8024_v40, %v8066_v9  ;;  %v7104_v53 = vld [vmem:[%s9256_s26 + $0x78] sm:$0xff]   ;;  %v8110_v5 = vld [vmem:[#allocation2 + $0xa8] sm:$0xff] }
 0x426   : > { %6581 = vmatprep.mubr.msk.bf16.mxu0 %vm1491_vm0, %v8030_v29  ;;  %6822 = vrot.lane.b32.xlu1 %v6821_v51, %s7383_s1  ;;  %v6851_v46 = vpack.i.bf16 %v8066_v9, %v8089_v20  ;;  %v7103_v51 = vld [vmem:[%s9256_s26 + $0x30] sm:$0xff]   ;;  %v3462_v2 = vld [vmem:[#allocation2 + $0x9c] sm:$0xff] }
 0x427   : > { %6582 = vmatmul.mubr.msk.bf16.gmra.mrb[40].mxu0 %vm1491_vm0, %v8041_v55  ;;  %6817 = vrot.lane.b32.xlu0 %v6816_v56, %s7382_s23  ;;  %v2670_v0 = vadd.f32 %v2669_v62, %v2668_v60 }
 0x428   : > { %6334 = vmatpush3.bf16.msra.mxu0 %v7095_v54  ;;  %v8070_v14 = vld [vmem:[#allocation2 + $0x12c] sm:$0xff] }
 0x429   : > { %6335 = vmatprep.subr.bf16.mxu0 %v7096_v58  ;;  %v2672_v4 = vadd.f32 %v2671_v16, %v2670_v0  ;;  %v8076_v34 = vld [vmem:[#allocation2 + $0xf5] sm:$0xff]  ;;  %v3479_v0 = vld [vmem:[#allocation2 + $0x126] sm:$0xff] }
 0x42a   : > { %6827 = vrot.lane.b32.xlu1 %v6826_v63, %s7382_s23  ;;  %v8072_v31 = vld [vmem:[#allocation2 + $0x144] sm:$0xff]  ;;  %v6876_v37 = vpack.i.bf16 %v8076_v34, %v8010_v39  ;;  %v2862_v38 = vld [vmem:[#allocation2 + $0xf6] sm:$0xff]  ;;  %v6861_v63 = vpack.i.bf16 %v8034_v52, %v8049_v59 }
 0x42b   : > { %6837 = vrot.lane.b32.xlu0 %v6836_v22, %s7382_s23  ;;  %v2673_v11 = vrot.slane %v2672_v4, 4  ;;  %v3773_v41 = vpack.c.bf16 %v8072_v31, %v8070_v14  ;;  %v6881_v32 = vpack.i.bf16 %v2862_v38, %v2861_v47  ;;  %v2831_v56 = vld [vmem:[#allocation2 + $0xf7] sm:$0xff]  ;;  %v3475_v38 = vld [vmem:[#allocation2 + $0x180] sm:$0xff]  ;;  %v2863_v47 = vld [vmem:[#allocation2 + $0x10e] sm:$0xff] }
 0x42c   : > { %6336 = vmatpush3.bf16.msra.mxu0 %v7097_v1  ;;  %v7105_v58 = vld [vmem:[%s9256_s26 + $0x38] sm:$0xff]   ;;  %v6891_v60 = vpack.i.bf16 %v2831_v56, %v8018_v49 }
 0x42d   : > { %6337 = vmatprep.subr.bf16.mxu0 %v7098_v3  ;;  %v2674_v36 = vadd.f32 %v2673_v11, %v2672_v4  ;;  %v3480_v62 = vld [vmem:[#allocation2 + $0x13e] sm:$0xff]  ;;  %v3463_v22 = vld [vmem:[#allocation2 + $0xb4] sm:$0xff]  ;;  %v2848_v3 = vld [vmem:[#allocation2 + $0x127] sm:$0xff] }
 0x42e   : > { %6832 = vrot.lane.b32.xlu1 %v6831_v17, %s7383_s1  ;;  %v6901_v1 = vpack.i.bf16 %v3480_v62, %v3479_v0  ;;  %v2849_v49 = vld [vmem:[#allocation2 + $0x13f] sm:$0xff]  ;;  %v8108_v16 = vpack.i.bf16 %v3463_v22, %v3462_v2  ;;  %v2858_v59 = vld [vmem:[#allocation2 + $0x155] sm:$0xff] }
 0x42f   : > { %6847 = vrot.lane.b32.xlu0 %v6846_v12, %s7383_s1  ;;  %v2675_v13 = vrot.slane %v2674_v36, 2  ;;  %v6906_v4 = vpack.i.bf16 %v2849_v49, %v2848_v3  ;;  %v2857_v52 = vld [vmem:[#allocation2 + $0x13d] sm:$0xff]  ;;  %v8115_v17 = vld [vmem:[#allocation2 + $0x90] sm:$0xff]  ;;  %v3459_v49 = vld [vmem:[#allocation2 + $0x108] sm:$0xff] }
 0x430   : > { %6338 = vmatpush3.bf16.msra.mxu0 %v7099_v18  ;;  %v6871_v24 = vpack.i.bf16 %v8110_v5, %v8115_v17  ;;  %v6911_v11 = vpack.i.bf16 %v2858_v59, %v2857_v52  ;;  %v8121_v18 = vld [vmem:[#allocation2 + $0x125] sm:$0xff]  ;;  %v3458_v2 = vld [vmem:[#allocation2 + $0xf0] sm:$0xff]  ;;  %v6981_v59 = vpack.i.bf16 %v8072_v31, %v8070_v14 }
 0x431   : > { %6339 = vmatprep.subr.bf16.mxu0 %v7100_v33  ;;  %v2676_v45 = vadd.f32 %v2675_v13, %v2674_v36  ;;  %v3472_v33 = vld [vmem:[#allocation2 + $0x138] sm:$0xff]  ;;  %v2847_v36 = vld [vmem:[#allocation2 + $0x10f] sm:$0xff] }
 0x432   : > { %6842 = vrot.lane.b32.xlu1 %v6841_v42, %s7381_s22  ;;  %v3471_v42 = vld [vmem:[#allocation2 + $0x120] sm:$0xff] }
 0x433   : > { %6877 = vrot.lane.b32.xlu0 %v6876_v37, %s7381_s22  ;;  %v2677_v50 = vrot.slane %v2676_v45, 1  ;;  %v6896_v13 = vpack.i.bf16 %v3472_v33, %v3471_v42  ;;  %v8127_v37 = vld [vmem:[#allocation2 + $0x10d] sm:$0xff]  ;;  %v8165_v33 = vpop.permute.xlu0 %6777 }
 0x434   : > { %6340 = vmatpush3.bf16.msra.mxu0 %v7101_v26  ;;  %v6926_v26 = vpack.i.bf16 %v2847_v36, %v2831_v56  ;;  %v3451_v56 = vld [vmem:[#allocation2 + $0x84] sm:$0xff] }
 0x435   : > { %6341 = vmatprep.subr.bf16.mxu0 %v7102_v44  ;;  %v2678_v54 = vadd.f32 %v2677_v50, %v2676_v45  ;;  %v6916_v44 = vpack.i.bf16 %v7920_v15, %v3480_v62  ;;  %v3476_v45 = vld [vmem:[#allocation2 + $0x198] sm:$0xff]  ;;  %v6951_v15 = vpack.i.bf16 %v8127_v37, %v8076_v34 }
 0x436   : > { %6852 = vrot.lane.b32.xlu1 %v6851_v46, %s7383_s1  ;;  %v6931_v46 = vpack.i.bf16 %v8121_v18, %v8127_v37  ;;  %v6946_v50 = vpack.i.bf16 %v3476_v45, %v3475_v38 }
 0x437   : > { %6882 = vrot.lane.b32.xlu0 %v6881_v32, %s7383_s1  ;;  %v2680_v57 = vmul.f32 0.015625, %v2678_v54  ;;  %v3450_v54 = vld [vmem:[#allocation2 + $0x6c] sm:$0xff]  ;;  %v8169_v42 = vpop.permute.xlu0 %6787 }
 0x438   : > { %6342 = vmatpush3.bf16.msra.mxu0 %v7103_v51  ;;  %v3442_v51 = vld [vmem:[#allocation2 + $0x66] sm:$0xff]  ;;  %v6961_v62 = vpack.i.bf16 %v3451_v56, %v3450_v54  ;;  %v2810_v56 = vld [vmem:[#allocation2 + $0x7d] sm:$0xff] }
 0x439   : > { %6343 = vmatprep.subr.bf16.mxu0 %v7104_v53  ;;  %v2685_v61 = vpack.c.bf16 %v2680_v57, %v2680_v57  ;;  %v6941_v53 = vpack.i.bf16 %v7969_v35, %v3442_v51  ;;  %v3483_v57 = vld [vmem:[#allocation2 + $0x186] sm:$0xff] }
 0x43a   : > { %6857 = vrot.lane.b32.xlu1 %v6846_v12, %s7382_s23  ;;  %v6921_v12 = vpack.i.bf16 %v2857_v52, %v8121_v18  ;;  %v3478_v52 = vld [vmem:[#allocation2 + $0x1c8] sm:$0xff] }
 0x43b   : > { %6892 = vrot.lane.b32.xlu0 %v6891_v60, %s7381_s22  ;;  %6590 = vmatmul.mubr.msk.bf16.vlgmr.msra.gmra.mrb[44].mxu1 %vm1491_vm0, %v2685_v61  ;;  %v8143_v60 = vld [vmem:[%s9258_s2 + $0x80] sm:$0xff]   ;;  %v6966_v61 = vpack.i.bf16 %v2848_v3, %v2847_v36  ;;  %v6996_v3 = vpack.i.bf16 %v3459_v49, %v3458_v2 }
 0x43c   : > { %6344 = vmatpush3.bf16.msra.mxu0 %v7105_v58  ;;  %6595 = vmatprep.mubr.msk.bf16.mxu1 %vm7384_vm4, %v7380_v21  ;;  %v3484_v58 = vld [vmem:[#allocation2 + $0x19e] sm:$0xff] }
 0x43d   : > { %6611 = vmatprep.subr.bf16.mxu0 %v8143_v60  ;;  %v6971_v35 = vpack.i.bf16 %v3484_v58, %v3483_v57 }
 0x43e   : > { %6862 = vrot.lane.b32.xlu1 %v6861_v63, %s7381_s22  ;;  %v3467_v63 = vld [vmem:[#allocation2 + $0x114] sm:$0xff] }
 0x43f   : > { %6902 = vrot.lane.b32.xlu0 %v6901_v1, %s7383_s1  ;;  %v6986_v1 = vpack.i.bf16 %v8063_v23, %v7977_v27  ;;  %v3485_v27 = vld [vmem:[#allocation2 + $0x1b6] sm:$0xff]  ;;  %v3486_v23 = vld [vmem:[#allocation2 + $0x1ce] sm:$0xff] }
 0x442   : > { %6867 = vrot.lane.b32.xlu1 %v8108_v16, %s7382_s23 }
 0x443   : > { %6907 = vrot.lane.b32.xlu0 %v6906_v4, %s7382_s23  ;;  %v3477_v4 = vld [vmem:[#allocation2 + $0x1b0] sm:$0xff] }
 0x446   : > { %6872 = vrot.lane.b32.xlu1 %v6871_v24, %s7383_s1  ;;  %v6991_v24 = vpack.i.bf16 %v3478_v52, %v3477_v4 }
 0x447   : > { %6912 = vrot.lane.b32.xlu0 %v6911_v11, %s7381_s22  ;;  %v7006_v11 = vpack.i.bf16 %v3486_v23, %v3485_v27 }
 0x44a   : > { %6887 = vrot.lane.b32.xlu1 %v6881_v32, %s7382_s23  ;;  %v6936_v32 = vpack.i.bf16 %v3479_v0, %v2863_v47  ;;  %v3466_v0 = vld [vmem:[#allocation2 + $0xfc] sm:$0xff] }
 0x44b   : > { %6922 = vrot.lane.b32.xlu0 %v6921_v12, %s7383_s1  ;;  %v6976_v22 = vpack.i.bf16 %v3467_v63, %v3466_v0  ;;  %v8163_v12 = vpop.permute.xlu1 %6782 }
 0x44e   : > { %6897 = vrot.lane.b32.xlu1 %v6896_v13, %s7381_s22 }
 0x44f   : > { %6927 = vrot.lane.b32.xlu0 %v6926_v26, %s7382_s23  ;;  %v8167_v36 = vpop.permute.xlu1 %6792 }
 0x452   : > { %6917 = vrot.lane.b32.xlu1 %v6916_v44, %s7383_s1  ;;  %v8173_v44 = vpop.permute.xlu0 %6802 }
 0x453   : > { %6932 = vrot.lane.b32.xlu0 %v6931_v46, %s7381_s22  ;;  %v8171_v26 = vpop.permute.xlu1 %6797 }
 0x456   : > { %6937 = vrot.lane.b32.xlu1 %v6936_v32, %s7383_s1 }
 0x457   : > { %6947 = vrot.lane.b32.xlu0 %v6946_v50, %s7381_s22 }
 0x45a   : > { %6942 = vrot.lane.b32.xlu1 %v6941_v53, %s7382_s23 }
 0x45b   : > { %6952 = vrot.lane.b32.xlu0 %v6951_v15, %s7383_s1 }
 0x45e   : > { %6957 = vrot.lane.b32.xlu1 %v6936_v32, %s7382_s23 }
 0x45f   : > { %6967 = vrot.lane.b32.xlu0 %v6966_v61, %s7381_s22 }
 0x462   : > { %6962 = vrot.lane.b32.xlu1 %v6961_v62, %s7381_s22 }
 0x463   : > { %6972 = vrot.lane.b32.xlu0 %v6971_v35, %s7383_s1 }
 0x466   : > { %6987 = vrot.lane.b32.xlu1 %v6986_v1, %s7382_s23 }
 0x467   : > { %6977 = vrot.lane.b32.xlu0 %v6976_v22, %s7382_s23 }
 0x46a   : > { %6997 = vrot.lane.b32.xlu1 %v6996_v3, %s7383_s1 }
 0x46b   : > { %6982 = vrot.lane.b32.xlu0 %v6981_v59, %s7382_s23 }
 0x46e   : > { %7002 = vrot.lane.b32.xlu1 %v8108_v16, %s7381_s22  ;;  %v2742_v16 = vld [vmem:[%s9259_s7] sm:$0x1]  ;;  %s9265_s7 = sld [smem:[#allocation13_spill]] }
 0x46f   : > { %6992 = vrot.lane.b32.xlu0 %v6991_v24, %s7381_s22  ;;  %v2750_v38 = vsel %vm2748_vm6, %v2742_v16, 0 }
 0x470   : > { %6594 = vmatpush3.bf16.msra.mxu1 %v2750_v38 }
 0x472   : > { %7012 = vrot.lane.b32.xlu1 %v6896_v13, %s7383_s1  ;;  %v8177_v13 = vld [vmem:[%s9256_s26 + $0x80] sm:$0xff]  }
 0x473   : > { %7007 = vrot.lane.b32.xlu0 %v7006_v11, %s7383_s1  ;;  %6599 = vmatprep.subr.bf16.mxu1 %v8177_v13 }
 0x494   : > { %v6813_v45 = vpop.permute.xlu1 %6812 }
 0x495   : > { %v6808_v46 = vpop.permute.xlu0 %6807  ;;  %v6815_v62 = vunpack.i.h.bf16 %v6813_v45  ;;  %v6814_v35 = vunpack.i.l.bf16 %v6813_v45 }
 0x496   : > { %v6810_v53 = vunpack.i.h.bf16 %v6808_v46  ;;  %v6809_v15 = vunpack.i.l.bf16 %v6808_v46 }
 0x498   : > { %v8180_v47 = vpop.permute.xlu1 %6822  ;;  %v3067_v63 = vsel %vm1491_vm0, %v2810_v56, %v6809_v15  ;;  %v3068_v0 = vsel %vm1491_vm0, %v8089_v20, %v6810_v53 }
 0x499   : > { %v6818_v50 = vpop.permute.xlu0 %6817  ;;  %v3076_v45 = vsel %vm3075_vm5, %v3067_v63, %v6814_v35  ;;  %v3077_v15 = vsel %vm3075_vm5, %v3068_v0, %v6815_v62 }
 0x49a   : > { %v6820_v22 = vunpack.i.h.bf16 %v6818_v50  ;;  %v6819_v49 = vunpack.i.l.bf16 %v6818_v50 }
 0x49c   : > { %v8182_v51 = vpop.permute.xlu1 %6827 }
 0x49d   : > { %v6838_v32 = vpop.permute.xlu0 %6837 }
 0x49e   : > { %v6840_v58 = vunpack.i.h.bf16 %v6838_v32  ;;  %v6839_v61 = vunpack.i.l.bf16 %v6838_v32 }
 0x4a0   : > { %v8184_v54 = vpop.permute.xlu1 %6832  ;;  %v3094_v52 = vsel %vm1491_vm0, %v7943_v10, %v6840_v58  ;;  %v3093_v59 = vsel %vm1491_vm0, %v7935_v7, %v6839_v61  ;;  %v3096_v58 = vsel %vm1491_vm0, %v7939_v8, %v6820_v22  ;;  %v3095_v61 = vsel %vm1491_vm0, %v7933_v6, %v6819_v49 }
 0x4a1   : > { %v6848_v57 = vpop.permute.xlu0 %6847 }
 0x4a2   : > { %v6850_v24 = vunpack.i.h.bf16 %v6848_v57  ;;  %v6849_v27 = vunpack.i.l.bf16 %v6848_v57 }
 0x4a4   : > { %v6843_v1 = vpop.permute.xlu1 %6842 }
 0x4a5   : > { %v6845_v2 = vunpack.i.h.bf16 %v6843_v1  ;;  %v6844_v3 = vunpack.i.l.bf16 %v6843_v1  ;;  %v6878_v4 = vpop.permute.xlu0 %6877 }
 0x4a6   : > { %v6880_v16 = vunpack.i.h.bf16 %v6878_v4  ;;  %v6879_v20 = vunpack.i.l.bf16 %v6878_v4 }
 0x4a7   : > { %v3101_v23 = vsel %vm3075_vm5, %v3093_v59, %v6844_v3  ;;  %v3102_v11 = vsel %vm3075_vm5, %v3094_v52, %v6845_v2  ;;  %v7107_v59 = vld [vmem:[%s9258_s2 + $0x88] sm:$0xff]  }
 0x4a8   : > { %v6853_v38 = vpop.permute.xlu1 %6852  ;;  %v3109_v46 = vsel %vm3084_vm7, %v3101_v23, %v6849_v27  ;;  %v3110_v50 = vsel %vm3084_vm7, %v3102_v11, %v6850_v24  ;;  %v3104_v35 = vsel %vm3075_vm5, %v3096_v58, %v6880_v16  ;;  %v3103_v63 = vsel %vm3075_vm5, %v3095_v61, %v6879_v20  ;;  %v8214_v16 = vld [vmem:[%s9260_s10] sm:$0xff]  }
 0x4a9   : > { %v6855_v32 = vunpack.i.h.bf16 %v6853_v38  ;;  %v6854_v53 = vunpack.i.l.bf16 %v6853_v38  ;;  %v6883_v56 = vpop.permute.xlu0 %6882  ;;  %v3154_v57 = vpack.c.bf16 %v3110_v50, %v3109_v46  ;;  %v6825_v46 = vunpack.i.h.bf16 %v8180_v47 }
 0x4aa   : > { %v6885_v1 = vunpack.i.h.bf16 %v6883_v56  ;;  %v6884_v2 = vunpack.i.l.bf16 %v6883_v56  ;;  %v6824_v50 = vunpack.i.l.bf16 %v8180_v47 }
 0x4ab   : > { %v3085_v3 = vsel %vm3084_vm7, %v3076_v45, %v6854_v53  ;;  %v3086_v4 = vsel %vm3084_vm7, %v3077_v15, %v6855_v32  ;;  %3324 = vmatprep.mubr.bf16.mxu0 %v3154_v57 }
 0x4ac   : > { %v3153_v62 = vpack.c.bf16 %v3086_v4, %v3085_v3  ;;  %v6858_v0 = vpop.permute.xlu1 %6857  ;;  %v3111_v52 = vsel %vm3084_vm7, %v3103_v63, %v6884_v2  ;;  %v3112_v22 = vsel %vm3084_vm7, %v3104_v35, %v6885_v1 }
 0x4ad   : > { %v8210_v49 = vpop.permute.xlu0 %6892  ;;  %v3157_v24 = vpack.c.bf16 %v3112_v22, %v3111_v52  ;;  %v6860_v27 = vunpack.i.h.bf16 %v6858_v0  ;;  %v6859_v23 = vunpack.i.l.bf16 %v6858_v0 }
 0x4ae   : > { %3325 = vmatmul.mubr.bf16.vlgmr.msra.gmra.mrb[44].mxu0 %v3153_v62 }
 0x4af   : > { %3332 = vmatprep.mubr.bf16.mxu0 %v3157_v24  ;;  %6612 = vmatpush3.bf16.msra.mxu0 %v8143_v60  ;;  %v3070_v32 = vsel %vm1491_vm0, %v8024_v40, %v6860_v27  ;;  %v3069_v53 = vsel %vm1491_vm0, %v8066_v9, %v6859_v23 }
 0x4b0   : > { %v6863_v11 = vpop.permute.xlu1 %6862  ;;  %6613 = vmatprep.subr.bf16.mxu0 %v7107_v59 }
 0x4b1   : > { %v6865_v20 = vunpack.i.h.bf16 %v6863_v11  ;;  %v6864_v38 = vunpack.i.l.bf16 %v6863_v11  ;;  %v6903_v45 = vpop.permute.xlu0 %6902 }
 0x4b2   : > { %v6905_v52 = vunpack.i.h.bf16 %v6903_v45  ;;  %v6904_v22 = vunpack.i.l.bf16 %v6903_v45 }
 0x4b3   : > { %v3078_v15 = vsel %vm3075_vm5, %v3069_v53, %v6864_v38  ;;  %v3079_v60 = vsel %vm3075_vm5, %v3070_v32, %v6865_v20  ;;  %6614 = vmatpush3.bf16.msra.mxu0 %v7107_v59 }
 0x4b4   : > { %v6868_v56 = vpop.permute.xlu1 %6867  ;;  %v3087_v57 = vsel %vm3084_vm7, %v3078_v15, %v6824_v50  ;;  %v3088_v58 = vsel %vm3084_vm7, %v3079_v60, %v6825_v46  ;;  %6623 = vmatprep.subr.bf16.mxu0 %v8214_v16 }
 0x4b5   : > { %v6908_v61 = vpop.permute.xlu0 %6907  ;;  %v3156_v47 = vpack.c.bf16 %v3088_v58, %v3087_v57  ;;  %v6870_v35 = vunpack.i.h.bf16 %v6868_v56  ;;  %v6869_v63 = vunpack.i.l.bf16 %v6868_v56 }
 0x4b6   : > { %v6910_v60 = vunpack.i.h.bf16 %v6908_v61  ;;  %v6909_v56 = vunpack.i.l.bf16 %v6908_v61 }
 0x4b7   : > { %3333 = vmatmul.mubr.bf16.gmra.mrb[48].mxu0 %v3156_v47  ;;  %v3712_v59 = vsel %vm1491_vm0, %v7943_v10, %v6870_v35  ;;  %v3711_v24 = vsel %vm1491_vm0, %v7935_v7, %v6869_v63 }
 0x4b8   : > { %v8227_v1 = vpop.permute.xlu1 %6872 }
 0x4b9   : > { %v6913_v40 = vpop.permute.xlu0 %6912 }
 0x4bc   : > { %v6888_v2 = vpop.permute.xlu1 %6887 }
 0x4bd   : > { %v8229_v9 = vpop.permute.xlu0 %6922  ;;  %v6890_v57 = vunpack.i.h.bf16 %v6888_v2  ;;  %v6889_v58 = vunpack.i.l.bf16 %v6888_v2 }
 0x4c0   : > { %v6898_v3 = vpop.permute.xlu1 %6897 }
 0x4c1   : > { %v6928_v4 = vpop.permute.xlu0 %6927  ;;  %v6900_v62 = vunpack.i.h.bf16 %v6898_v3  ;;  %v6899_v0 = vunpack.i.l.bf16 %v6898_v3 }
 0x4c2   : > { %v6930_v46 = vunpack.i.h.bf16 %v6928_v4  ;;  %v6929_v50 = vunpack.i.l.bf16 %v6928_v4 }
 0x4c3   : > { %v3720_v27 = vsel %vm3075_vm5, %v3712_v59, %v6900_v62  ;;  %v3719_v23 = vsel %vm3075_vm5, %v3711_v24, %v6899_v0  ;;  %v6915_v0 = vunpack.i.h.bf16 %v6913_v40 }
 0x4c4   : > { %v6918_v11 = vpop.permute.xlu1 %6917  ;;  %v8238_v20 = vsel %vm3084_vm7, %v3719_v23, %v6904_v22  ;;  %v8241_v38 = vsel %vm3084_vm7, %v3720_v27, %v6905_v52  ;;  %v3098_v35 = vsel %vm1491_vm0, %v8014_v48, %v6930_v46  ;;  %v3097_v63 = vsel %vm1491_vm0, %v8000_v43, %v6929_v50 }
 0x4c5   : > { %v6933_v45 = vpop.permute.xlu0 %6932  ;;  %v3772_v32 = vpack.c.bf16 %v8241_v38, %v8238_v20  ;;  %v6914_v52 = vunpack.i.l.bf16 %v6913_v40  ;;  %v6920_v61 = vunpack.i.h.bf16 %v6918_v11  ;;  %v6919_v24 = vunpack.i.l.bf16 %v6918_v11  ;;  %v3430_v20 = vld [vmem:[#allocation2] sm:$0xff] }
 0x4c6   : > { %v6935_v53 = vunpack.i.h.bf16 %v6933_v45  ;;  %v6934_v15 = vunpack.i.l.bf16 %v6933_v45  ;;  %v3071_v23 = vsel %vm1491_vm0, %v8010_v39, %v6889_v58  ;;  %v3072_v46 = vsel %vm1491_vm0, %v8076_v34, %v6890_v57 }
 0x4c7   : > { %v6895_v40 = vunpack.i.h.bf16 %v8210_v49  ;;  %v3100_v11 = vsel %vm1491_vm0, %v8008_v28, %v6910_v60  ;;  %v6830_v38 = vunpack.i.h.bf16 %v8182_v51 }
 0x4c8   : > { %v6938_v47 = vpop.permute.xlu1 %6937  ;;  %v3105_v22 = vsel %vm3075_vm5, %v3097_v63, %v6934_v15  ;;  %v3106_v59 = vsel %vm3075_vm5, %v3098_v35, %v6935_v53  ;;  %v6894_v15 = vunpack.i.l.bf16 %v8210_v49  ;;  %v3099_v53 = vsel %vm1491_vm0, %v7973_v19, %v6909_v56 }
 0x4c9   : > { %v8249_v3 = vpop.permute.xlu0 %6947  ;;  %v6940_v4 = vunpack.i.h.bf16 %v6938_v47  ;;  %v6939_v62 = vunpack.i.l.bf16 %v6938_v47  ;;  %v3107_v35 = vsel %vm3075_vm5, %v3099_v53, %v6914_v52  ;;  %v3108_v39 = vsel %vm3075_vm5, %v3100_v11, %v6915_v0 }
 0x4ca   : > { %v3080_v57 = vsel %vm3075_vm5, %v3071_v23, %v6894_v15  ;;  %v3081_v63 = vsel %vm3075_vm5, %v3072_v46, %v6895_v40  ;;  %v3115_v49 = vsel %vm3084_vm7, %v3107_v35, %v6919_v24  ;;  %v6924_v46 = vunpack.i.l.bf16 %v8229_v9  ;;  %v3491_v35 = vld [vmem:[#allocation2 + $0x18c] sm:$0xff] }
 0x4cb   : > { %v3113_v2 = vsel %vm3084_vm7, %v3105_v22, %v6939_v62  ;;  %v3114_v27 = vsel %vm3084_vm7, %v3106_v59, %v6940_v4  ;;  %v3116_v4 = vsel %vm3084_vm7, %v3108_v39, %v6920_v61  ;;  %v6925_v61 = vunpack.i.h.bf16 %v8229_v9  ;;  %v3492_v9 = vld [vmem:[#allocation2 + $0x1a4] sm:$0xff] }
 0x4cc   : > { %v8259_v50 = vpop.permute.xlu1 %6942  ;;  %v3160_v45 = vpack.c.bf16 %v3114_v27, %v3113_v2 }
 0x4cd   : > { %v6953_v47 = vpop.permute.xlu0 %6952 }
 0x4ce   : > { %v6955_v58 = vunpack.i.h.bf16 %v6953_v47  ;;  %v6954_v34 = vunpack.i.l.bf16 %v6953_v47  ;;  %3340 = vmatprep.mubr.bf16.mxu0 %v3160_v45  ;;  %v3163_v45 = vpack.c.bf16 %v3116_v4, %v3115_v49 }
 0x4d0   : > { %v6958_v60 = vpop.permute.xlu1 %6957  ;;  %v3089_v62 = vsel %vm3084_vm7, %v3080_v57, %v6954_v34  ;;  %v3090_v56 = vsel %vm3084_vm7, %v3081_v63, %v6955_v58  ;;  %v3779_v58 = vpack.c.bf16 %v3492_v9, %v3491_v35  ;;  %v7109_v34 = vld [vmem:[%s9260_s10 + $0x8] sm:$0xff]   ;;  %v3493_v57 = vld [vmem:[#allocation2 + $0x1bc] sm:$0xff]  ;;  %v3494_v63 = vld [vmem:[#allocation2 + $0x1d4] sm:$0xff] }
 0x4d1   : > { %v6968_v22 = vpop.permute.xlu0 %6967  ;;  %v6960_v52 = vunpack.i.h.bf16 %v6958_v60  ;;  %v6959_v59 = vunpack.i.l.bf16 %v6958_v60  ;;  %v3159_v0 = vpack.c.bf16 %v3090_v56, %v3089_v62  ;;  %v3782_v49 = vpack.c.bf16 %v3494_v63, %v3493_v57  ;;  %v7116_v9 = vld [vmem:[%s9258_s2 + $0x50] sm:$0xff]   ;;  %v7118_v63 = vld [vmem:[%s9258_s2 + $0x58] sm:$0xff]  }
 0x4d2   : > { %v6970_v2 = vunpack.i.h.bf16 %v6968_v22  ;;  %v6969_v27 = vunpack.i.l.bf16 %v6968_v22 }
 0x4d3   : > { %v3074_v23 = vsel %vm1491_vm0, %v8121_v18, %v6960_v52  ;;  %v3073_v24 = vsel %vm1491_vm0, %v8127_v37, %v6959_v59  ;;  %3341 = vmatmul.mubr.bf16.gmra.mrb[52].mxu0 %v3159_v0  ;;  %v3489_v18 = vld [vmem:[#allocation2 + $0x15c] sm:$0xff]  ;;  %v3490_v37 = vld [vmem:[#allocation2 + $0x174] sm:$0xff] }
 0x4d4   : > { %3348 = vmatprep.mubr.bf16.mxu0 %v3163_v45  ;;  %v3082_v40 = vsel %vm3075_vm5, %v3073_v24, %v6969_v27  ;;  %v3083_v15 = vsel %vm3075_vm5, %v3074_v23, %v6970_v2  ;;  %v3776_v39 = vpack.c.bf16 %v3490_v37, %v3489_v18  ;;  %v2867_v0 = vld [vmem:[#allocation2 + $0xaf] sm:$0xff]  ;;  %v2868_v23 = vld [vmem:[#allocation2 + $0xc7] sm:$0xff] }
 0x4d5   : > { %v3091_v11 = vsel %vm3084_vm7, %v3082_v40, %v6924_v46  ;;  %v3092_v53 = vsel %vm3084_vm7, %v3083_v15, %v6925_v61  ;;  %v7111_v24 = vld [vmem:[%s9256_s26 + $0x88] sm:$0xff]   ;;  %v3155_v61 = vpack.c.bf16 %v2868_v23, %v2867_v0  ;;  %v7112_v46 = vld [vmem:[%s9258_s2 + $0x40] sm:$0xff]   ;;  %v2870_v40 = vld [vmem:[#allocation2 + $0xf7] sm:$0xff] }
 0x4d6   : > { %v3162_v47 = vpack.c.bf16 %v3092_v53, %v3091_v11  ;;  %v2871_v15 = vld [vmem:[#allocation2 + $0x10f] sm:$0xff]  ;;  %v2869_v11 = vld [vmem:[#allocation2 + $0xdf] sm:$0xff]  ;;  %v2872_v18 = vld [vmem:[#allocation2 + $0x127] sm:$0xff] }
 0x4d7   : > { %v7113_v53 = vld [vmem:[%s9258_s2] sm:$0xff]   ;;  %v7114_v37 = vld [vmem:[%s9258_s2 + $0x48] sm:$0xff]   ;;  %v3161_v35 = vpack.c.bf16 %v2872_v18, %v2871_v15  ;;  %v3431_v23 = vld [vmem:[#allocation2 + $0x18] sm:$0xff]  ;;  %v8348_v15 = vpop.permute.xlu1 %6962  ;;  %v3714_v18 = vsel %vm1491_vm0, %v7939_v8, %v6830_v38  ;;  %v6799_v38 = vunpack.i.l.bf16 %v8171_v26 }
 0x4d8   : > { %v7122_v0 = vld [vmem:[%s9258_s2 + $0x68] sm:$0xff]  }
 0x4db   : > { %3349 = vmatmul.mubr.bf16.gmra.mrb[56].mxu0 %v3162_v47  ;;  %v3158_v47 = vpack.c.bf16 %v2870_v40, %v2869_v11  ;;  %v6784_v40 = vunpack.i.l.bf16 %v8163_v12 }
 0x4dc   : > { %6615 = vmatprep.mubr.msk.bf16.mxu0 %vm1491_vm0, %v3773_v41 }
 0x4e3   : > { %6616 = vmatmul.mubr.msk.bf16.vlgmr.msra.gmra.mrb[60].mxu0 %vm1491_vm0, %v3776_v39  ;;  %v2873_v39 = vld [vmem:[#allocation2 + $0x13f] sm:$0xff] }
 0x4e4   : > { %6619 = vmatprep.mubr.msk.bf16.mxu0 %vm1491_vm0, %v3779_v58  ;;  %6624 = vmatpush3.bf16.msra.mxu0 %v8214_v16  ;;  %v2874_v58 = vld [vmem:[#allocation2 + $0x157] sm:$0xff] }
 0x4e5   : > { %6625 = vmatprep.subr.bf16.mxu0 %v7109_v34  ;;  %v3164_v57 = vpack.c.bf16 %v2874_v58, %v2873_v39  ;;  %v6804_v39 = vunpack.i.l.bf16 %v8173_v44 }
 0x4e8   : > { %6626 = vmatpush3.bf16.msra.mxu0 %v7109_v34  ;;  %v7117_v34 = vld [vmem:[%s9258_s2 + $0x10] sm:$0xff]  }
 0x4eb   : > { %6620 = vmatmul.mubr.msk.bf16.gmra.mrb[64].mxu0 %vm1491_vm0, %v3782_v49  ;;  %v7119_v49 = vld [vmem:[%s9258_s2 + $0x18] sm:$0xff]  }
 0x4ec   : > { %6627 = vmatprep.mubr.msk.bf16.mxu0 %vm1491_vm0, %v7955_v25 }
 0x4f0   : > { %v8296_v14 = vpop.f32.mrb[36].mxu0 }
 0x4f1   : > { %v8298_v31 = vpop.f32.mrb[37].mxu0 }
 0x4f2   : > { %v8300_v41 = vpop.f32.mrb[38].mxu0 }
 0x4f3   : > { %6628 = vmatmul.mubr.msk.bf16.vlgmr.msra.gmra.mrb[68].mxu0 %vm1491_vm0, %v7960_v30  ;;  %v8304_v4 = vpop.f32.mrb[39].mxu0 }
 0x4f4   : > { %6631 = vmatprep.mubr.msk.bf16.mxu0 %vm1491_vm0, %v8030_v29 }
 0x4fa   : > { %v8308_v16 = vpop.f32.mrb[40].mxu0 }
 0x4fb   : > { %v8310_v60 = vpop.f32.mrb[41].mxu0  ;;  %6632 = vmatmul.mubr.msk.bf16.gmra.mrb[72].mxu0 %vm1491_vm0, %v8041_v55 }
 0x4fc   : > { %v8314_v62 = vpop.f32.mrb[42].mxu0 }
 0x4fd   : > { %v8316_v56 = vpop.f32.mrb[43].mxu0 }
 0x50e   : > { %v2735_v22 = vpop.f32.mrb[44].mxu1 }
 0x50f   : > { %v2741_v52 = vmax.f32 %v2735_v22, 0.0  ;;  %v6591_v59 = vpop.f32.mrb[45].mxu1  ;;  %v7120_v22 = vld [vmem:[%s9258_s2 + $0x60] sm:$0xff]  }
 0x510   : > { %v2738_v2 = vpop.f32.mrb[46].mxu1  ;;  %v7121_v59 = vld [vmem:[%s9258_s2 + $0x20] sm:$0xff]  }
 0x511   : > { %v2743_v27 = vpack.c.bf16 %v2741_v52, %v2741_v52  ;;  %v6592_v45 = vpop.f32.mrb[47].mxu1  ;;  %v8336_v52 = vpop.permute.xlu0 %6972  ;;  %v6780_v2 = vunpack.i.h.bf16 %v8165_v33 }
 0x512   : > { %v7123_v45 = vld [vmem:[%s9258_s2 + $0x28] sm:$0xff]  }
 0x513   : > { %6596 = vmatmul.mubr.msk.bf16.vlgmr.msra.gmra.mrb[48].mxu1 %vm2744_vm8, %v2743_v27  ;;  %v6779_v27 = vunpack.i.l.bf16 %v8165_v33  ;;  %v3688_v33 = vsel %vm1491_vm0, %v3431_v23, %v6780_v2 }
 0x514   : > { %6600 = vmatpush3.bf16.msra.mxu1 %v8177_v13  ;;  %6603 = vmatprep.mubr.msk.bf16.mxu1 %vm1491_vm0, %v3155_v61  ;;  %v7115_v13 = vld [vmem:[%s9258_s2 + $0x8] sm:$0xff]  }
 0x515   : > { %6601 = vmatprep.subr.bf16.mxu1 %v7111_v24  ;;  %v6978_v61 = vpop.permute.xlu0 %6977  ;;  %v3687_v11 = vsel %vm1491_vm0, %v3430_v20, %v6779_v27  ;;  %v8373_v27 = vpop.permute.xlu1 %6987  ;;  %v6800_v20 = vunpack.i.h.bf16 %v8171_v26 }
 0x516   : > { %v6979_v2 = vunpack.i.l.bf16 %v6978_v61 }
 0x518   : > { %6602 = vmatpush3.bf16.msra.mxu1 %v7111_v24  ;;  %v7124_v24 = vld [vmem:[%s9258_s2 + $0x70] sm:$0xff]   ;;  %v3715_v26 = vsel %vm1491_vm0, %v8000_v43, %v6979_v2 }
 0x519   : > { %6375 = vmatprep.subr.bf16.mxu1 %v7112_v46  ;;  %v6785_v46 = vunpack.i.h.bf16 %v8163_v12  ;;  %v7126_v12 = vld [vmem:[%s9258_s2 + $0x78] sm:$0xff]  }
 0x51b   : > { %6604 = vmatmul.mubr.msk.bf16.vlgmr.msra.gmra.mrb[52].mxu1 %vm1491_vm0, %v3158_v47  ;;  %v6794_v47 = vunpack.i.l.bf16 %v8167_v36  ;;  %v3696_v58 = vsel %vm3075_vm5, %v3688_v33, %v6785_v46  ;;  %v6949_v33 = vunpack.i.l.bf16 %v8249_v3 }
 0x51c   : > { %6376 = vmatpush3.bf16.msra.mxu1 %v7113_v53  ;;  %6607 = vmatprep.mubr.msk.bf16.mxu1 %vm1491_vm0, %v3161_v35  ;;  %v6795_v53 = vunpack.i.h.bf16 %v8167_v36  ;;  %v6875_v35 = vunpack.i.h.bf16 %v8227_v1  ;;  %v3695_v36 = vsel %vm3075_vm5, %v3687_v11, %v6784_v40  ;;  %v6950_v40 = vunpack.i.h.bf16 %v8249_v3 }
 0x51d   : > { %6377 = vmatprep.subr.bf16.mxu1 %v7114_v37  ;;  %v6974_v3 = vunpack.i.l.bf16 %v8336_v52 }
 0x51e   : > { %v3704_v23 = vsel %vm3084_vm7, %v3696_v58, %v6875_v35  ;;  %v6975_v35 = vunpack.i.h.bf16 %v8336_v52  ;;  %v6944_v58 = vunpack.i.l.bf16 %v8259_v50 }
 0x520   : > { %6378 = vmatpush3.bf16.msra.mxu1 %v7115_v13  ;;  %v6874_v13 = vunpack.i.l.bf16 %v8227_v1  ;;  %v3722_v1 = vsel %vm3075_vm5, %v3714_v18, %v6795_v53  ;;  %v6834_v18 = vunpack.i.l.bf16 %v8184_v54 }
 0x521   : > { %6379 = vmatprep.subr.bf16.mxu1 %v7116_v9  ;;  %v6805_v9 = vunpack.i.h.bf16 %v8173_v44  ;;  %v6980_v44 = vunpack.i.h.bf16 %v6978_v61 }
 0x523   : > { %6608 = vmatmul.mubr.msk.bf16.gmra.mrb[56].mxu1 %vm1491_vm0, %v3164_v57  ;;  %v6789_v57 = vunpack.i.l.bf16 %v8169_v42  ;;  %v3716_v53 = vsel %vm1491_vm0, %v8014_v48, %v6980_v44 }
 0x524   : > { %6380 = vmatpush3.bf16.msra.mxu1 %v7117_v34  ;;  %3943 = vmatprep.mubr.bf16.mxu1 %v3772_v32  ;;  %v6829_v32 = vunpack.i.l.bf16 %v8182_v51  ;;  %v7125_v51 = vld [vmem:[%s9258_s2 + $0x30] sm:$0xff]   ;;  %v6790_v34 = vunpack.i.h.bf16 %v8169_v42  ;;  %v3703_v42 = vsel %vm3084_vm7, %v3695_v36, %v6874_v13  ;;  %v6998_v13 = vpop.permute.xlu1 %6997  ;;  %v6945_v36 = vunpack.i.h.bf16 %v8259_v50 }
 0x525   : > { %6381 = vmatprep.subr.bf16.mxu1 %v7118_v63  ;;  %v8368_v63 = vpop.permute.xlu0 %6982  ;;  %v3771_v11 = vpack.c.bf16 %v3704_v23, %v3703_v42 }
 0x526   : > { %v3713_v37 = vsel %vm1491_vm0, %v7933_v6, %v6829_v32  ;;  %v6985_v23 = vunpack.i.h.bf16 %v8368_v63  ;;  %v6984_v42 = vunpack.i.l.bf16 %v8368_v63 }
 0x528   : > { %6382 = vmatpush3.bf16.msra.mxu1 %v7119_v49  ;;  %v7127_v49 = vld [vmem:[%s9258_s2 + $0x38] sm:$0xff]   ;;  %v3717_v63 = vsel %vm1491_vm0, %v7973_v19, %v6984_v42  ;;  %s9276_s2 = sld [smem:[#allocation4_spill]] }
 0x529   : > { %6383 = vmatprep.subr.bf16.mxu1 %v7120_v22  ;;  %v3721_v22 = vsel %vm3075_vm5, %v3713_v37, %v6794_v47  ;;  %v7129_v47 = vld [vmem:[%s9261_s11 + $0x8] sm:$0xff]   ;;  %v6993_v37 = vpop.permute.xlu0 %6992 }
 0x52a   : > { %v3729_v32 = vsel %vm3084_vm7, %v3721_v22, %v6804_v39 }
 0x52c   : > { %6384 = vmatpush3.bf16.msra.mxu1 %v7121_v59  ;;  %v3432_v59 = vld [vmem:[#allocation2 + $0x30] sm:$0xff] }
 0x52d   : > { %6385 = vmatprep.subr.bf16.mxu1 %v7122_v0  ;;  %v3433_v0 = vld [vmem:[#allocation2 + $0x48] sm:$0xff]  ;;  %v3689_v61 = vsel %vm1491_vm0, %v3432_v59, %v6789_v57  ;;  %v3434_v57 = vld [vmem:[#allocation2 + $0x60] sm:$0xff]  ;;  %v6964_v59 = vunpack.i.l.bf16 %v8348_v15 }
 0x52e   : > { %v3690_v46 = vsel %vm1491_vm0, %v3433_v0, %v6790_v34  ;;  %v3724_v34 = vsel %vm3075_vm5, %v3716_v53, %v6950_v40  ;;  %v3691_v2 = vsel %vm1491_vm0, %v3434_v57, %v6944_v58  ;;  %s8759_s3 = scalar_lea.vmem %s9276_s2, %s7635_s0  ;;  %s9277_s2 = sld [smem:[#allocation29_spill]] }
 0x52f   : > { %v3698_v39 = vsel %vm3075_vm5, %v3690_v46, %v6800_v20  ;;  %v3732_v50 = vsel %vm3084_vm7, %v3724_v34, %v6975_v35  ;;  %v7000_v20 = vunpack.i.h.bf16 %v6998_v13  ;;  %v6995_v46 = vunpack.i.h.bf16 %v6993_v37 }
 0x530   : > { %6386 = vmatpush3.bf16.msra.mxu1 %v7123_v45  ;;  %v7128_v45 = vld [vmem:[%s9261_s11] sm:$0xff]   ;;  %v3699_v40 = vsel %vm3075_vm5, %v3691_v2, %v6964_v59 }
 0x531   : > { %6387 = vmatprep.subr.bf16.mxu1 %v7124_v24  ;;  %v3730_v24 = vsel %vm3084_vm7, %v3722_v1, %v6805_v9  ;;  %v3697_v9 = vsel %vm3075_vm5, %v3689_v61, %v6799_v38  ;;  %v6965_v1 = vunpack.i.h.bf16 %v8348_v15  ;;  %v7003_v38 = vpop.permute.xlu1 %7002  ;;  %v6994_v15 = vunpack.i.l.bf16 %v6993_v37 }
 0x532   : > { %v3705_v52 = vsel %vm3084_vm7, %v3697_v9, %v6834_v18  ;;  %v6989_v9 = vunpack.i.l.bf16 %v8373_v27 }
 0x534   : > { %6388 = vmatpush3.bf16.msra.mxu1 %v7125_v51  ;;  %v6835_v51 = vunpack.i.h.bf16 %v8184_v54  ;;  %v3723_v54 = vsel %vm3075_vm5, %v3715_v26, %v6949_v33  ;;  %v3718_v26 = vsel %vm1491_vm0, %v8008_v28, %v6985_v23 }
 0x535   : > { %6389 = vmatprep.subr.bf16.mxu1 %v7126_v12  ;;  %v3775_v12 = vpack.c.bf16 %v3730_v24, %v3729_v32  ;;  %v3731_v0 = vsel %vm3084_vm7, %v3723_v54, %v6974_v3  ;;  %v6999_v24 = vunpack.i.l.bf16 %v6998_v13  ;;  %v6990_v13 = vunpack.i.h.bf16 %v8373_v27 }
 0x536   : > { %v3706_v22 = vsel %vm3084_vm7, %v3698_v39, %v6835_v51  ;;  %v3778_v61 = vpack.c.bf16 %v3732_v50, %v3731_v0  ;;  %v3726_v51 = vsel %vm3075_vm5, %v3718_v26, %v6995_v46  ;;  %v7005_v39 = vunpack.i.h.bf16 %v7003_v38 }
 0x537   : > { %v3774_v32 = vpack.c.bf16 %v3706_v22, %v3705_v52  ;;  %v3707_v18 = vsel %vm3084_vm7, %v3699_v40, %v6999_v24  ;;  %v3693_v52 = vsel %vm1491_vm0, %v8115_v17, %v6989_v9 }
 0x538   : > { %6390 = vmatpush3.bf16.msra.mxu1 %v7127_v49  ;;  %v3435_v49 = vld [vmem:[#allocation2 + $0x78] sm:$0xff] }
 0x539   : > { %6635 = vmatprep.subr.bf16.mxu1 %v7128_v45  ;;  %v3692_v44 = vsel %vm1491_vm0, %v3435_v49, %v6945_v36  ;;  %v7004_v36 = vunpack.i.l.bf16 %v7003_v38  ;;  %v3694_v49 = vsel %vm1491_vm0, %v8110_v5, %v6990_v13  ;;  %v6180_v13 = vld [vmem:[%s9262_s16 + $0x2] ss:$0 sm:$0xff] }
 0x53a   : > { %v3700_v33 = vsel %vm3075_vm5, %v3692_v44, %v6965_v1  ;;  %v3702_v1 = vsel %vm3075_vm5, %v3694_v49, %v7005_v39 }
 0x53b   : > { %3944 = vmatmul.mubr.bf16.vlgmr.msra.gmra.mrb[60].mxu1 %v3771_v11  ;;  %v3708_v37 = vsel %vm3084_vm7, %v3700_v33, %v7000_v20  ;;  %v3701_v22 = vsel %vm3075_vm5, %v3693_v52, %v7004_v36 }
 0x53c   : > { %3951 = vmatprep.mubr.bf16.mxu1 %v3775_v12  ;;  %6636 = vmatpush3.bf16.msra.mxu1 %v7128_v45  ;;  %v7008_v45 = vpop.permute.xlu0 %7007  ;;  %v7013_v12 = vpop.permute.xlu1 %7012  ;;  %v3777_v58 = vpack.c.bf16 %v3708_v37, %v3707_v18 }
 0x53d   : > { %6637 = vmatprep.subr.bf16.mxu1 %v7129_v47  ;;  %v7010_v11 = vunpack.i.h.bf16 %v7008_v45  ;;  %v7009_v53 = vunpack.i.l.bf16 %v7008_v45  ;;  %v7015_v54 = vunpack.i.h.bf16 %v7013_v12  ;;  %v7014_v34 = vunpack.i.l.bf16 %v7013_v12 }
 0x53f   : > { %v3734_v3 = vsel %vm3084_vm7, %v3726_v51, %v7010_v11  ;;  %v3709_v27 = vsel %vm3084_vm7, %v3701_v22, %v7014_v34  ;;  %v3710_v59 = vsel %vm3084_vm7, %v3702_v1, %v7015_v54 }
 0x540   : > { %6638 = vmatpush3.bf16.msra.mxu1 %v7129_v47  ;;  %v3725_v47 = vsel %vm3075_vm5, %v3717_v63, %v6994_v15  ;;  %v3780_v0 = vpack.c.bf16 %v3710_v59, %v3709_v27 }
 0x541   : > { %v3733_v35 = vsel %vm3084_vm7, %v3725_v47, %v7009_v53 }
 0x542   : > { %v3781_v57 = vpack.c.bf16 %v3734_v3, %v3733_v35 }
 0x543   : > { %3952 = vmatmul.mubr.bf16.gmra.mrb[64].mxu1 %v3774_v32 }
 0x544   : > { %3959 = vmatprep.mubr.bf16.mxu1 %v3778_v61 }
 0x54b   : > { %3960 = vmatmul.mubr.bf16.gmra.mrb[68].mxu1 %v3777_v58 }
 0x54c   : > { %3967 = vmatprep.mubr.bf16.mxu1 %v3781_v57 }
 0x553   : > { %3968 = vmatmul.mubr.bf16.gmra.mrb[72].mxu1 %v3780_v0 }
 0x554   : > { %6639 = vmatprep.mubr.msk.bf16.mxu1 %vm1491_vm0, %v7955_v25 }
 0x55b   : > { %6640 = vmatmul.mubr.msk.bf16.vlgmr.msra.gmra.mrb[76].mxu1 %vm1491_vm0, %v7960_v30 }
 0x55c   : > { %6643 = vmatprep.mubr.msk.bf16.mxu1 %vm1491_vm0, %v8030_v29 }
 0x563   : > { %6644 = vmatmul.mubr.msk.bf16.gmra.mrb[80].mxu1 %vm1491_vm0, %v8041_v55 }
 0x581   : > { %v6345_v5 = vpop.f32.mrb[44].mxu0 }
 0x582   : > { %v6346_v17 = vpop.f32.mrb[45].mxu0 }
 0x583   : > { %v8441_v50 = vadd.f32 %v6346_v17, %v6345_v5  ;;  %v6348_v44 = vpop.f32.mrb[46].mxu0 }
 0x584   : > { %v6349_v2 = vpop.f32.mrb[47].mxu0 }
 0x585   : > { %v8443_v45 = vadd.f32 %v6349_v2, %v6348_v44 }
 0x58a   : > { %v6351_v23 = vpop.f32.mrb[48].mxu0 }
 0x58b   : > { %v6352_v42 = vpop.f32.mrb[49].mxu0 }
 0x58c   : > { %v8445_v25 = vadd.f32 %v6352_v42, %v6351_v23  ;;  %v6354_v20 = vpop.f32.mrb[50].mxu0 }
 0x58d   : > { %v6355_v30 = vpop.f32.mrb[51].mxu0 }
 0x58e   : > { %v8447_v38 = vadd.f32 %v6355_v30, %v6354_v20 }
 0x5a6   : > { %v6357_v29 = vpop.f32.mrb[52].mxu0 }
 0x5a7   : > { %v6358_v32 = vpop.f32.mrb[53].mxu0 }
 0x5a8   : > { %v8449_v24 = vadd.f32 %v6358_v32, %v6357_v29  ;;  %v6360_v55 = vpop.f32.mrb[54].mxu0 }
 0x5a9   : > { %v6361_v46 = vpop.f32.mrb[55].mxu0 }
 0x5aa   : > { %v8451_v15 = vadd.f32 %v6361_v46, %v6360_v55  ;;  %v2612_v55 = vsub.f32 0.0, %v8296_v14  ;;  %v2617_v14 = vsub.f32 0.0, %v8314_v62 }
 0x5ae   : > { %v6363_v61 = vpop.f32.mrb[56].mxu0 }
 0x5af   : > { %v6364_v40 = vpop.f32.mrb[57].mxu0 }
 0x5b0   : > { %v8453_v33 = vadd.f32 %v6364_v40, %v6363_v61  ;;  %v6366_v11 = vpop.f32.mrb[58].mxu0  ;;  %v2610_v40 = vsub.f32 0.0, %v8298_v31  ;;  %v2615_v31 = vsub.f32 0.0, %v8316_v56 }
 0x5b1   : > { %v6367_v53 = vpop.f32.mrb[59].mxu0 }
 0x5b2   : > { %v8455_v26 = vadd.f32 %v6367_v53, %v6366_v11  ;;  %v2613_v53 = vsub.f32 0.0, %v8300_v41 }
 0x5b6   : > { %v8457_v63 = vpop.f32.mrb[60].mxu0 }
 0x5b7   : > { %v8459_v47 = vpop.f32.mrb[61].mxu0 }
 0x5b8   : > { %v8461_v51 = vpop.f32.mrb[62].mxu0 }
 0x5b9   : > { %v8463_v18 = vpop.f32.mrb[63].mxu0 }
 0x5be   : > { %v8465_v37 = vpop.f32.mrb[64].mxu0 }
 0x5bf   : > { %v8467_v12 = vpop.f32.mrb[65].mxu0 }
 0x5c0   : > { %v8469_v35 = vpop.f32.mrb[66].mxu0 }
 0x5c1   : > { %v8471_v3 = vpop.f32.mrb[67].mxu0 }
 0x5c6   : > { %v6629_v9 = vpop.f32.mrb[68].mxu0 }
 0x5c7   : > { %v4116_v39 = vadd.f32 %v6629_v9, %v6180_v13  ;;  %v4107_v36 = vpop.f32.mrb[69].mxu0 }
 0x5c8   : > { %v4108_v58 = vadd.f32 %v6180_v13, %v4107_v36  ;;  %v6630_v54 = vpop.f32.mrb[70].mxu0  ;;  %v2622_v36 = vmul.f32 1.442695, %v2612_v55 }
 0x5c9   : > { %v4119_v34 = vadd.f32 %v6630_v54, %v6180_v13  ;;  %v4110_v57 = vpop.f32.mrb[71].mxu0  ;;  %v4140_v52 = vmax.f32 %v4116_v39, 0.0  ;;  %v2611_v39 = vsub.f32 0.0, %v8304_v4  ;;  %v2614_v54 = vsub.f32 0.0, %v8310_v60 }
 0x5ca   : > { %v4111_v49 = vadd.f32 %v6180_v13, %v4110_v57  ;;  %v4138_v1 = vmax.f32 %v4108_v58, 0.0  ;;  %v2616_v58 = vsub.f32 0.0, %v8308_v16  ;;  %7194 = vpow2.f32 %v2622_v36 }
 0x5cb   : > { %v4141_v22 = vmax.f32 %v4119_v34, 0.0  ;;  %v2624_v34 = vmul.f32 1.442695, %v2613_v53  ;;  %v2620_v57 = vmul.f32 1.442695, %v2611_v39 }
 0x5cc   : > { %v4139_v27 = vmax.f32 %v4111_v49, 0.0  ;;  %v2630_v49 = vmul.f32 1.442695, %v2616_v58  ;;  %v2626_v41 = vmul.f32 1.442695, %v2614_v54 }
 0x5cd   : > { %v7016_v59 = vpack.i.bf16 %v4141_v22, %v4140_v52  ;;  %v2632_v52 = vmul.f32 1.442695, %v2617_v14  ;;  %v2628_v4 = vmul.f32 1.442695, %v2615_v31 }
 0x5ce   : > { %v7021_v0 = vpack.i.bf16 %v4139_v27, %v4138_v1  ;;  %v6633_v5 = vpop.f32.mrb[72].mxu0 }
 0x5cf   : > { %v4132_v17 = vadd.f32 %v6633_v5, %v6180_v13  ;;  %7017 = vrot.lane.b32.xlu1 %v7016_v59, %s7381_s22  ;;  %v4123_v44 = vpop.f32.mrb[73].mxu0 }
 0x5d0   : > { %v4124_v2 = vadd.f32 %v6180_v13, %v4123_v44  ;;  %v6634_v23 = vpop.f32.mrb[74].mxu0  ;;  %7022 = vrot.lane.b32.xlu0 %v7021_v0, %s7381_s22 }
 0x5d1   : > { %v4135_v42 = vadd.f32 %v6634_v23, %v6180_v13  ;;  %v4126_v20 = vpop.f32.mrb[75].mxu0  ;;  %v4144_v29 = vmax.f32 %v4132_v17, 0.0 }
 0x5d2   : > { %v4127_v30 = vadd.f32 %v6180_v13, %v4126_v20  ;;  %v4142_v46 = vmax.f32 %v4124_v2, 0.0  ;;  %v2618_v13 = vmul.f32 1.442695, %v2610_v40 }
 0x5d3   : > { %v4145_v32 = vmax.f32 %v4135_v42, 0.0 }
 0x5d4   : > { %v4143_v61 = vmax.f32 %v4127_v30, 0.0  ;;  %7196 = vpow2.f32 %v2618_v13  ;;  %v7195_v16 = vpop.eup %7194 }
 0x5d5   : > { %v8478_v11 = vpack.i.bf16 %v4145_v32, %v4144_v29  ;;  %7198 = vpow2.f32 %v2624_v34  ;;  %v2636_v59 = vadd.f32 1.0, %v7195_v16  ;;  %v6132_v29 = vld [vmem:[%s9262_s16] ss:$0 sm:$0xff] }
 0x5d6   : > { %v8481_v9 = vpack.i.bf16 %v4143_v61, %v4142_v46  ;;  %7200 = vpow2.f32 %v2620_v57  ;;  %v3335_v61 = vadd.f32 %v8445_v25, %v6132_v29  ;;  %v3327_v39 = vadd.f32 %v8441_v50, %v6132_v29 }
 0x5d7   : > { %7202 = vpow2.f32 %v2630_v49  ;;  %v3338_v54 = vadd.f32 %v8447_v38, %v6132_v29  ;;  %v3330_v57 = vadd.f32 %v8443_v45, %v6132_v29  ;;  %v3343_v16 = vadd.f32 %v8449_v24, %v6132_v29 }
 0x5d8   : > { %7204 = vpow2.f32 %v2626_v41  ;;  %v3351_v41 = vadd.f32 %v8453_v33, %v6132_v29  ;;  %v3346_v33 = vadd.f32 %v8451_v15, %v6132_v29 }
 0x5d9   : > { %7206 = vpow2.f32 %v2632_v52 }
 0x5da   : > { %7208 = vpow2.f32 %v2628_v4 }
 0x5de   : > { %v7197_v60 = vpop.eup %7196 }
 0x5df   : > { %v7199_v62 = vpop.eup %7198  ;;  %v2634_v17 = vadd.f32 1.0, %v7197_v60 }
 0x5e0   : > { %v7201_v56 = vpop.eup %7200  ;;  %v2637_v42 = vadd.f32 1.0, %v7199_v62 }
 0x5e1   : > { %v7203_v5 = vpop.eup %7202  ;;  %v2635_v30 = vadd.f32 1.0, %v7201_v56 }
 0x5e2   : > { %v7205_v23 = vpop.eup %7204  ;;  %v2640_v55 = vadd.f32 1.0, %v7203_v5 }
 0x5e3   : > { %v7207_v20 = vpop.eup %7206  ;;  %v2638_v46 = vadd.f32 1.0, %v7205_v23 }
 0x5e4   : > { %v7209_v32 = vpop.eup %7208  ;;  %v2641_v40 = vadd.f32 1.0, %v7207_v20 }
 0x5e5   : > { %v2639_v36 = vadd.f32 1.0, %v7209_v32 }
 0x5e6   : > { %v2786_v22 = vpop.f32.mrb[48].mxu1 }
 0x5e7   : > { %v2792_v1 = vsub.f32 0.0, %v2786_v22  ;;  %v6597_v27 = vpop.f32.mrb[49].mxu1  ;;  %v2797_v22 = vlaneseq }
 0x5e8   : > { %v2789_v0 = vpop.f32.mrb[50].mxu1 }
 0x5e9   : > { %v2793_v44 = vmul.f32 1.442695, %v2792_v1  ;;  %v6598_v2 = vpop.f32.mrb[51].mxu1  ;;  %v3354_v1 = vadd.f32 %v8455_v26, %v6132_v29  ;;  %v2798_v23 = vshrl.u32 %v2797_v22, 7 }
 0x5eb   : > { %7210 = vpow2.f32 %v2793_v44  ;;  %v2799_v29 = vsub.s32 0, %v2798_v23 }
 0x5ec   : > { %7212 = vrcp.f32 %v2636_v59 }
 0x5ed   : > { %7214 = vrcp.f32 %v2634_v17 }
 0x5ee   : > { %7216 = vrcp.f32 %v2637_v42  ;;  %v6605_v53 = vpop.f32.mrb[52].mxu1 }
 0x5ef   : > { %7218 = vrcp.f32 %v2635_v30  ;;  %v8491_v58 = vadd.f32 %v6605_v53, %v3335_v61  ;;  %v3391_v13 = vpop.f32.mrb[53].mxu1  ;;  %v6204_v30 = vld [vmem:[%s9263_s18] ss:$0 sm:$0xff]  ;;  %s9266_s18 = sld [smem:[#allocation15_spill]] }
 0x5f0   : > { %7220 = vrcp.f32 %v2640_v55  ;;  %v8494_v34 = vadd.f32 %v3391_v13, %v3327_v39  ;;  %v6606_v14 = vpop.f32.mrb[54].mxu1 }
 0x5f1   : > { %7222 = vrcp.f32 %v2638_v46  ;;  %v8497_v25 = vadd.f32 %v6606_v14, %v3338_v54  ;;  %v3394_v31 = vpop.f32.mrb[55].mxu1 }
 0x5f2   : > { %7224 = vrcp.f32 %v2641_v40  ;;  %v8499_v49 = vadd.f32 %v3394_v31, %v3330_v57 }
 0x5f3   : > { %7226 = vrcp.f32 %v2639_v36 }
 0x5f5   : > { %v7211_v50 = vpop.eup %7210 }
 0x5f6   : > { %v7213_v52 = vpop.eup %7212  ;;  %v2795_v4 = vadd.f32 1.0, %v7211_v50  ;;  %v6609_v38 = vpop.f32.mrb[56].mxu1 }
 0x5f7   : > { %v7215_v60 = vpop.eup %7214  ;;  %v8503_v62 = vadd.f32 %v6609_v38, %v3351_v41  ;;  %v3407_v45 = vpop.f32.mrb[57].mxu1  ;;  %v2652_v26 = vmul.f32 %v7213_v52, %v7933_v6 }
 0x5f8   : > { %v7217_v27 = vpop.eup %7216  ;;  %7228 = vrcp.f32 %v2795_v4  ;;  %v8506_v56 = vadd.f32 %v3407_v45, %v3343_v16  ;;  %v6610_v59 = vpop.f32.mrb[58].mxu1  ;;  %v2650_v32 = vmul.f32 %v7215_v60, %v7935_v7  ;;  %v6205_v4 = vld [vmem:[%s9264_s28] ss:$0 sm:$0xff]  ;;  %s9270_s28 = sld [smem:[#allocation17_spill]] }
 0x5f9   : > { %v7219_v0 = vpop.eup %7218  ;;  %v8509_v5 = vadd.f32 %v6610_v59, %v3354_v1  ;;  %v3410_v17 = vpop.f32.mrb[59].mxu1  ;;  %v2653_v55 = vmul.f32 %v7217_v27, %v7939_v8  ;;  %v4512_v36 = vmul.f32 %v6204_v30, %v2652_v26 }
 0x5fa   : > { %v7221_v24 = vpop.eup %7220  ;;  %v8511_v44 = vadd.f32 %v3410_v17, %v3346_v33  ;;  %v2651_v15 = vmul.f32 %v7219_v0, %v7943_v10  ;;  %v4510_v13 = vmul.f32 %v6204_v30, %v2650_v32 }
 0x5fb   : > { %v7223_v2 = vpop.eup %7222  ;;  %v2656_v46 = vmul.f32 %v7221_v24, %v7973_v19  ;;  %v4513_v54 = vmul.f32 %v6204_v30, %v2653_v55 }
 0x5fc   : > { %v7225_v42 = vpop.eup %7224  ;;  %v2654_v61 = vmul.f32 %v7223_v2, %v8000_v43  ;;  %v4511_v14 = vmul.f32 %v6204_v30, %v2651_v15 }
 0x5fd   : > { %v7227_v20 = vpop.eup %7226  ;;  %v2657_v40 = vmul.f32 %v7225_v42, %v8008_v28  ;;  %v4516_v31 = vmul.f32 %v6204_v30, %v2656_v46 }
 0x5fe   : > { %v2655_v53 = vmul.f32 %v7227_v20, %v8014_v48  ;;  %v4514_v50 = vmul.f32 %v6204_v30, %v2654_v61 }
 0x5ff   : > { %v4517_v41 = vmul.f32 %v6204_v30, %v2657_v40 }
 0x600   : > { %v4515_v52 = vmul.f32 %v6204_v30, %v2655_v53  ;;  %v8548_v53 = vld [vmem:[%s9262_s16 + $0x1] ss:$0 sm:$0xff] }
 0x602   : > { %v7229_v39 = vpop.eup %7228 }
 0x603   : > { %v2800_v57 = vrot.slane %v7229_v39, %v2799_v29 }
 0x605   : > { %v2803_v38 = vmul.f32 %v2800_v57, %v7933_v6  ;;  %v2801_v16 = vmul.f32 %v2800_v57, %v7935_v7  ;;  %v2804_v60 = vmul.f32 %v2800_v57, %v7939_v8  ;;  %v2802_v22 = vmul.f32 %v2800_v57, %v7943_v10 }
 0x606   : > { %v2807_v45 = vmul.f32 %v2800_v57, %v7973_v19  ;;  %v2805_v1 = vmul.f32 %v2800_v57, %v8000_v43  ;;  %v2808_v27 = vmul.f32 %v2800_v57, %v8008_v28  ;;  %v2806_v59 = vmul.f32 %v2800_v57, %v8014_v48 }
 0x607   : > { %v4527_v33 = vmul.f32 %v6205_v4, %v2803_v38  ;;  %v4525_v0 = vmul.f32 %v6205_v4, %v2801_v16  ;;  %v4528_v17 = vmul.f32 %v6205_v4, %v2804_v60  ;;  %v4526_v24 = vmul.f32 %v6205_v4, %v2802_v22 }
 0x608   : > { %v4531_v2 = vmul.f32 %v6205_v4, %v2807_v45  ;;  %v4529_v23 = vmul.f32 %v6205_v4, %v2805_v1  ;;  %v4532_v42 = vmul.f32 %v6205_v4, %v2808_v27  ;;  %v4530_v20 = vmul.f32 %v6205_v4, %v2806_v59  ;;  %v7130_v4 = vld [vmem:[%s9265_s7] sm:$0xff]   ;;  %v7132_v59 = vld [vmem:[%s9265_s7 + $0x10] sm:$0xff]  }
 0x609   : > { %v8531_v26 = vadd.f32 %v4527_v33, %v4512_v36  ;;  %v8533_v30 = vadd.f32 %v4525_v0, %v4510_v13  ;;  %v8535_v32 = vadd.f32 %v4528_v17, %v4513_v54  ;;  %v8537_v55 = vadd.f32 %v4526_v24, %v4511_v14  ;;  %v7131_v54 = vld [vmem:[%s9265_s7 + $0x8] sm:$0xff]   ;;  %6647 = vmatprep.subr.bf16.mxu0 %v7130_v4  ;;  %v7133_v33 = vld [vmem:[%s9265_s7 + $0x18] sm:$0xff]  }
 0x60a   : > { %v8539_v15 = vadd.f32 %v4531_v2, %v4516_v31  ;;  %v8541_v29 = vadd.f32 %v4529_v23, %v4514_v50  ;;  %v8543_v46 = vadd.f32 %v4532_v42, %v4517_v41  ;;  %v8545_v61 = vadd.f32 %v4530_v20, %v4515_v52  ;;  %6648 = vmatpush3.bf16.msra.mxu0 %v7130_v4  ;;  %v7135_v4 = vld [vmem:[%s9265_s7 + $0x28] sm:$0xff]  }
 0x60b   : > { %6649 = vmatprep.subr.bf16.mxu0 %v7131_v54 }
 0x60e   : > { %v6391_v40 = vpop.f32.mrb[60].mxu1  ;;  %6650 = vmatpush3.bf16.msra.mxu0 %v7131_v54 }
 0x60f   : > { %v6392_v39 = vpop.f32.mrb[61].mxu1  ;;  %6651 = vmatprep.subr.bf16.mxu0 %v7132_v59 }
 0x610   : > { %v6393_v36 = vadd.f32 %v6392_v39, %v6391_v40  ;;  %v6394_v57 = vpop.f32.mrb[62].mxu1 }
 0x611   : > { %v6395_v13 = vpop.f32.mrb[63].mxu1 }
 0x612   : > { %v3946_v14 = vadd.f32 %v6393_v36, %v8548_v53  ;;  %v6396_v31 = vadd.f32 %v6395_v13, %v6394_v57  ;;  %6652 = vmatpush3.bf16.msra.mxu0 %v7132_v59  ;;  %v7134_v13 = vld [vmem:[%s9265_s7 + $0x20] sm:$0xff]  }
 0x613   : > { %6653 = vmatprep.subr.bf16.mxu0 %v7133_v33 }
 0x614   : > { %v4011_v50 = vadd.f32 %v8459_v47, %v3946_v14  ;;  %v3949_v41 = vadd.f32 %v6396_v31, %v8548_v53 }
 0x616   : > { %v4014_v52 = vadd.f32 %v8463_v18, %v3949_v41  ;;  %v6397_v38 = vpop.f32.mrb[64].mxu1  ;;  %v4041_v60 = vmax.f32 %v4011_v50, 0.0  ;;  %6654 = vmatpush3.bf16.msra.mxu0 %v7133_v33 }
 0x617   : > { %v6398_v16 = vpop.f32.mrb[65].mxu1  ;;  %6655 = vmatprep.subr.bf16.mxu0 %v7134_v13 }
 0x618   : > { %v4042_v22 = vmax.f32 %v4014_v52, 0.0  ;;  %v6399_v45 = vadd.f32 %v6398_v16, %v6397_v38  ;;  %v6400_v1 = vpop.f32.mrb[66].mxu1 }
 0x619   : > { %v6401_v27 = vpop.f32.mrb[67].mxu1 }
 0x61a   : > { %v3954_v0 = vadd.f32 %v6399_v45, %v8548_v53  ;;  %v6402_v17 = vadd.f32 %v6401_v27, %v6400_v1  ;;  %v7026_v47 = vpack.i.bf16 %v4042_v22, %v4041_v60  ;;  %6656 = vmatpush3.bf16.msra.mxu0 %v7134_v13  ;;  %v7136_v1 = vld [vmem:[%s9265_s7 + $0x30] sm:$0xff]  }
 0x61b   : > { %6657 = vmatprep.subr.bf16.mxu0 %v7135_v4 }
 0x61c   : > { %v4019_v24 = vadd.f32 %v8457_v63, %v3954_v0  ;;  %v3957_v18 = vadd.f32 %v6402_v17, %v8548_v53  ;;  %7027 = vrot.lane.b32.xlu0 %v7026_v47, %s7382_s23  ;;  %v6188_v0 = vld [vmem:[%s9262_s16 + $0x3] ss:$0 sm:$0xff] }
 0x61e   : > { %v4022_v2 = vadd.f32 %v8461_v51, %v3957_v18  ;;  %v6403_v23 = vpop.f32.mrb[68].mxu1  ;;  %v4043_v20 = vmax.f32 %v4019_v24, 0.0  ;;  %6658 = vmatpush3.bf16.msra.mxu0 %v7135_v4  ;;  %v7137_v24 = vld [vmem:[%s9265_s7 + $0x38] sm:$0xff]  }
 0x61f   : > { %v6404_v42 = vpop.f32.mrb[69].mxu1  ;;  %6659 = vmatprep.subr.bf16.mxu0 %v7136_v1 }
 0x620   : > { %v4044_v40 = vmax.f32 %v4022_v2, 0.0  ;;  %v6405_v39 = vadd.f32 %v6404_v42, %v6403_v23  ;;  %v6406_v36 = vpop.f32.mrb[70].mxu1 }
 0x621   : > { %v6407_v57 = vpop.f32.mrb[71].mxu1 }
 0x622   : > { %v3962_v63 = vadd.f32 %v6405_v39, %v8548_v53  ;;  %v6408_v54 = vadd.f32 %v6407_v57, %v6406_v36  ;;  %v7031_v14 = vpack.i.bf16 %v4044_v40, %v4043_v20  ;;  %6660 = vmatpush3.bf16.msra.mxu0 %v7136_v1 }
 0x623   : > { %6661 = vmatprep.subr.bf16.mxu0 %v7137_v24 }
 0x624   : > { %v4027_v31 = vadd.f32 %v8467_v12, %v3962_v63  ;;  %v3965_v51 = vadd.f32 %v6408_v54, %v8548_v53  ;;  %7032 = vrot.lane.b32.xlu1 %v7031_v14, %s7382_s23 }
 0x626   : > { %v4030_v50 = vadd.f32 %v8471_v3, %v3965_v51  ;;  %v6409_v41 = vpop.f32.mrb[72].mxu1  ;;  %v4045_v38 = vmax.f32 %v4027_v31, 0.0  ;;  %6662 = vmatpush3.bf16.msra.mxu0 %v7137_v24 }
 0x627   : > { %v6410_v52 = vpop.f32.mrb[73].mxu1 }
 0x628   : > { %v4046_v16 = vmax.f32 %v4030_v50, 0.0  ;;  %v6411_v60 = vadd.f32 %v6410_v52, %v6409_v41  ;;  %v6412_v22 = vpop.f32.mrb[74].mxu1 }
 0x629   : > { %v6413_v45 = vpop.f32.mrb[75].mxu1 }
 0x62a   : > { %v3970_v12 = vadd.f32 %v6411_v60, %v8548_v53  ;;  %v6414_v27 = vadd.f32 %v6413_v45, %v6412_v22  ;;  %v7036_v59 = vpack.i.bf16 %v4046_v16, %v4045_v38  ;;  %v7138_v16 = vld [vmem:[%s9266_s18] sm:$0xff]  }
 0x62b   : > { %6671 = vmatprep.subr.bf16.mxu1 %v7138_v16 }
 0x62c   : > { %v4035_v33 = vadd.f32 %v8465_v37, %v3970_v12  ;;  %v3973_v3 = vadd.f32 %v6414_v27, %v8548_v53  ;;  %7037 = vrot.lane.b32.xlu0 %v7036_v59, %s7382_s23  ;;  %6672 = vmatpush3.bf16.msra.mxu1 %v7138_v16 }
 0x62e   : > { %v4038_v17 = vadd.f32 %v8469_v35, %v3973_v3  ;;  %v6641_v47 = vpop.f32.mrb[76].mxu1  ;;  %v4047_v23 = vmax.f32 %v4035_v33, 0.0 }
 0x62f   : > { %v4213_v18 = vadd.f32 %v6641_v47, %v6188_v0  ;;  %v4204_v2 = vpop.f32.mrb[77].mxu1 }
 0x630   : > { %v4048_v42 = vmax.f32 %v4038_v17, 0.0  ;;  %v4205_v20 = vadd.f32 %v6188_v0, %v4204_v2  ;;  %v6642_v40 = vpop.f32.mrb[78].mxu1 }
 0x631   : > { %v4216_v39 = vadd.f32 %v6642_v40, %v6188_v0  ;;  %v4207_v36 = vpop.f32.mrb[79].mxu1  ;;  %v4237_v57 = vmax.f32 %v4213_v18, 0.0  ;;  %v3422_v18 = vmax.f32 %v8494_v34, 0.0  ;;  %v3425_v40 = vmax.f32 %v8497_v25, 0.0 }
 0x632   : > { %v4208_v37 = vadd.f32 %v6188_v0, %v4207_v36  ;;  %v7041_v53 = vpack.i.bf16 %v4048_v42, %v4047_v23  ;;  %v4235_v4 = vmax.f32 %v4205_v20, 0.0  ;;  %v3424_v20 = vmax.f32 %v8491_v58, 0.0 }
 0x633   : > { %v4238_v13 = vmax.f32 %v4216_v39, 0.0 }
 0x634   : > { %v4236_v63 = vmax.f32 %v4208_v37, 0.0  ;;  %7042 = vrot.lane.b32.xlu1 %v7041_v53, %s7382_s23  ;;  %s9268_s23 = sld [smem:[#allocation21_spill]] }
 0x635   : > { %v7046_v35 = vpack.i.bf16 %v4238_v13, %v4237_v57 }
 0x636   : > { %v7051_v54 = vpack.i.bf16 %v4236_v63, %v4235_v4  ;;  %v6645_v14 = vpop.f32.mrb[80].mxu1 }
 0x637   : > { %v4229_v31 = vadd.f32 %v6645_v14, %v6188_v0  ;;  %v4220_v51 = vpop.f32.mrb[81].mxu1 }
 0x638   : > { %v4221_v50 = vadd.f32 %v6188_v0, %v4220_v51  ;;  %v6646_v41 = vpop.f32.mrb[82].mxu1  ;;  %7047 = vrot.lane.b32.xlu1 %v7046_v35, %s7383_s1  ;;  %7052 = vrot.lane.b32.xlu0 %v7051_v54, %s7383_s1 }
 0x639   : > { %v4232_v52 = vadd.f32 %v6646_v41, %v6188_v0  ;;  %v4223_v38 = vpop.f32.mrb[83].mxu1  ;;  %v4241_v22 = vmax.f32 %v4229_v31, 0.0 }
 0x63a   : > { %v4224_v60 = vadd.f32 %v6188_v0, %v4223_v38  ;;  %v4239_v1 = vmax.f32 %v4221_v50, 0.0 }
 0x63b   : > { %v4242_v45 = vmax.f32 %v4232_v52, 0.0 }
 0x63c   : > { %v4240_v12 = vmax.f32 %v4224_v60, 0.0  ;;  %7062 = vrot.lane.b32.xlu1 %v8478_v11, %s7381_s22  ;;  %7057 = vrot.lane.b32.xlu0 %v8481_v9, %s7381_s22  ;;  %v3423_v11 = vmax.f32 %v8499_v49, 0.0  ;;  %s9267_s22 = sld [smem:[#allocation14_spill]] }
 0x63d   : > { %v7071_v27 = vpack.i.bf16 %v4242_v45, %v4241_v22 }
 0x63e   : > { %v7066_v59 = vpack.i.bf16 %v4240_v12, %v4239_v1 }
 0x640   : > { %7072 = vrot.lane.b32.xlu1 %v7071_v27, %s7383_s1  ;;  %7067 = vrot.lane.b32.xlu0 %v7066_v59, %s7383_s1  ;;  %s9269_s1 = sld [smem:[#allocation16_spill]] }
 0x641   : > { %v7018_v3 = vpop.permute.xlu1 %7017 }
 0x642   : > { %v7023_v33 = vpop.permute.xlu0 %7022  ;;  %v7020_v13 = vunpack.i.h.bf16 %v7018_v3  ;;  %v7019_v49 = vunpack.i.l.bf16 %v7018_v3  ;;  %v3428_v3 = vmax.f32 %v8503_v62, 0.0 }
 0x643   : > { %v7025_v37 = vunpack.i.h.bf16 %v7023_v33  ;;  %v7024_v53 = vunpack.i.l.bf16 %v7023_v33 }
 0x68e   : > { %v7028_v0 = vpop.permute.xlu0 %7027 }
 0x68f   : > { %v7030_v47 = vunpack.i.h.bf16 %v7028_v0  ;;  %v7029_v24 = vunpack.i.l.bf16 %v7028_v0  ;;  %v3426_v0 = vmax.f32 %v8506_v56, 0.0 }
 0x691   : > { %v4340_v39 = vsel %vm1491_vm0, %v3423_v11, %v7030_v47  ;;  %v4339_v36 = vsel %vm1491_vm0, %v3422_v18, %v7029_v24  ;;  %v3427_v47 = vmax.f32 %v8511_v44, 0.0 }
 0x692   : > { %v4347_v35 = vsel %vm3075_vm5, %v4339_v36, %v7024_v53  ;;  %v4348_v58 = vsel %vm3075_vm5, %v4340_v39, %v7025_v37 }
 0x696   : > { %v7033_v17 = vpop.permute.xlu1 %7032 }
 0x697   : > { %v7035_v2 = vunpack.i.h.bf16 %v7033_v17  ;;  %v7034_v23 = vunpack.i.l.bf16 %v7033_v17  ;;  %v3429_v17 = vmax.f32 %v8509_v5, 0.0 }
 0x699   : > { %v4342_v57 = vsel %vm1491_vm0, %v3425_v40, %v7035_v2  ;;  %v4341_v34 = vsel %vm1491_vm0, %v3424_v20, %v7034_v23 }
 0x69a   : > { %v4349_v41 = vsel %vm3075_vm5, %v4341_v34, %v7019_v49  ;;  %v4350_v52 = vsel %vm3075_vm5, %v4342_v57, %v7020_v13 }
 0x69e   : > { %v7038_v9 = vpop.permute.xlu0 %7037 }
 0x69f   : > { %v7040_v51 = vunpack.i.h.bf16 %v7038_v9  ;;  %v7039_v50 = vunpack.i.l.bf16 %v7038_v9 }
 0x6a1   : > { %v4343_v23 = vsel %vm1491_vm0, %v3426_v0, %v7039_v50  ;;  %v4344_v9 = vsel %vm1491_vm0, %v3427_v47, %v7040_v51  ;;  %v4548_v51 = vsel %vm1491_vm0, %v8537_v55, -inf }
 0x6a6   : > { %v7043_v42 = vpop.permute.xlu1 %7042 }
 0x6a7   : > { %v7045_v45 = vunpack.i.h.bf16 %v7043_v42  ;;  %v7044_v1 = vunpack.i.l.bf16 %v7043_v42 }
 0x6a9   : > { %v4345_v42 = vsel %vm1491_vm0, %v3428_v3, %v7044_v1  ;;  %v4346_v62 = vsel %vm1491_vm0, %v3429_v17, %v7045_v45  ;;  %v4569_v45 = vsel %vm1491_vm0, %v8541_v29, -inf }
 0x6aa   : > { %v7048_v4 = vpop.permute.xlu1 %7047  ;;  %v7053_v63 = vpop.permute.xlu0 %7052  ;;  %v4570_v0 = vrot.slane %v4569_v45, 4 }
 0x6ab   : > { %v7050_v54 = vunpack.i.h.bf16 %v7048_v4  ;;  %v7049_v25 = vunpack.i.l.bf16 %v7048_v4  ;;  %v7055_v14 = vunpack.i.h.bf16 %v7053_v63  ;;  %v7054_v31 = vunpack.i.l.bf16 %v7053_v63 }
 0x6ad   : > { %v4357_v38 = vsel %vm3084_vm7, %v4349_v41, %v7049_v25  ;;  %v4358_v16 = vsel %vm3084_vm7, %v4350_v52, %v7050_v54  ;;  %v4355_v60 = vsel %vm3084_vm7, %v4347_v35, %v7054_v31  ;;  %v4356_v22 = vsel %vm3084_vm7, %v4348_v58, %v7055_v14  ;;  %v7139_v58 = vld [vmem:[%s9266_s18 + $0x8] sm:$0xff]  }
 0x6ae   : > { %v4380_v12 = vpack.c.bf16 %v4358_v16, %v4357_v38  ;;  %v7063_v27 = vpop.permute.xlu1 %7062  ;;  %v7058_v59 = vpop.permute.xlu0 %7057  ;;  %v4379_v33 = vpack.c.bf16 %v4356_v22, %v4355_v60  ;;  %6673 = vmatprep.subr.bf16.mxu1 %v7139_v58  ;;  %v4555_v54 = vsel %vm1491_vm0, %v8531_v26, -inf  ;;  %v4541_v25 = vsel %vm1491_vm0, %v8533_v30, -inf }
 0x6af   : > { %v7065_v24 = vunpack.i.h.bf16 %v7063_v27  ;;  %v7064_v18 = vunpack.i.l.bf16 %v7063_v27  ;;  %v7060_v11 = vunpack.i.h.bf16 %v7058_v59  ;;  %v7059_v2 = vunpack.i.l.bf16 %v7058_v59  ;;  %6674 = vmatpush3.bf16.msra.mxu1 %v7139_v58 }
 0x6b0   : > { %6663 = vmatprep.mubr.bf16.mxu0 %v4379_v33  ;;  %v4562_v14 = vsel %vm1491_vm0, %v8535_v32, -inf  ;;  %v4556_v31 = vrot.slane %v4555_v54, 4  ;;  %v4542_v50 = vrot.slane %v4541_v25, 4  ;;  %v4549_v52 = vrot.slane %v4548_v51, 4 }
 0x6b1   : > { %6664 = vmatmul.mubr.bf16.vlgmr.msra.gmra.mrb[76].mxu0 %v4380_v12  ;;  %v4353_v36 = vsel %vm3075_vm5, %v4345_v42, %v7064_v18  ;;  %v4354_v37 = vsel %vm3075_vm5, %v4346_v62, %v7065_v24  ;;  %v4351_v53 = vsel %vm3075_vm5, %v4343_v23, %v7059_v2  ;;  %v4352_v57 = vsel %vm3075_vm5, %v4344_v9, %v7060_v11 }
 0x6b2   : > { %v7073_v20 = vpop.permute.xlu1 %7072  ;;  %v7068_v56 = vpop.permute.xlu0 %7067  ;;  %v4563_v41 = vrot.slane %v4562_v14, 4  ;;  %v4557_v38 = vmax.f32 %v4555_v54, %v4556_v31  ;;  %v4543_v16 = vmax.f32 %v4541_v25, %v4542_v50  ;;  %v4583_v60 = vsel %vm1491_vm0, %v8539_v15, -inf }
 0x6b3   : > { %v7075_v40 = vunpack.i.h.bf16 %v7073_v20  ;;  %v7074_v5 = vunpack.i.l.bf16 %v7073_v20  ;;  %v7070_v44 = vunpack.i.h.bf16 %v7068_v56  ;;  %v7069_v39 = vunpack.i.l.bf16 %v7068_v56 }
 0x6b4   : > { %v4564_v22 = vmax.f32 %v4562_v14, %v4563_v41  ;;  %v4550_v1 = vmax.f32 %v4548_v51, %v4549_v52  ;;  %v4590_v12 = vsel %vm1491_vm0, %v8543_v46, -inf  ;;  %v4558_v27 = vrot.slane %v4557_v38, 2 }
 0x6b5   : > { %v4359_v34 = vsel %vm3084_vm7, %v4351_v53, %v7069_v39  ;;  %v4360_v13 = vsel %vm3084_vm7, %v4352_v57, %v7070_v44  ;;  %v4361_v49 = vsel %vm3084_vm7, %v4353_v36, %v7074_v5  ;;  %v4362_v4 = vsel %vm3084_vm7, %v4354_v37, %v7075_v40 }
 0x6b6   : > { %v4381_v63 = vpack.c.bf16 %v4360_v13, %v4359_v34  ;;  %v4382_v35 = vpack.c.bf16 %v4362_v4, %v4361_v49  ;;  %v4584_v59 = vrot.slane %v4583_v60, 4  ;;  %v4576_v33 = vsel %vm1491_vm0, %v8545_v61, -inf }
 0x6b7   : > { %v4544_v3 = vrot.slane %v4543_v16, 2  ;;  %v4565_v17 = vrot.slane %v4564_v22, 2  ;;  %v4591_v47 = vrot.slane %v4590_v12, 4  ;;  %v4551_v24 = vrot.slane %v4550_v1, 2 }
 0x6b8   : > { %6667 = vmatprep.mubr.bf16.mxu0 %v4381_v63  ;;  %v4577_v18 = vrot.slane %v4576_v33, 4  ;;  %v4559_v11 = vmax.f32 %v4557_v38, %v4558_v27  ;;  %v4585_v2 = vmax.f32 %v4583_v60, %v4584_v59  ;;  %v4571_v9 = vmax.f32 %v4569_v45, %v4570_v0 }
 0x6b9   : > { %6668 = vmatmul.mubr.bf16.gmra.mrb[80].mxu0 %v4382_v35  ;;  %v4545_v23 = vmax.f32 %v4543_v16, %v4544_v3  ;;  %v4566_v42 = vmax.f32 %v4564_v22, %v4565_v17  ;;  %v4592_v62 = vmax.f32 %v4590_v12, %v4591_v47  ;;  %v4552_v20 = vmax.f32 %v4550_v1, %v4551_v24 }
 0x6ba   : > { %v4578_v56 = vmax.f32 %v4576_v33, %v4577_v18  ;;  %v4560_v40 = vrot.slane %v4559_v11, 1  ;;  %v4586_v5 = vrot.slane %v4585_v2, 2  ;;  %v4572_v39 = vrot.slane %v4571_v9, 2 }
 0x6bb   : > { %v4546_v44 = vrot.slane %v4545_v23, 1  ;;  %v4567_v36 = vrot.slane %v4566_v42, 1  ;;  %v4593_v37 = vrot.slane %v4592_v62, 2  ;;  %v4553_v53 = vrot.slane %v4552_v20, 1 }
 0x6bc   : > { %v4579_v57 = vrot.slane %v4578_v56, 2  ;;  %v4561_v34 = vmax.f32 %v4559_v11, %v4560_v40  ;;  %v4587_v13 = vmax.f32 %v4585_v2, %v4586_v5  ;;  %v4573_v4 = vmax.f32 %v4571_v9, %v4572_v39 }
 0x6bd   : > { %v4547_v49 = vmax.f32 %v4545_v23, %v4546_v44  ;;  %v4568_v63 = vmax.f32 %v4566_v42, %v4567_v36  ;;  %v4594_v35 = vmax.f32 %v4592_v62, %v4593_v37  ;;  %v4554_v58 = vmax.f32 %v4552_v20, %v4553_v53 }
 0x6be   : > { %v4580_v54 = vmax.f32 %v4578_v56, %v4579_v57  ;;  %v4599_v25 = vsub.f32 %v8531_v26, %v4561_v34  ;;  %v4588_v14 = vrot.slane %v4587_v13, 1  ;;  %v4574_v51 = vrot.slane %v4573_v4, 1 }
 0x6bf   : > { %v4597_v31 = vsub.f32 %v8533_v30, %v4547_v49  ;;  %v4600_v50 = vsub.f32 %v8535_v32, %v4568_v63  ;;  %v4595_v41 = vrot.slane %v4594_v35, 1  ;;  %v4598_v52 = vsub.f32 %v8537_v55, %v4554_v58 }
 0x6c0   : > { %v4581_v38 = vrot.slane %v4580_v54, 1  ;;  %v4609_v16 = vmul.f32 1.442695, %v4599_v25  ;;  %v4589_v60 = vmax.f32 %v4587_v13, %v4588_v14  ;;  %v4575_v45 = vmax.f32 %v4573_v4, %v4574_v51 }
 0x6c1   : > { %v4605_v22 = vmul.f32 1.442695, %v4597_v31  ;;  %v4611_v1 = vmul.f32 1.442695, %v4600_v50  ;;  %v4596_v12 = vmax.f32 %v4594_v35, %v4595_v41  ;;  %v4607_v27 = vmul.f32 1.442695, %v4598_v52 }
 0x6c2   : > { %v4582_v59 = vmax.f32 %v4580_v54, %v4581_v38  ;;  %7230 = vpow2.f32 %v4609_v16  ;;  %v4603_v26 = vsub.f32 %v8539_v15, %v4589_v60  ;;  %v4601_v30 = vsub.f32 %v8541_v29, %v4575_v45 }
 0x6c3   : > { %7232 = vpow2.f32 %v4605_v22  ;;  %v4604_v32 = vsub.f32 %v8543_v46, %v4596_v12 }
 0x6c4   : > { %7234 = vpow2.f32 %v4611_v1  ;;  %v4602_v55 = vsub.f32 %v8545_v61, %v4582_v59  ;;  %v4617_v33 = vmul.f32 1.442695, %v4603_v26  ;;  %v4613_v3 = vmul.f32 1.442695, %v4601_v30 }
 0x6c5   : > { %7236 = vpow2.f32 %v4607_v27  ;;  %v4619_v0 = vmul.f32 1.442695, %v4604_v32 }
 0x6c6   : > { %v4615_v17 = vmul.f32 1.442695, %v4602_v55  ;;  %7238 = vpow2.f32 %v4617_v33 }
 0x6c7   : > { %7240 = vpow2.f32 %v4613_v3 }
 0x6c8   : > { %7242 = vpow2.f32 %v4619_v0 }
 0x6c9   : > { %7244 = vpow2.f32 %v4615_v17 }
 0x6cc   : > { %v8645_v47 = vpop.eup %7230 }
 0x6cd   : > { %v8647_v24 = vpop.eup %7232  ;;  %v4635_v46 = vsel %vm1491_vm0, %v8645_v47, 0.0 }
 0x6ce   : > { %v8649_v15 = vpop.eup %7234  ;;  %v4621_v61 = vsel %vm1491_vm0, %v8647_v24, 0.0  ;;  %v4636_v11 = vrot.slane %v4635_v46, 4 }
 0x6cf   : > { %v8651_v29 = vpop.eup %7236  ;;  %v4642_v18 = vsel %vm1491_vm0, %v8649_v15, 0.0  ;;  %v4622_v23 = vrot.slane %v4621_v61, 4 }
 0x6d0   : > { %v4628_v2 = vsel %vm1491_vm0, %v8651_v29, 0.0  ;;  %v8661_v9 = vpop.eup %7238  ;;  %v4643_v42 = vrot.slane %v4642_v18, 4  ;;  %v4637_v40 = vadd.f32 %v4636_v11, %v4635_v46 }
 0x6d1   : > { %v8663_v62 = vpop.eup %7240  ;;  %v4629_v20 = vrot.slane %v4628_v2, 4  ;;  %v4623_v44 = vadd.f32 %v4622_v23, %v4621_v61  ;;  %v4663_v39 = vsel %vm1491_vm0, %v8661_v9, 0.0 }
 0x6d2   : > { %v8665_v56 = vpop.eup %7242  ;;  %v4644_v36 = vadd.f32 %v4643_v42, %v4642_v18  ;;  %v4649_v37 = vsel %vm1491_vm0, %v8663_v62, 0.0  ;;  %v4638_v34 = vrot.slane %v4637_v40, 2  ;;  %v4664_v13 = vrot.slane %v4663_v39, 4 }
 0x6d3   : > { %v8667_v5 = vpop.eup %7244  ;;  %v4630_v53 = vadd.f32 %v4629_v20, %v4628_v2  ;;  %v4670_v57 = vsel %vm1491_vm0, %v8665_v56, 0.0  ;;  %v4624_v4 = vrot.slane %v4623_v44, 2  ;;  %v4650_v63 = vrot.slane %v4649_v37, 4 }
 0x6d4   : > { %v4656_v49 = vsel %vm1491_vm0, %v8667_v5, 0.0  ;;  %v4645_v35 = vrot.slane %v4644_v36, 2  ;;  %v4671_v58 = vrot.slane %v4670_v57, 4  ;;  %v4639_v14 = vadd.f32 %v4638_v34, %v4637_v40 }
 0x6d5   : > { %v4631_v54 = vrot.slane %v4630_v53, 2  ;;  %v4657_v25 = vrot.slane %v4656_v49, 4  ;;  %v4665_v31 = vadd.f32 %v4664_v13, %v4663_v39  ;;  %v4625_v51 = vadd.f32 %v4624_v4, %v4623_v44  ;;  %v6195_v44 = vld [vmem:[%s9267_s22] ss:$0 sm:$0xff]  ;;  %s9271_s22 = sld [smem:[#allocation18_spill]] }
 0x6d6   : > { %v4651_v50 = vadd.f32 %v4650_v63, %v4649_v37  ;;  %v4646_v41 = vadd.f32 %v4645_v35, %v4644_v36  ;;  %v4672_v52 = vadd.f32 %v4671_v58, %v4670_v57  ;;  %v4640_v60 = vrot.slane %v4639_v14, 1  ;;  %v6206_v37 = vld [vmem:[%s9268_s23] ss:$0 sm:$0xff]  ;;  %s9272_s23 = sld [smem:[#allocation25_spill]] }
 0x6d7   : > { %v4632_v38 = vadd.f32 %v4631_v54, %v4630_v53  ;;  %v4658_v16 = vadd.f32 %v4657_v25, %v4656_v49  ;;  %v4666_v22 = vrot.slane %v4665_v31, 2  ;;  %v4626_v45 = vrot.slane %v4625_v51, 1 }
 0x6d8   : > { %v4652_v1 = vrot.slane %v4651_v50, 2  ;;  %v4647_v12 = vrot.slane %v4646_v41, 1  ;;  %v4673_v27 = vrot.slane %v4672_v52, 2  ;;  %v4641_v30 = vadd.f32 %v4640_v60, %v4639_v14 }
 0x6d9   : > { %v4633_v59 = vrot.slane %v4632_v38, 1  ;;  %v4659_v26 = vrot.slane %v4658_v16, 2  ;;  %v4667_v32 = vadd.f32 %v4666_v22, %v4665_v31  ;;  %v4627_v55 = vadd.f32 %v4626_v45, %v4625_v51 }
 0x6da   : > { %v4653_v33 = vadd.f32 %v4652_v1, %v4651_v50  ;;  %v4648_v3 = vadd.f32 %v4647_v12, %v4646_v41  ;;  %v4674_v0 = vadd.f32 %v4673_v27, %v4672_v52  ;;  %7246 = vrcp.f32 %v4641_v30 }
 0x6db   : > { %v4634_v17 = vadd.f32 %v4633_v59, %v4632_v38  ;;  %v4660_v46 = vadd.f32 %v4659_v26, %v4658_v16  ;;  %v4668_v61 = vrot.slane %v4667_v32, 1  ;;  %7248 = vrcp.f32 %v4627_v55 }
 0x6dc   : > { %v4654_v18 = vrot.slane %v4653_v33, 1  ;;  %7250 = vrcp.f32 %v4648_v3  ;;  %v4675_v11 = vrot.slane %v4674_v0, 1 }
 0x6dd   : > { %7252 = vrcp.f32 %v4634_v17  ;;  %v4661_v2 = vrot.slane %v4660_v46, 1  ;;  %v4669_v23 = vadd.f32 %v4668_v61, %v4667_v32 }
 0x6de   : > { %v4655_v42 = vadd.f32 %v4654_v18, %v4653_v33  ;;  %v4676_v20 = vadd.f32 %v4675_v11, %v4674_v0 }
 0x6df   : > { %v4662_v40 = vadd.f32 %v4661_v2, %v4660_v46  ;;  %7254 = vrcp.f32 %v4669_v23 }
 0x6e0   : > { %7256 = vrcp.f32 %v4655_v42 }
 0x6e1   : > { %7258 = vrcp.f32 %v4676_v20 }
 0x6e2   : > { %7260 = vrcp.f32 %v4662_v40 }
 0x6e4   : > { %v7247_v39 = vpop.eup %7246 }
 0x6e5   : > { %v7249_v53 = vpop.eup %7248  ;;  %v4687_v35 = vmul.f32 %v7247_v39, %v8645_v47 }
 0x6e6   : > { %v7251_v13 = vpop.eup %7250  ;;  %v4685_v14 = vmul.f32 %v7249_v53, %v8647_v24  ;;  %v6214_v53 = vld [vmem:[%s9270_s28] ss:$0 sm:$0xff]  ;;  %s9274_s28 = sld [smem:[#allocation23_spill]] }
 0x6e7   : > { %v7253_v63 = vpop.eup %7252  ;;  %v4688_v41 = vmul.f32 %v7251_v13, %v8649_v15 }
 0x6e8   : > { %v4686_v16 = vmul.f32 %v7253_v63, %v8651_v29 }
 0x6e9   : > { %v7255_v45 = vpop.eup %7254 }
 0x6ea   : > { %v7257_v47 = vpop.eup %7256  ;;  %v4691_v15 = vmul.f32 %v7255_v45, %v8661_v9 }
 0x6eb   : > { %v7259_v30 = vpop.eup %7258  ;;  %v4689_v29 = vmul.f32 %v7257_v47, %v8663_v62 }
 0x6ec   : > { %v7261_v33 = vpop.eup %7260  ;;  %v4692_v11 = vmul.f32 %v7259_v30, %v8665_v56 }
 0x6ed   : > { %v4690_v9 = vmul.f32 %v7261_v33, %v8667_v5 }
 0x784   : > { %v6665_v36 = vpop.f32.mrb[76].mxu0 }
 0x785   : > { %v4481_v57 = vadd.f32 %v6665_v36, %v6195_v44  ;;  %v4472_v34 = vpop.f32.mrb[77].mxu0 }
 0x786   : > { %v4473_v49 = vadd.f32 %v6195_v44, %v4472_v34  ;;  %v6666_v4 = vpop.f32.mrb[78].mxu0  ;;  %v6215_v34 = vld [vmem:[%s9271_s22] ss:$0 sm:$0xff]  ;;  %s9275_s22 = sld [smem:[#allocation24_spill]] }
 0x787   : > { %v4702_v58 = vmul.f32 %v6206_v37, %v4481_v57  ;;  %v4484_v54 = vadd.f32 %v6666_v4, %v6195_v44  ;;  %v4475_v25 = vpop.f32.mrb[79].mxu0  ;;  %v4846_v47 = vmul.f32 %v6215_v34, %v8000_v43  ;;  %v4849_v43 = vmul.f32 %v6215_v34, %v8008_v28 }
 0x788   : > { %v4700_v31 = vmul.f32 %v6206_v37, %v4473_v49  ;;  %v4476_v51 = vadd.f32 %v6195_v44, %v4475_v25 }
 0x789   : > { %v4710_v50 = vadd.f32 %v4702_v58, %v4687_v35  ;;  %v4703_v52 = vmul.f32 %v6206_v37, %v4484_v54  ;;  %v4842_v58 = vmul.f32 %v6215_v34, %v7935_v7  ;;  %v4844_v54 = vmul.f32 %v6215_v34, %v7933_v6 }
 0x78a   : > { %v4708_v38 = vadd.f32 %v4700_v31, %v4685_v14  ;;  %v4701_v60 = vmul.f32 %v6206_v37, %v4476_v51  ;;  %v4843_v31 = vmul.f32 %v6215_v34, %v7943_v10 }
 0x78b   : > { %v4711_v22 = vadd.f32 %v4703_v52, %v4688_v41 }
 0x78c   : > { %v4709_v1 = vadd.f32 %v4701_v60, %v4686_v16  ;;  %v6669_v12 = vpop.f32.mrb[80].mxu0 }
 0x78d   : > { %v4721_v27 = vpack.c.bf16 %v4711_v22, %v4710_v50  ;;  %v4497_v59 = vadd.f32 %v6669_v12, %v6195_v44  ;;  %v4488_v26 = vpop.f32.mrb[81].mxu0  ;;  %v4845_v22 = vmul.f32 %v6215_v34, %v7939_v8  ;;  %v4847_v8 = vmul.f32 %v6215_v34, %v8014_v48 }
 0x78e   : > { %v4720_v24 = vpack.c.bf16 %v4709_v1, %v4708_v38  ;;  %v4489_v32 = vadd.f32 %v6195_v44, %v4488_v26  ;;  %v6670_v55 = vpop.f32.mrb[82].mxu0 }
 0x78f   : > { %v4706_v3 = vmul.f32 %v6206_v37, %v4497_v59  ;;  %v4500_v0 = vadd.f32 %v6670_v55, %v6195_v44  ;;  %v4491_v17 = vpop.f32.mrb[83].mxu0  ;;  %v4848_v55 = vmul.f32 %v6215_v34, %v7973_v19 }
 0x790   : > { %v4704_v46 = vmul.f32 %v6206_v37, %v4489_v32  ;;  %v4492_v61 = vadd.f32 %v6195_v44, %v4491_v17  ;;  %6675 = vmatprep.mubr.msk.bf16.mxu1 %vm1491_vm0, %v4720_v24  ;;  %v6207_v44 = vld [vmem:[%s9269_s1] ss:$0 sm:$0xff]  ;;  %s9273_s1 = sld [smem:[#allocation22_spill]] }
 0x791   : > { %v4714_v18 = vadd.f32 %v4706_v3, %v4691_v15  ;;  %v4707_v2 = vmul.f32 %v6206_v37, %v4500_v0  ;;  %6676 = vmatmul.mubr.msk.bf16.vlgmr.msra.gmra.mrb[84].mxu1 %vm1491_vm0, %v4721_v27 }
 0x792   : > { %v4712_v23 = vadd.f32 %v4704_v46, %v4689_v29  ;;  %v4705_v42 = vmul.f32 %v6206_v37, %v4492_v61 }
 0x793   : > { %v4715_v20 = vadd.f32 %v4707_v2, %v4692_v11 }
 0x794   : > { %v4713_v40 = vadd.f32 %v4705_v42, %v4690_v9 }
 0x795   : > { %v4723_v62 = vpack.c.bf16 %v4715_v20, %v4714_v18 }
 0x796   : > { %v4722_v39 = vpack.c.bf16 %v4713_v40, %v4712_v23 }
 0x798   : > { %6679 = vmatprep.mubr.msk.bf16.mxu1 %vm1491_vm0, %v4722_v39 }
 0x799   : > { %6680 = vmatmul.mubr.msk.bf16.gmra.mrb[88].mxu1 %vm1491_vm0, %v4723_v62 }
 0x864   : > { %v6677_v36 = vpop.f32.mrb[84].mxu1 }
 0x865   : > { %v4798_v56 = vadd.f32 %v6677_v36, %v6207_v44  ;;  %v4789_v57 = vpop.f32.mrb[85].mxu1 }
 0x866   : > { %v4790_v13 = vadd.f32 %v6207_v44, %v4789_v57  ;;  %v6678_v49 = vpop.f32.mrb[86].mxu1 }
 0x867   : > { %v4829_v4 = vadd.f32 %v6214_v53, %v4798_v56  ;;  %v4801_v63 = vadd.f32 %v6678_v49, %v6207_v44  ;;  %v4792_v5 = vpop.f32.mrb[87].mxu1 }
 0x868   : > { %v4827_v37 = vadd.f32 %v6214_v53, %v4790_v13  ;;  %v4793_v35 = vadd.f32 %v6207_v44, %v4792_v5 }
 0x869   : > { %v4830_v51 = vadd.f32 %v6214_v53, %v4801_v63  ;;  %v4852_v50 = vadd.f32 %v4844_v54, %v4829_v4 }
 0x86a   : > { %v4828_v25 = vadd.f32 %v6214_v53, %v4793_v35  ;;  %v4850_v14 = vadd.f32 %v4842_v58, %v4827_v37 }
 0x86b   : > { %v4867_v12 = vsel %vm1491_vm0, %v4852_v50, 0.0  ;;  %v4853_v10 = vadd.f32 %v4845_v22, %v4830_v51 }
 0x86c   : > { %v6681_v41 = vpop.f32.mrb[88].mxu1  ;;  %v4861_v52 = vsel %vm1491_vm0, %v4850_v14, 0.0  ;;  %v4851_v38 = vadd.f32 %v4843_v31, %v4828_v25 }
 0x86d   : > { %v4814_v16 = vadd.f32 %v6681_v41, %v6207_v44  ;;  %4862 = vadd.xlane.f32.xlu0 %v4861_v52  ;;  %v4805_v60 = vpop.f32.mrb[89].mxu1  ;;  %v4870_v33 = vsel %vm1491_vm0, %v4853_v10, 0.0 }
 0x86e   : > { %v4806_v45 = vadd.f32 %v6207_v44, %v4805_v60  ;;  %v6682_v1 = vpop.f32.mrb[90].mxu1  ;;  %v4864_v7 = vsel %vm1491_vm0, %v4851_v38, 0.0 }
 0x86f   : > { %4865 = vadd.xlane.f32.xlu1 %v4864_v7  ;;  %v4808_v6 = vpop.f32.mrb[91].mxu1  ;;  %v4833_v27 = vadd.f32 %v6214_v53, %v4814_v16  ;;  %v4817_v26 = vadd.f32 %v6682_v1, %v6207_v44  ;;  %v7140_v7 = vld [vmem:[%s9272_s23] sm:$0xff]  }
 0x870   : > { %v4831_v59 = vadd.f32 %v6214_v53, %v4806_v45  ;;  %v4809_v30 = vadd.f32 %v6207_v44, %v4808_v6  ;;  %v7141_v6 = vld [vmem:[%s9272_s23 + $0x8] sm:$0xff]   ;;  %6683 = vmatprep.subr.bf16.mxu1 %v7140_v7 }
 0x871   : > { %4868 = vadd.xlane.f32.xlu0 %v4867_v12  ;;  %v4834_v15 = vadd.f32 %v6214_v53, %v4817_v26  ;;  %v4856_v17 = vadd.f32 %v4848_v55, %v4833_v27  ;;  %6684 = vmatpush3.bf16.msra.mxu1 %v7140_v7 }
 0x872   : > { %v4832_v24 = vadd.f32 %v6214_v53, %v4809_v30  ;;  %v4854_v32 = vadd.f32 %v4846_v47, %v4831_v59  ;;  %6685 = vmatprep.subr.bf16.mxu1 %v7141_v6 }
 0x873   : > { %v4879_v46 = vsel %vm1491_vm0, %v4856_v17, 0.0  ;;  %v4857_v61 = vadd.f32 %v4849_v43, %v4834_v15 }
 0x874   : > { %v4873_v3 = vsel %vm1491_vm0, %v4854_v32, 0.0  ;;  %v4855_v0 = vadd.f32 %v4847_v8, %v4832_v24 }
 0x875   : > { %4871 = vadd.xlane.f32.xlu0 %v4870_v33  ;;  %4874 = vadd.xlane.f32.xlu1 %v4873_v3  ;;  %v4882_v19 = vsel %vm1491_vm0, %v4857_v61, 0.0 }
 0x876   : > { %v4876_v29 = vsel %vm1491_vm0, %v4855_v0, 0.0  ;;  %6686 = vmatpush3.bf16.msra.mxu1 %v7141_v6  ;;  %v1403_v6 = vld [vmem:[%s8759_s3 + $0x18] sm:$0xff] }
 0x879   : > { %4877 = vadd.xlane.f32.xlu0 %v4876_v29  ;;  %4880 = vadd.xlane.f32.xlu1 %v4879_v46 }
 0x87d   : > { %4883 = vadd.xlane.f32.xlu0 %v4882_v19  ;;  %v6216_v19 = vld [vmem:[%s9273_s1] ss:$0 sm:$0xff]  ;;  %s9279_s1 = sld [smem:[#allocation27_spill]] }
 0x8fa   : > { %v4863_v48 = vpop.xlane.xlu0 %4862 }
 0x8fb   : > { %v4886_v18 = vmul.f32 0.03125, %v4863_v48 }
 0x8fc   : > { %v4866_v11 = vpop.xlane.xlu1 %4865 }
 0x8fd   : > { %v8710_v2 = vsub.f32 %v4850_v14, %v4886_v18  ;;  %v4887_v23 = vmul.f32 0.03125, %v4866_v11 }
 0x8fe   : > { %v4869_v9 = vpop.xlane.xlu0 %4868 }
 0x8ff   : > { %v8712_v42 = vsub.f32 %v4851_v38, %v4887_v23  ;;  %v4888_v28 = vmul.f32 0.03125, %v4869_v9  ;;  %v4902_v20 = vmul.f32 %v8710_v2, %v8710_v2 }
 0x901   : > { %v8716_v40 = vsub.f32 %v4852_v50, %v4888_v28  ;;  %v4910_v62 = vsel %vm1491_vm0, %v4902_v20, 0.0  ;;  %v4903_v39 = vmul.f32 %v8712_v42, %v8712_v42  ;;  %v6217_v28 = vld [vmem:[%s9274_s28] ss:$0 sm:$0xff]  ;;  %s9280_s28 = sld [smem:[#allocation28_spill]] }
 0x902   : > { %v4872_v44 = vpop.xlane.xlu0 %4871  ;;  %4911 = vadd.xlane.f32.xlu1 %v4910_v62  ;;  %v4875_v36 = vpop.xlane.xlu1 %4874 }
 0x903   : > { %v4889_v53 = vmul.f32 0.03125, %v4872_v44  ;;  %v4890_v56 = vmul.f32 0.03125, %v4875_v36  ;;  %v4913_v57 = vsel %vm1491_vm0, %v4903_v39, 0.0  ;;  %v4904_v34 = vmul.f32 %v8716_v40, %v8716_v40  ;;  %v6218_v36 = vld [vmem:[%s9275_s22] ss:$0 sm:$0xff]  ;;  %s9281_s22 = sld [smem:[#allocation30_spill]] }
 0x904   : > { %4914 = vadd.xlane.f32.xlu0 %v4913_v57 }
 0x905   : > { %v8724_v13 = vsub.f32 %v4853_v10, %v4889_v53  ;;  %v8726_v49 = vsub.f32 %v4854_v32, %v4890_v56  ;;  %v4916_v4 = vsel %vm1491_vm0, %v4904_v34, 0.0 }
 0x906   : > { %v4878_v63 = vpop.xlane.xlu0 %4877  ;;  %4917 = vadd.xlane.f32.xlu1 %v4916_v4  ;;  %v4881_v5 = vpop.xlane.xlu1 %4880 }
 0x907   : > { %v4891_v37 = vmul.f32 0.03125, %v4878_v63  ;;  %v4892_v35 = vmul.f32 0.03125, %v4881_v5  ;;  %v4905_v58 = vmul.f32 %v8724_v13, %v8724_v13  ;;  %v4906_v54 = vmul.f32 %v8726_v49, %v8726_v49 }
 0x909   : > { %v8733_v25 = vsub.f32 %v4855_v0, %v4891_v37  ;;  %v8735_v14 = vsub.f32 %v4856_v17, %v4892_v35  ;;  %v4919_v31 = vsel %vm1491_vm0, %v4905_v58, 0.0  ;;  %v4922_v51 = vsel %vm1491_vm0, %v4906_v54, 0.0  ;;  %v1400_v37 = vld [vmem:[%s8759_s3] sm:$0xff]  ;;  %v1401_v35 = vld [vmem:[%s8759_s3 + $0x8] sm:$0xff] }
 0x90a   : > { %4920 = vadd.xlane.f32.xlu0 %v4919_v31  ;;  %v4884_v50 = vpop.xlane.xlu0 %4883  ;;  %4923 = vadd.xlane.f32.xlu1 %v4922_v51 }
 0x90b   : > { %v4893_v41 = vmul.f32 0.03125, %v4884_v50  ;;  %v4907_v52 = vmul.f32 %v8733_v25, %v8733_v25  ;;  %v4908_v38 = vmul.f32 %v8735_v14, %v8735_v14 }
 0x90d   : > { %v8743_v16 = vsub.f32 %v4857_v61, %v4893_v41  ;;  %v4925_v60 = vsel %vm1491_vm0, %v4907_v52, 0.0  ;;  %v4928_v22 = vsel %vm1491_vm0, %v4908_v38, 0.0 }
 0x90e   : > { %4926 = vadd.xlane.f32.xlu0 %v4925_v60  ;;  %4929 = vadd.xlane.f32.xlu1 %v4928_v22 }
 0x90f   : > { %v4909_v45 = vmul.f32 %v8743_v16, %v8743_v16 }
 0x911   : > { %v4931_v1 = vsel %vm1491_vm0, %v4909_v45, 0.0 }
 0x912   : > { %4932 = vadd.xlane.f32.xlu0 %v4931_v1 }
 0x98f   : > { %v4912_v12 = vpop.xlane.xlu1 %4911 }
 0x990   : > { %v4934_v10 = vmul.f32 0.03125, %v4912_v12 }
 0x991   : > { %v4915_v47 = vpop.xlane.xlu0 %4914 }
 0x992   : > { %v4942_v27 = vadd.f32 1e-05, %v4934_v10  ;;  %v4935_v59 = vmul.f32 0.03125, %v4915_v47 }
 0x993   : > { %v4918_v26 = vpop.xlane.xlu1 %4917 }
 0x994   : > { %7262 = vrsqrt.f32 %v4942_v27  ;;  %v4943_v30 = vadd.f32 1e-05, %v4935_v59  ;;  %v4936_v24 = vmul.f32 0.03125, %v4918_v26 }
 0x996   : > { %7264 = vrsqrt.f32 %v4943_v30  ;;  %v4944_v32 = vadd.f32 1e-05, %v4936_v24 }
 0x997   : > { %v4921_v8 = vpop.xlane.xlu0 %4920  ;;  %v4924_v55 = vpop.xlane.xlu1 %4923 }
 0x998   : > { %7266 = vrsqrt.f32 %v4944_v32  ;;  %v4937_v33 = vmul.f32 0.03125, %v4921_v8  ;;  %v4938_v15 = vmul.f32 0.03125, %v4924_v55  ;;  %v1404_v8 = vld [vmem:[%s8759_s3 + $0x20] sm:$0xff] }
 0x99a   : > { %v4945_v3 = vadd.f32 1e-05, %v4937_v33  ;;  %v4946_v0 = vadd.f32 1e-05, %v4938_v15 }
 0x99b   : > { %v4927_v17 = vpop.xlane.xlu0 %4926  ;;  %v4930_v43 = vpop.xlane.xlu1 %4929 }
 0x99c   : > { %7268 = vrsqrt.f32 %v4945_v3  ;;  %v4939_v29 = vmul.f32 0.03125, %v4927_v17  ;;  %v4940_v46 = vmul.f32 0.03125, %v4930_v43 }
 0x99d   : > { %7270 = vrsqrt.f32 %v4946_v0 }
 0x99e   : > { %v7263_v61 = vpop.eup %7262  ;;  %v4947_v48 = vadd.f32 1e-05, %v4939_v29  ;;  %v4948_v18 = vadd.f32 1e-05, %v4940_v46  ;;  %v1406_v29 = vld [vmem:[%s8759_s3 + $0x30] sm:$0xff]  ;;  %v1407_v46 = vld [vmem:[%s8759_s3 + $0x38] sm:$0xff] }
 0x99f   : > { %v4958_v11 = vmul.f32 %v7263_v61, %v8710_v2  ;;  %v4933_v23 = vpop.xlane.xlu0 %4932 }
 0x9a0   : > { %v7265_v9 = vpop.eup %7264  ;;  %7272 = vrsqrt.f32 %v4947_v48  ;;  %v4941_v20 = vmul.f32 0.03125, %v4933_v23  ;;  %v7142_v23 = vld [vmem:[%s9277_s2] sm:$0xff]  }
 0x9a1   : > { %v4972_v62 = vmul.f32 %v6216_v19, %v4958_v11  ;;  %v4959_v39 = vmul.f32 %v7265_v9, %v8712_v42  ;;  %7274 = vrsqrt.f32 %v4948_v18  ;;  %v7143_v9 = vld [vmem:[%s9277_s2 + $0x8] sm:$0xff]   ;;  %6695 = vmatprep.subr.bf16.mxu0 %v7142_v23 }
 0x9a2   : > { %v7267_v44 = vpop.eup %7266  ;;  %v4949_v53 = vadd.f32 1e-05, %v4941_v20  ;;  %6696 = vmatpush3.bf16.msra.mxu0 %v7142_v23  ;;  %v7145_v20 = vld [vmem:[%s9277_s2 + $0x18] sm:$0xff]  }
 0x9a3   : > { %v4973_v56 = vmul.f32 %v6216_v19, %v4959_v39  ;;  %v4960_v57 = vmul.f32 %v7267_v44, %v8716_v40  ;;  %v4986_v2 = vadd.f32 %v6217_v28, %v4972_v62  ;;  %6697 = vmatprep.subr.bf16.mxu0 %v7143_v9 }
 0x9a4   : > { %7276 = vrsqrt.f32 %v4949_v53 }
 0x9a5   : > { %v4974_v34 = vmul.f32 %v6216_v19, %v4960_v57  ;;  %v4987_v4 = vadd.f32 %v6217_v28, %v4973_v56  ;;  %v5000_v63 = vmul.f32 %v6218_v36, %v4986_v2 }
 0x9a6   : > { %v7269_v5 = vpop.eup %7268  ;;  %6698 = vmatpush3.bf16.msra.mxu0 %v7143_v9  ;;  %v8865_v9 = vld [vmem:[%s9279_s1] ss:$0 sm:$0xff] }
 0x9a7   : > { %v7271_v42 = vpop.eup %7270  ;;  %v4988_v58 = vadd.f32 %v6217_v28, %v4974_v34  ;;  %v4961_v54 = vmul.f32 %v7269_v5, %v8724_v13  ;;  %v5001_v31 = vmul.f32 %v6218_v36, %v4987_v4  ;;  %v8766_v41 = vadd.f32 %v5000_v63, %v1400_v37  ;;  %v1402_v13 = vld [vmem:[%s8759_s3 + $0x10] sm:$0xff] }
 0x9a8   : > { %v4962_v51 = vmul.f32 %v7271_v42, %v8726_v49 }
 0x9a9   : > { %v4975_v50 = vmul.f32 %v6216_v19, %v4961_v54  ;;  %v8768_v40 = vadd.f32 %v5001_v31, %v1401_v35  ;;  %v5002_v38 = vmul.f32 %v6218_v36, %v4988_v58 }
 0x9aa   : > { %v7273_v52 = vpop.eup %7272  ;;  %v4976_v60 = vmul.f32 %v6216_v19, %v4962_v51 }
 0x9ab   : > { %v7275_v22 = vpop.eup %7274  ;;  %v4989_v45 = vadd.f32 %v6217_v28, %v4975_v50  ;;  %v4963_v1 = vmul.f32 %v7273_v52, %v8733_v25  ;;  %v5020_v7 = vpack.c.bf16 %v8768_v40, %v8766_v41  ;;  %v8777_v26 = vadd.f32 %v5002_v38, %v1402_v13 }
 0x9ac   : > { %v4964_v49 = vmul.f32 %v7275_v22, %v8735_v14  ;;  %v4990_v12 = vadd.f32 %v6217_v28, %v4976_v60  ;;  %v1405_v14 = vld [vmem:[%s8759_s3 + $0x28] sm:$0xff]  ;;  %s9278_s3 = sld [smem:[#allocation26_spill]] }
 0x9ad   : > { %v5003_v10 = vmul.f32 %v6218_v36, %v4989_v45  ;;  %v4977_v47 = vmul.f32 %v6216_v19, %v4963_v1  ;;  %6687 = vmatprep.mubr.msk.bf16.mxu1 %vm1491_vm0, %v5020_v7 }
 0x9ae   : > { %v7277_v27 = vpop.eup %7276  ;;  %v4978_v59 = vmul.f32 %v6216_v19, %v4964_v49  ;;  %v5004_v32 = vmul.f32 %v6218_v36, %v4990_v12 }
 0x9af   : > { %v4965_v25 = vmul.f32 %v7277_v27, %v8743_v16  ;;  %v8780_v30 = vadd.f32 %v5003_v10, %v1403_v6  ;;  %v4991_v24 = vadd.f32 %v6217_v28, %v4977_v47 }
 0x9b0   : > { %v4992_v55 = vadd.f32 %v6217_v28, %v4978_v59  ;;  %v8787_v0 = vadd.f32 %v5004_v32, %v1404_v8 }
 0x9b1   : > { %v4979_v33 = vmul.f32 %v6216_v19, %v4965_v25  ;;  %v5021_v15 = vpack.c.bf16 %v8780_v30, %v8777_v26  ;;  %v5005_v3 = vmul.f32 %v6218_v36, %v4991_v24 }
 0x9b2   : > { %v5006_v43 = vmul.f32 %v6218_v36, %v4992_v55  ;;  %v6219_v62 = vld [vmem:[%s9278_s3] ss:$0 sm:$0xff]  ;;  %s9282_s3 = sld [smem:[#allocation31_spill]] }
 0x9b3   : > { %6688 = vmatmul.mubr.msk.bf16.vlgmr.msra.gmra.mrb[92].mxu1 %vm1491_vm0, %v5021_v15  ;;  %v8789_v17 = vadd.f32 %v5005_v3, %v1405_v14  ;;  %v4993_v16 = vadd.f32 %v6217_v28, %v4979_v33  ;;  %v7144_v28 = vld [vmem:[%s9277_s2 + $0x10] sm:$0xff]  }
 0x9b4   : > { %v8796_v19 = vadd.f32 %v5006_v43, %v1406_v29  ;;  %6699 = vmatprep.subr.bf16.mxu0 %v7144_v28 }
 0x9b5   : > { %v5022_v61 = vpack.c.bf16 %v8789_v17, %v8787_v0  ;;  %v5007_v48 = vmul.f32 %v6218_v36, %v4993_v16  ;;  %6700 = vmatpush3.bf16.msra.mxu0 %v7144_v28 }
 0x9b6   : > { %6701 = vmatprep.subr.bf16.mxu0 %v7145_v20 }
 0x9b7   : > { %6691 = vmatprep.mubr.msk.bf16.mxu1 %vm1491_vm0, %v5022_v61  ;;  %v8798_v18 = vadd.f32 %v5007_v48, %v1407_v46 }
 0x9b9   : > { %v5023_v11 = vpack.c.bf16 %v8798_v18, %v8796_v19  ;;  %6702 = vmatpush3.bf16.msra.mxu0 %v7145_v20  ;;  %v5230_v20 = vld [vmem:[#allocation3] sm:$0xff] }
 0x9bb   : > { %6692 = vmatmul.mubr.msk.bf16.gmra.mrb[96].mxu1 %vm1491_vm0, %v5023_v11 }
 0xa86   : > { %v6689_v39 = vpop.f32.mrb[92].mxu1 }
 0xa87   : > { %v8818_v44 = vadd.f32 %v6689_v39, %v6219_v62  ;;  %v5089_v36 = vpop.f32.mrb[93].mxu1 }
 0xa88   : > { %v8820_v53 = vadd.f32 %v6219_v62, %v5089_v36  ;;  %v6690_v21 = vpop.f32.mrb[94].mxu1 }
 0xa89   : > { %v5130_v56 = vmul.f32 0.044715, %v8818_v44  ;;  %v8823_v57 = vadd.f32 %v6690_v21, %v6219_v62  ;;  %v5092_v2 = vpop.f32.mrb[95].mxu1 }
 0xa8a   : > { %v5128_v34 = vmul.f32 0.044715, %v8820_v53  ;;  %v8826_v4 = vadd.f32 %v6219_v62, %v5092_v2 }
 0xa8b   : > { %v5138_v63 = vmul.f32 %v5130_v56, %v8818_v44  ;;  %v5131_v5 = vmul.f32 0.044715, %v8823_v57  ;;  %v5122_v56 = vmul.f32 0.5, %v8818_v44 }
 0xa8c   : > { %v5136_v37 = vmul.f32 %v5128_v34, %v8820_v53  ;;  %v5129_v35 = vmul.f32 0.044715, %v8826_v4  ;;  %v8871_v34 = vld [vmem:[%s9280_s28] ss:$0 sm:$0xff]  ;;  %s9283_s28 = sld [smem:[#allocation32_spill]] }
 0xa8d   : > { %v5146_v42 = vmul.f32 %v5138_v63, %v8818_v44  ;;  %v5139_v58 = vmul.f32 %v5131_v5, %v8823_v57  ;;  %v5245_v5 = vmul.f32 %v8865_v9, %v5230_v20 }
 0xa8e   : > { %v5144_v54 = vmul.f32 %v5136_v37, %v8820_v53  ;;  %v5137_v31 = vmul.f32 %v5129_v35, %v8826_v4  ;;  %v6693_v51 = vpop.f32.mrb[96].mxu1  ;;  %v5120_v35 = vmul.f32 0.5, %v8820_v53 }
 0xa8f   : > { %v5154_v50 = vadd.f32 %v5146_v42, %v8818_v44  ;;  %v5147_v52 = vmul.f32 %v5139_v58, %v8823_v57  ;;  %v8838_v38 = vadd.f32 %v6693_v51, %v6219_v62  ;;  %v5105_v60 = vpop.f32.mrb[97].mxu1  ;;  %v8876_v58 = vld [vmem:[%s9279_s1 + $0x1] ss:$0 sm:$0xff] }
 0xa90   : > { %v5152_v22 = vadd.f32 %v5144_v54, %v8820_v53  ;;  %v5145_v45 = vmul.f32 %v5137_v31, %v8826_v4  ;;  %v8842_v1 = vadd.f32 %v6219_v62, %v5105_v60  ;;  %v6694_v7 = vpop.f32.mrb[98].mxu1  ;;  %v5261_v54 = vld [vmem:[#allocation3 + $0x1] sm:$0xff]  ;;  %v5121_v60 = vmul.f32 0.5, %v8826_v4 }
 0xa91   : > { %v5162_v13 = vmul.f32 0.7978846, %v5154_v50  ;;  %v5155_v49 = vadd.f32 %v5147_v52, %v8823_v57  ;;  %v5134_v6 = vmul.f32 0.044715, %v8838_v38  ;;  %v5108_v12 = vpop.f32.mrb[99].mxu1  ;;  %v8849_v24 = vadd.f32 %v6694_v7, %v6219_v62 }
 0xa92   : > { %v5160_v10 = vmul.f32 0.7978846, %v5152_v22  ;;  %v5153_v47 = vadd.f32 %v5145_v45, %v8826_v4  ;;  %v5132_v27 = vmul.f32 0.044715, %v8842_v1  ;;  %v8852_v14 = vadd.f32 %v6219_v62, %v5108_v12 }
 0xa93   : > { %7278 = vtanh.f32 %v5162_v13  ;;  %v5163_v59 = vmul.f32 0.7978846, %v5155_v49  ;;  %v5142_v25 = vmul.f32 %v5134_v6, %v8838_v38  ;;  %v5135_v33 = vmul.f32 0.044715, %v8849_v24  ;;  %v8885_v13 = vld [vmem:[%s9279_s1 + $0x2] ss:$0 sm:$0xff] }
 0xa94   : > { %7280 = vtanh.f32 %v5160_v10  ;;  %v5161_v32 = vmul.f32 0.7978846, %v5153_v47  ;;  %v5140_v8 = vmul.f32 %v5132_v27, %v8842_v1  ;;  %v5133_v3 = vmul.f32 0.044715, %v8852_v14 }
 0xa95   : > { %7282 = vtanh.f32 %v5163_v59  ;;  %v5150_v55 = vmul.f32 %v5142_v25, %v8838_v38  ;;  %v5143_v43 = vmul.f32 %v5135_v33, %v8849_v24  ;;  %v5123_v50 = vmul.f32 0.5, %v8823_v57  ;;  %v5293_v57 = vld [vmem:[#allocation3 + $0x2] sm:$0xff] }
 0xa96   : > { %7284 = vtanh.f32 %v5161_v32  ;;  %v5148_v15 = vmul.f32 %v5140_v8, %v8842_v1  ;;  %v5141_v46 = vmul.f32 %v5133_v3, %v8852_v14  ;;  %v5253_v53 = vadd.f32 %v8871_v34, %v5245_v5  ;;  %v8893_v32 = vld [vmem:[%s9279_s1 + $0x4] ss:$0 sm:$0xff] }
 0xa97   : > { %v5158_v16 = vadd.f32 %v5150_v55, %v8838_v38  ;;  %v5151_v48 = vmul.f32 %v5143_v43, %v8849_v24  ;;  %v5277_v7 = vmul.f32 %v8876_v58, %v5261_v54  ;;  %v5126_v12 = vmul.f32 0.5, %v8838_v38 }
 0xa98   : > { %v5156_v29 = vadd.f32 %v5148_v15, %v8842_v1  ;;  %v5149_v23 = vmul.f32 %v5141_v46, %v8852_v14  ;;  %v5309_v27 = vmul.f32 %v8885_v13, %v5293_v57  ;;  %v5124_v59 = vmul.f32 0.5, %v8842_v1 }
 0xa99   : > { %v5166_v61 = vmul.f32 0.7978846, %v5158_v16  ;;  %v5159_v28 = vadd.f32 %v5151_v48, %v8849_v24  ;;  %v5285_v47 = vadd.f32 %v5277_v7, %v5253_v53  ;;  %v5127_v1 = vmul.f32 0.5, %v8849_v24 }
 0xa9a   : > { %v5164_v11 = vmul.f32 0.7978846, %v5156_v29  ;;  %v5157_v62 = vadd.f32 %v5149_v23, %v8852_v14  ;;  %v5125_v43 = vmul.f32 0.5, %v8852_v14  ;;  %v8911_v23 = vld [vmem:[%s9279_s1 + $0x3] ss:$0 sm:$0xff] }
 0xa9b   : > { %7286 = vtanh.f32 %v5166_v61  ;;  %v5167_v36 = vmul.f32 0.7978846, %v5159_v28  ;;  %v5317_v61 = vadd.f32 %v5309_v27, %v5285_v47 }
 0xa9c   : > { %7288 = vtanh.f32 %v5164_v11  ;;  %v5165_v63 = vmul.f32 0.7978846, %v5157_v62 }
 0xa9d   : > { %v7279_v39 = vpop.eup %7278  ;;  %7290 = vtanh.f32 %v5167_v36 }
 0xa9e   : > { %v7281_v21 = vpop.eup %7280  ;;  %v5178_v2 = vadd.f32 1.0, %v7279_v39  ;;  %7292 = vtanh.f32 %v5165_v63 }
 0xa9f   : > { %v7283_v37 = vpop.eup %7282  ;;  %v5176_v42 = vadd.f32 1.0, %v7281_v21 }
 0xaa0   : > { %v7285_v31 = vpop.eup %7284  ;;  %v5186_v51 = vmul.f32 %v5178_v2, %v5122_v56  ;;  %v5179_v44 = vadd.f32 1.0, %v7283_v37 }
 0xaa1   : > { %v5184_v52 = vmul.f32 %v5176_v42, %v5120_v35  ;;  %v5177_v22 = vadd.f32 1.0, %v7285_v31 }
 0xaa2   : > { %5216 = vst.msk [vmem:[#allocation3 + $0x31] sm:$0xff] %vm3075_vm5, %v5186_v51  ;;  %v5187_v45 = vmul.f32 %v5179_v44, %v5123_v50  ;;  %v8906_v48 = vmul.f32 %v8893_v32, %v5186_v51  ;;  %v8930_v51 = vld [vmem:[%s9279_s1 + $0x5] ss:$0 sm:$0xff] }
 0xaa3   : > { %5214 = vst.msk [vmem:[#allocation3 + $0x11] sm:$0xff] %vm3075_vm5, %v5184_v52  ;;  %v5185_v49 = vmul.f32 %v5177_v22, %v5121_v60  ;;  %v5365_v24 = vmul.f32 %v8893_v32, %v5184_v52 }
 0xaa4   : > { %5217 = vst.msk [vmem:[#allocation3 + $0x41] sm:$0xff] %vm3075_vm5, %v5187_v45  ;;  %v5368_v21 = vmul.f32 %v8893_v32, %v5187_v45 }
 0xaa5   : > { %v7287_v6 = vpop.eup %7286  ;;  %5215 = vst.msk [vmem:[#allocation3 + $0x21] sm:$0xff] %vm3075_vm5, %v5185_v49  ;;  %v5366_v50 = vmul.f32 %v8893_v32, %v5185_v49 }
 0xaa6   : > { %v7289_v4 = vpop.eup %7288  ;;  %v5182_v10 = vadd.f32 1.0, %v7287_v6 }
 0xaa7   : > { %v5180_v25 = vadd.f32 1.0, %v7289_v4  ;;  %v7291_v55 = vpop.eup %7290  ;;  %v8947_v4 = vld [vmem:[%s9279_s1 + $0x6] ss:$0 sm:$0xff] }
 0xaa8   : > { %v8895_v8 = vmul.f32 %v5182_v10, %v5126_v12  ;;  %v7293_v16 = vpop.eup %7292  ;;  %v5183_v28 = vadd.f32 1.0, %v7291_v55  ;;  %v8950_v10 = vld [vmem:[%s9279_s1 + $0x7] ss:$0 sm:$0xff] }
 0xaa9   : > { %v8897_v33 = vld [vmem:[#allocation3 + $0x30] sm:$0xff]  ;;  %v5188_v3 = vmul.f32 %v5180_v25, %v5124_v59  ;;  %v5181_v20 = vadd.f32 1.0, %v7293_v16 }
 0xaaa   : > { %v5264_v15 = vld [vmem:[#allocation3 + $0x31] sm:$0xff]  ;;  %v5248_v38 = vmul.f32 %v8865_v9, %v8897_v33  ;;  %5220 = vst.msk [vmem:[#allocation3 + $0x71] sm:$0xff] %vm3075_vm5, %v8895_v8  ;;  %v8923_v63 = vmul.f32 %v5183_v28, %v5127_v1 }
 0xaab   : > { %v5231_v29 = vld [vmem:[#allocation3 + $0x10] sm:$0xff]  ;;  %5218 = vst.msk [vmem:[#allocation3 + $0x51] sm:$0xff] %vm3075_vm5, %v5188_v3  ;;  %v5280_v39 = vmul.f32 %v8876_v58, %v5264_v15  ;;  %v8918_v36 = vld [vmem:[#allocation3 + $0x40] sm:$0xff]  ;;  %v5189_v5 = vmul.f32 %v5181_v20, %v5125_v43  ;;  %v8937_v22 = vmul.f32 %v8893_v32, %v5188_v3 }
 0xaac   : > { %v5262_v46 = vld [vmem:[#allocation3 + $0x11] sm:$0xff]  ;;  %v5246_v62 = vmul.f32 %v8865_v9, %v5231_v29  ;;  %v5256_v14 = vadd.f32 %v8871_v34, %v5248_v38  ;;  %v8921_v2 = vld [vmem:[#allocation3 + $0x42] sm:$0xff]  ;;  %v5341_v44 = vmul.f32 %v8911_v23, %v5231_v29  ;;  %v5344_v60 = vmul.f32 %v8911_v23, %v8918_v36  ;;  %5221 = vst.msk [vmem:[#allocation3 + $0x81] sm:$0xff] %vm3075_vm5, %v8923_v63 }
 0xaad   : > { %v8908_v11 = vld [vmem:[#allocation3 + $0x32] sm:$0xff]  ;;  %v5278_v35 = vmul.f32 %v8876_v58, %v5262_v46  ;;  %v5326_v42 = vld [vmem:[#allocation3 + $0x20] sm:$0xff]  ;;  %5219 = vst.msk [vmem:[#allocation3 + $0x61] sm:$0xff] %vm3075_vm5, %v5189_v5  ;;  %v5400_v49 = vmul.f32 %v8930_v51, %v8921_v2  ;;  %v8953_v47 = vmul.f32 %v8893_v32, %v5189_v5  ;;  %v8959_v38 = vld [vmem:[%s9279_s1 + $0x8] ss:$0 sm:$0xff]  ;;  %v5431_v29 = vmul.f32 %v8947_v4, %v8897_v33 }
 0xaae   : > { %v5294_v56 = vld [vmem:[#allocation3 + $0x12] sm:$0xff]  ;;  %v5254_v37 = vadd.f32 %v8871_v34, %v5246_v62  ;;  %v5288_v54 = vadd.f32 %v5280_v39, %v5256_v14  ;;  %v5312_v31 = vmul.f32 %v8885_v13, %v8908_v11  ;;  %v5382_v52 = vld [vmem:[#allocation3 + $0x22] sm:$0xff]  ;;  %v5342_v57 = vmul.f32 %v8911_v23, %v5326_v42 }
 0xaaf   : > { %v5310_v53 = vmul.f32 %v8885_v13, %v5294_v56  ;;  %v5349_v6 = vadd.f32 %v5341_v44, %v5317_v61  ;;  %v5446_v12 = vld [vmem:[#allocation3 + $0x21] sm:$0xff]  ;;  %v5397_v59 = vmul.f32 %v8930_v51, %v5294_v56  ;;  %v5398_v25 = vmul.f32 %v8930_v51, %v5382_v52 }
 0xab0   : > { %v5286_v45 = vadd.f32 %v5278_v35, %v5254_v37  ;;  %v5320_v7 = vadd.f32 %v5312_v31, %v5288_v54  ;;  %v5430_v16 = vmul.f32 %v8947_v4, %v5326_v42  ;;  %v5247_v1 = vmul.f32 %v8865_v9, %v5326_v42 }
 0xab1   : > { %v5373_v3 = vadd.f32 %v5365_v24, %v5349_v6  ;;  %v5462_v46 = vmul.f32 %v8950_v10, %v5446_v12  ;;  %v5463_v61 = vmul.f32 %v8950_v10, %v5264_v15  ;;  %v5279_v24 = vmul.f32 %v8876_v58, %v5446_v12 }
 0xab2   : > { %v5318_v27 = vadd.f32 %v5310_v53, %v5286_v45  ;;  %v5352_v55 = vadd.f32 %v5344_v60, %v5320_v7  ;;  %v5417_v28 = vld [vmem:[#allocation3 + $0x50] sm:$0xff]  ;;  %v5255_v14 = vadd.f32 %v8871_v34, %v5247_v1  ;;  %v5494_v56 = vmul.f32 %v8959_v38, %v5382_v52 }
 0xab3   : > { %v5405_v62 = vadd.f32 %v5397_v59, %v5373_v3  ;;  %v5495_v5 = vmul.f32 %v8959_v38, %v8908_v11  ;;  %v5311_v37 = vmul.f32 %v8885_v13, %v5382_v52  ;;  %v5449_v35 = vld [vmem:[#allocation3 + $0x51] sm:$0xff]  ;;  %v5433_v15 = vmul.f32 %v8947_v4, %v5417_v28 }
 0xab4   : > { %v5350_v43 = vadd.f32 %v5342_v57, %v5318_v27  ;;  %v5376_v20 = vadd.f32 %v5368_v21, %v5352_v55  ;;  %v5287_v31 = vadd.f32 %v5279_v24, %v5255_v14  ;;  %v5448_v21 = vld [vmem:[#allocation3 + $0x41] sm:$0xff]  ;;  %v5343_v60 = vmul.f32 %v8911_v23, %v8897_v33  ;;  %v5481_v12 = vld [vmem:[#allocation3 + $0x52] sm:$0xff] }
 0xab5   : > { %v5438_v54 = vadd.f32 %v5430_v16, %v5405_v62  ;;  %v5249_v45 = vmul.f32 %v8865_v9, %v8918_v36  ;;  %v5465_v52 = vmul.f32 %v8950_v10, %v5449_v35  ;;  %v5281_v59 = vmul.f32 %v8876_v58, %v5448_v21 }
 0xab6   : > { %v5374_v39 = vadd.f32 %v5366_v50, %v5350_v43  ;;  %v5408_v42 = vadd.f32 %v5400_v49, %v5376_v20  ;;  %v5399_v50 = vmul.f32 %v8930_v51, %v8908_v11  ;;  %v5319_v53 = vadd.f32 %v5311_v37, %v5287_v31 }
 0xab7   : > { %v5250_v49 = vmul.f32 %v8865_v9, %v5417_v28  ;;  %v5470_v6 = vadd.f32 %v5462_v46, %v5438_v54  ;;  %v5257_v27 = vadd.f32 %v8871_v34, %v5249_v45  ;;  %v5432_v11 = vmul.f32 %v8947_v4, %v8918_v36 }
 0xab8   : > { %v5406_v44 = vadd.f32 %v5398_v25, %v5374_v39  ;;  %v5441_v7 = vadd.f32 %v5433_v15, %v5408_v42  ;;  %v5351_v33 = vadd.f32 %v5343_v60, %v5319_v53  ;;  %v5282_v55 = vmul.f32 %v8876_v58, %v5449_v35  ;;  %v5386_v35 = vld [vmem:[#allocation3 + $0x62] sm:$0xff]  ;;  %v5419_v15 = vld [vmem:[#allocation3 + $0x70] sm:$0xff] }
 0xab9   : > { %v5258_v25 = vadd.f32 %v8871_v34, %v5250_v49  ;;  %v5289_v1 = vadd.f32 %v5281_v59, %v5257_v27  ;;  %v5313_v43 = vmul.f32 %v8885_v13, %v8921_v2  ;;  %v5314_v62 = vmul.f32 %v8885_v13, %v5481_v12  ;;  %v5483_v59 = vld [vmem:[#allocation3 + $0x72] sm:$0xff] }
 0xaba   : > { %v5439_v57 = vadd.f32 %v5431_v29, %v5406_v44  ;;  %v5473_v16 = vadd.f32 %v5465_v52, %v5441_v7  ;;  %v5330_v29 = vld [vmem:[#allocation3 + $0x60] sm:$0xff]  ;;  %v5375_v46 = vadd.f32 %v8906_v48, %v5351_v33  ;;  %v5345_v14 = vmul.f32 %v8911_v23, %v5417_v28 }
 0xabb   : > { %v5290_v20 = vadd.f32 %v5282_v55, %v5258_v25  ;;  %v5502_v24 = vadd.f32 %v5494_v56, %v5470_v6  ;;  %v5497_v39 = vmul.f32 %v8959_v38, %v5481_v12  ;;  %v5321_v37 = vadd.f32 %v5313_v43, %v5289_v1  ;;  %v5450_v28 = vld [vmem:[#allocation3 + $0x61] sm:$0xff] }
 0xabc   : > { %v5471_v3 = vadd.f32 %v5463_v61, %v5439_v57  ;;  %v5407_v61 = vadd.f32 %v5399_v50, %v5375_v46  ;;  %v5464_v42 = vmul.f32 %v8950_v10, %v5448_v21  ;;  %v5346_v31 = vmul.f32 %v8911_v23, %v5330_v29  ;;  %v5451_v50 = vld [vmem:[#allocation3 + $0x71] sm:$0xff]  ;;  %v5332_v1 = vld [vmem:[#allocation3 + $0x80] sm:$0xff] }
 0xabd   : > { %v5322_v54 = vadd.f32 %v5314_v62, %v5290_v20  ;;  %v5496_v48 = vmul.f32 %v8959_v38, %v8921_v2  ;;  %v5505_v60 = vadd.f32 %v5497_v39, %v5473_v16  ;;  %v5353_v45 = vadd.f32 %v5345_v14, %v5321_v37  ;;  %v5421_v37 = vld [vmem:[#allocation3 + $0x90] sm:$0xff] }
 0xabe   : > { %v5503_v36 = vadd.f32 %v5495_v5, %v5471_v3  ;;  %v5440_v56 = vadd.f32 %v5432_v11, %v5407_v61  ;;  %v5401_v53 = vmul.f32 %v8930_v51, %v5481_v12  ;;  %v5402_v7 = vmul.f32 %v8930_v51, %v5386_v35 }
 0xabf   : > { %v5354_v5 = vadd.f32 %v5346_v31, %v5322_v54  ;;  %v5377_v21 = vadd.f32 %v8937_v22, %v5353_v45  ;;  %v5434_v52 = vmul.f32 %v8947_v4, %v5330_v29  ;;  %v5251_v49 = vmul.f32 %v8865_v9, %v5330_v29 }
 0xac0   : > { %v5518_v44 = vpack.c.bf16 %v5503_v36, %v5502_v24  ;;  %v5252_v2 = vmul.f32 %v8865_v9, %v5419_v15  ;;  %v5472_v57 = vadd.f32 %v5464_v42, %v5440_v56  ;;  %v5435_v27 = vmul.f32 %v8947_v4, %v5419_v15 }
 0xac1   : > { %v5378_v6 = vadd.f32 %v8953_v47, %v5354_v5  ;;  %v5283_v12 = vmul.f32 %v8876_v58, %v5450_v28  ;;  %v5409_v33 = vadd.f32 %v5401_v53, %v5377_v21  ;;  %v5259_v11 = vadd.f32 %v8871_v34, %v5251_v49  ;;  %v5485_v21 = vld [vmem:[#allocation3 + $0x92] sm:$0xff] }
 0xac2   : > { %6703 = vmatprep.mubr.msk.bf16.mxu0 %vm3075_vm5, %v5518_v44  ;;  %v5260_v25 = vadd.f32 %v8871_v34, %v5252_v2  ;;  %v5284_v22 = vmul.f32 %v8876_v58, %v5451_v50  ;;  %v5504_v55 = vadd.f32 %v5496_v48, %v5472_v57  ;;  %v5466_v16 = vmul.f32 %v8950_v10, %v5450_v28  ;;  %v5453_v28 = vld [vmem:[#allocation3 + $0x91] sm:$0xff] }
 0xac3   : > { %v5410_v3 = vadd.f32 %v5402_v7, %v5378_v6  ;;  %v5315_v9 = vmul.f32 %v8885_v13, %v5386_v35  ;;  %v5442_v47 = vadd.f32 %v5434_v52, %v5409_v33  ;;  %v5291_v43 = vadd.f32 %v5283_v12, %v5259_v11 }
 0xac4   : > { %v5292_v29 = vadd.f32 %v5284_v22, %v5260_v25  ;;  %v5316_v46 = vmul.f32 %v8885_v13, %v5483_v59  ;;  %v5519_v20 = vpack.c.bf16 %v5505_v60, %v5504_v55  ;;  %v5467_v14 = vmul.f32 %v8950_v10, %v5451_v50  ;;  %v5388_v13 = vld [vmem:[#allocation3 + $0x82] sm:$0xff] }
 0xac5   : > { %v5443_v62 = vadd.f32 %v5435_v27, %v5410_v3  ;;  %v5347_v34 = vmul.f32 %v8911_v23, %v5419_v15  ;;  %v5474_v24 = vadd.f32 %v5466_v16, %v5442_v47  ;;  %v5323_v58 = vadd.f32 %v5315_v9, %v5291_v43  ;;  %v5452_v50 = vld [vmem:[#allocation3 + $0x81] sm:$0xff] }
 0xac6   : > { %v5324_v36 = vadd.f32 %v5316_v46, %v5292_v29  ;;  %v5348_v39 = vmul.f32 %v8911_v23, %v5332_v1  ;;  %6704 = vmatmul.mubr.msk.bf16.vlgmr.msra.gmra.mrb[84].mxu0 %vm3075_vm5, %v5519_v20  ;;  %v5498_v42 = vmul.f32 %v8959_v38, %v5386_v35  ;;  %v5499_v54 = vmul.f32 %v8959_v38, %v5483_v59 }
 0xac7   : > { %v5475_v61 = vadd.f32 %v5467_v14, %v5443_v62  ;;  %v5371_v31 = vmul.f32 %v8893_v32, %v8895_v8  ;;  %v5372_v15 = vmul.f32 %v8893_v32, %v8923_v63  ;;  %v5355_v44 = vadd.f32 %v5347_v34, %v5323_v58 }
 0xac8   : > { %v5356_v48 = vadd.f32 %v5348_v39, %v5324_v36  ;;  %v5506_v60 = vadd.f32 %v5498_v42, %v5474_v24  ;;  %v5437_v23 = vmul.f32 %v8947_v4, %v5421_v37  ;;  %v5403_v35 = vmul.f32 %v8930_v51, %v5483_v59 }
 0xac9   : > { %v5507_v45 = vadd.f32 %v5499_v54, %v5475_v61  ;;  %v5379_v56 = vadd.f32 %v5371_v31, %v5355_v44  ;;  %v5404_v53 = vmul.f32 %v8930_v51, %v5388_v13  ;;  %v5436_v32 = vmul.f32 %v8947_v4, %v5332_v1  ;;  %v6244_v4 = vld [vmem:[%s9281_s22] ss:$0 sm:$0xff]  ;;  %s9284_s22 = sld [smem:[#allocation33_spill]] }
 0xaca   : > { %v5380_v5 = vadd.f32 %v5372_v15, %v5356_v48  ;;  %v5469_v63 = vmul.f32 %v8950_v10, %v5453_v28  ;;  %v5468_v57 = vmul.f32 %v8950_v10, %v5452_v50  ;;  %v5501_v6 = vmul.f32 %v8959_v38, %v5485_v21 }
 0xacb   : > { %v5520_v7 = vpack.c.bf16 %v5507_v45, %v5506_v60  ;;  %v5411_v8 = vadd.f32 %v5403_v35, %v5379_v56  ;;  %v5500_v59 = vmul.f32 %v8959_v38, %v5388_v13 }
 0xacc   : > { %v5412_v52 = vadd.f32 %v5404_v53, %v5380_v5 }
 0xacd   : > { %6707 = vmatprep.mubr.msk.bf16.mxu0 %vm3075_vm5, %v5520_v7  ;;  %v5444_v49 = vadd.f32 %v5436_v32, %v5411_v8 }
 0xace   : > { %v5445_v2 = vadd.f32 %v5437_v23, %v5412_v52 }
 0xacf   : > { %v5476_v27 = vadd.f32 %v5468_v57, %v5444_v49 }
 0xad0   : > { %v5477_v51 = vadd.f32 %v5469_v63, %v5445_v2 }
 0xad1   : > { %v5508_v12 = vadd.f32 %v5500_v59, %v5476_v27 }
 0xad2   : > { %v5509_v33 = vadd.f32 %v5501_v6, %v5477_v51 }
 0xad4   : > { %v5521_v11 = vpack.c.bf16 %v5509_v33, %v5508_v12 }
 0xad6   : > { %6708 = vmatmul.mubr.msk.bf16.gmra.mrb[88].mxu0 %vm3075_vm5, %v5521_v11 }
 0xb99   : > { %v6705_v25 = vpop.f32.mrb[84].mxu0 }
 0xb9a   : > { %v5608_v22 = vadd.f32 %v6705_v25, %v6244_v4  ;;  %v5599_v55 = vpop.f32.mrb[85].mxu0 }
 0xb9b   : > { %v6706_v3 = vpop.f32.mrb[86].mxu0  ;;  %v5600_v16 = vadd.f32 %v6244_v4, %v5599_v55 }
 0xb9c   : > { %v5611_v9 = vadd.f32 %v6706_v3, %v6244_v4  ;;  %v5602_v1 = vpop.f32.mrb[87].mxu0  ;;  %v5639_v10 = vsel %vm1491_vm0, %v5608_v22, 0.0 }
 0xb9d   : > { %5640 = vadd.xlane.f32.xlu1 %v5639_v10  ;;  %v5603_v47 = vadd.f32 %v6244_v4, %v5602_v1  ;;  %v5633_v38 = vsel %vm1491_vm0, %v5600_v16, 0.0 }
 0xb9e   : > { %v5642_v43 = vsel %vm1491_vm0, %v5611_v9, 0.0 }
 0xb9f   : > { %5643 = vadd.xlane.f32.xlu0 %v5642_v43  ;;  %v5636_v29 = vsel %vm1491_vm0, %v5603_v47, 0.0 }
 0xba1   : > { %5634 = vadd.xlane.f32.xlu1 %v5633_v38 }
 0xba3   : > { %5637 = vadd.xlane.f32.xlu0 %v5636_v29 }
 0xba9   : > { %v6709_v46 = vpop.f32.mrb[88].mxu0 }
 0xbaa   : > { %v5615_v20 = vpop.f32.mrb[89].mxu0  ;;  %v5624_v24 = vadd.f32 %v6709_v46, %v6244_v4 }
 0xbab   : > { %v5616_v62 = vadd.f32 %v6244_v4, %v5615_v20  ;;  %v6710_v14 = vpop.f32.mrb[90].mxu0 }
 0xbac   : > { %v5618_v34 = vpop.f32.mrb[91].mxu0  ;;  %v5627_v39 = vadd.f32 %v6710_v14, %v6244_v4  ;;  %v5651_v61 = vsel %vm1491_vm0, %v5624_v24, 0.0 }
 0xbad   : > { %v5619_v58 = vadd.f32 %v6244_v4, %v5618_v34  ;;  %v5645_v36 = vsel %vm1491_vm0, %v5616_v62, 0.0 }
 0xbae   : > { %5646 = vadd.xlane.f32.xlu1 %v5645_v36  ;;  %v5654_v42 = vsel %vm1491_vm0, %v5627_v39, 0.0 }
 0xbaf   : > { %v5648_v37 = vsel %vm1491_vm0, %v5619_v58, 0.0 }
 0xbb0   : > { %5649 = vadd.xlane.f32.xlu0 %v5648_v37  ;;  %v9083_v37 = vld [vmem:[%s9282_s3] ss:$0 sm:$0xff]  ;;  %s9187_s3 = scalar_lea.vmem %s7623_s5, %s7635_s0 }
 0xbb2   : > { %5652 = vadd.xlane.f32.xlu1 %v5651_v61 }
 0xbb4   : > { %5655 = vadd.xlane.f32.xlu0 %v5654_v42 }
 0xc2a   : > { %v5641_v54 = vpop.xlane.xlu1 %5640 }
 0xc2b   : > { %v5659_v13 = vmul.f32 0.03125, %v5641_v54 }
 0xc2c   : > { %v5644_v31 = vpop.xlane.xlu0 %5643 }
 0xc2d   : > { %v9042_v15 = vsub.f32 %v5608_v22, %v5659_v13  ;;  %v5660_v44 = vmul.f32 0.03125, %v5644_v31  ;;  %v9087_v31 = vld [vmem:[%s9283_s28] ss:$0 sm:$0xff] }
 0xc2e   : > { %v5635_v48 = vpop.xlane.xlu1 %5634 }
 0xc2f   : > { %v9044_v60 = vsub.f32 %v5611_v9, %v5660_v44  ;;  %v5657_v45 = vmul.f32 0.03125, %v5635_v48  ;;  %v5675_v23 = vmul.f32 %v9042_v15, %v9042_v15 }
 0xc30   : > { %v5638_v28 = vpop.xlane.xlu0 %5637 }
 0xc31   : > { %v9048_v56 = vsub.f32 %v5600_v16, %v5657_v45  ;;  %v5658_v5 = vmul.f32 0.03125, %v5638_v28  ;;  %v5687_v35 = vsel %vm1491_vm0, %v5675_v23, 0.0  ;;  %v5676_v53 = vmul.f32 %v9044_v60, %v9044_v60 }
 0xc32   : > { %5688 = vadd.xlane.f32.xlu1 %v5687_v35  ;;  %v9092_v35 = vld [vmem:[%s9284_s22] ss:$0 sm:$0xff] }
 0xc33   : > { %v9053_v7 = vsub.f32 %v5603_v47, %v5658_v5  ;;  %v5690_v50 = vsel %vm1491_vm0, %v5676_v53, 0.0  ;;  %v5673_v21 = vmul.f32 %v9048_v56, %v9048_v56 }
 0xc34   : > { %5691 = vadd.xlane.f32.xlu0 %v5690_v50 }
 0xc35   : > { %v5681_v8 = vsel %vm1491_vm0, %v5673_v21, 0.0  ;;  %v5674_v52 = vmul.f32 %v9053_v7, %v9053_v7 }
 0xc36   : > { %5682 = vadd.xlane.f32.xlu1 %v5681_v8 }
 0xc37   : > { %v5684_v32 = vsel %vm1491_vm0, %v5674_v52, 0.0 }
 0xc38   : > { %5685 = vadd.xlane.f32.xlu0 %v5684_v32 }
 0xc3b   : > { %v5647_v63 = vpop.xlane.xlu1 %5646 }
 0xc3c   : > { %v5661_v49 = vmul.f32 0.03125, %v5647_v63 }
 0xc3d   : > { %v5650_v2 = vpop.xlane.xlu0 %5649 }
 0xc3e   : > { %v9062_v57 = vsub.f32 %v5616_v62, %v5661_v49  ;;  %v5662_v6 = vmul.f32 0.03125, %v5650_v2 }
 0xc3f   : > { %v5653_v27 = vpop.xlane.xlu1 %5652 }
 0xc40   : > { %v9064_v51 = vsub.f32 %v5619_v58, %v5662_v6  ;;  %v5663_v59 = vmul.f32 0.03125, %v5653_v27  ;;  %v5677_v12 = vmul.f32 %v9062_v57, %v9062_v57 }
 0xc41   : > { %v5656_v33 = vpop.xlane.xlu0 %5655 }
 0xc42   : > { %v9068_v11 = vsub.f32 %v5624_v24, %v5663_v59  ;;  %v5664_v4 = vmul.f32 0.03125, %v5656_v33  ;;  %v5693_v25 = vsel %vm1491_vm0, %v5677_v12, 0.0  ;;  %v5678_v22 = vmul.f32 %v9064_v51, %v9064_v51 }
 0xc43   : > { %5694 = vadd.xlane.f32.xlu1 %v5693_v25 }
 0xc44   : > { %v9073_v55 = vsub.f32 %v5627_v39, %v5664_v4  ;;  %v5696_v3 = vsel %vm1491_vm0, %v5678_v22, 0.0  ;;  %v5679_v16 = vmul.f32 %v9068_v11, %v9068_v11 }
 0xc45   : > { %5697 = vadd.xlane.f32.xlu0 %v5696_v3 }
 0xc46   : > { %v5699_v9 = vsel %vm1491_vm0, %v5679_v16, 0.0  ;;  %v5680_v1 = vmul.f32 %v9073_v55, %v9073_v55 }
 0xc47   : > { %5700 = vadd.xlane.f32.xlu1 %v5699_v9 }
 0xc48   : > { %v5702_v10 = vsel %vm1491_vm0, %v5680_v1, 0.0 }
 0xc49   : > { %5703 = vadd.xlane.f32.xlu0 %v5702_v10 }
 0xcbf   : > { %v5689_v47 = vpop.xlane.xlu1 %5688 }
 0xcc0   : > { %v5707_v43 = vmul.f32 0.03125, %v5689_v47 }
 0xcc1   : > { %v5692_v38 = vpop.xlane.xlu0 %5691 }
 0xcc2   : > { %v5715_v29 = vadd.f32 1e-05, %v5707_v43  ;;  %v5708_v46 = vmul.f32 0.03125, %v5692_v38 }
 0xcc3   : > { %v5683_v20 = vpop.xlane.xlu1 %5682 }
 0xcc4   : > { %7294 = vrsqrt.f32 %v5715_v29  ;;  %v5716_v62 = vadd.f32 1e-05, %v5708_v46  ;;  %v5705_v14 = vmul.f32 0.03125, %v5683_v20 }
 0xcc5   : > { %v5686_v34 = vpop.xlane.xlu0 %5685 }
 0xcc6   : > { %7296 = vrsqrt.f32 %v5716_v62  ;;  %v5713_v24 = vadd.f32 1e-05, %v5705_v14  ;;  %v5706_v58 = vmul.f32 0.03125, %v5686_v34 }
 0xcc8   : > { %7298 = vrsqrt.f32 %v5713_v24  ;;  %v5714_v36 = vadd.f32 1e-05, %v5706_v58 }
 0xcca   : > { %7300 = vrsqrt.f32 %v5714_v36 }
 0xcce   : > { %v7295_v39 = vpop.eup %7294 }
 0xccf   : > { %v5731_v42 = vmul.f32 %v7295_v39, %v9042_v15 }
 0xcd0   : > { %v5695_v61 = vpop.xlane.xlu1 %5694  ;;  %v7297_v54 = vpop.eup %7296 }
 0xcd1   : > { %v5709_v13 = vmul.f32 0.03125, %v5695_v61  ;;  %v5745_v48 = vmul.f32 %v9083_v37, %v5731_v42  ;;  %v5732_v45 = vmul.f32 %v7297_v54, %v9044_v60 }
 0xcd2   : > { %v5698_v44 = vpop.xlane.xlu0 %5697  ;;  %v7299_v23 = vpop.eup %7298 }
 0xcd3   : > { %v5717_v28 = vadd.f32 1e-05, %v5709_v13  ;;  %v5710_v5 = vmul.f32 0.03125, %v5698_v44  ;;  %v5759_v50 = vadd.f32 %v9087_v31, %v5745_v48  ;;  %v5746_v21 = vmul.f32 %v9083_v37, %v5732_v45 }
 0xcd4   : > { %v5701_v53 = vpop.xlane.xlu1 %5700  ;;  %v5729_v15 = vmul.f32 %v7299_v23, %v9048_v56  ;;  %v7301_v8 = vpop.eup %7300 }
 0xcd5   : > { %7302 = vrsqrt.f32 %v5717_v28  ;;  %v5718_v52 = vadd.f32 1e-05, %v5710_v5  ;;  %v5711_v32 = vmul.f32 0.03125, %v5701_v53  ;;  %v5773_v49 = vmul.f32 %v9092_v35, %v5759_v50 }
 0xcd6   : > { %v5704_v63 = vpop.xlane.xlu0 %5703  ;;  %v5760_v60 = vadd.f32 %v9087_v31, %v5746_v21  ;;  %v5743_v2 = vmul.f32 %v9083_v37, %v5729_v15  ;;  %v5730_v6 = vmul.f32 %v7301_v8, %v9053_v7 }
 0xcd7   : > { %7304 = vrsqrt.f32 %v5718_v52  ;;  %v5719_v27 = vadd.f32 1e-05, %v5711_v32  ;;  %v5712_v59 = vmul.f32 0.03125, %v5704_v63  ;;  %v5781_v12 = vadd.f32 %v5773_v49, %v8777_v26 }
 0xcd8   : > { %v5774_v56 = vmul.f32 %v9092_v35, %v5760_v60  ;;  %v5757_v33 = vadd.f32 %v9087_v31, %v5743_v2  ;;  %v5744_v4 = vmul.f32 %v9083_v37, %v5730_v6 }
 0xcd9   : > { %7306 = vrsqrt.f32 %v5719_v27  ;;  %v5720_v25 = vadd.f32 1e-05, %v5712_v59  ;;  %v5796_v22 = vsel %vm1491_vm0, %v5781_v12, 0.0 }
 0xcda   : > { %v5782_v3 = vadd.f32 %v5774_v56, %v8780_v30  ;;  %v5771_v16 = vmul.f32 %v9092_v35, %v5757_v33  ;;  %v5758_v7 = vadd.f32 %v9087_v31, %v5744_v4  ;;  %5797 = vadd.xlane.f32.xlu1 %v5796_v22 }
 0xcdb   : > { %7308 = vrsqrt.f32 %v5720_v25 }
 0xcdc   : > { %v5799_v26 = vsel %vm1491_vm0, %v5782_v3, 0.0  ;;  %v5779_v9 = vadd.f32 %v5771_v16, %v8766_v41  ;;  %v5772_v1 = vmul.f32 %v9092_v35, %v5758_v7 }
 0xcdd   : > { %5800 = vadd.xlane.f32.xlu0 %v5799_v26 }
 0xcde   : > { %v5790_v10 = vsel %vm1491_vm0, %v5779_v9, 0.0  ;;  %v5780_v47 = vadd.f32 %v5772_v1, %v8768_v40 }
 0xcdf   : > { %v7303_v43 = vpop.eup %7302  ;;  %5791 = vadd.xlane.f32.xlu1 %v5790_v10 }
 0xce0   : > { %v5793_v30 = vsel %vm1491_vm0, %v5780_v47, 0.0  ;;  %v5733_v38 = vmul.f32 %v7303_v43, %v9062_v57 }
 0xce1   : > { %v7305_v29 = vpop.eup %7304  ;;  %5794 = vadd.xlane.f32.xlu0 %v5793_v30 }
 0xce2   : > { %v5747_v46 = vmul.f32 %v9083_v37, %v5733_v38  ;;  %v5734_v20 = vmul.f32 %v7305_v29, %v9064_v51 }
 0xce3   : > { %v7307_v41 = vpop.eup %7306 }
 0xce4   : > { %v5761_v62 = vadd.f32 %v9087_v31, %v5747_v46  ;;  %v5748_v14 = vmul.f32 %v9083_v37, %v5734_v20  ;;  %v5735_v34 = vmul.f32 %v7307_v41, %v9068_v11 }
 0xce5   : > { %v7309_v40 = vpop.eup %7308 }
 0xce6   : > { %v5775_v24 = vmul.f32 %v9092_v35, %v5761_v62  ;;  %v5762_v58 = vadd.f32 %v9087_v31, %v5748_v14  ;;  %v5749_v57 = vmul.f32 %v9083_v37, %v5735_v34  ;;  %v5736_v36 = vmul.f32 %v7309_v40, %v9073_v55 }
 0xce8   : > { %v5783_v39 = vadd.f32 %v5775_v24, %v8787_v0  ;;  %v5776_v51 = vmul.f32 %v9092_v35, %v5762_v58  ;;  %v5763_v61 = vadd.f32 %v9087_v31, %v5749_v57  ;;  %v5750_v42 = vmul.f32 %v9083_v37, %v5736_v36 }
 0xcea   : > { %v5802_v54 = vsel %vm1491_vm0, %v5783_v39, 0.0  ;;  %v5784_v11 = vadd.f32 %v5776_v51, %v8789_v17  ;;  %v5777_v13 = vmul.f32 %v9092_v35, %v5763_v61  ;;  %v5764_v44 = vadd.f32 %v9087_v31, %v5750_v42  ;;  %v6256_v42 = vld [vmem:[%s7608_s24] ss:$0 sm:$0xff] }
 0xceb   : > { %5803 = vadd.xlane.f32.xlu1 %v5802_v54 }
 0xcec   : > { %v5805_v48 = vsel %vm1491_vm0, %v5784_v11, 0.0  ;;  %v5785_v55 = vadd.f32 %v5777_v13, %v8796_v19  ;;  %v5778_v0 = vmul.f32 %v9092_v35, %v5764_v44  ;;  %v6257_v44 = vld [vmem:[%s7613_s27] ss:$0 sm:$0xff] }
 0xced   : > { %5806 = vadd.xlane.f32.xlu0 %v5805_v48 }
 0xcee   : > { %v5808_v45 = vsel %vm1491_vm0, %v5785_v55, 0.0  ;;  %v5786_v37 = vadd.f32 %v5778_v0, %v8798_v18 }
 0xcef   : > { %5809 = vadd.xlane.f32.xlu1 %v5808_v45 }
 0xcf0   : > { %v5811_v23 = vsel %vm1491_vm0, %v5786_v37, 0.0 }
 0xcf1   : > { %5812 = vadd.xlane.f32.xlu0 %v5811_v23  ;;  %v6258_v23 = vld [vmem:[%s7618_s4] ss:$0 sm:$0xff] }
 0xd67   : > { %v5798_v17 = vpop.xlane.xlu1 %5797 }
 0xd68   : > { %v5816_v28 = vmul.f32 0.03125, %v5798_v17 }
 0xd6a   : > { %v5801_v5 = vpop.xlane.xlu0 %5800  ;;  %v9139_v31 = vsub.f32 %v5781_v12, %v5816_v28 }
 0xd6b   : > { %v5817_v53 = vmul.f32 0.03125, %v5801_v5 }
 0xd6c   : > { %v5792_v50 = vpop.xlane.xlu1 %5791  ;;  %v5832_v35 = vmul.f32 %v9139_v31, %v9139_v31 }
 0xd6d   : > { %v9141_v21 = vsub.f32 %v5782_v3, %v5817_v53  ;;  %v5814_v19 = vmul.f32 0.03125, %v5792_v50 }
 0xd6e   : > { %v5795_v15 = vpop.xlane.xlu0 %5794  ;;  %v5844_v52 = vsel %vm1491_vm0, %v5832_v35, 0.0 }
 0xd6f   : > { %v9145_v8 = vsub.f32 %v5779_v9, %v5814_v19  ;;  %v5815_v18 = vmul.f32 0.03125, %v5795_v15  ;;  %v5833_v32 = vmul.f32 %v9141_v21, %v9141_v21  ;;  %5845 = vadd.xlane.f32.xlu1 %v5844_v52 }
 0xd71   : > { %v9150_v63 = vsub.f32 %v5780_v47, %v5815_v18  ;;  %v5847_v49 = vsel %vm1491_vm0, %v5833_v32, 0.0  ;;  %v5830_v60 = vmul.f32 %v9145_v8, %v9145_v8 }
 0xd72   : > { %5848 = vadd.xlane.f32.xlu0 %v5847_v49 }
 0xd73   : > { %v5838_v2 = vsel %vm1491_vm0, %v5830_v60, 0.0  ;;  %v5831_v6 = vmul.f32 %v9150_v63, %v9150_v63 }
 0xd74   : > { %5839 = vadd.xlane.f32.xlu1 %v5838_v2 }
 0xd75   : > { %v5841_v27 = vsel %vm1491_vm0, %v5831_v6, 0.0 }
 0xd76   : > { %5842 = vadd.xlane.f32.xlu0 %v5841_v27 }
 0xd78   : > { %v5804_v59 = vpop.xlane.xlu1 %5803 }
 0xd79   : > { %v5818_v12 = vmul.f32 0.03125, %v5804_v59 }
 0xd7a   : > { %v5807_v56 = vpop.xlane.xlu0 %5806 }
 0xd7b   : > { %v9159_v33 = vsub.f32 %v5783_v39, %v5818_v12  ;;  %v5819_v4 = vmul.f32 0.03125, %v5807_v56 }
 0xd7c   : > { %v5810_v25 = vpop.xlane.xlu1 %5809 }
 0xd7d   : > { %v9161_v22 = vsub.f32 %v5784_v11, %v5819_v4  ;;  %v5820_v3 = vmul.f32 0.03125, %v5810_v25  ;;  %v5834_v16 = vmul.f32 %v9159_v33, %v9159_v33 }
 0xd7e   : > { %v5813_v7 = vpop.xlane.xlu0 %5812 }
 0xd7f   : > { %v9165_v26 = vsub.f32 %v5785_v55, %v5820_v3  ;;  %v5821_v9 = vmul.f32 0.03125, %v5813_v7  ;;  %v5850_v1 = vsel %vm1491_vm0, %v5834_v16, 0.0  ;;  %v5835_v10 = vmul.f32 %v9161_v22, %v9161_v22 }
 0xd80   : > { %5851 = vadd.xlane.f32.xlu1 %v5850_v1 }
 0xd81   : > { %v9170_v47 = vsub.f32 %v5786_v37, %v5821_v9  ;;  %v5853_v43 = vsel %vm1491_vm0, %v5835_v10, 0.0  ;;  %v5836_v30 = vmul.f32 %v9165_v26, %v9165_v26 }
 0xd82   : > { %5854 = vadd.xlane.f32.xlu0 %v5853_v43 }
 0xd83   : > { %v5856_v38 = vsel %vm1491_vm0, %v5836_v30, 0.0  ;;  %v5837_v29 = vmul.f32 %v9170_v47, %v9170_v47 }
 0xd84   : > { %5857 = vadd.xlane.f32.xlu1 %v5856_v38 }
 0xd85   : > { %v5859_v46 = vsel %vm1491_vm0, %v5837_v29, 0.0 }
 0xd86   : > { %5860 = vadd.xlane.f32.xlu0 %v5859_v46 }
 0xdfc   : > { %v5846_v20 = vpop.xlane.xlu1 %5845 }
 0xdfd   : > { %v5864_v41 = vmul.f32 0.03125, %v5846_v20 }
 0xdff   : > { %v5849_v62 = vpop.xlane.xlu0 %5848  ;;  %v5872_v14 = vadd.f32 1e-05, %v5864_v41 }
 0xe00   : > { %v5865_v34 = vmul.f32 0.03125, %v5849_v62 }
 0xe01   : > { %v5840_v40 = vpop.xlane.xlu1 %5839  ;;  %7310 = vrsqrt.f32 %v5872_v14 }
 0xe02   : > { %v5873_v24 = vadd.f32 1e-05, %v5865_v34  ;;  %v5862_v58 = vmul.f32 0.03125, %v5840_v40 }
 0xe03   : > { %v5843_v57 = vpop.xlane.xlu0 %5842 }
 0xe04   : > { %7312 = vrsqrt.f32 %v5873_v24  ;;  %v5870_v36 = vadd.f32 1e-05, %v5862_v58  ;;  %v5863_v39 = vmul.f32 0.03125, %v5843_v57 }
 0xe06   : > { %7314 = vrsqrt.f32 %v5870_v36  ;;  %v5871_v51 = vadd.f32 1e-05, %v5863_v39 }
 0xe08   : > { %7316 = vrsqrt.f32 %v5871_v51 }
 0xe0b   : > { %v7311_v61 = vpop.eup %7310 }
 0xe0c   : > { %v5888_v54 = vmul.f32 %v7311_v61, %v9139_v31 }
 0xe0d   : > { %v5852_v11 = vpop.xlane.xlu1 %5851 }
 0xe0e   : > { %v7313_v13 = vpop.eup %7312  ;;  %v5866_v48 = vmul.f32 0.03125, %v5852_v11  ;;  %v5902_v55 = vmul.f32 %v6256_v42, %v5888_v54 }
 0xe0f   : > { %v5889_v0 = vmul.f32 %v7313_v13, %v9141_v21  ;;  %v5855_v45 = vpop.xlane.xlu0 %5854 }
 0xe10   : > { %v7315_v37 = vpop.eup %7314  ;;  %v5874_v17 = vadd.f32 1e-05, %v5866_v48  ;;  %v5867_v28 = vmul.f32 0.03125, %v5855_v45  ;;  %v5916_v5 = vadd.f32 %v6257_v44, %v5902_v55 }
 0xe11   : > { %v5903_v53 = vmul.f32 %v6256_v42, %v5889_v0  ;;  %v5886_v50 = vmul.f32 %v7315_v37, %v9145_v8  ;;  %v5858_v19 = vpop.xlane.xlu1 %5857 }
 0xe12   : > { %v7317_v31 = vpop.eup %7316  ;;  %7318 = vrsqrt.f32 %v5874_v17  ;;  %v5875_v35 = vadd.f32 1e-05, %v5867_v28  ;;  %v5868_v15 = vmul.f32 0.03125, %v5858_v19  ;;  %v5930_v18 = vmul.f32 %v6258_v23, %v5916_v5 }
 0xe13   : > { %v5917_v21 = vadd.f32 %v6257_v44, %v5903_v53  ;;  %v5900_v52 = vmul.f32 %v6256_v42, %v5886_v50  ;;  %v5887_v32 = vmul.f32 %v7317_v31, %v9150_v63  ;;  %v5861_v49 = vpop.xlane.xlu0 %5860 }
 0xe14   : > { %7320 = vrsqrt.f32 %v5875_v35  ;;  %v5876_v60 = vadd.f32 1e-05, %v5868_v15  ;;  %v5869_v8 = vmul.f32 0.03125, %v5861_v49  ;;  %5938 = vst.msk [vmem:[%s9187_s3 + $0x10] sm:$0xff] %vm1491_vm0, %v5930_v18 }
 0xe15   : > { %v5931_v2 = vmul.f32 %v6258_v23, %v5917_v21  ;;  %v5914_v6 = vadd.f32 %v6257_v44, %v5900_v52  ;;  %v5901_v27 = vmul.f32 %v6256_v42, %v5887_v32 }
 0xe16   : > { %7322 = vrsqrt.f32 %v5876_v60  ;;  %v5877_v59 = vadd.f32 1e-05, %v5869_v8 }
 0xe17   : > { %5939 = vst.msk [vmem:[%s9187_s3 + $0x18] sm:$0xff] %vm1491_vm0, %v5931_v2  ;;  %v5928_v12 = vmul.f32 %v6258_v23, %v5914_v6  ;;  %v5915_v56 = vadd.f32 %v6257_v44, %v5901_v27 }
 0xe18   : > { %7324 = vrsqrt.f32 %v5877_v59 }
 0xe19   : > { %5936 = vst.msk [vmem:[%s9187_s3] sm:$0xff] %vm1491_vm0, %v5928_v12  ;;  %v5929_v63 = vmul.f32 %v6258_v23, %v5915_v56 }
 0xe1b   : > { %5937 = vst.msk [vmem:[%s9187_s3 + $0x8] sm:$0xff] %vm1491_vm0, %v5929_v63 }
 0xe1c   : > { %v7319_v4 = vpop.eup %7318 }
 0xe1d   : > { %v5890_v25 = vmul.f32 %v7319_v4, %v9159_v33 }
 0xe1e   : > { %v7321_v3 = vpop.eup %7320 }
 0xe1f   : > { %v5904_v16 = vmul.f32 %v6256_v42, %v5890_v25  ;;  %v5891_v7 = vmul.f32 %v7321_v3, %v9161_v22 }
 0xe20   : > { %v7323_v9 = vpop.eup %7322 }
 0xe21   : > { %v5918_v1 = vadd.f32 %v6257_v44, %v5904_v16  ;;  %v5905_v10 = vmul.f32 %v6256_v42, %v5891_v7  ;;  %v5892_v43 = vmul.f32 %v7323_v9, %v9165_v26 }
 0xe22   : > { %v7325_v30 = vpop.eup %7324 }
 0xe23   : > { %v5932_v38 = vmul.f32 %v6258_v23, %v5918_v1  ;;  %v5919_v29 = vadd.f32 %v6257_v44, %v5905_v10  ;;  %v5906_v46 = vmul.f32 %v6256_v42, %v5892_v43  ;;  %v5893_v20 = vmul.f32 %v7325_v30, %v9170_v47 }
 0xe25   : > { %5940 = vst.msk [vmem:[%s9187_s3 + $0x20] sm:$0xff] %vm1491_vm0, %v5932_v38  ;;  %v5933_v33 = vmul.f32 %v6258_v23, %v5919_v29  ;;  %v5920_v41 = vadd.f32 %v6257_v44, %v5906_v46  ;;  %v5907_v62 = vmul.f32 %v6256_v42, %v5893_v20 }
 0xe27   : > { %5941 = vst.msk [vmem:[%s9187_s3 + $0x28] sm:$0xff] %vm1491_vm0, %v5933_v33  ;;  %v5934_v22 = vmul.f32 %v6258_v23, %v5920_v41  ;;  %v5921_v14 = vadd.f32 %v6257_v44, %v5907_v62 }
 0xe29   : > { %5942 = vst.msk [vmem:[%s9187_s3 + $0x30] sm:$0xff] %vm1491_vm0, %v5934_v22  ;;  %v5935_v34 = vmul.f32 %v6258_v23, %v5921_v14 }
 0xe2b   : > { %5943 = vst.msk [vmem:[%s9187_s3 + $0x38] sm:$0xff] %vm1491_vm0, %v5935_v34 }
 0xe2c PF: > { %s103_s15 = sadd.s32 1, %s7332_s15  }
 0xe2d   : > { %p100_p4 = scmp.ge.s32.totalorder %s103_s15, 4  }
 0xe2f   :  { %102 = sbr.rel (!%p100_p4) target bundleno = 92 (0x5c), region = 300 }

// kernel: decoder_block_forward.2
= control target key start
LH: loop header
LB: loop body
LE: loop exit
PB: predicated region body
PF: predicated region fallthrough
CT: control target
= control target key end

     0   :  { %s7358_s6 = smov 1   ;;  %s7359_s10 = smov 2   ;;  %s9218_s0 = inlined_call_operand.smem [shape: u32[47], index: -1, kind: input, shape index: {}] }
   0x1   :  { %s7417_s5 = sld [smem:[%s9218_s0]]   ;;  %s7360_s14 = smov 3  }
   0x2   :  { %s7422_s9 = sld [smem:[%s9218_s0 + %s7358_s6]]   ;;  %s7361_s18 = smov 4  }
   0x3   :  { %s7427_s13 = sld [smem:[%s9218_s0 + %s7359_s10]]   ;;  %s7362_s22 = smov 5  }
   0x4   :  { %s7432_s17 = sld [smem:[%s9218_s0 + %s7360_s14]]   ;;  %s7363_s26 = smov 6  }
   0x5   :  { %s7437_s21 = sld [smem:[%s9218_s0 + %s7361_s18]]   ;;  %s7364_s30 = smov 7  }
   0x6   :  { %s7442_s25 = sld [smem:[%s9218_s0 + %s7362_s22]]   ;;  %s7365_s4 = smov 8  }
   0x7   :  { %9232 = sst [smem:[#allocation11_spill]] %s7417_s5  ;;  %s7366_s10 = smov 9  }
   0x8   :  { %s7447_s29 = sld [smem:[%s9218_s0 + %s7363_s26]]   ;;  %s7367_s15 = smov 10  }
   0x9   :  { %s7452_s3 = sld [smem:[%s9218_s0 + %s7364_s30]]   ;;  %s7368_s20 = smov 11  }
   0xa   :  { %s7457_s8 = sld [smem:[%s9218_s0 + %s7365_s4]]   ;;  %s7369_s26 = smov 12  }
   0xb   :  { %s7462_s14 = sld [smem:[%s9218_s0 + %s7366_s10]]   ;;  %s7370_s1 = smov 13  }
   0xc   :  { %s7467_s19 = sld [smem:[%s9218_s0 + %s7367_s15]]   ;;  %s7371_s7 = smov 14  }
   0xd   :  { %s7472_s24 = sld [smem:[%s9218_s0 + %s7368_s20]]   ;;  %s7372_s15 = smov 15  }
   0xe   :  { %s7477_s30 = sld [smem:[%s9218_s0 + %s7369_s26]]   ;;  %s7373_s22 = smov 16  }
   0xf   :  { %9233 = sst [smem:[#allocation12_spill]] %s7452_s3  ;;  %s7374_s28 = smov 17  }
  0x10   :  { %s7482_s6 = sld [smem:[%s9218_s0 + %s7370_s1]]  }
  0x11   :  { %s7487_s12 = sld [smem:[%s9218_s0 + %s7371_s7]]   ;;  %s7375_s7 = smov 18  }
  0x12   :  { %s7492_s20 = sld [smem:[%s9218_s0 + %s7372_s15]]   ;;  %s7376_s15 = smov 19  }
  0x13   :  { %9234 = sst [smem:[#allocation13_spill]] %s7472_s24 }
  0x14   :  { %s7497_s27 = sld [smem:[%s9218_s0 + %s7373_s22]]   ;;  %s7377_s22 = smov 20  }
  0x15   :  { %s7502_s4 = sld [smem:[%s9218_s0 + %s7374_s28]]   ;;  %s7378_s28 = smov 21  }
  0x16   :  { %s7507_s5 = sld [smem:[%s9218_s0 + %s7375_s7]]   ;;  %s7379_s7 = smov 22  }
  0x17   :  { %s7512_s24 = sld [smem:[%s9218_s0 + %s7376_s15]]   ;;  %s7380_s15 = smov 23  }
  0x1a   :  { %9235 = sst [smem:[#allocation14_spill]] %s7497_s27 }
  0x1b   :  { %9236 = sst [smem:[#allocation15_spill]] %s7502_s4 }
  0x1c   :  { %9237 = sst [smem:[#allocation16_spill]] %s7507_s5 }
  0x1d   :  { %9238 = sst [smem:[#allocation17_spill]] %s7512_s24 }
  0x1e   :  { %s7517_s27 = sld [smem:[%s9218_s0 + %s7377_s22]]   ;;  %s7381_s22 = smov 24  }
  0x1f   :  { %s7522_s4 = sld [smem:[%s9218_s0 + %s7378_s28]]   ;;  %s7382_s28 = smov 25  }
  0x20   :  { %s7527_s5 = sld [smem:[%s9218_s0 + %s7379_s7]]   ;;  %s7383_s7 = smov 26  }
  0x21   :  { %s7532_s24 = sld [smem:[%s9218_s0 + %s7380_s15]]   ;;  %s7384_s15 = smov 27  }
  0x24   :  { %9239 = sst [smem:[#allocation18_spill]] %s7517_s27 }
  0x25   :  { %9240 = sst [smem:[#allocation19_spill]] %s7522_s4 }
  0x26   :  { %9241 = sst [smem:[#allocation20_spill]] %s7527_s5 }
  0x27   :  { %9242 = sst [smem:[#allocation21_spill]] %s7532_s24 }
  0x28   :  { %s7537_s27 = sld [smem:[%s9218_s0 + %s7381_s22]]   ;;  %s7385_s22 = smov 28  }
  0x29   :  { %s7542_s4 = sld [smem:[%s9218_s0 + %s7382_s28]]   ;;  %s7386_s28 = smov 29  }
  0x2a   :  { %s7547_s5 = sld [smem:[%s9218_s0 + %s7383_s7]]   ;;  %s7387_s7 = smov 30  }
  0x2b   :  { %s7552_s24 = sld [smem:[%s9218_s0 + %s7384_s15]]   ;;  %s7388_s15 = smov 31  }
  0x2e   :  { %9243 = sst [smem:[#allocation22_spill]] %s7537_s27 }
  0x2f   :  { %9244 = sst [smem:[#allocation23_spill]] %s7542_s4 }
  0x30   :  { %9245 = sst [smem:[#allocation24_spill]] %s7547_s5 }
  0x31   :  { %9246 = sst [smem:[#allocation25_spill]] %s7552_s24 }
  0x32   :  { %s7557_s27 = sld [smem:[%s9218_s0 + %s7385_s22]]   ;;  %s7389_s22 = smov 32  }
  0x33   :  { %s7562_s4 = sld [smem:[%s9218_s0 + %s7386_s28]]   ;;  %s7390_s28 = smov 33  }
  0x34   :  { %s7567_s5 = sld [smem:[%s9218_s0 + %s7387_s7]]   ;;  %s7391_s7 = smov 34  }
  0x35   :  { %s7572_s24 = sld [smem:[%s9218_s0 + %s7388_s15]]   ;;  %s7392_s15 = smov 35  }
  0x38   :  { %9247 = sst [smem:[#allocation26_spill]] %s7557_s27 }
  0x39   :  { %9248 = sst [smem:[#allocation27_spill]] %s7562_s4 }
  0x3a   :  { %9249 = sst [smem:[#allocation28_spill]] %s7567_s5 }
  0x3b   :  { %9250 = sst [smem:[#allocation29_spill]] %s7572_s24 }
  0x3c   :  { %s7577_s27 = sld [smem:[%s9218_s0 + %s7389_s22]]   ;;  %s7393_s22 = smov 36  }
  0x3d   :  { %s7582_s4 = sld [smem:[%s9218_s0 + %s7390_s28]]   ;;  %s7394_s28 = smov 37  }
  0x3e   :  { %s7587_s5 = sld [smem:[%s9218_s0 + %s7391_s7]]   ;;  %s7395_s7 = smov 38  }
  0x3f   :  { %s7592_s24 = sld [smem:[%s9218_s0 + %s7392_s15]]   ;;  %s7396_s15 = smov 39  }
  0x42   :  { %9251 = sst [smem:[#allocation30_spill]] %s7577_s27 }
  0x43   :  { %9252 = sst [smem:[#allocation31_spill]] %s7582_s4 }
  0x44   :  { %9253 = sst [smem:[#allocation32_spill]] %s7587_s5 }
  0x45   :  { %9254 = sst [smem:[#allocation33_spill]] %s7592_s24 }
  0x46   :  { %s7597_s27 = sld [smem:[%s9218_s0 + %s7393_s22]]   ;;  %s7397_s22 = smov 40  }
  0x47   :  { %s7602_s4 = sld [smem:[%s9218_s0 + %s7394_s28]]   ;;  %s7398_s28 = smov 41  }
  0x48   :  { %s7607_s5 = sld [smem:[%s9218_s0 + %s7395_s7]]   ;;  %s7399_s7 = smov 42  }
  0x49   :  { %s7612_s24 = sld [smem:[%s9218_s0 + %s7396_s15]]   ;;  %s7400_s15 = smov 46  }
  0x4c   :  { %9255 = sst [smem:[#allocation34_spill]] %s7597_s27 }
  0x4d   :  { %9256 = sst [smem:[#allocation35_spill]] %s7602_s4 }
  0x4e   :  { %9257 = sst [smem:[#allocation36_spill]] %s7607_s5 }
  0x4f   :  { %9258 = sst [smem:[#allocation37_spill]] %s7612_s24 }
  0x50   :  { %s7617_s27 = sld [smem:[%s9218_s0 + %s7397_s22]]  }
  0x51   :  { %s7622_s4 = sld [smem:[%s9218_s0 + %s7398_s28]]  }
  0x52   :  { %s7627_s5 = sld [smem:[%s9218_s0 + %s7399_s7]]  }
  0x53   :  { %s7632_s24 = sld [smem:[%s9218_s0 + %s7400_s15]]  }
  0x54   :  { %98 = vsyncpa [#allocation5], 0 }
  0x55   :  { %99 = vsyncpa [#allocation7], 0  ;;  %s7634_s22 = smov 0  }
  0x56 LB: > { %s7640_s23 = sadd.s32 4294967295, %s7356_s22   ;;  %p5976_p0 = scmp.ge.s32.totalorder %s7356_s22, 1  ;;  %s7356_s22 = sphi %s7634_s22, %s105_s22  }
  0x57   : > { %p1112_p1 = scmp.lt.s32.totalorder %s7356_s22, 3  ;;  %p9229_p2 = scmp.eq.s32.totalorder %s7640_s23, 0 }
  0x58   : > { %s7401_s26 = smov [#allocation6]   ;;  %s7402_s1 = smov [#allocation4]  }
  0x59   : > { %p7645_p3 = pnand %p5976_p0, %p1112_p1  ;;  %s1250_s28 = sshll.u32 %s7401_s26, 4  ;;  %s1251_s28 = int_to_ptr.vmem [resolvable:$true] %s1250_s28 }
  0x5a   : > { %s1239_s2 = sshll.u32 %s7402_s1, 4  ;;  %s7403_s7 = smov [#allocation8]   ;;  %s7657_s2 = int_to_ptr.vmem [resolvable:$true] %s1239_s2 }
  0x5b   : > { %s9259_s0 = scalar_select %p7645_p3, 1, 0 }
  0x5c   : > { %p6649_p4 = pneg %p7645_p3  ;;  %s1261_s10 = sshll.u32 %s7403_s7, 4  ;;  %s7659_s10 = int_to_ptr.vmem [resolvable:$true] %s1261_s10 }
  0x5d   : > { %s7258_s15 = scalar_lea.hbm %s7622_s4, 16 }
  0x5e   : > { %p7653_p5 = pnand %p9229_p2, %p6649_p4  ;;  %p7259_p6 = scmp.ne.s32.totalorder %s7622_s4, %s7258_s15 }
  0x5f   : > { %p7265_p10 = scmp.lt.u32.totalorder %s7258_s15, %s7622_s4 }
  0x60   : > { %p7665_p7 = pneg %p7653_p5 }
  0x62   : > { %p7261_p8 = pnand %p7665_p7, %p7259_p6 }
  0x64   : > { %p7262_p9 = pneg %p7261_p8 }
  0x66   : > { %p7267_p11 = pnand %p7265_p10, %p7262_p9 }
  0x68   : > { %7270 = shalt.err (!%p7267_p11)
}
  0x69   : > { %s7271_s18 = scalar_lea.vmem %s1251_s28, 16  ;;  %s7278_s26 = scalar_lea.vmem %s1251_s28, 32 }
  0x6a   : > { %p7272_p12 = scmp.ne.s32.totalorder %s1251_s28, %s7271_s18  ;;  %p7279_p1 = scmp.lt.s32.totalorder %s1251_s28, %s1251_s28 }
  0x6b   : > { %p7280_p4 = scmp.lt.s32.totalorder %s7278_s26, %s7271_s18 }
  0x6c   : > { %p7274_p13 = pnand %p7272_p12, %p7665_p7 }
  0x6d   : > { %p7281_p2 = por %p7280_p4, %p7279_p1 }
  0x6e   : > { %p7275_p0 = pneg %p7274_p13 }
  0x70   : > { %p7282_p3 = pnand %p7281_p2, %p7275_p0 }
  0x72   : > { %7285 = shalt.err (!%p7282_p3)
}
  0x73   : > { %6655 = dma.hbm_to_vmem [thread:$0]  (!%p7653_p5), %s7622_s4, 16, %s1251_s28, [#allocation7]  }
  0x74   : > { %s7286_s1 = scalar_lea.hbm %s7617_s27, 16 }
  0x75   : > { %p7287_p6 = scmp.ne.s32.totalorder %s7617_s27, %s7286_s1  ;;  %p7293_p10 = scmp.lt.u32.totalorder %s7286_s1, %s7617_s27 }
  0x77   : > { %p7289_p8 = pnand %p7287_p6, %p7665_p7 }
  0x79   : > { %p7290_p9 = pneg %p7289_p8 }
  0x7b   : > { %p7295_p11 = pnand %p7293_p10, %p7290_p9 }
  0x7d   : > { %7298 = shalt.err (!%p7295_p11)
}
  0x7e   : > { %s7299_s7 = scalar_lea.vmem %s7657_s2, 16  ;;  %s7306_s15 = scalar_lea.vmem %s7657_s2, 32 }
  0x7f   : > { %p7300_p2 = scmp.ne.s32.totalorder %s7657_s2, %s7299_s7  ;;  %p7307_p13 = scmp.lt.s32.totalorder %s7657_s2, %s7657_s2 }
  0x80   : > { %p7308_p0 = scmp.lt.s32.totalorder %s7306_s15, %s7299_s7 }
  0x81   : > { %p7302_p3 = pnand %p7300_p2, %p7665_p7 }
  0x82   : > { %p7309_p1 = por %p7308_p0, %p7307_p13 }
  0x83   : > { %p7303_p12 = pneg %p7302_p3 }
  0x85   : > { %p7310_p4 = pnand %p7309_p1, %p7303_p12 }
  0x87   : > { %7313 = shalt.err (!%p7310_p4)
}
  0x88   : > { %6652 = dma.hbm_to_vmem [thread:$0]  (!%p7653_p5), %s7617_s27, 16, %s7657_s2, [#allocation5]  }
  0x89   : > { %s7314_s28 = scalar_lea.hbm %s7627_s5, 16 }
  0x8a   : > { %p7315_p6 = scmp.ne.s32.totalorder %s7627_s5, %s7314_s28  ;;  %p7321_p10 = scmp.lt.u32.totalorder %s7314_s28, %s7627_s5 }
  0x8c   : > { %p7317_p8 = pnand %p7315_p6, %p7665_p7 }
  0x8e   : > { %p7318_p9 = pneg %p7317_p8 }
  0x90   : > { %p7323_p11 = pnand %p7321_p10, %p7318_p9 }
  0x92   : > { %7326 = shalt.err (!%p7323_p11)
}
  0x93   : > { %s7327_s18 = scalar_lea.vmem %s7659_s10, 16  ;;  %s7334_s26 = scalar_lea.vmem %s7659_s10, 32 }
  0x94   : > { %p7328_p2 = scmp.ne.s32.totalorder %s7659_s10, %s7327_s18  ;;  %p7335_p13 = scmp.lt.s32.totalorder %s7659_s10, %s7659_s10 }
  0x95   : > { %p7336_p0 = scmp.lt.s32.totalorder %s7334_s26, %s7327_s18 }
  0x96   : > { %p7330_p3 = pnand %p7328_p2, %p7665_p7 }
  0x97   : > { %p7337_p1 = por %p7336_p0, %p7335_p13 }
  0x98   : > { %p7331_p12 = pneg %p7330_p3 }
  0x9a   : > { %p7338_p4 = pnand %p7337_p1, %p7331_p12 }
  0x9c   : > { %7341 = shalt.err (!%p7338_p4)
}
  0x9d   : > { %6658 = dma.hbm_to_vmem [thread:$0]  (!%p7653_p5), %s7627_s5, 16, %s7659_s10, [#allocation7]  }
  0x9e   : > { %p9262_p6 = scmp.ne.s32.totalorder %s9259_s0, 0 }
  0x9f   : > { %p9263_p8 = scmp.eq.s32.totalorder (!%p9262_p6), %s7640_s23, 0 }
  0xa0   : > { %1299 = sbr.rel (%p9262_p6) target bundleno = 3383 (0xd37), region = 204 }
  0xa7   : > { %7347 = dma.done.wait (%p9263_p8), [#allocation5], 16   ;;  %p9264_p7 = pmov %p9263_p8 }
  0xa9   : > { %7349 = vsyncadd (%p9264_p7), [#allocation5], 4294967280  ;;  %p9265_p9 = pmov %p9264_p7 }
  0xaa   : > { %p9266_p10 = pmov %p9264_p7 }
  0xab   : > { %7351 = dma.done.wait (%p9265_p9), [#allocation7], 32  }
  0xac   : > { %7353 = vsyncadd (%p9266_p10), [#allocation7], 4294967264  ;;  %p1422_p5 = scmp.lt.s32.totalorder %s7640_s23, 1  ;;  %v7024_v0 = vld [vmem:[%s7437_s21] sm:$0xff]   ;;  %v7025_v1 = vld [vmem:[%s7437_s21 + $0x8] sm:$0xff]   ;;  %vm1529_vm0 = vcmask 261120  }
  0xad   : > { %6631 = vmatprep.subr.bf16.mxu1 %v7024_v0  ;;  %6385 = vmatprep.subr.bf16.mxu0 %v7024_v0  ;;  %v7026_v7 = vld [vmem:[%s7447_s29] sm:$0xff]   ;;  %v1447_v13 = vld [vmem:[%s7432_s17 + $0x8] sm:$0xff]  ;;  %v1448_v19 = vld [vmem:[%s7432_s17 + $0x10] sm:$0xff]  ;;  %s9267_s3 = sld [smem:[#allocation12_spill]]  ;;  %vm2187_vm1 = vcmask 1041408   ;;  %vm2174_vm2 = vcmask 31744  }
  0xae   : > { %s9295_s23 = smov (!%p1422_p5, %s7640_s23), 1  ;;  %6633 = vmatpush3.bf16.msra.mxu1 %v7024_v0  ;;  %6386 = vmatpush3.bf16.msra.mxu0 %v7024_v0  ;;  %v1446_v12 = vld [vmem:[%s7432_s17] sm:$0xff]  ;;  %v7027_v17 = vld [vmem:[%s7447_s29 + $0x8] sm:$0xff]   ;;  %v1449_v20 = vld [vmem:[%s7432_s17 + $0x18] sm:$0xff]  ;;  %vm2483_vm3 = vcmask 257024   ;;  %s7406_s10 = smov 32  }
  0xaf   : > { %s7721_s0 = sshll.u32 %s9295_s23, 6  ;;  %6632 = vmatprep.subr.bf16.mxu1 %v7025_v1  ;;  %6387 = vmatprep.subr.bf16.mxu0 %v7025_v1  ;;  %v1462_v15 = vpack.c.bf16 %v1447_v13, %v1446_v12  ;;  %v1450_v21 = vld [vmem:[%s7432_s17 + $0x20] sm:$0xff]  ;;  %v1451_v22 = vld [vmem:[%s7432_s17 + $0x28] sm:$0xff]  ;;  %v1463_v25 = vpack.c.bf16 %v1449_v20, %v1448_v19  ;;  %v1452_v30 = vld [vmem:[%s7432_s17 + $0x30] sm:$0xff]  ;;  %s7405_s23 = smov 64   ;;  %vm7408_vm4 = vmmov 0  }
  0xb0   : > { %s1431_s2 = scalar_lea.vmem %s7422_s9, %s7721_s0  ;;  %v7028_v23 = vld [vmem:[%s7457_s8] sm:$0xff]   ;;  %v7029_v24 = vld [vmem:[%s7457_s8 + $0x8] sm:$0xff]   ;;  %v1464_v28 = vpack.c.bf16 %v1451_v22, %v1450_v21  ;;  %v1453_v31 = vld [vmem:[%s7432_s17 + $0x38] sm:$0xff]  ;;  %s9268_s11 = sld [smem:[#allocation15_spill]]  ;;  %vm3113_vm5 = vcmask 523264   ;;  %vm2786_vm6 = vcmask 1040384  }
  0xb1   : > { %v1498_v2 = vld [vmem:[%s1431_s2 + $0x20] sm:$0xff]  ;;  %v1499_v3 = vld [vmem:[%s1431_s2 + $0x28] sm:$0xff]  ;;  %v1500_v4 = vld [vmem:[%s1431_s2 + $0x30] sm:$0xff]  ;;  %v1465_v34 = vpack.c.bf16 %v1453_v31, %v1452_v30  ;;  %s7407_s16 = smov 96   ;;  %s9269_s1 = sld [smem:[#allocation13_spill]]  ;;  %vm3122_vm7 = vcmask 785408  }
  0xb2   : > { %v1508_v5 = vpack.c.bf16 %v1499_v3, %v1498_v2  ;;  %v1501_v6 = vld [vmem:[%s1431_s2 + $0x38] sm:$0xff]  ;;  %v1494_v8 = vld [vmem:[%s1431_s2] sm:$0xff]  ;;  %v1495_v9 = vld [vmem:[%s1431_s2 + $0x8] sm:$0xff]  ;;  %6634 = vmatpush3.bf16.msra.mxu1 %v7025_v1  ;;  %6388 = vmatpush3.bf16.msra.mxu0 %v7025_v1  ;;  %s9270_s7 = sld [smem:[#allocation16_spill]]  ;;  %s9271_s15 = sld [smem:[#allocation14_spill]]  ;;  %vm2782_vm8 = vcmask 15360  }
  0xb3   : > { %v1509_v10 = vpack.c.bf16 %v1501_v6, %v1500_v4  ;;  %v1506_v11 = vpack.c.bf16 %v1495_v9, %v1494_v8  ;;  %v1496_v14 = vld [vmem:[%s1431_s2 + $0x10] sm:$0xff]  ;;  %v1497_v16 = vld [vmem:[%s1431_s2 + $0x18] sm:$0xff]  ;;  %6397 = vmatprep.subr.bf16.mxu1 %v7026_v7  ;;  %6417 = vmatprep.subr.bf16.mxu0 %v7028_v23  ;;  %v1470_v26 = vld [vmem:[%s7427_s13] sm:$0xff]  ;;  %s9272_s28 = sld [smem:[#allocation17_spill]]  ;;  %s9273_s18 = sld [smem:[#allocation18_spill]]  ;;  %vm5231_vm9 = vcmask 517120  }
  0xb4   : > { %6393 = vmatprep.mubr.msk.bf16.mxu1 %vm1529_vm0, %v1508_v5  ;;  %v1507_v18 = vpack.c.bf16 %v1497_v16, %v1496_v14  ;;  %v1471_v27 = vld [vmem:[%s7427_s13 + $0x8] sm:$0xff]  ;;  %v1454_v32 = vld [vmem:[%s7432_s17 + $0x40] sm:$0xff]  ;;  %v1456_v36 = vld [vmem:[%s7432_s17 + $0x50] sm:$0xff]  ;;  %s9274_s26 = sld [smem:[#allocation19_spill]]  ;;  %s9275_s2 = sld [smem:[#allocation26_spill]] }
  0xb5   : > { %6389 = vmatprep.mubr.msk.bf16.mxu0 %vm1529_vm0, %v1506_v11  ;;  %6394 = vmatmul.mubr.msk.bf16.vlgmr.msra.gmra.mrb[0].mxu1 %vm1529_vm0, %v1509_v10  ;;  %v1486_v29 = vpack.c.bf16 %v1471_v27, %v1470_v26  ;;  %v1455_v33 = vld [vmem:[%s7432_s17 + $0x48] sm:$0xff]  ;;  %v1457_v37 = vld [vmem:[%s7432_s17 + $0x58] sm:$0xff]  ;;  %v1458_v38 = vld [vmem:[%s7432_s17 + $0x60] sm:$0xff] }
  0xb6   : > { %6390 = vmatmul.mubr.msk.bf16.vlgmr.msra.gmra.mrb[0].mxu0 %vm1529_vm0, %v1507_v18  ;;  %6398 = vmatpush3.bf16.msra.mxu1 %v7026_v7  ;;  %v1466_v35 = vpack.c.bf16 %v1455_v33, %v1454_v32  ;;  %v1459_v39 = vld [vmem:[%s7432_s17 + $0x68] sm:$0xff]  ;;  %v1467_v40 = vpack.c.bf16 %v1457_v37, %v1456_v36  ;;  %v1460_v42 = vld [vmem:[%s7432_s17 + $0x70] sm:$0xff]  ;;  %v1461_v43 = vld [vmem:[%s7432_s17 + $0x78] sm:$0xff] }
  0xb7   : > { %6401 = vmatprep.mubr.msk.bf16.mxu1 %vm1529_vm0, %v1462_v15  ;;  %6399 = vmatprep.subr.bf16.mxu1 %v7027_v17  ;;  %v1468_v41 = vpack.c.bf16 %v1459_v39, %v1458_v38  ;;  %v1469_v44 = vpack.c.bf16 %v1461_v43, %v1460_v42  ;;  %v1472_v45 = vld [vmem:[%s7427_s13 + $0x10] sm:$0xff]  ;;  %v1473_v46 = vld [vmem:[%s7427_s13 + $0x18] sm:$0xff]  ;;  %v7030_v48 = vld [vmem:[%s7477_s30] sm:$0xff]  }
  0xb8   : > { %6418 = vmatpush3.bf16.msra.mxu0 %v7028_v23  ;;  %6421 = vmatprep.mubr.msk.bf16.mxu0 %vm1529_vm0, %v1486_v29  ;;  %v1487_v47 = vpack.c.bf16 %v1473_v46, %v1472_v45  ;;  %v1474_v49 = vld [vmem:[%s7427_s13 + $0x20] sm:$0xff]  ;;  %v1475_v50 = vld [vmem:[%s7427_s13 + $0x28] sm:$0xff]  ;;  %v1476_v52 = vld [vmem:[%s7427_s13 + $0x30] sm:$0xff] }
  0xb9   : > { %6419 = vmatprep.subr.bf16.mxu0 %v7029_v24  ;;  %v1488_v51 = vpack.c.bf16 %v1475_v50, %v1474_v49  ;;  %v1477_v53 = vld [vmem:[%s7427_s13 + $0x38] sm:$0xff]  ;;  %v1478_v55 = vld [vmem:[%s7427_s13 + $0x40] sm:$0xff]  ;;  %v1479_v56 = vld [vmem:[%s7427_s13 + $0x48] sm:$0xff] }
  0xba   : > { %6400 = vmatpush3.bf16.msra.mxu1 %v7027_v17  ;;  %v1489_v54 = vpack.c.bf16 %v1477_v53, %v1476_v52  ;;  %v1490_v57 = vpack.c.bf16 %v1479_v56, %v1478_v55  ;;  %v7031_v58 = vld [vmem:[%s7477_s30 + $0x8] sm:$0xff]   ;;  %v1480_v59 = vld [vmem:[%s7427_s13 + $0x50] sm:$0xff]  ;;  %v1481_v60 = vld [vmem:[%s7427_s13 + $0x58] sm:$0xff] }
  0xbb   : > { %6437 = vmatprep.subr.bf16.mxu1 %v7030_v48  ;;  %v1491_v61 = vpack.c.bf16 %v1481_v60, %v1480_v59  ;;  %v1482_v62 = vld [vmem:[%s7427_s13 + $0x60] sm:$0xff]  ;;  %v1483_v63 = vld [vmem:[%s7427_s13 + $0x68] sm:$0xff]  ;;  %v1484_v1 = vld [vmem:[%s7427_s13 + $0x70] sm:$0xff] }
  0xbc   : > { %6420 = vmatpush3.bf16.msra.mxu0 %v7029_v24  ;;  %v1492_v0 = vpack.c.bf16 %v1483_v63, %v1482_v62  ;;  %v1485_v2 = vld [vmem:[%s7427_s13 + $0x78] sm:$0xff]  ;;  %v5991_v12 = vld [vmem:[%s7442_s25] ss:$0 sm:$0xff] }
  0xbd   : > { %6402 = vmatmul.mubr.msk.bf16.vlgmr.msra.gmra.mrb[4].mxu1 %vm1529_vm0, %v1463_v25  ;;  %6449 = vmatprep.subr.bf16.mxu0 %v7030_v48  ;;  %v1493_v3 = vpack.c.bf16 %v1485_v2, %v1484_v1  ;;  %v7787_v13 = vld [vmem:[%s9267_s3] ss:$0 sm:$0xff] }
  0xbe   : > { %6405 = vmatprep.mubr.msk.bf16.mxu1 %vm1529_vm0, %v1464_v28  ;;  %6438 = vmatpush3.bf16.msra.mxu1 %v7030_v48 }
  0xbf   : > { %6422 = vmatmul.mubr.msk.bf16.vlgmr.msra.gmra.mrb[4].mxu0 %vm1529_vm0, %v1487_v47  ;;  %6439 = vmatprep.subr.bf16.mxu1 %v7031_v58 }
  0xc0   : > { %6450 = vmatpush3.bf16.msra.mxu0 %v7030_v48  ;;  %6425 = vmatprep.mubr.msk.bf16.mxu0 %vm1529_vm0, %v1488_v51 }
  0xc1   : > { %6451 = vmatprep.subr.bf16.mxu0 %v7031_v58 }
  0xc2   : > { %6440 = vmatpush3.bf16.msra.mxu1 %v7031_v58 }
  0xc4   : > { %6452 = vmatpush3.bf16.msra.mxu0 %v7031_v58 }
  0xc5   : > { %6406 = vmatmul.mubr.msk.bf16.gmra.mrb[8].mxu1 %vm1529_vm0, %v1465_v34 }
  0xc6   : > { %6409 = vmatprep.mubr.msk.bf16.mxu1 %vm1529_vm0, %v1466_v35 }
  0xc7   : > { %6426 = vmatmul.mubr.msk.bf16.gmra.mrb[8].mxu0 %vm1529_vm0, %v1489_v54 }
  0xc8   : > { %6429 = vmatprep.mubr.msk.bf16.mxu0 %vm1529_vm0, %v1490_v57 }
  0xcd   : > { %6410 = vmatmul.mubr.msk.bf16.gmra.mrb[12].mxu1 %vm1529_vm0, %v1467_v40 }
  0xce   : > { %6413 = vmatprep.mubr.msk.bf16.mxu1 %vm1529_vm0, %v1468_v41 }
  0xcf   : > { %6430 = vmatmul.mubr.msk.bf16.gmra.mrb[12].mxu0 %vm1529_vm0, %v1491_v61 }
  0xd0   : > { %6433 = vmatprep.mubr.msk.bf16.mxu0 %vm1529_vm0, %v1492_v0 }
  0xd5   : > { %6414 = vmatmul.mubr.msk.bf16.gmra.mrb[16].mxu1 %vm1529_vm0, %v1469_v44 }
  0xd7   : > { %6434 = vmatmul.mubr.msk.bf16.gmra.mrb[16].mxu0 %vm1529_vm0, %v1493_v3 }
 0x188   : > { %v6395_v4 = vpop.f32.mrb[0].mxu1 }
 0x189   : > { %v6391_v5 = vpop.f32.mrb[0].mxu0  ;;  %v1592_v6 = vpop.f32.mrb[1].mxu1  ;;  %v1601_v33 = vadd.f32 %v6395_v4, %v5991_v12 }
 0x18a   : > { %v1576_v7 = vpop.f32.mrb[1].mxu0  ;;  %v6396_v8 = vpop.f32.mrb[2].mxu1  ;;  %v1585_v14 = vadd.f32 %v6391_v5, %v5991_v12  ;;  %v1593_v36 = vadd.f32 %v5991_v12, %v1592_v6 }
 0x18b   : > { %v6392_v9 = vpop.f32.mrb[2].mxu0  ;;  %v1595_v10 = vpop.f32.mrb[3].mxu1  ;;  %v1577_v16 = vadd.f32 %v5991_v12, %v1576_v7  ;;  %v1604_v39 = vadd.f32 %v6396_v8, %v5991_v12 }
 0x18c   : > { %v1579_v11 = vpop.f32.mrb[3].mxu0  ;;  %v1588_v19 = vadd.f32 %v6392_v9, %v5991_v12  ;;  %v1596_v43 = vadd.f32 %v5991_v12, %v1595_v10 }
 0x18d   : > { %v1580_v22 = vadd.f32 %v5991_v12, %v1579_v11 }
 0x190   : > { %v6403_v15 = vpop.f32.mrb[4].mxu1 }
 0x191   : > { %v1697_v17 = vadd.f32 %v6403_v15, %v7787_v13  ;;  %v1688_v18 = vpop.f32.mrb[5].mxu1 }
 0x192   : > { %v1689_v20 = vadd.f32 %v7787_v13, %v1688_v18  ;;  %v6404_v21 = vpop.f32.mrb[6].mxu1  ;;  %v7813_v15 = vpop.f32.mrb[4].mxu0 }
 0x193   : > { %v1902_v23 = vmul.f32 %v1697_v17, %v1585_v14  ;;  %v1700_v24 = vadd.f32 %v6404_v21, %v7787_v13  ;;  %v1691_v25 = vpop.f32.mrb[7].mxu1 }
 0x194   : > { %v1900_v26 = vmul.f32 %v1689_v20, %v1577_v16  ;;  %v1692_v27 = vadd.f32 %v7787_v13, %v1691_v25 }
 0x195   : > { %v1903_v28 = vmul.f32 %v1700_v24, %v1588_v19 }
 0x196   : > { %v1901_v29 = vmul.f32 %v1692_v27, %v1580_v22 }
 0x197   : > { %v1909_v30 = vpack.c.bf16 %v1903_v28, %v1902_v23 }
 0x198   : > { %v1908_v31 = vpack.c.bf16 %v1901_v29, %v1900_v26  ;;  %v6407_v32 = vpop.f32.mrb[8].mxu1 }
 0x199   : > { %v1713_v34 = vadd.f32 %v6407_v32, %v7787_v13  ;;  %v1704_v35 = vpop.f32.mrb[9].mxu1  ;;  %v7847_v32 = vld [vmem:[%s7467_s19] sm:$0xff]  }
 0x19a   : > { %v1705_v37 = vadd.f32 %v7787_v13, %v1704_v35  ;;  %v6408_v38 = vpop.f32.mrb[10].mxu1  ;;  %6441 = vmatprep.mubr.msk.bf16.mxu1 %vm1529_vm0, %v1908_v31 }
 0x19b   : > { %v1906_v40 = vmul.f32 %v1713_v34, %v1601_v33  ;;  %v1716_v41 = vadd.f32 %v6408_v38, %v7787_v13  ;;  %v1707_v42 = vpop.f32.mrb[11].mxu1  ;;  %6442 = vmatmul.mubr.msk.bf16.vlgmr.msra.gmra.mrb[20].mxu1 %vm1529_vm0, %v1909_v30  ;;  %v1899_v30 = vld [vmem:[%s7482_s6] sm:$0x3] }
 0x19c   : > { %v1904_v44 = vmul.f32 %v1705_v37, %v1593_v36  ;;  %v1708_v45 = vadd.f32 %v7787_v13, %v1707_v42  ;;  %6635 = vmatprep.subr.msk.bf16.mxu1 %vm2187_vm1, %v1899_v30  ;;  %6636 = vmatprep.subr.msk.bf16.mxu0 %vm2187_vm1, %v1899_v30  ;;  %v2189_v31 = vsel %vm2187_vm1, %v1899_v30, 0 }
 0x19d   : > { %v1907_v46 = vmul.f32 %v1716_v41, %v1604_v39  ;;  %6462 = vmatpush3.bf16.msra.mxu1 %v2189_v31 }
 0x19e   : > { %v1905_v47 = vmul.f32 %v1708_v45, %v1596_v43  ;;  %6481 = vmatprep.subr.bf16.mxu1 %v7847_v32 }
 0x19f   : > { %v1911_v48 = vpack.c.bf16 %v1907_v46, %v1906_v40 }
 0x1a0   : > { %v1910_v49 = vpack.c.bf16 %v1905_v47, %v1904_v44  ;;  %v6411_v50 = vpop.f32.mrb[12].mxu1 }
 0x1a1   : > { %v1729_v51 = vadd.f32 %v6411_v50, %v7787_v13  ;;  %v1720_v52 = vpop.f32.mrb[13].mxu1 }
 0x1a2   : > { %v1721_v53 = vadd.f32 %v7787_v13, %v1720_v52  ;;  %v6412_v54 = vpop.f32.mrb[14].mxu1  ;;  %6445 = vmatprep.mubr.msk.bf16.mxu1 %vm1529_vm0, %v1910_v49 }
 0x1a3   : > { %v2003_v55 = vmul.f32 %v1729_v51, %v1585_v14  ;;  %v1732_v56 = vadd.f32 %v6412_v54, %v7787_v13  ;;  %v1723_v57 = vpop.f32.mrb[15].mxu1  ;;  %6446 = vmatmul.mubr.msk.bf16.gmra.mrb[24].mxu1 %vm1529_vm0, %v1911_v48 }
 0x1a4   : > { %v2001_v58 = vmul.f32 %v1721_v53, %v1577_v16  ;;  %v1724_v59 = vadd.f32 %v7787_v13, %v1723_v57  ;;  %v7815_v16 = vpop.f32.mrb[5].mxu0 }
 0x1a5   : > { %v2004_v60 = vmul.f32 %v1732_v56, %v1588_v19  ;;  %v7817_v17 = vpop.f32.mrb[6].mxu0 }
 0x1a6   : > { %v2002_v61 = vmul.f32 %v1724_v59, %v1580_v22  ;;  %v7819_v18 = vpop.f32.mrb[7].mxu0 }
 0x1a7   : > { %v2010_v62 = vpack.c.bf16 %v2004_v60, %v2003_v55  ;;  %v7821_v19 = vpop.f32.mrb[8].mxu0 }
 0x1a8   : > { %v2009_v63 = vpack.c.bf16 %v2002_v61, %v2001_v58  ;;  %v6415_v0 = vpop.f32.mrb[16].mxu1 }
 0x1a9   : > { %v1745_v1 = vadd.f32 %v6415_v0, %v7787_v13  ;;  %v1736_v2 = vpop.f32.mrb[17].mxu1 }
 0x1aa   : > { %v1737_v3 = vadd.f32 %v7787_v13, %v1736_v2  ;;  %v6416_v4 = vpop.f32.mrb[18].mxu1  ;;  %6453 = vmatprep.mubr.msk.bf16.mxu0 %vm1529_vm0, %v2009_v63 }
 0x1ab   : > { %v2007_v5 = vmul.f32 %v1745_v1, %v1601_v33  ;;  %v1748_v6 = vadd.f32 %v6416_v4, %v7787_v13  ;;  %v1739_v7 = vpop.f32.mrb[19].mxu1  ;;  %6454 = vmatmul.mubr.msk.bf16.vlgmr.msra.gmra.mrb[20].mxu0 %vm1529_vm0, %v2010_v62 }
 0x1ac   : > { %v2005_v8 = vmul.f32 %v1737_v3, %v1593_v36  ;;  %v1740_v9 = vadd.f32 %v7787_v13, %v1739_v7  ;;  %v7823_v13 = vpop.f32.mrb[9].mxu0  ;;  %6472 = vmatpush3.bf16.msra.mxu0 %v2189_v31 }
 0x1ad   : > { %v2008_v10 = vmul.f32 %v1748_v6, %v1604_v39  ;;  %v7825_v20 = vpop.f32.mrb[10].mxu0 }
 0x1ae   : > { %v2006_v11 = vmul.f32 %v1740_v9, %v1596_v43  ;;  %v7827_v21 = vpop.f32.mrb[11].mxu0 }
 0x1af   : > { %v2012_v12 = vpack.c.bf16 %v2008_v10, %v2007_v5  ;;  %v7829_v22 = vpop.f32.mrb[12].mxu0 }
 0x1b0   : > { %v2011_v14 = vpack.c.bf16 %v2006_v11, %v2005_v8  ;;  %v7831_v23 = vpop.f32.mrb[13].mxu0 }
 0x1b1   : > { %v7833_v24 = vpop.f32.mrb[14].mxu0 }
 0x1b2   : > { %6457 = vmatprep.mubr.msk.bf16.mxu0 %vm1529_vm0, %v2011_v14  ;;  %v7835_v25 = vpop.f32.mrb[15].mxu0 }
 0x1b3   : > { %6458 = vmatmul.mubr.msk.bf16.gmra.mrb[24].mxu0 %vm1529_vm0, %v2012_v12  ;;  %v7837_v26 = vpop.f32.mrb[16].mxu0 }
 0x1b4   : > { %v7839_v27 = vpop.f32.mrb[17].mxu0 }
 0x1b5   : > { %v7841_v28 = vpop.f32.mrb[18].mxu0 }
 0x1b6   : > { %v7843_v29 = vpop.f32.mrb[19].mxu0 }
 0x26e   : > { %v6443_v33 = vpop.f32.mrb[20].mxu1 }
 0x26f   : > { %v1970_v34 = vpop.f32.mrb[21].mxu1 }
 0x270   : > { %v6444_v35 = vpop.f32.mrb[22].mxu1 }
 0x271   : > { %v1973_v36 = vpop.f32.mrb[23].mxu1 }
 0x276   : > { %v6447_v37 = vpop.f32.mrb[24].mxu1 }
 0x277   : > { %v1986_v38 = vpop.f32.mrb[25].mxu1 }
 0x278   : > { %v6448_v39 = vpop.f32.mrb[26].mxu1 }
 0x279   : > { %v1989_v40 = vpop.f32.mrb[27].mxu1 }
 0x27e   : > { %v6455_v41 = vpop.f32.mrb[20].mxu0 }
 0x27f   : > { %v2092_v42 = vmax.f32 %v6443_v33, %v6455_v41  ;;  %v2059_v43 = vpop.f32.mrb[21].mxu0 }
 0x280   : > { %v2090_v44 = vmax.f32 %v1970_v34, %v2059_v43  ;;  %v6456_v45 = vpop.f32.mrb[22].mxu0 }
 0x281   : > { %v2100_v46 = vsub.f32 %v6443_v33, %v2092_v42  ;;  %v2124_v47 = vsub.f32 %v6455_v41, %v2092_v42  ;;  %v2093_v48 = vmax.f32 %v6444_v35, %v6456_v45  ;;  %v2062_v49 = vpop.f32.mrb[23].mxu0 }
 0x282   : > { %v2098_v50 = vsub.f32 %v1970_v34, %v2090_v44  ;;  %v2122_v51 = vsub.f32 %v2059_v43, %v2090_v44  ;;  %v2091_v52 = vmax.f32 %v1973_v36, %v2062_v49 }
 0x283   : > { %v2110_v53 = vmul.f32 1.442695, %v2100_v46  ;;  %v2134_v54 = vmul.f32 1.442695, %v2124_v47  ;;  %v2101_v55 = vsub.f32 %v6444_v35, %v2093_v48  ;;  %v2125_v56 = vsub.f32 %v6456_v45, %v2093_v48 }
 0x284   : > { %v2106_v57 = vmul.f32 1.442695, %v2098_v50  ;;  %v2130_v58 = vmul.f32 1.442695, %v2122_v51  ;;  %v2099_v59 = vsub.f32 %v1973_v36, %v2091_v52  ;;  %v2123_v60 = vsub.f32 %v2062_v49, %v2091_v52 }
 0x285   : > { %7094 = vpow2.f32 %v2110_v53  ;;  %v2112_v61 = vmul.f32 1.442695, %v2101_v55  ;;  %v2136_v62 = vmul.f32 1.442695, %v2125_v56 }
 0x286   : > { %7096 = vpow2.f32 %v2134_v54  ;;  %v6459_v63 = vpop.f32.mrb[24].mxu0  ;;  %v2108_v0 = vmul.f32 1.442695, %v2099_v59  ;;  %v2132_v3 = vmul.f32 1.442695, %v2123_v60 }
 0x287   : > { %7098 = vpow2.f32 %v2106_v57  ;;  %v2096_v1 = vmax.f32 %v6447_v37, %v6459_v63  ;;  %v2075_v2 = vpop.f32.mrb[25].mxu0 }
 0x288   : > { %7100 = vpow2.f32 %v2130_v58  ;;  %v2094_v4 = vmax.f32 %v1986_v38, %v2075_v2  ;;  %v6460_v5 = vpop.f32.mrb[26].mxu0 }
 0x289   : > { %7102 = vpow2.f32 %v2112_v61  ;;  %v2104_v6 = vsub.f32 %v6447_v37, %v2096_v1  ;;  %v2128_v7 = vsub.f32 %v6459_v63, %v2096_v1  ;;  %v2097_v8 = vmax.f32 %v6448_v39, %v6460_v5  ;;  %v2078_v9 = vpop.f32.mrb[27].mxu0 }
 0x28a   : > { %7104 = vpow2.f32 %v2136_v62  ;;  %v2102_v10 = vsub.f32 %v1986_v38, %v2094_v4  ;;  %v2126_v11 = vsub.f32 %v2075_v2, %v2094_v4  ;;  %v2095_v12 = vmax.f32 %v1989_v40, %v2078_v9 }
 0x28b   : > { %7106 = vpow2.f32 %v2108_v0  ;;  %v2118_v14 = vmul.f32 1.442695, %v2104_v6  ;;  %v2142_v30 = vmul.f32 1.442695, %v2128_v7  ;;  %v2105_v31 = vsub.f32 %v6448_v39, %v2097_v8 }
 0x28c   : > { %7108 = vpow2.f32 %v2132_v3  ;;  %v2114_v33 = vmul.f32 1.442695, %v2102_v10  ;;  %v2138_v34 = vmul.f32 1.442695, %v2126_v11  ;;  %v2129_v35 = vsub.f32 %v6460_v5, %v2097_v8 }
 0x28d   : > { %7110 = vpow2.f32 %v2118_v14  ;;  %v2120_v36 = vmul.f32 1.442695, %v2105_v31  ;;  %v2103_v41 = vsub.f32 %v1989_v40, %v2095_v12  ;;  %v2127_v42 = vsub.f32 %v2078_v9, %v2095_v12 }
 0x28e   : > { %7112 = vpow2.f32 %v2142_v30  ;;  %v2144_v37 = vmul.f32 1.442695, %v2129_v35 }
 0x28f   : > { %v7095_v43 = vpop.eup %7094  ;;  %7114 = vpow2.f32 %v2114_v33  ;;  %v2116_v38 = vmul.f32 1.442695, %v2103_v41  ;;  %v2140_v39 = vmul.f32 1.442695, %v2127_v42 }
 0x290   : > { %v7097_v44 = vpop.eup %7096  ;;  %7116 = vpow2.f32 %v2138_v34 }
 0x291   : > { %v7099_v45 = vpop.eup %7098  ;;  %v2148_v46 = vadd.f32 %v7097_v44, %v7095_v43  ;;  %7118 = vpow2.f32 %v2120_v36 }
 0x292   : > { %v7101_v47 = vpop.eup %7100  ;;  %7120 = vpow2.f32 %v2144_v37 }
 0x293   : > { %v7103_v48 = vpop.eup %7102  ;;  %7122 = vrcp.f32 %v2148_v46  ;;  %v2146_v49 = vadd.f32 %v7101_v47, %v7099_v45 }
 0x294   : > { %v7105_v50 = vpop.eup %7104  ;;  %7124 = vpow2.f32 %v2116_v38 }
 0x295   : > { %v7107_v40 = vpop.eup %7106  ;;  %7126 = vrcp.f32 %v2146_v49  ;;  %v2149_v51 = vadd.f32 %v7105_v50, %v7103_v48 }
 0x296   : > { %v7109_v52 = vpop.eup %7108  ;;  %7128 = vpow2.f32 %v2140_v39 }
 0x297   : > { %v7111_v53 = vpop.eup %7110  ;;  %7130 = vrcp.f32 %v2149_v51  ;;  %v2147_v54 = vadd.f32 %v7109_v52, %v7107_v40  ;;  %v7033_v51 = vld [vmem:[%s7467_s19 + $0x8] sm:$0xff]  }
 0x298   : > { %v7113_v55 = vpop.eup %7112 }
 0x299   : > { %v7115_v56 = vpop.eup %7114  ;;  %7132 = vrcp.f32 %v2147_v54  ;;  %v2152_v57 = vadd.f32 %v7113_v55, %v7111_v53 }
 0x29a   : > { %v7117_v58 = vpop.eup %7116 }
 0x29b   : > { %v7119_v59 = vpop.eup %7118  ;;  %7134 = vrcp.f32 %v2152_v57  ;;  %v2150_v60 = vadd.f32 %v7117_v58, %v7115_v56 }
 0x29c   : > { %v7121_v61 = vpop.eup %7120 }
 0x29d   : > { %v7123_v62 = vpop.eup %7122  ;;  %7136 = vrcp.f32 %v2150_v60  ;;  %v2153_v63 = vadd.f32 %v7121_v61, %v7119_v59 }
 0x29e   : > { %v7125_v0 = vpop.eup %7124  ;;  %v2164_v1 = vmul.f32 %v7123_v62, %v7095_v43  ;;  %v2274_v2 = vmul.f32 %v7123_v62, %v7097_v44 }
 0x29f   : > { %v7127_v3 = vpop.eup %7126  ;;  %7138 = vrcp.f32 %v2153_v63 }
 0x2a0   : > { %v7129_v4 = vpop.eup %7128  ;;  %v2162_v5 = vmul.f32 %v7127_v3, %v7099_v45  ;;  %v2272_v6 = vmul.f32 %v7127_v3, %v7101_v47 }
 0x2a1   : > { %v7131_v7 = vpop.eup %7130  ;;  %v2151_v8 = vadd.f32 %v7129_v4, %v7125_v0 }
 0x2a2   : > { %v2165_v9 = vmul.f32 %v7131_v7, %v7103_v48  ;;  %v2275_v10 = vmul.f32 %v7131_v7, %v7105_v50 }
 0x2a3   : > { %v7133_v11 = vpop.eup %7132  ;;  %7140 = vrcp.f32 %v2151_v8 }
 0x2a4   : > { %v2281_v12 = vpack.c.bf16 %v2275_v10, %v2274_v2  ;;  %v2163_v14 = vmul.f32 %v7133_v11, %v7107_v40  ;;  %v2273_v30 = vmul.f32 %v7133_v11, %v7109_v52  ;;  %v2171_v31 = vpack.c.bf16 %v2165_v9, %v2164_v1  ;;  %v6009_v52 = vld [vmem:[%s7462_s14] ss:$0 sm:$0xff] }
 0x2a5   : > { %v7135_v33 = vpop.eup %7134  ;;  %v1833_v54 = vadd.f32 %v6009_v52, %v7815_v16 }
 0x2a6   : > { %v2170_v34 = vpack.c.bf16 %v2163_v14, %v2162_v5  ;;  %v2280_v35 = vpack.c.bf16 %v2273_v30, %v2272_v6  ;;  %v2168_v36 = vmul.f32 %v7135_v33, %v7111_v53  ;;  %v2278_v41 = vmul.f32 %v7135_v33, %v7113_v55 }
 0x2a7   : > { %v7137_v42 = vpop.eup %7136  ;;  %v1873_v53 = vadd.f32 %v7829_v22, %v6009_v52  ;;  %v1865_v55 = vadd.f32 %v6009_v52, %v7831_v23  ;;  %v1881_v14 = vadd.f32 %v6009_v52, %v7839_v27  ;;  %v1860_v33 = vadd.f32 %v7825_v20, %v6009_v52 }
 0x2a8   : > { %6463 = vmatprep.mubr.msk.bf16.mxu1 %vm2174_vm2, %v2170_v34  ;;  %6473 = vmatprep.mubr.msk.bf16.mxu0 %vm2174_vm2, %v2280_v35  ;;  %v2166_v37 = vmul.f32 %v7137_v42, %v7115_v56  ;;  %v2276_v43 = vmul.f32 %v7137_v42, %v7117_v58  ;;  %v1844_v58 = vadd.f32 %v7817_v17, %v6009_v52 }
 0x2a9   : > { %v7139_v44 = vpop.eup %7138  ;;  %6464 = vmatmul.mubr.msk.bf16.vlgmr.msra.gmra.mrb[28].mxu1 %vm2174_vm2, %v2171_v31  ;;  %6474 = vmatmul.mubr.msk.bf16.vlgmr.msra.gmra.mrb[28].mxu0 %vm2174_vm2, %v2281_v12  ;;  %v1849_v12 = vadd.f32 %v6009_v52, %v7823_v13  ;;  %v1892_v34 = vadd.f32 %v7841_v28, %v6009_v52  ;;  %v1884_v13 = vadd.f32 %v6009_v52, %v7843_v29  ;;  %v7034_v29 = vld [vmem:[%s7487_s12] sm:$0xff]  }
 0x2aa   : > { %v2169_v38 = vmul.f32 %v7139_v44, %v7119_v59  ;;  %v2279_v45 = vmul.f32 %v7139_v44, %v7121_v61  ;;  %6482 = vmatpush3.bf16.msra.mxu1 %v7847_v32  ;;  %v1841_v32 = vadd.f32 %v7813_v15, %v6009_v52  ;;  %v1876_v59 = vadd.f32 %v7833_v24, %v6009_v52 }
 0x2ab   : > { %6483 = vmatprep.subr.bf16.mxu1 %v7033_v51  ;;  %v1868_v15 = vadd.f32 %v6009_v52, %v7835_v25  ;;  %v1889_v25 = vadd.f32 %v7837_v26, %v6009_v52  ;;  %6493 = vmatprep.subr.bf16.mxu0 %v7034_v29 }
 0x2ac   : > { %v2173_v46 = vpack.c.bf16 %v2169_v38, %v2168_v36  ;;  %v2283_v47 = vpack.c.bf16 %v2279_v45, %v2278_v41  ;;  %6494 = vmatpush3.bf16.msra.mxu0 %v7034_v29 }
 0x2ad   : > { %v7141_v39 = vpop.eup %7140 }
 0x2ae   : > { %v2167_v48 = vmul.f32 %v7141_v39, %v7125_v0  ;;  %v2277_v49 = vmul.f32 %v7141_v39, %v7129_v4  ;;  %6484 = vmatpush3.bf16.msra.mxu1 %v7033_v51  ;;  %v1836_v0 = vadd.f32 %v6009_v52, %v7819_v18  ;;  %v1857_v18 = vadd.f32 %v7821_v19, %v6009_v52 }
 0x2af   : > { %v1852_v19 = vadd.f32 %v6009_v52, %v7827_v21  ;;  %v7404_v21 = vmov 0.0  }
 0x2b0   : > { %v2172_v50 = vpack.c.bf16 %v2167_v48, %v2166_v37  ;;  %v2282_v40 = vpack.c.bf16 %v2277_v49, %v2276_v43  ;;  %2506 = vst.msk [vmem:[#allocation2 + $0xc0] sm:$0xff] %vm1529_vm0, %v7404_v21  ;;  %2507 = vst.msk [vmem:[#allocation2 + $0xc8] sm:$0xff] %vm1529_vm0, %v7404_v21  ;;  %6505 = vmatprep.subr.bf16.mxu1 %v7404_v21 }
 0x2b1   : > { %2481 = vst.msk [vmem:[#allocation2] sm:$0xff] %vm1529_vm0, %v7404_v21  ;;  %2482 = vst.msk [vmem:[#allocation2 + $0x8] sm:$0xff] %vm1529_vm0, %v7404_v21 }
 0x2b2   : > { %6467 = vmatprep.mubr.msk.bf16.mxu1 %vm2174_vm2, %v2172_v50  ;;  %6477 = vmatprep.mubr.msk.bf16.mxu0 %vm2174_vm2, %v2282_v40  ;;  %2485 = vst.msk [vmem:[#allocation2 + $0x18] sm:$0xff] %vm1529_vm0, %v7404_v21  ;;  %2486 = vst.msk [vmem:[#allocation2 + $0x20] sm:$0xff] %vm1529_vm0, %v7404_v21 }
 0x2b3   : > { %6468 = vmatmul.mubr.msk.bf16.gmra.mrb[32].mxu1 %vm2174_vm2, %v2173_v46  ;;  %6478 = vmatmul.mubr.msk.bf16.gmra.mrb[32].mxu0 %vm2174_vm2, %v2283_v47  ;;  %2488 = vst.msk [vmem:[#allocation2 + $0x30] sm:$0xff] %vm1529_vm0, %v7404_v21  ;;  %2489 = vst.msk [vmem:[#allocation2 + $0x38] sm:$0xff] %vm1529_vm0, %v7404_v21 }
 0x2b4   : > { %2491 = vst.msk [vmem:[#allocation2 + $0x48] sm:$0xff] %vm1529_vm0, %v7404_v21  ;;  %2492 = vst.msk [vmem:[#allocation2 + $0x50] sm:$0xff] %vm1529_vm0, %v7404_v21 }
 0x2b5   : > { %2494 = vst.msk [vmem:[#allocation2 + $0x60] sm:$0xff] %vm1529_vm0, %v7404_v21  ;;  %2495 = vst.msk [vmem:[#allocation2 + $0x68] sm:$0xff] %vm1529_vm0, %v7404_v21 }
 0x2b6   : > { %2497 = vst.msk [vmem:[#allocation2 + $0x78] sm:$0xff] %vm1529_vm0, %v7404_v21  ;;  %2498 = vst.msk [vmem:[#allocation2 + $0x80] sm:$0xff] %vm1529_vm0, %v7404_v21 }
 0x2b7   : > { %2500 = vst.msk [vmem:[#allocation2 + $0x90] sm:$0xff] %vm1529_vm0, %v7404_v21  ;;  %2501 = vst.msk [vmem:[#allocation2 + $0x98] sm:$0xff] %vm1529_vm0, %v7404_v21 }
 0x2b8   : > { %2503 = vst.msk [vmem:[#allocation2 + $0xa8] sm:$0xff] %vm1529_vm0, %v7404_v21  ;;  %2504 = vst.msk [vmem:[#allocation2 + $0xb0] sm:$0xff] %vm1529_vm0, %v7404_v21 }
 0x2b9   : > { %2509 = vst.msk [vmem:[#allocation2 + $0xd8] sm:$0xff] %vm1529_vm0, %v7404_v21  ;;  %2510 = vst.msk [vmem:[#allocation2 + $0xe0] sm:$0xff] %vm1529_vm0, %v7404_v21 }
 0x2ba   : > { %2512 = vst.msk [vmem:[#allocation2 + $0xf0] sm:$0xff] %vm1529_vm0, %v7404_v21  ;;  %2513 = vst.msk [vmem:[#allocation2 + $0xf8] sm:$0xff] %vm1529_vm0, %v7404_v21 }
 0x2bb   : > { %2515 = vst.msk [vmem:[#allocation2 + $0x108] sm:$0xff] %vm1529_vm0, %v7404_v21  ;;  %2516 = vst.msk [vmem:[#allocation2 + $0x110] sm:$0xff] %vm1529_vm0, %v7404_v21 }
 0x2bc   : > { %2518 = vst.msk [vmem:[#allocation2 + $0x120] sm:$0xff] %vm1529_vm0, %v7404_v21  ;;  %2519 = vst.msk [vmem:[#allocation2 + $0x128] sm:$0xff] %vm1529_vm0, %v7404_v21 }
 0x2bd   : > { %2521 = vst.msk [vmem:[#allocation2 + $0x138] sm:$0xff] %vm1529_vm0, %v7404_v21  ;;  %2522 = vst.msk [vmem:[#allocation2 + $0x140] sm:$0xff] %vm1529_vm0, %v7404_v21 }
 0x2be   : > { %2524 = vst.msk [vmem:[#allocation2 + $0x150] sm:$0xff] %vm1529_vm0, %v7404_v21  ;;  %2525 = vst.msk [vmem:[#allocation2 + $0x158] sm:$0xff] %vm1529_vm0, %v7404_v21 }
 0x2bf   : > { %2527 = vst.msk [vmem:[#allocation2 + $0x168] sm:$0xff] %vm1529_vm0, %v7404_v21  ;;  %2528 = vst.msk [vmem:[#allocation2 + $0x170] sm:$0xff] %vm1529_vm0, %v7404_v21 }
 0x2c0   : > { %2530 = vst.msk [vmem:[#allocation2 + $0x180] sm:$0xff] %vm1529_vm0, %v7404_v21  ;;  %2531 = vst.msk [vmem:[#allocation2 + $0x188] sm:$0xff] %vm1529_vm0, %v7404_v21 }
 0x2c1   : > { %2533 = vst.msk [vmem:[#allocation2 + $0x198] sm:$0xff] %vm1529_vm0, %v7404_v21  ;;  %2534 = vst.msk [vmem:[#allocation2 + $0x1a0] sm:$0xff] %vm1529_vm0, %v7404_v21 }
 0x2c2   : > { %2536 = vst.msk [vmem:[#allocation2 + $0x1b0] sm:$0xff] %vm1529_vm0, %v7404_v21  ;;  %2537 = vst.msk [vmem:[#allocation2 + $0x1b8] sm:$0xff] %vm1529_vm0, %v7404_v21 }
 0x2c3   : > { %2539 = vst.msk [vmem:[#allocation2 + $0x1c8] sm:$0xff] %vm1529_vm0, %v7404_v21  ;;  %2540 = vst.msk [vmem:[#allocation2 + $0x1d0] sm:$0xff] %vm1529_vm0, %v7404_v21 }
 0x2c4   : > { %2484 = vst.msk [vmem:[#allocation2 + $0x10] sm:$0xf] %vm2483_vm3, %v7404_v21  ;;  %2487 = vst.msk [vmem:[#allocation2 + $0x28] sm:$0xf] %vm2483_vm3, %v7404_v21 }
 0x2c5   : > { %2490 = vst.msk [vmem:[#allocation2 + $0x40] sm:$0xf] %vm2483_vm3, %v7404_v21  ;;  %2493 = vst.msk [vmem:[#allocation2 + $0x58] sm:$0xf] %vm2483_vm3, %v7404_v21 }
 0x2c6   : > { %2496 = vst.msk [vmem:[#allocation2 + $0x70] sm:$0xf] %vm2483_vm3, %v7404_v21  ;;  %2499 = vst.msk [vmem:[#allocation2 + $0x88] sm:$0xf] %vm2483_vm3, %v7404_v21 }
 0x2c7   : > { %2502 = vst.msk [vmem:[#allocation2 + $0xa0] sm:$0xf] %vm2483_vm3, %v7404_v21  ;;  %2505 = vst.msk [vmem:[#allocation2 + $0xb8] sm:$0xf] %vm2483_vm3, %v7404_v21 }
 0x2c8   : > { %2508 = vst.msk [vmem:[#allocation2 + $0xd0] sm:$0xf] %vm2483_vm3, %v7404_v21  ;;  %2511 = vst.msk [vmem:[#allocation2 + $0xe8] sm:$0xf] %vm2483_vm3, %v7404_v21 }
 0x2c9   : > { %2514 = vst.msk [vmem:[#allocation2 + $0x100] sm:$0xf] %vm2483_vm3, %v7404_v21  ;;  %2517 = vst.msk [vmem:[#allocation2 + $0x118] sm:$0xf] %vm2483_vm3, %v7404_v21 }
 0x2ca   : > { %2520 = vst.msk [vmem:[#allocation2 + $0x130] sm:$0xf] %vm2483_vm3, %v7404_v21  ;;  %2523 = vst.msk [vmem:[#allocation2 + $0x148] sm:$0xf] %vm2483_vm3, %v7404_v21 }
 0x2cb   : > { %2526 = vst.msk [vmem:[#allocation2 + $0x160] sm:$0xf] %vm2483_vm3, %v7404_v21  ;;  %2529 = vst.msk [vmem:[#allocation2 + $0x178] sm:$0xf] %vm2483_vm3, %v7404_v21  ;;  %v3484_v51 = vld [vmem:[#allocation2 + $0xc] sm:$0xff]  ;;  %v3485_v52 = vld [vmem:[#allocation2 + $0x24] sm:$0xff] }
 0x2cc   : > { %2532 = vst.msk [vmem:[#allocation2 + $0x190] sm:$0xf] %vm2483_vm3, %v7404_v21  ;;  %2535 = vst.msk [vmem:[#allocation2 + $0x1a8] sm:$0xf] %vm2483_vm3, %v7404_v21 }
 0x2cd   : > { %2538 = vst.msk [vmem:[#allocation2 + $0x1c0] sm:$0xf] %vm2483_vm3, %v7404_v21  ;;  %2541 = vst.msk [vmem:[#allocation2 + $0x1d8] sm:$0xf] %vm2483_vm3, %v7404_v21 }
 0x2ce   : > { %5230 = vst.msk [vmem:[#allocation3] sm:$0xff] %vm3113_vm5, %v7404_v21  ;;  %5233 = vst.msk [vmem:[#allocation3 + $0x10] sm:$0xff] %vm3113_vm5, %v7404_v21 }
 0x2cf   : > { %5235 = vst.msk [vmem:[#allocation3 + $0x20] sm:$0xff] %vm3113_vm5, %v7404_v21  ;;  %5237 = vst.msk [vmem:[#allocation3 + $0x30] sm:$0xff] %vm3113_vm5, %v7404_v21 }
 0x2d0   : > { %5239 = vst.msk [vmem:[#allocation3 + $0x40] sm:$0xff] %vm3113_vm5, %v7404_v21  ;;  %5241 = vst.msk [vmem:[#allocation3 + $0x50] sm:$0xff] %vm3113_vm5, %v7404_v21 }
 0x2d1   : > { %5243 = vst.msk [vmem:[#allocation3 + $0x60] sm:$0xff] %vm3113_vm5, %v7404_v21  ;;  %5245 = vst.msk [vmem:[#allocation3 + $0x70] sm:$0xff] %vm3113_vm5, %v7404_v21 }
 0x2d2   : > { %5247 = vst.msk [vmem:[#allocation3 + $0x80] sm:$0xff] %vm3113_vm5, %v7404_v21  ;;  %5249 = vst.msk [vmem:[#allocation3 + $0x90] sm:$0xff] %vm3113_vm5, %v7404_v21 }
 0x2d3   : > { %5238 = vst.msk [vmem:[#allocation3 + $0x38] sm:$0x3] %vm5231_vm9, %v7404_v21  ;;  %5232 = vst.msk [vmem:[#allocation3 + $0x8] sm:$0x3] %vm5231_vm9, %v7404_v21 }
 0x2d4   : > { %5234 = vst.msk [vmem:[#allocation3 + $0x18] sm:$0x3] %vm5231_vm9, %v7404_v21  ;;  %5236 = vst.msk [vmem:[#allocation3 + $0x28] sm:$0x3] %vm5231_vm9, %v7404_v21 }
 0x2d5   : > { %5240 = vst.msk [vmem:[#allocation3 + $0x48] sm:$0x3] %vm5231_vm9, %v7404_v21  ;;  %5242 = vst.msk [vmem:[#allocation3 + $0x58] sm:$0x3] %vm5231_vm9, %v7404_v21 }
 0x2d6   : > { %5244 = vst.msk [vmem:[#allocation3 + $0x68] sm:$0x3] %vm5231_vm9, %v7404_v21  ;;  %5246 = vst.msk [vmem:[#allocation3 + $0x78] sm:$0x3] %vm5231_vm9, %v7404_v21 }
 0x2d7   : > { %5248 = vst.msk [vmem:[#allocation3 + $0x88] sm:$0x3] %vm5231_vm9, %v7404_v21  ;;  %5250 = vst.msk [vmem:[#allocation3 + $0x98] sm:$0x3] %vm5231_vm9, %v7404_v21 }
 0x37c   : > { %v6465_v56 = vpop.f32.mrb[28].mxu1  ;;  %v6475_v57 = vpop.f32.mrb[28].mxu0 }
 0x37d   : > { %v2258_v60 = vmul.f32 %v6465_v56, %v1841_v32  ;;  %v2363_v61 = vmul.f32 %v6475_v57, %v1873_v53  ;;  %v2225_v62 = vpop.f32.mrb[29].mxu1  ;;  %v2330_v63 = vpop.f32.mrb[29].mxu0  ;;  %v6729_v32 = vpack.i.bf16 %v3485_v52, %v3484_v51  ;;  %v3476_v53 = vld [vmem:[#allocation2 + $0x6] sm:$0xff]  ;;  %v3511_v57 = vld [vmem:[#allocation2 + $0x150] sm:$0xff] }
 0x37e   : > { %v2256_v1 = vmul.f32 %v2225_v62, %v1833_v54  ;;  %v2361_v22 = vmul.f32 %v2330_v63, %v1865_v55  ;;  %v6466_v2 = vpop.f32.mrb[30].mxu1  ;;  %v6476_v16 = vpop.f32.mrb[30].mxu0  ;;  %v3477_v54 = vld [vmem:[#allocation2 + $0x1e] sm:$0xff]  ;;  %v7035_v56 = vld [vmem:[%s7487_s12 + $0x8] sm:$0xff]  }
 0x37f   : > { %v2371_v3 = vadd.f32 %v2363_v61, %v2258_v60  ;;  %v2259_v23 = vmul.f32 %v6466_v2, %v1844_v58  ;;  %v2364_v4 = vmul.f32 %v6476_v16, %v1876_v59  ;;  %v2228_v5 = vpop.f32.mrb[31].mxu1  ;;  %v2333_v6 = vpop.f32.mrb[31].mxu0  ;;  %v6724_v55 = vpack.i.bf16 %v3477_v54, %v3476_v53  ;;  %6730 = vrot.lane.b32.xlu1 %v6729_v32, %s7405_s23  ;;  %v3512_v58 = vld [vmem:[#allocation2 + $0x168] sm:$0xff]  ;;  %v3478_v60 = vld [vmem:[#allocation2 + $0x36] sm:$0xff]  ;;  %v7036_v16 = vld [vmem:[%s7492_s20] sm:$0xff]  }
 0x380   : > { %v2369_v17 = vadd.f32 %v2361_v22, %v2256_v1  ;;  %v2257_v7 = vmul.f32 %v2228_v5, %v1836_v0  ;;  %v2362_v24 = vmul.f32 %v2333_v6, %v1868_v15  ;;  %v6739_v59 = vpack.i.bf16 %v3512_v58, %v3511_v57  ;;  %v3479_v61 = vld [vmem:[#allocation2 + $0x4e] sm:$0xff]  ;;  %6495 = vmatprep.subr.bf16.mxu0 %v7035_v56  ;;  %v3486_v63 = vld [vmem:[#allocation2 + $0x3c] sm:$0xff] }
 0x381   : > { %v2372_v8 = vadd.f32 %v2364_v4, %v2259_v23  ;;  %6725 = vrot.lane.b32.xlu0 %v6724_v55, %s7406_s10  ;;  %v6734_v62 = vpack.i.bf16 %v3479_v61, %v3478_v60  ;;  %6496 = vmatpush3.bf16.msra.mxu0 %v7035_v56  ;;  %v3487_v0 = vld [vmem:[#allocation2 + $0x54] sm:$0xff]  ;;  %v7038_v23 = vld [vmem:[%s9268_s11 + $0x40] sm:$0xff]  }
 0x382   : > { %v2370_v9 = vadd.f32 %v2362_v24, %v2257_v7  ;;  %v8008_v15 = vld [vmem:[#allocation2 + $0x156] sm:$0xff]  ;;  %v6744_v1 = vpack.i.bf16 %v3487_v0, %v3486_v63  ;;  %v3520_v22 = vld [vmem:[#allocation2 + $0x16e] sm:$0xff]  ;;  %6249 = vmatprep.subr.bf16.mxu0 %v7038_v23  ;;  %v6038_v4 = vld [vmem:[%s9269_s1] ss:$0 sm:$0xff]  ;;  %s9276_s1 = sld [smem:[#allocation27_spill]] }
 0x383   : > { %v2382_v10 = vpack.c.bf16 %v2372_v8, %v2371_v3  ;;  %6740 = vrot.lane.b32.xlu1 %v6739_v59, %s7405_s23  ;;  %v6749_v2 = vpack.i.bf16 %v3520_v22, %v8008_v15  ;;  %v7037_v3 = vld [vmem:[%s7492_s20 + $0x8] sm:$0xff]   ;;  %v7043_v54 = vld [vmem:[%s9268_s11 + $0x10] sm:$0xff]   ;;  %v7044_v58 = vld [vmem:[%s9268_s11 + $0x58] sm:$0xff]  }
 0x384   : > { %v2381_v11 = vpack.c.bf16 %v2370_v9, %v2369_v17 }
 0x385   : > { %6735 = vrot.lane.b32.xlu0 %v6734_v62, %s7406_s10 }
 0x386   : > { %v6469_v30 = vpop.f32.mrb[32].mxu1  ;;  %v6479_v31 = vpop.f32.mrb[32].mxu0  ;;  %6485 = vmatprep.mubr.msk.bf16.mxu1 %vm1529_vm0, %v2381_v11 }
 0x387   : > { %v2262_v35 = vmul.f32 %v6469_v30, %v1857_v18  ;;  %v2367_v36 = vmul.f32 %v6479_v31, %v1889_v25  ;;  %v2241_v41 = vpop.f32.mrb[33].mxu1  ;;  %v2346_v42 = vpop.f32.mrb[33].mxu0  ;;  %6486 = vmatmul.mubr.msk.bf16.vlgmr.msra.gmra.mrb[36].mxu1 %vm1529_vm0, %v2382_v10  ;;  %6745 = vrot.lane.b32.xlu1 %v6744_v1, %s7405_s23  ;;  %v7040_v31 = vld [vmem:[%s9268_s11 + $0x48] sm:$0xff]   ;;  %v7045_v1 = vld [vmem:[%s9268_s11 + $0x18] sm:$0xff]  }
 0x388   : > { %v2260_v26 = vmul.f32 %v2241_v41, %v1849_v12  ;;  %v2365_v27 = vmul.f32 %v2346_v42, %v1881_v14  ;;  %v6470_v37 = vpop.f32.mrb[34].mxu1  ;;  %v6480_v43 = vpop.f32.mrb[34].mxu0  ;;  %6506 = vmatpush3.bf16.msra.mxu1 %v7036_v16  ;;  %v7039_v12 = vld [vmem:[%s9268_s11] sm:$0xff]  }
 0x389   : > { %v2375_v44 = vadd.f32 %v2367_v36, %v2262_v35  ;;  %v2263_v38 = vmul.f32 %v6470_v37, %v1860_v33  ;;  %v2368_v45 = vmul.f32 %v6480_v43, %v1892_v34  ;;  %v2244_v20 = vpop.f32.mrb[35].mxu1  ;;  %v2349_v46 = vpop.f32.mrb[35].mxu0  ;;  %6750 = vrot.lane.b32.xlu0 %v6749_v2, %s7407_s16  ;;  %6507 = vmatprep.subr.bf16.mxu1 %v7404_v21  ;;  %v2864_v34 = vld [vmem:[#allocation2 + $0x7f] sm:$0xff]  ;;  %v7041_v37 = vld [vmem:[%s9268_s11 + $0x8] sm:$0xff]  }
 0x38a   : > { %v2373_v28 = vadd.f32 %v2365_v27, %v2260_v26  ;;  %v2261_v47 = vmul.f32 %v2244_v20, %v1852_v19  ;;  %v2366_v39 = vmul.f32 %v2349_v46, %v1884_v13  ;;  %v8077_v35 = vld [vmem:[#allocation2 + $0x7e] sm:$0xff]  ;;  %v7042_v46 = vld [vmem:[%s9268_s11 + $0x50] sm:$0xff]  }
 0x38b   : > { %v2376_v48 = vadd.f32 %v2368_v45, %v2263_v38 }
 0x38c   : > { %v2374_v49 = vadd.f32 %v2366_v39, %v2261_v47  ;;  %6508 = vmatpush3.bf16.msra.mxu1 %v7037_v3  ;;  %v7046_v3 = vld [vmem:[%s9268_s11 + $0x60] sm:$0xff]  }
 0x38d   : > { %v2384_v50 = vpack.c.bf16 %v2376_v48, %v2375_v44  ;;  %6513 = vmatprep.subr.bf16.mxu1 %v7404_v21 }
 0x38e   : > { %v2383_v40 = vpack.c.bf16 %v2374_v49, %v2373_v28 }
 0x390   : > { %6489 = vmatprep.mubr.msk.bf16.mxu1 %vm1529_vm0, %v2383_v40 }
 0x391   : > { %6490 = vmatmul.mubr.msk.bf16.gmra.mrb[40].mxu1 %vm1529_vm0, %v2384_v50 }
 0x392   : > { %6509 = vmatprep.mubr.msk.bf16.mxu1 %vm7408_vm4, %v7404_v21 }
 0x45a   : > { %v6487_v5 = vpop.f32.mrb[36].mxu1 }
 0x45b   : > { %v8041_v6 = vadd.f32 %v6487_v5, %v6038_v4  ;;  %v2450_v17 = vpop.f32.mrb[37].mxu1 }
 0x45c   : > { %v8043_v7 = vadd.f32 %v6038_v4, %v2450_v17  ;;  %v6488_v24 = vpop.f32.mrb[38].mxu1 }
 0x45d   : > { %2545 = vst.msk [vmem:[#allocation2 + $0xc6] sm:$0xff] %vm1529_vm0, %v8041_v6  ;;  %v8047_v8 = vadd.f32 %v6488_v24, %v6038_v4  ;;  %v2453_v9 = vpop.f32.mrb[39].mxu1  ;;  %v2699_v33 = vsel %vm1529_vm0, %v8041_v6, 0.0 }
 0x45e   : > { %2543 = vst.msk [vmem:[#allocation2 + $0x96] sm:$0xff] %vm1529_vm0, %v8043_v7  ;;  %v8051_v10 = vadd.f32 %v6038_v4, %v2453_v9  ;;  %v2696_v11 = vsel %vm1529_vm0, %v8043_v7, 0.0 }
 0x45f   : > { %2546 = vst.msk [vmem:[#allocation2 + $0xde] sm:$0xff] %vm1529_vm0, %v8047_v8  ;;  %v8068_v30 = vpack.c.bf16 %v8047_v8, %v8041_v6  ;;  %v2701_v42 = vsel %vm1529_vm0, %v8047_v8, 0.0 }
 0x460   : > { %2544 = vst.msk [vmem:[#allocation2 + $0xae] sm:$0xff] %vm1529_vm0, %v8051_v10  ;;  %v2697_v18 = vsel %vm1529_vm0, %v8051_v10, 0.0  ;;  %v8063_v25 = vpack.c.bf16 %v8051_v10, %v8043_v7 }
 0x461   : > { %v2698_v14 = vadd.f32 %v2697_v18, %v2696_v11  ;;  %v7047_v18 = vld [vmem:[%s9268_s11 + $0x20] sm:$0xff]  }
 0x462   : > { %6497 = vmatprep.mubr.msk.bf16.mxu0 %vm1529_vm0, %v8063_v25 }
 0x463   : > { %6498 = vmatmul.mubr.msk.bf16.vlgmr.msra.gmra.mrb[36].mxu0 %vm1529_vm0, %v8068_v30  ;;  %v2700_v36 = vadd.f32 %v2699_v33, %v2698_v14  ;;  %v7048_v33 = vld [vmem:[%s9268_s11 + $0x68] sm:$0xff]  }
 0x464   : > { %v6491_v41 = vpop.f32.mrb[40].mxu1  ;;  %6250 = vmatpush3.bf16.msra.mxu0 %v7039_v12  ;;  %v8109_v40 = vld [vmem:[#allocation2 + $0xc5] sm:$0xff] }
 0x465   : > { %v8081_v19 = vadd.f32 %v6491_v41, %v6038_v4  ;;  %v2466_v13 = vpop.f32.mrb[41].mxu1  ;;  %v2865_v26 = vld [vmem:[#allocation2 + $0x97] sm:$0xff]  ;;  %6251 = vmatprep.subr.bf16.mxu0 %v7040_v31  ;;  %v2702_v20 = vadd.f32 %v2701_v42, %v2700_v36  ;;  %v8119_v52 = vld [vmem:[#allocation2 + $0xc7] sm:$0xff] }
 0x466   : > { %v8083_v27 = vld [vmem:[#allocation2 + $0x96] sm:$0xff]  ;;  %v8086_v43 = vadd.f32 %v6038_v4, %v2466_v13  ;;  %v6492_v44 = vpop.f32.mrb[42].mxu1  ;;  %v6759_v38 = vpack.i.bf16 %v2865_v26, %v2864_v34  ;;  %v8103_v49 = vld [vmem:[#allocation2 + $0xdf] sm:$0xff]  ;;  %v3502_v61 = vld [vmem:[#allocation2 + $0xcc] sm:$0xff] }
 0x467   : > { %v6754_v45 = vpack.i.bf16 %v8083_v27, %v8077_v35  ;;  %2549 = vst.msk [vmem:[#allocation2 + $0x126] sm:$0xff] %vm1529_vm0, %v8081_v19  ;;  %v8093_v28 = vadd.f32 %v6492_v44, %v6038_v4  ;;  %v2469_v47 = vpop.f32.mrb[43].mxu1  ;;  %v8095_v39 = vld [vmem:[#allocation2 + $0xdd] sm:$0xff]  ;;  %v6764_v56 = vpack.i.bf16 %v8103_v49, %v8119_v52  ;;  %v8134_v59 = vld [vmem:[#allocation2 + $0xaf] sm:$0xff]  ;;  %v2707_v62 = vsel %vm1529_vm0, %v8081_v19, 0.0  ;;  %v2898_v24 = vld [vmem:[#allocation2 + $0xc6] sm:$0xff] }
 0x468   : > { %2547 = vst.msk [vmem:[#allocation2 + $0xf6] sm:$0xff] %vm1529_vm0, %v8086_v43  ;;  %v8099_v48 = vadd.f32 %v6038_v4, %v2469_v47  ;;  %6760 = vrot.lane.b32.xlu1 %v6759_v38, %s7405_s23  ;;  %v2703_v50 = vsel %vm1529_vm0, %v8086_v43, 0.0  ;;  %6252 = vmatpush3.bf16.msra.mxu0 %v7041_v37  ;;  %v6769_v51 = vpack.i.bf16 %v8095_v39, %v8109_v40  ;;  %v3503_v57 = vld [vmem:[#allocation2 + $0xe4] sm:$0xff]  ;;  %v3495_v2 = vld [vmem:[#allocation2 + $0xd8] sm:$0xff]  ;;  %v8147_v23 = vld [vmem:[#allocation2 + $0xae] sm:$0xff] }
 0x469   : > { %6755 = vrot.lane.b32.xlu0 %v6754_v45, %s7406_s10  ;;  %2550 = vst.msk [vmem:[#allocation2 + $0x13e] sm:$0xff] %vm1529_vm0, %v8093_v28  ;;  %v2704_v32 = vadd.f32 %v2703_v50, %v2702_v20  ;;  %6253 = vmatprep.subr.bf16.mxu0 %v7042_v46  ;;  %v8126_v55 = vpack.c.bf16 %v8093_v28, %v8081_v19  ;;  %v2709_v16 = vsel %vm1529_vm0, %v8093_v28, 0.0  ;;  %v3494_v5 = vld [vmem:[#allocation2 + $0xc0] sm:$0xff]  ;;  %v8150_v9 = vld [vmem:[#allocation2 + $0xad] sm:$0xff]  ;;  %v3469_v50 = vld [vmem:[#allocation2 + $0x18] sm:$0xff] }
 0x46a   : > { %2548 = vst.msk [vmem:[#allocation2 + $0x10e] sm:$0xff] %vm1529_vm0, %v8099_v48  ;;  %v8115_v29 = vpack.c.bf16 %v8099_v48, %v8086_v43  ;;  %v2705_v53 = vsel %vm1529_vm0, %v8099_v48, 0.0  ;;  %v6774_v63 = vpack.i.bf16 %v3503_v57, %v3502_v61  ;;  %v6784_v22 = vpack.i.bf16 %v8134_v59, %v2865_v26  ;;  %v6726_v26 = vpop.permute.xlu0 %6725  ;;  %v7049_v37 = vld [vmem:[%s9268_s11 + $0x28] sm:$0xff]   ;;  %v7050_v20 = vld [vmem:[%s9268_s11 + $0x70] sm:$0xff]  }
 0x46b   : > { %v2706_v60 = vadd.f32 %v2705_v53, %v2704_v32  ;;  %v6779_v17 = vpack.i.bf16 %v3495_v2, %v3494_v5  ;;  %v6794_v12 = vpack.i.bf16 %v2898_v24, %v8147_v23  ;;  %v6789_v42 = vpack.i.bf16 %v8109_v40, %v8150_v9  ;;  %v8173_v32 = vld [vmem:[#allocation2 + $0x95] sm:$0xff]  ;;  %v6731_v53 = vpop.permute.xlu1 %6730 }
 0x46c   : > { %6501 = vmatprep.mubr.msk.bf16.mxu0 %vm1529_vm0, %v8115_v29  ;;  %6770 = vrot.lane.b32.xlu1 %v6769_v51, %s7407_s16  ;;  %v6728_v38 = vunpack.i.h.bf16 %v6726_v26  ;;  %v6727_v45 = vunpack.i.l.bf16 %v6726_v26  ;;  %v3468_v51 = vld [vmem:[#allocation2] sm:$0xff]  ;;  %v7051_v61 = vld [vmem:[%s9268_s11 + $0x30] sm:$0xff]  }
 0x46d   : > { %6502 = vmatmul.mubr.msk.bf16.gmra.mrb[40].mxu0 %vm1529_vm0, %v8126_v55  ;;  %6765 = vrot.lane.b32.xlu0 %v6764_v56, %s7406_s10  ;;  %v2708_v0 = vadd.f32 %v2707_v62, %v2706_v60  ;;  %v2899_v56 = vld [vmem:[#allocation2 + $0xde] sm:$0xff]  ;;  %v6732_v60 = vunpack.i.l.bf16 %v6731_v53 }
 0x46e   : > { %6254 = vmatpush3.bf16.msra.mxu0 %v7043_v54  ;;  %v8154_v14 = vld [vmem:[#allocation2 + $0x12c] sm:$0xff]  ;;  %v6799_v54 = vpack.i.bf16 %v8150_v9, %v8173_v32 }
 0x46f   : > { %6255 = vmatprep.subr.bf16.mxu0 %v7044_v58  ;;  %v2710_v4 = vadd.f32 %v2709_v16, %v2708_v0  ;;  %v8160_v34 = vld [vmem:[#allocation2 + $0xf5] sm:$0xff]  ;;  %v6733_v58 = vunpack.i.h.bf16 %v6731_v53  ;;  %v3725_v0 = vsel %vm1529_vm0, %v3468_v51, %v6727_v45  ;;  %v2886_v26 = vld [vmem:[#allocation2 + $0x127] sm:$0xff] }
 0x470   : > { %6775 = vrot.lane.b32.xlu1 %v6774_v63, %s7406_s10  ;;  %v8156_v31 = vld [vmem:[#allocation2 + $0x144] sm:$0xff]  ;;  %v6824_v44 = vpack.i.bf16 %v8160_v34, %v8095_v39  ;;  %v2900_v46 = vld [vmem:[#allocation2 + $0xf6] sm:$0xff]  ;;  %v3726_v63 = vsel %vm1529_vm0, %v3469_v50, %v6728_v38 }
 0x471   : > { %6785 = vrot.lane.b32.xlu0 %v6784_v22, %s7406_s10  ;;  %v2711_v11 = vrot.slane %v2710_v4, 4  ;;  %v3811_v41 = vpack.c.bf16 %v8156_v31, %v8154_v14  ;;  %v6829_v62 = vpack.i.bf16 %v2900_v46, %v2899_v56  ;;  %v2869_v2 = vld [vmem:[#allocation2 + $0xf7] sm:$0xff]  ;;  %v8188_v5 = vsel %vm3113_vm5, %v3726_v63, %v6733_v58  ;;  %v8213_v46 = vld [vmem:[#allocation2 + $0x125] sm:$0xff]  ;;  %v2885_v51 = vld [vmem:[#allocation2 + $0x10f] sm:$0xff] }
 0x472   : > { %6256 = vmatpush3.bf16.msra.mxu0 %v7045_v1  ;;  %v7052_v1 = vld [vmem:[%s9268_s11 + $0x78] sm:$0xff]   ;;  %v8207_v38 = vld [vmem:[#allocation2 + $0x90] sm:$0xff]  ;;  %v3509_v53 = vld [vmem:[#allocation2 + $0x120] sm:$0xff]  ;;  %v6874_v56 = vpack.i.bf16 %v2885_v51, %v2869_v2 }
 0x473   : > { %6257 = vmatprep.subr.bf16.mxu0 %v7046_v3  ;;  %v2712_v36 = vadd.f32 %v2711_v11, %v2710_v4  ;;  %v7053_v3 = vld [vmem:[%s9268_s11 + $0x38] sm:$0xff]   ;;  %v8185_v4 = vsel %vm3113_vm5, %v3725_v0, %v6732_v60  ;;  %v3513_v60 = vld [vmem:[#allocation2 + $0x180] sm:$0xff] }
 0x474   : > { %6780 = vrot.lane.b32.xlu1 %v6779_v17, %s7407_s16  ;;  %v6839_v17 = vpack.i.bf16 %v2869_v2, %v8103_v49  ;;  %v3518_v11 = vld [vmem:[#allocation2 + $0x13e] sm:$0xff] }
 0x475   : > { %6795 = vrot.lane.b32.xlu0 %v6794_v12, %s7407_s16  ;;  %v2713_v13 = vrot.slane %v2712_v36, 2  ;;  %v2887_v49 = vld [vmem:[#allocation2 + $0x13f] sm:$0xff]  ;;  %v6864_v58 = vpack.i.bf16 %v8008_v15, %v3518_v11 }
 0x476   : > { %6258 = vmatpush3.bf16.msra.mxu0 %v7047_v18  ;;  %v6809_v18 = vpack.i.bf16 %v8119_v52, %v8134_v59  ;;  %v2895_v52 = vld [vmem:[#allocation2 + $0x13d] sm:$0xff]  ;;  %v2896_v59 = vld [vmem:[#allocation2 + $0x155] sm:$0xff] }
 0x477   : > { %6259 = vmatprep.subr.bf16.mxu0 %v7048_v33  ;;  %v2714_v47 = vadd.f32 %v2713_v13, %v2712_v36  ;;  %v3517_v33 = vld [vmem:[#allocation2 + $0x126] sm:$0xff]  ;;  %v3510_v50 = vld [vmem:[#allocation2 + $0x138] sm:$0xff] }
 0x478   : > { %6790 = vrot.lane.b32.xlu1 %v6789_v42, %s7405_s23  ;;  %v6849_v36 = vpack.i.bf16 %v3518_v11, %v3517_v33  ;;  %v3501_v42 = vld [vmem:[#allocation2 + $0xb4] sm:$0xff]  ;;  %v8235_v11 = vld [vmem:[%s9270_s7 + $0x80] sm:$0xff]  }
 0x479   : > { %6825 = vrot.lane.b32.xlu0 %v6824_v44, %s7405_s23  ;;  %v2715_v57 = vrot.slane %v2714_v47, 1  ;;  %v8202_v44 = vld [vmem:[#allocation2 + $0xa8] sm:$0xff] }
 0x47a   : > { %6260 = vmatpush3.bf16.msra.mxu0 %v7049_v37  ;;  %v6854_v37 = vpack.i.bf16 %v2887_v49, %v2886_v26  ;;  %v6819_v45 = vpack.i.bf16 %v8202_v44, %v8207_v38  ;;  %v6934_v49 = vpack.i.bf16 %v8147_v23, %v8083_v27  ;;  %v3523_v27 = vld [vmem:[#allocation2 + $0x1b6] sm:$0xff]  ;;  %v3524_v23 = vld [vmem:[#allocation2 + $0x1ce] sm:$0xff] }
 0x47b   : > { %6261 = vmatprep.subr.bf16.mxu0 %v7050_v20  ;;  %v2716_v22 = vadd.f32 %v2715_v57, %v2714_v47  ;;  %v6859_v20 = vpack.i.bf16 %v2896_v59, %v2895_v52  ;;  %v6869_v47 = vpack.i.bf16 %v2895_v52, %v8213_v46  ;;  %v8219_v57 = vld [vmem:[#allocation2 + $0x10d] sm:$0xff] }
 0x47c   : > { %6800 = vrot.lane.b32.xlu1 %v6799_v54, %s7407_s16  ;;  %v6844_v54 = vpack.i.bf16 %v3510_v50, %v3509_v53  ;;  %v6879_v63 = vpack.i.bf16 %v8213_v46, %v8219_v57  ;;  %v6899_v15 = vpack.i.bf16 %v8219_v57, %v8160_v34  ;;  %v3515_v59 = vld [vmem:[#allocation2 + $0x1b0] sm:$0xff]  ;;  %v6954_v50 = vpack.i.bf16 %v3524_v23, %v3523_v27  ;;  %v6736_v53 = vpop.permute.xlu0 %6735 }
 0x47d   : > { %6830 = vrot.lane.b32.xlu0 %v6829_v62, %s7407_s16  ;;  %v2718_v16 = vmul.f32 0.015625, %v2716_v22 }
 0x47e   : > { %6262 = vmatpush3.bf16.msra.mxu0 %v7051_v61  ;;  %v3514_v61 = vld [vmem:[#allocation2 + $0x198] sm:$0xff] }
 0x47f   : > { %6263 = vmatprep.subr.bf16.mxu0 %v7052_v1  ;;  %v2723_v24 = vpack.c.bf16 %v2718_v16, %v2718_v16  ;;  %v6894_v0 = vpack.i.bf16 %v3514_v61, %v3513_v60  ;;  %v3480_v1 = vld [vmem:[#allocation2 + $0x66] sm:$0xff]  ;;  %v2780_v60 = vld [vmem:[%s9271_s15] sm:$0x1]  ;;  %s9277_s15 = sld [smem:[#allocation20_spill]] }
 0x480   : > { %6805 = vrot.lane.b32.xlu1 %v6794_v12, %s7406_s10  ;;  %v3500_v12 = vld [vmem:[#allocation2 + $0x9c] sm:$0xff]  ;;  %v6889_v2 = vpack.i.bf16 %v8077_v35, %v3480_v1  ;;  %v3488_v16 = vld [vmem:[#allocation2 + $0x6c] sm:$0xff]  ;;  %v2788_v61 = vsel %vm2786_vm6, %v2780_v60, 0  ;;  %v6737_v1 = vunpack.i.l.bf16 %v6736_v53 }
 0x481   : > { %6840 = vrot.lane.b32.xlu0 %v6839_v17, %s7405_s23  ;;  %6510 = vmatmul.mubr.msk.bf16.vlgmr.msra.gmra.mrb[44].mxu1 %vm1529_vm0, %v2723_v24  ;;  %v8200_v13 = vpack.i.bf16 %v3501_v42, %v3500_v12  ;;  %v3521_v17 = vld [vmem:[#allocation2 + $0x186] sm:$0xff]  ;;  %v3522_v24 = vld [vmem:[#allocation2 + $0x19e] sm:$0xff] }
 0x482   : > { %6264 = vmatpush3.bf16.msra.mxu0 %v7053_v3  ;;  %6515 = vmatprep.mubr.msk.bf16.mxu1 %vm7408_vm4, %v7404_v21  ;;  %v3489_v3 = vld [vmem:[#allocation2 + $0x84] sm:$0xff]  ;;  %v6919_v35 = vpack.i.bf16 %v3522_v24, %v3521_v17  ;;  %v3504_v42 = vld [vmem:[#allocation2 + $0xfc] sm:$0xff] }
 0x483   : > { %6531 = vmatprep.subr.bf16.mxu0 %v8235_v11  ;;  %6514 = vmatpush3.bf16.msra.mxu1 %v2788_v61 }
 0x484   : > { %6810 = vrot.lane.b32.xlu1 %v6809_v18, %s7405_s23  ;;  %v6914_v18 = vpack.i.bf16 %v2886_v26, %v2885_v51  ;;  %v3496_v26 = vld [vmem:[#allocation2 + $0xf0] sm:$0xff]  ;;  %v6741_v51 = vpop.permute.xlu1 %6740 }
 0x485   : > { %6850 = vrot.lane.b32.xlu0 %v6849_v36, %s7407_s16  ;;  %v3505_v36 = vld [vmem:[#allocation2 + $0x114] sm:$0xff]  ;;  %v6743_v17 = vunpack.i.h.bf16 %v6741_v51  ;;  %v6742_v24 = vunpack.i.l.bf16 %v6741_v51  ;;  %v2848_v51 = vld [vmem:[#allocation2 + $0x7d] sm:$0xff] }
 0x486   : > { %v6924_v12 = vpack.i.bf16 %v3505_v36, %v3504_v42 }
 0x488   : > { %6815 = vrot.lane.b32.xlu1 %v8200_v13, %s7406_s10 }
 0x489   : > { %6855 = vrot.lane.b32.xlu0 %v6854_v37, %s7406_s10  ;;  %v3497_v37 = vld [vmem:[#allocation2 + $0x108] sm:$0xff] }
 0x48a   : > { %v6944_v52 = vpack.i.bf16 %v3497_v37, %v3496_v26 }
 0x48c   : > { %6820 = vrot.lane.b32.xlu1 %v6819_v45, %s7407_s16  ;;  %v3516_v45 = vld [vmem:[#allocation2 + $0x1c8] sm:$0xff] }
 0x48d   : > { %6860 = vrot.lane.b32.xlu0 %v6859_v20, %s7405_s23  ;;  %v6929_v20 = vpack.i.bf16 %v8156_v31, %v8154_v14 }
 0x490   : > { %6835 = vrot.lane.b32.xlu1 %v6829_v62, %s7406_s10  ;;  %v2901_v62 = vld [vmem:[#allocation2 + $0x10e] sm:$0xff] }
 0x491   : > { %6870 = vrot.lane.b32.xlu0 %v6869_v47, %s7407_s16  ;;  %v6884_v22 = vpack.i.bf16 %v3517_v33, %v2901_v62  ;;  %v6909_v33 = vpack.i.bf16 %v3489_v3, %v3488_v16  ;;  %v6939_v47 = vpack.i.bf16 %v3516_v45, %v3515_v59 }
 0x494   : > { %6845 = vrot.lane.b32.xlu1 %v6844_v54, %s7405_s23 }
 0x495   : > { %6875 = vrot.lane.b32.xlu0 %v6874_v56, %s7406_s10  ;;  %v6746_v56 = vpop.permute.xlu1 %6745 }
 0x496   : > { %v6748_v16 = vunpack.i.h.bf16 %v6746_v56  ;;  %v6747_v3 = vunpack.i.l.bf16 %v6746_v56 }
 0x498   : > { %6865 = vrot.lane.b32.xlu1 %v6864_v58, %s7407_s16  ;;  %v6751_v58 = vpop.permute.xlu0 %6750 }
 0x499   : > { %6880 = vrot.lane.b32.xlu0 %v6879_v63, %s7405_s23  ;;  %v6753_v36 = vunpack.i.h.bf16 %v6751_v58  ;;  %v6752_v42 = vunpack.i.l.bf16 %v6751_v58 }
 0x49c   : > { %6885 = vrot.lane.b32.xlu1 %v6884_v22, %s7407_s16 }
 0x49d   : > { %6895 = vrot.lane.b32.xlu0 %v6894_v0, %s7405_s23  ;;  %v8259_v0 = vld [vmem:[%s9268_s11 + $0x80] sm:$0xff]  }
 0x49e   : > { %6519 = vmatprep.subr.bf16.mxu1 %v8259_v0 }
 0x4a0   : > { %6890 = vrot.lane.b32.xlu1 %v6889_v2, %s7406_s10  ;;  %v3471_v2 = vld [vmem:[#allocation2 + $0x48] sm:$0xff] }
 0x4a1   : > { %6900 = vrot.lane.b32.xlu0 %v6899_v15, %s7407_s16 }
 0x4a4   : > { %6905 = vrot.lane.b32.xlu1 %v6884_v22, %s7406_s10  ;;  %v3470_v22 = vld [vmem:[#allocation2 + $0x30] sm:$0xff] }
 0x4a5   : > { %6915 = vrot.lane.b32.xlu0 %v6914_v18, %s7405_s23 }
 0x4a8   : > { %6910 = vrot.lane.b32.xlu1 %v6909_v33, %s7405_s23  ;;  %v3727_v33 = vsel %vm1529_vm0, %v3470_v22, %v6737_v1 }
 0x4a9   : > { %6920 = vrot.lane.b32.xlu0 %v6919_v35, %s7407_s16  ;;  %v3735_v26 = vsel %vm3113_vm5, %v3727_v33, %v6747_v3 }
 0x4ac   : > { %6935 = vrot.lane.b32.xlu1 %v6934_v49, %s7406_s10 }
 0x4ad   : > { %6925 = vrot.lane.b32.xlu0 %v6924_v12, %s7406_s10 }
 0x4b0   : > { %6945 = vrot.lane.b32.xlu1 %v6944_v52, %s7407_s16 }
 0x4b1   : > { %6930 = vrot.lane.b32.xlu0 %v6929_v20, %s7406_s10 }
 0x4b4   : > { %6950 = vrot.lane.b32.xlu1 %v8200_v13, %s7405_s23  ;;  %v6738_v13 = vunpack.i.h.bf16 %v6736_v53 }
 0x4b5   : > { %6940 = vrot.lane.b32.xlu0 %v6939_v47, %s7405_s23 }
 0x4b6   : > { %v3728_v18 = vsel %vm1529_vm0, %v3471_v2, %v6738_v13 }
 0x4b7   : > { %v3736_v52 = vsel %vm3113_vm5, %v3728_v18, %v6748_v16 }
 0x4b8   : > { %6960 = vrot.lane.b32.xlu1 %v6844_v54, %s7407_s16 }
 0x4b9   : > { %6955 = vrot.lane.b32.xlu0 %v6954_v50, %s7407_s16 }
 0x4da   : > { %v8256_v63 = vpop.permute.xlu1 %6760 }
 0x4db   : > { %v6756_v62 = vpop.permute.xlu0 %6755  ;;  %v6763_v22 = vunpack.i.h.bf16 %v8256_v63  ;;  %v6762_v3 = vunpack.i.l.bf16 %v8256_v63 }
 0x4dc   : > { %v6758_v20 = vunpack.i.h.bf16 %v6756_v62  ;;  %v6757_v47 = vunpack.i.l.bf16 %v6756_v62 }
 0x4de   : > { %v8262_v54 = vpop.permute.xlu1 %6770 }
 0x4df   : > { %v8264_v15 = vpop.permute.xlu0 %6765 }
 0x4e2   : > { %v6776_v35 = vpop.permute.xlu1 %6775 }
 0x4e3   : > { %v6778_v49 = vunpack.i.h.bf16 %v6776_v35  ;;  %v6777_v12 = vunpack.i.l.bf16 %v6776_v35  ;;  %v6786_v37 = vpop.permute.xlu0 %6785  ;;  %v6768_v35 = vunpack.i.h.bf16 %v8264_v15 }
 0x4e4   : > { %v6788_v13 = vunpack.i.h.bf16 %v6786_v37  ;;  %v6787_v1 = vunpack.i.l.bf16 %v6786_v37 }
 0x4e5   : > { %v3752_v59 = vsel %vm1529_vm0, %v8047_v8, %v6778_v49  ;;  %v3751_v45 = vsel %vm1529_vm0, %v8041_v6, %v6777_v12 }
 0x4e6   : > { %v6781_v27 = vpop.permute.xlu1 %6780  ;;  %v3759_v23 = vsel %vm3113_vm5, %v3751_v45, %v6742_v24  ;;  %v3760_v50 = vsel %vm3113_vm5, %v3752_v59, %v6743_v17  ;;  %v3105_v17 = vsel %vm1529_vm0, %v2848_v51, %v6757_v47  ;;  %v3106_v24 = vsel %vm1529_vm0, %v8173_v32, %v6758_v20 }
 0x4e7   : > { %v6783_v53 = vunpack.i.h.bf16 %v6781_v27  ;;  %v6782_v56 = vunpack.i.l.bf16 %v6781_v27  ;;  %v6796_v58 = vpop.permute.xlu0 %6795  ;;  %v8277_v60 = vsel %vm3122_vm7, %v3759_v23, %v6752_v42  ;;  %v8280_v61 = vsel %vm3122_vm7, %v3760_v50, %v6753_v36 }
 0x4e8   : > { %v3813_v62 = vpack.c.bf16 %v8280_v61, %v8277_v60  ;;  %v6767_v36 = vunpack.i.l.bf16 %v8264_v15  ;;  %v3132_v37 = vsel %vm1529_vm0, %v8051_v10, %v6788_v13  ;;  %v3131_v63 = vsel %vm1529_vm0, %v8043_v7, %v6787_v1 }
 0x4e9   : > { %v8286_v2 = vsel %vm3122_vm7, %v3735_v26, %v6782_v56  ;;  %v8289_v16 = vsel %vm3122_vm7, %v3736_v52, %v6783_v53  ;;  %v6798_v26 = vunpack.i.h.bf16 %v6796_v58  ;;  %v6797_v52 = vunpack.i.l.bf16 %v6796_v58 }
 0x4ea   : > { %v6791_v18 = vpop.permute.xlu1 %6790  ;;  %v3812_v33 = vpack.c.bf16 %v8289_v16, %v8286_v2  ;;  %v3114_v15 = vsel %vm3113_vm5, %v3105_v17, %v6762_v3  ;;  %v3115_v53 = vsel %vm3113_vm5, %v3106_v24, %v6763_v22  ;;  %v3134_v13 = vsel %vm1529_vm0, %v8047_v8, %v6768_v35 }
 0x4eb   : > { %v6793_v42 = vunpack.i.h.bf16 %v6791_v18  ;;  %v6792_v49 = vunpack.i.l.bf16 %v6791_v18  ;;  %v6826_v12 = vpop.permute.xlu0 %6825  ;;  %v3133_v1 = vsel %vm1529_vm0, %v8041_v6, %v6767_v36 }
 0x4ec   : > { %v6828_v45 = vunpack.i.h.bf16 %v6826_v12  ;;  %v6827_v20 = vunpack.i.l.bf16 %v6826_v12 }
 0x4ed   : > { %v3139_v32 = vsel %vm3113_vm5, %v3131_v63, %v6792_v49  ;;  %v3140_v59 = vsel %vm3113_vm5, %v3132_v37, %v6793_v42  ;;  %v7055_v63 = vld [vmem:[%s9270_s7 + $0x88] sm:$0xff]  }
 0x4ee   : > { %v6801_v47 = vpop.permute.xlu1 %6800  ;;  %v3147_v27 = vsel %vm3122_vm7, %v3139_v32, %v6797_v52  ;;  %v3148_v23 = vsel %vm3122_vm7, %v3140_v59, %v6798_v26  ;;  %v3142_v3 = vsel %vm3113_vm5, %v3134_v13, %v6828_v45  ;;  %v3141_v17 = vsel %vm3113_vm5, %v3133_v1, %v6827_v20  ;;  %v8324_v45 = vld [vmem:[%s9272_s28] sm:$0xff]  }
 0x4ef   : > { %v6803_v50 = vunpack.i.h.bf16 %v6801_v47  ;;  %v6802_v51 = vunpack.i.l.bf16 %v6801_v47  ;;  %v6831_v56 = vpop.permute.xlu0 %6830  ;;  %v3192_v58 = vpack.c.bf16 %v3148_v23, %v3147_v27  ;;  %v6773_v27 = vunpack.i.h.bf16 %v8262_v54 }
 0x4f0   : > { %v6833_v18 = vunpack.i.h.bf16 %v6831_v56  ;;  %v6832_v42 = vunpack.i.l.bf16 %v6831_v56  ;;  %v6772_v23 = vunpack.i.l.bf16 %v8262_v54 }
 0x4f1   : > { %v3123_v49 = vsel %vm3122_vm7, %v3114_v15, %v6802_v51  ;;  %v3124_v12 = vsel %vm3122_vm7, %v3115_v53, %v6803_v50  ;;  %3362 = vmatprep.mubr.bf16.mxu0 %v3192_v58 }
 0x4f2   : > { %v3191_v22 = vpack.c.bf16 %v3124_v12, %v3123_v49  ;;  %v6806_v24 = vpop.permute.xlu1 %6805  ;;  %v3149_v37 = vsel %vm3122_vm7, %v3141_v17, %v6832_v42  ;;  %v3150_v35 = vsel %vm3122_vm7, %v3142_v3, %v6833_v18 }
 0x4f3   : > { %v8320_v36 = vpop.permute.xlu0 %6840  ;;  %v3195_v26 = vpack.c.bf16 %v3150_v35, %v3149_v37  ;;  %v6808_v52 = vunpack.i.h.bf16 %v6806_v24  ;;  %v6807_v32 = vunpack.i.l.bf16 %v6806_v24 }
 0x4f4   : > { %3363 = vmatmul.mubr.bf16.vlgmr.msra.gmra.mrb[44].mxu0 %v3191_v22 }
 0x4f5   : > { %3370 = vmatprep.mubr.bf16.mxu0 %v3195_v26  ;;  %6532 = vmatpush3.bf16.msra.mxu0 %v8235_v11  ;;  %v3108_v50 = vsel %vm1529_vm0, %v8109_v40, %v6808_v52  ;;  %v3107_v51 = vsel %vm1529_vm0, %v8150_v9, %v6807_v32 }
 0x4f6   : > { %v6811_v59 = vpop.permute.xlu1 %6810  ;;  %6533 = vmatprep.subr.bf16.mxu0 %v7055_v63 }
 0x4f7   : > { %v6813_v20 = vunpack.i.h.bf16 %v6811_v59  ;;  %v6812_v47 = vunpack.i.l.bf16 %v6811_v59  ;;  %v6851_v15 = vpop.permute.xlu0 %6850 }
 0x4f8   : > { %v6853_v32 = vunpack.i.h.bf16 %v6851_v15  ;;  %v6852_v59 = vunpack.i.l.bf16 %v6851_v15 }
 0x4f9   : > { %v3116_v53 = vsel %vm3113_vm5, %v3107_v51, %v6812_v47  ;;  %v3117_v11 = vsel %vm3113_vm5, %v3108_v50, %v6813_v20  ;;  %6534 = vmatpush3.bf16.msra.mxu0 %v7055_v63 }
 0x4fa   : > { %v6816_v56 = vpop.permute.xlu1 %6815  ;;  %v3125_v58 = vsel %vm3122_vm7, %v3116_v53, %v6772_v23  ;;  %v3126_v13 = vsel %vm3122_vm7, %v3117_v11, %v6773_v27  ;;  %6543 = vmatprep.subr.bf16.mxu0 %v8324_v45 }
 0x4fb   : > { %v6856_v1 = vpop.permute.xlu0 %6855  ;;  %v3194_v54 = vpack.c.bf16 %v3126_v13, %v3125_v58  ;;  %v6818_v24 = vunpack.i.h.bf16 %v6816_v56  ;;  %v6817_v37 = vunpack.i.l.bf16 %v6816_v56 }
 0x4fc   : > { %v6858_v13 = vunpack.i.h.bf16 %v6856_v1 }
 0x4fd   : > { %3371 = vmatmul.mubr.bf16.gmra.mrb[48].mxu0 %v3194_v54  ;;  %v6857_v54 = vunpack.i.l.bf16 %v6856_v1 }
 0x4fe   : > { %v6821_v18 = vpop.permute.xlu1 %6820 }
 0x4ff   : > { %v6823_v40 = vunpack.i.h.bf16 %v6821_v18  ;;  %v6822_v42 = vunpack.i.l.bf16 %v6821_v18  ;;  %v6861_v3 = vpop.permute.xlu0 %6860 }
 0x501   : > { %v8339_v9 = vsel %vm3122_vm7, %v8188_v5, %v6823_v40  ;;  %v8343_v17 = vsel %vm3122_vm7, %v8185_v4, %v6822_v42  ;;  %v3750_v5 = vsel %vm1529_vm0, %v8051_v10, %v6818_v24  ;;  %v3749_v4 = vsel %vm1529_vm0, %v8043_v7, %v6817_v37 }
 0x502   : > { %v3809_v49 = vpack.c.bf16 %v8339_v9, %v8343_v17  ;;  %v6836_v12 = vpop.permute.xlu1 %6835 }
 0x503   : > { %v8347_v22 = vpop.permute.xlu0 %6870  ;;  %v6838_v18 = vunpack.i.h.bf16 %v6836_v12  ;;  %v6837_v40 = vunpack.i.l.bf16 %v6836_v12 }
 0x506   : > { %v6846_v35 = vpop.permute.xlu1 %6845 }
 0x507   : > { %v6876_v63 = vpop.permute.xlu0 %6875  ;;  %v6848_v26 = vunpack.i.h.bf16 %v6846_v35  ;;  %v6847_v52 = vunpack.i.l.bf16 %v6846_v35 }
 0x508   : > { %v6878_v51 = vunpack.i.h.bf16 %v6876_v63  ;;  %v6877_v53 = vunpack.i.l.bf16 %v6876_v63 }
 0x509   : > { %v3758_v20 = vsel %vm3113_vm5, %v3750_v5, %v6848_v26  ;;  %v3757_v47 = vsel %vm3113_vm5, %v3749_v4, %v6847_v52  ;;  %v6863_v52 = vunpack.i.h.bf16 %v6861_v3 }
 0x50a   : > { %v6866_v27 = vpop.permute.xlu1 %6865  ;;  %v8356_v23 = vsel %vm3122_vm7, %v3757_v47, %v6852_v59  ;;  %v8359_v50 = vsel %vm3122_vm7, %v3758_v20, %v6853_v32  ;;  %v3136_v24 = vsel %vm1529_vm0, %v8099_v48, %v6878_v51  ;;  %v3135_v37 = vsel %vm1529_vm0, %v8086_v43, %v6877_v53 }
 0x50b   : > { %v6881_v15 = vpop.permute.xlu0 %6880  ;;  %v3810_v11 = vpack.c.bf16 %v8359_v50, %v8356_v23  ;;  %v6862_v32 = vunpack.i.l.bf16 %v6861_v3  ;;  %v6868_v1 = vunpack.i.h.bf16 %v6866_v27  ;;  %v6867_v4 = vunpack.i.l.bf16 %v6866_v27  ;;  %v7073_v23 = vld [vmem:[%s9270_s7 + $0x30] sm:$0xff]   ;;  %v7074_v50 = vld [vmem:[%s9270_s7 + $0x78] sm:$0xff]  }
 0x50c   : > { %v6883_v56 = vunpack.i.h.bf16 %v6881_v15  ;;  %v6882_v58 = vunpack.i.l.bf16 %v6881_v15  ;;  %v3109_v47 = vsel %vm1529_vm0, %v8095_v39, %v6837_v40  ;;  %v3110_v51 = vsel %vm1529_vm0, %v8160_v34, %v6838_v18 }
 0x50d   : > { %v6843_v3 = vunpack.i.h.bf16 %v8320_v36  ;;  %v3138_v27 = vsel %vm1529_vm0, %v8093_v28, %v6858_v13 }
 0x50e   : > { %v6886_v42 = vpop.permute.xlu1 %6885  ;;  %v3143_v59 = vsel %vm3113_vm5, %v3135_v37, %v6882_v58  ;;  %v3144_v5 = vsel %vm3113_vm5, %v3136_v24, %v6883_v56  ;;  %v6842_v58 = vunpack.i.l.bf16 %v8320_v36  ;;  %v3137_v56 = vsel %vm1529_vm0, %v8081_v19, %v6857_v54 }
 0x50f   : > { %v8367_v35 = vpop.permute.xlu0 %6895  ;;  %v6888_v63 = vunpack.i.h.bf16 %v6886_v42  ;;  %v6887_v26 = vunpack.i.l.bf16 %v6886_v42  ;;  %v3145_v24 = vsel %vm3113_vm5, %v3137_v56, %v6862_v32  ;;  %v3146_v39 = vsel %vm3113_vm5, %v3138_v27, %v6863_v52 }
 0x510   : > { %v3118_v18 = vsel %vm3113_vm5, %v3109_v47, %v6842_v58  ;;  %v3119_v37 = vsel %vm3113_vm5, %v3110_v51, %v6843_v3  ;;  %v3153_v36 = vsel %vm3122_vm7, %v3145_v24, %v6867_v4  ;;  %v6872_v51 = vunpack.i.l.bf16 %v8347_v22  ;;  %v3529_v24 = vld [vmem:[#allocation2 + $0x18c] sm:$0xff] }
 0x511   : > { %v3151_v12 = vsel %vm3122_vm7, %v3143_v59, %v6887_v26  ;;  %v3152_v20 = vsel %vm3122_vm7, %v3144_v5, %v6888_v63  ;;  %v3154_v63 = vsel %vm3122_vm7, %v3146_v39, %v6868_v1  ;;  %v6873_v1 = vunpack.i.h.bf16 %v8347_v22  ;;  %v3530_v22 = vld [vmem:[#allocation2 + $0x1a4] sm:$0xff] }
 0x512   : > { %v8377_v53 = vpop.permute.xlu1 %6890  ;;  %v3198_v15 = vpack.c.bf16 %v3152_v20, %v3151_v12 }
 0x513   : > { %v6901_v42 = vpop.permute.xlu0 %6900 }
 0x514   : > { %v6903_v40 = vunpack.i.h.bf16 %v6901_v42  ;;  %v6902_v34 = vunpack.i.l.bf16 %v6901_v42  ;;  %3378 = vmatprep.mubr.bf16.mxu0 %v3198_v15  ;;  %v3201_v15 = vpack.c.bf16 %v3154_v63, %v3153_v36 }
 0x516   : > { %v6906_v13 = vpop.permute.xlu1 %6905  ;;  %v3127_v26 = vsel %vm3122_vm7, %v3118_v18, %v6902_v34  ;;  %v3128_v54 = vsel %vm3122_vm7, %v3119_v37, %v6903_v40  ;;  %v3817_v40 = vpack.c.bf16 %v3530_v22, %v3529_v24  ;;  %v7057_v34 = vld [vmem:[%s9272_s28 + $0x8] sm:$0xff]   ;;  %v3531_v18 = vld [vmem:[#allocation2 + $0x1bc] sm:$0xff]  ;;  %v3532_v37 = vld [vmem:[#allocation2 + $0x1d4] sm:$0xff] }
 0x517   : > { %v6916_v59 = vpop.permute.xlu0 %6915  ;;  %v6908_v32 = vunpack.i.h.bf16 %v6906_v13  ;;  %v6907_v5 = vunpack.i.l.bf16 %v6906_v13  ;;  %v3197_v52 = vpack.c.bf16 %v3128_v54, %v3127_v26  ;;  %v3820_v36 = vpack.c.bf16 %v3532_v37, %v3531_v18  ;;  %v7064_v22 = vld [vmem:[%s9270_s7 + $0x50] sm:$0xff]   ;;  %v7066_v37 = vld [vmem:[%s9270_s7 + $0x58] sm:$0xff]  }
 0x518   : > { %v6918_v12 = vunpack.i.h.bf16 %v6916_v59  ;;  %v6917_v20 = vunpack.i.l.bf16 %v6916_v59 }
 0x519   : > { %v3112_v47 = vsel %vm1529_vm0, %v8213_v46, %v6908_v32  ;;  %v3111_v4 = vsel %vm1529_vm0, %v8219_v57, %v6907_v5  ;;  %3379 = vmatmul.mubr.bf16.gmra.mrb[52].mxu0 %v3197_v52  ;;  %v3527_v46 = vld [vmem:[#allocation2 + $0x15c] sm:$0xff]  ;;  %v3528_v57 = vld [vmem:[#allocation2 + $0x174] sm:$0xff] }
 0x51a   : > { %3386 = vmatprep.mubr.bf16.mxu0 %v3201_v15  ;;  %v3120_v3 = vsel %vm3113_vm5, %v3111_v4, %v6917_v20  ;;  %v3121_v58 = vsel %vm3113_vm5, %v3112_v47, %v6918_v12  ;;  %v3814_v39 = vpack.c.bf16 %v3528_v57, %v3527_v46  ;;  %v2905_v52 = vld [vmem:[#allocation2 + $0xaf] sm:$0xff]  ;;  %v2906_v47 = vld [vmem:[#allocation2 + $0xc7] sm:$0xff] }
 0x51b   : > { %v3129_v27 = vsel %vm3122_vm7, %v3120_v3, %v6872_v51  ;;  %v3130_v56 = vsel %vm3122_vm7, %v3121_v58, %v6873_v1  ;;  %v7059_v4 = vld [vmem:[%s9268_s11 + $0x88] sm:$0xff]   ;;  %v3193_v1 = vpack.c.bf16 %v2906_v47, %v2905_v52  ;;  %v7060_v51 = vld [vmem:[%s9270_s7 + $0x40] sm:$0xff]   ;;  %v2908_v3 = vld [vmem:[#allocation2 + $0xf7] sm:$0xff]  ;;  %v6911_v47 = vpop.permute.xlu1 %6910 }
 0x51c   : > { %v3200_v42 = vpack.c.bf16 %v3130_v56, %v3129_v27  ;;  %v2909_v58 = vld [vmem:[#allocation2 + $0x10f] sm:$0xff]  ;;  %v2907_v27 = vld [vmem:[#allocation2 + $0xdf] sm:$0xff]  ;;  %v2910_v46 = vld [vmem:[#allocation2 + $0x127] sm:$0xff] }
 0x51d   : > { %v7061_v56 = vld [vmem:[%s9270_s7] sm:$0xff]   ;;  %v7062_v57 = vld [vmem:[%s9270_s7 + $0x48] sm:$0xff]   ;;  %v3199_v24 = vpack.c.bf16 %v2910_v46, %v2909_v58 }
 0x51e   : > { %v7070_v52 = vld [vmem:[%s9270_s7 + $0x68] sm:$0xff]   ;;  %v7076_v58 = vld [vmem:[%s9273_s18] sm:$0xff]  }
 0x521   : > { %3387 = vmatmul.mubr.bf16.gmra.mrb[56].mxu0 %v3200_v42  ;;  %v3196_v42 = vpack.c.bf16 %v2908_v3, %v2907_v27  ;;  %v8461_v3 = vpop.permute.xlu1 %6935  ;;  %v6898_v27 = vunpack.i.h.bf16 %v8367_v35 }
 0x522   : > { %6535 = vmatprep.mubr.msk.bf16.mxu0 %vm1529_vm0, %v3811_v41  ;;  %v6938_v16 = vunpack.i.h.bf16 %v8461_v3 }
 0x529   : > { %6536 = vmatmul.mubr.msk.bf16.vlgmr.msra.gmra.mrb[60].mxu0 %vm1529_vm0, %v3814_v39  ;;  %v2911_v39 = vld [vmem:[#allocation2 + $0x13f] sm:$0xff] }
 0x52a   : > { %6539 = vmatprep.mubr.msk.bf16.mxu0 %vm1529_vm0, %v3817_v40  ;;  %6544 = vmatpush3.bf16.msra.mxu0 %v8324_v45  ;;  %v2912_v40 = vld [vmem:[#allocation2 + $0x157] sm:$0xff] }
 0x52b   : > { %6545 = vmatprep.subr.bf16.mxu0 %v7057_v34  ;;  %v3202_v18 = vpack.c.bf16 %v2912_v40, %v2911_v39  ;;  %v6946_v39 = vpop.permute.xlu1 %6945  ;;  %v6893_v40 = vunpack.i.h.bf16 %v8377_v53 }
 0x52e   : > { %6546 = vmatpush3.bf16.msra.mxu0 %v7057_v34  ;;  %v7065_v34 = vld [vmem:[%s9270_s7 + $0x10] sm:$0xff]  }
 0x531   : > { %6540 = vmatmul.mubr.msk.bf16.gmra.mrb[64].mxu0 %vm1529_vm0, %v3820_v36  ;;  %v7067_v36 = vld [vmem:[%s9270_s7 + $0x18] sm:$0xff]  }
 0x532   : > { %6547 = vmatprep.mubr.msk.bf16.mxu0 %vm1529_vm0, %v8063_v25 }
 0x536   : > { %v8414_v14 = vpop.f32.mrb[36].mxu0 }
 0x537   : > { %v8416_v31 = vpop.f32.mrb[37].mxu0 }
 0x538   : > { %v8418_v41 = vpop.f32.mrb[38].mxu0 }
 0x539   : > { %6548 = vmatmul.mubr.msk.bf16.vlgmr.msra.gmra.mrb[68].mxu0 %vm1529_vm0, %v8068_v30  ;;  %v8422_v63 = vpop.f32.mrb[39].mxu0 }
 0x53a   : > { %6551 = vmatprep.mubr.msk.bf16.mxu0 %vm1529_vm0, %v8115_v29 }
 0x540   : > { %v8426_v45 = vpop.f32.mrb[40].mxu0 }
 0x541   : > { %v8428_v13 = vpop.f32.mrb[41].mxu0  ;;  %6552 = vmatmul.mubr.msk.bf16.gmra.mrb[72].mxu0 %vm1529_vm0, %v8126_v55 }
 0x542   : > { %v8432_v26 = vpop.f32.mrb[42].mxu0 }
 0x543   : > { %v8434_v54 = vpop.f32.mrb[43].mxu0 }
 0x554   : > { %v2773_v59 = vpop.f32.mrb[44].mxu1 }
 0x555   : > { %v2779_v32 = vmax.f32 %v2773_v59, 0.0  ;;  %v6511_v5 = vpop.f32.mrb[45].mxu1  ;;  %v7068_v59 = vld [vmem:[%s9270_s7 + $0x60] sm:$0xff]  }
 0x556   : > { %v2776_v12 = vpop.f32.mrb[46].mxu1  ;;  %v7069_v5 = vld [vmem:[%s9270_s7 + $0x20] sm:$0xff]  }
 0x557   : > { %v2781_v20 = vpack.c.bf16 %v2779_v32, %v2779_v32  ;;  %v6512_v15 = vpop.f32.mrb[47].mxu1  ;;  %v6921_v32 = vpop.permute.xlu0 %6920  ;;  %v7071_v12 = vld [vmem:[%s9270_s7 + $0x28] sm:$0xff]  }
 0x559   : > { %6516 = vmatmul.mubr.msk.bf16.vlgmr.msra.gmra.mrb[48].mxu1 %vm2782_vm8, %v2781_v20  ;;  %v7072_v20 = vld [vmem:[%s9270_s7 + $0x70] sm:$0xff]  }
 0x55a   : > { %6520 = vmatpush3.bf16.msra.mxu1 %v8259_v0  ;;  %6523 = vmatprep.mubr.msk.bf16.mxu1 %vm1529_vm0, %v3193_v1  ;;  %v7063_v0 = vld [vmem:[%s9270_s7 + $0x8] sm:$0xff]  }
 0x55b   : > { %6521 = vmatprep.subr.bf16.mxu1 %v7059_v4  ;;  %v6926_v15 = vpop.permute.xlu0 %6925 }
 0x55c   : > { %v6928_v1 = vunpack.i.h.bf16 %v6926_v15 }
 0x55e   : > { %6522 = vmatpush3.bf16.msra.mxu1 %v7059_v4  ;;  %v7075_v4 = vld [vmem:[%s9270_s7 + $0x38] sm:$0xff]  }
 0x55f   : > { %6295 = vmatprep.subr.bf16.mxu1 %v7060_v51  ;;  %v6927_v51 = vunpack.i.l.bf16 %v6926_v15 }
 0x561   : > { %6524 = vmatmul.mubr.msk.bf16.vlgmr.msra.gmra.mrb[52].mxu1 %vm1529_vm0, %v3196_v42  ;;  %v3754_v42 = vsel %vm1529_vm0, %v8099_v48, %v6928_v1  ;;  %v3753_v46 = vsel %vm1529_vm0, %v8086_v43, %v6927_v51 }
 0x562   : > { %6296 = vmatpush3.bf16.msra.mxu1 %v7061_v56  ;;  %6527 = vmatprep.mubr.msk.bf16.mxu1 %vm1529_vm0, %v3199_v24  ;;  %v6897_v56 = vunpack.i.l.bf16 %v8367_v35  ;;  %v6892_v35 = vunpack.i.l.bf16 %v8377_v53 }
 0x563   : > { %6297 = vmatprep.subr.bf16.mxu1 %v7062_v57  ;;  %v7077_v57 = vld [vmem:[%s9273_s18 + $0x8] sm:$0xff]  }
 0x566   : > { %6298 = vmatpush3.bf16.msra.mxu1 %v7063_v0  ;;  %v6923_v0 = vunpack.i.h.bf16 %v6921_v32 }
 0x567   : > { %6299 = vmatprep.subr.bf16.mxu1 %v7064_v22  ;;  %v6922_v22 = vunpack.i.l.bf16 %v6921_v32  ;;  %v6912_v32 = vunpack.i.l.bf16 %v6911_v47 }
 0x569   : > { %6528 = vmatmul.mubr.msk.bf16.gmra.mrb[56].mxu1 %vm1529_vm0, %v3202_v18  ;;  %v3762_v18 = vsel %vm3113_vm5, %v3754_v42, %v6898_v27 }
 0x56a   : > { %6300 = vmatpush3.bf16.msra.mxu1 %v7065_v34  ;;  %3981 = vmatprep.mubr.bf16.mxu1 %v3810_v11  ;;  %v6931_v11 = vpop.permute.xlu0 %6930  ;;  %v3761_v34 = vsel %vm3113_vm5, %v3753_v46, %v6897_v56  ;;  %v3770_v17 = vsel %vm3122_vm7, %v3762_v18, %v6923_v0 }
 0x56b   : > { %6301 = vmatprep.subr.bf16.mxu1 %v7066_v37  ;;  %v3472_v37 = vld [vmem:[#allocation2 + $0x60] sm:$0xff]  ;;  %v3769_v9 = vsel %vm3122_vm7, %v3761_v34, %v6922_v22  ;;  %v6933_v61 = vunpack.i.h.bf16 %v6931_v11  ;;  %v3732_v34 = vsel %vm1529_vm0, %v8202_v44, %v6938_v16 }
 0x56c   : > { %v3729_v53 = vsel %vm1529_vm0, %v3472_v37, %v6892_v35  ;;  %v6103_v16 = vld [vmem:[%s9274_s26 + $0x2] ss:$0 sm:$0xff] }
 0x56e   : > { %6302 = vmatpush3.bf16.msra.mxu1 %v7067_v36  ;;  %v6941_v24 = vpop.permute.xlu0 %6940  ;;  %v3473_v36 = vld [vmem:[#allocation2 + $0x78] sm:$0xff] }
 0x56f   : > { %6303 = vmatprep.subr.bf16.mxu1 %v7068_v59  ;;  %v6913_v59 = vunpack.i.h.bf16 %v6911_v47  ;;  %v6942_v15 = vunpack.i.l.bf16 %v6941_v24  ;;  %v3737_v47 = vsel %vm3113_vm5, %v3729_v53, %v6912_v32 }
 0x572   : > { %6304 = vmatpush3.bf16.msra.mxu1 %v7069_v5  ;;  %v6956_v60 = vpop.permute.xlu0 %6955  ;;  %v6948_v5 = vunpack.i.h.bf16 %v6946_v39 }
 0x573   : > { %6305 = vmatprep.subr.bf16.mxu1 %v7070_v52  ;;  %v6951_v52 = vpop.permute.xlu1 %6950  ;;  %v6957_v1 = vunpack.i.l.bf16 %v6956_v60 }
 0x574   : > { %v6952_v0 = vunpack.i.l.bf16 %v6951_v52 }
 0x576   : > { %6306 = vmatpush3.bf16.msra.mxu1 %v7071_v12  ;;  %v6947_v12 = vunpack.i.l.bf16 %v6946_v39 }
 0x577   : > { %6307 = vmatprep.subr.bf16.mxu1 %v7072_v20  ;;  %v6943_v20 = vunpack.i.h.bf16 %v6941_v24  ;;  %v6961_v46 = vpop.permute.xlu1 %6960  ;;  %v6953_v24 = vunpack.i.h.bf16 %v6951_v52 }
 0x578   : > { %v3745_v56 = vsel %vm3122_vm7, %v3737_v47, %v6947_v12  ;;  %v6963_v39 = vunpack.i.h.bf16 %v6961_v46 }
 0x57a   : > { %6308 = vmatpush3.bf16.msra.mxu1 %v7073_v23  ;;  %v3816_v23 = vpack.c.bf16 %v3770_v17, %v3769_v9 }
 0x57b   : > { %6309 = vmatprep.subr.bf16.mxu1 %v7074_v50 }
 0x57e   : > { %6310 = vmatpush3.bf16.msra.mxu1 %v7075_v4  ;;  %v6958_v4 = vunpack.i.h.bf16 %v6956_v60 }
 0x57f   : > { %6555 = vmatprep.subr.bf16.mxu1 %v7076_v58 }
 0x581   : > { %3982 = vmatmul.mubr.bf16.vlgmr.msra.gmra.mrb[60].mxu1 %v3809_v49  ;;  %v3730_v49 = vsel %vm1529_vm0, %v3473_v36, %v6893_v40  ;;  %v6962_v40 = vunpack.i.l.bf16 %v6961_v46  ;;  %v3740_v36 = vsel %vm3113_vm5, %v3732_v34, %v6953_v24 }
 0x582   : > { %3989 = vmatprep.mubr.bf16.mxu1 %v3813_v62  ;;  %6556 = vmatpush3.bf16.msra.mxu1 %v7076_v58  ;;  %v6932_v62 = vunpack.i.l.bf16 %v6931_v11  ;;  %v3738_v50 = vsel %vm3113_vm5, %v3730_v49, %v6913_v59  ;;  %v3756_v11 = vsel %vm1529_vm0, %v8093_v28, %v6933_v61  ;;  %v3748_v59 = vsel %vm3122_vm7, %v3740_v36, %v6963_v39 }
 0x583   : > { %6557 = vmatprep.subr.bf16.mxu1 %v7077_v57  ;;  %v3764_v27 = vsel %vm3113_vm5, %v3756_v11, %v6943_v20  ;;  %v3746_v42 = vsel %vm3122_vm7, %v3738_v50, %v6948_v5 }
 0x584   : > { %v3755_v51 = vsel %vm1529_vm0, %v8081_v19, %v6932_v62  ;;  %v3772_v2 = vsel %vm3122_vm7, %v3764_v27, %v6958_v4  ;;  %v3815_v22 = vpack.c.bf16 %v3746_v42, %v3745_v56 }
 0x585   : > { %v3763_v58 = vsel %vm3113_vm5, %v3755_v51, %v6942_v15 }
 0x586   : > { %6558 = vmatpush3.bf16.msra.mxu1 %v7077_v57  ;;  %v3771_v57 = vsel %vm3122_vm7, %v3763_v58, %v6957_v1 }
 0x587   : > { %v3819_v35 = vpack.c.bf16 %v3772_v2, %v3771_v57 }
 0x589   : > { %3990 = vmatmul.mubr.bf16.gmra.mrb[64].mxu1 %v3812_v33  ;;  %v6937_v33 = vunpack.i.l.bf16 %v8461_v3 }
 0x58a   : > { %3997 = vmatprep.mubr.bf16.mxu1 %v3816_v23 }
 0x58b   : > { %v3731_v18 = vsel %vm1529_vm0, %v8207_v38, %v6937_v33 }
 0x58c   : > { %v3739_v37 = vsel %vm3113_vm5, %v3731_v18, %v6952_v0 }
 0x58d   : > { %v3747_v3 = vsel %vm3122_vm7, %v3739_v37, %v6962_v40 }
 0x58e   : > { %v3818_v32 = vpack.c.bf16 %v3748_v59, %v3747_v3 }
 0x591   : > { %3998 = vmatmul.mubr.bf16.gmra.mrb[68].mxu1 %v3815_v22 }
 0x592   : > { %4005 = vmatprep.mubr.bf16.mxu1 %v3819_v35 }
 0x599   : > { %4006 = vmatmul.mubr.bf16.gmra.mrb[72].mxu1 %v3818_v32 }
 0x59a   : > { %6559 = vmatprep.mubr.msk.bf16.mxu1 %vm1529_vm0, %v8063_v25 }
 0x5a1   : > { %6560 = vmatmul.mubr.msk.bf16.vlgmr.msra.gmra.mrb[76].mxu1 %vm1529_vm0, %v8068_v30 }
 0x5a2   : > { %6563 = vmatprep.mubr.msk.bf16.mxu1 %vm1529_vm0, %v8115_v29 }
 0x5a9   : > { %6564 = vmatmul.mubr.msk.bf16.gmra.mrb[80].mxu1 %vm1529_vm0, %v8126_v55 }
 0x5c7   : > { %v6265_v44 = vpop.f32.mrb[44].mxu0 }
 0x5c8   : > { %v6266_v38 = vpop.f32.mrb[45].mxu0 }
 0x5c9   : > { %v8518_v9 = vadd.f32 %v6266_v38, %v6265_v44  ;;  %v6268_v17 = vpop.f32.mrb[46].mxu0 }
 0x5ca   : > { %v6269_v49 = vpop.f32.mrb[47].mxu0 }
 0x5cb   : > { %v8520_v53 = vadd.f32 %v6269_v49, %v6268_v17 }
 0x5d0   : > { %v6271_v60 = vpop.f32.mrb[48].mxu0 }
 0x5d1   : > { %v6272_v61 = vpop.f32.mrb[49].mxu0 }
 0x5d2   : > { %v8522_v25 = vadd.f32 %v6272_v61, %v6271_v60  ;;  %v6274_v62 = vpop.f32.mrb[50].mxu0 }
 0x5d3   : > { %v6275_v30 = vpop.f32.mrb[51].mxu0 }
 0x5d4   : > { %v8524_v5 = vadd.f32 %v6275_v30, %v6274_v62 }
 0x5ec   : > { %v6277_v29 = vpop.f32.mrb[52].mxu0 }
 0x5ed   : > { %v6278_v52 = vpop.f32.mrb[53].mxu0 }
 0x5ee   : > { %v8526_v12 = vadd.f32 %v6278_v52, %v6277_v29  ;;  %v6280_v55 = vpop.f32.mrb[54].mxu0 }
 0x5ef   : > { %v6281_v20 = vpop.f32.mrb[55].mxu0 }
 0x5f0   : > { %v8528_v15 = vadd.f32 %v6281_v20, %v6280_v55  ;;  %v2650_v55 = vsub.f32 0.0, %v8414_v14  ;;  %v2655_v14 = vsub.f32 0.0, %v8432_v26 }
 0x5f4   : > { %v6283_v23 = vpop.f32.mrb[56].mxu0 }
 0x5f5   : > { %v6284_v47 = vpop.f32.mrb[57].mxu0 }
 0x5f6   : > { %v8530_v50 = vadd.f32 %v6284_v47, %v6283_v23  ;;  %v6286_v4 = vpop.f32.mrb[58].mxu0  ;;  %v2648_v47 = vsub.f32 0.0, %v8416_v31  ;;  %v2653_v31 = vsub.f32 0.0, %v8434_v54 }
 0x5f7   : > { %v6287_v1 = vpop.f32.mrb[59].mxu0 }
 0x5f8   : > { %v8532_v11 = vadd.f32 %v6287_v1, %v6286_v4  ;;  %v2651_v1 = vsub.f32 0.0, %v8418_v41 }
 0x5fc   : > { %v8534_v51 = vpop.f32.mrb[60].mxu0 }
 0x5fd   : > { %v8536_v58 = vpop.f32.mrb[61].mxu0 }
 0x5fe   : > { %v8538_v27 = vpop.f32.mrb[62].mxu0 }
 0x5ff   : > { %v8540_v56 = vpop.f32.mrb[63].mxu0 }
 0x604   : > { %v8542_v42 = vpop.f32.mrb[64].mxu0 }
 0x605   : > { %v8544_v46 = vpop.f32.mrb[65].mxu0 }
 0x606   : > { %v8546_v57 = vpop.f32.mrb[66].mxu0 }
 0x607   : > { %v8548_v2 = vpop.f32.mrb[67].mxu0 }
 0x60c   : > { %v6549_v33 = vpop.f32.mrb[68].mxu0 }
 0x60d   : > { %v4154_v24 = vadd.f32 %v6549_v33, %v6103_v16  ;;  %v4145_v0 = vpop.f32.mrb[69].mxu0 }
 0x60e   : > { %v4146_v22 = vadd.f32 %v6103_v16, %v4145_v0  ;;  %v6550_v39 = vpop.f32.mrb[70].mxu0  ;;  %v2660_v0 = vmul.f32 1.442695, %v2650_v55 }
 0x60f   : > { %v4157_v40 = vadd.f32 %v6550_v39, %v6103_v16  ;;  %v4148_v35 = vpop.f32.mrb[71].mxu0  ;;  %v4178_v18 = vmax.f32 %v4154_v24, 0.0  ;;  %v2649_v24 = vsub.f32 0.0, %v8422_v63  ;;  %v2652_v39 = vsub.f32 0.0, %v8428_v13 }
 0x610   : > { %v4149_v34 = vadd.f32 %v6103_v16, %v4148_v35  ;;  %v4176_v36 = vmax.f32 %v4146_v22, 0.0  ;;  %v2654_v22 = vsub.f32 0.0, %v8426_v45  ;;  %7142 = vpow2.f32 %v2660_v0 }
 0x611   : > { %v4179_v37 = vmax.f32 %v4157_v40, 0.0  ;;  %v2662_v40 = vmul.f32 1.442695, %v2651_v1  ;;  %v2658_v35 = vmul.f32 1.442695, %v2649_v24 }
 0x612   : > { %v4177_v3 = vmax.f32 %v4149_v34, 0.0  ;;  %v2668_v34 = vmul.f32 1.442695, %v2654_v22  ;;  %v2664_v41 = vmul.f32 1.442695, %v2652_v39 }
 0x613   : > { %v6964_v59 = vpack.i.bf16 %v4179_v37, %v4178_v18  ;;  %v2670_v18 = vmul.f32 1.442695, %v2655_v14  ;;  %v2666_v63 = vmul.f32 1.442695, %v2653_v31 }
 0x614   : > { %v6969_v32 = vpack.i.bf16 %v4177_v3, %v4176_v36  ;;  %v6553_v44 = vpop.f32.mrb[72].mxu0 }
 0x615   : > { %v4170_v38 = vadd.f32 %v6553_v44, %v6103_v16  ;;  %6965 = vrot.lane.b32.xlu1 %v6964_v59, %s7405_s23  ;;  %v4161_v17 = vpop.f32.mrb[73].mxu0 }
 0x616   : > { %v4162_v49 = vadd.f32 %v6103_v16, %v4161_v17  ;;  %v6554_v60 = vpop.f32.mrb[74].mxu0  ;;  %6970 = vrot.lane.b32.xlu0 %v6969_v32, %s7405_s23 }
 0x617   : > { %v4173_v61 = vadd.f32 %v6554_v60, %v6103_v16  ;;  %v4164_v62 = vpop.f32.mrb[75].mxu0  ;;  %v4182_v29 = vmax.f32 %v4170_v38, 0.0 }
 0x618   : > { %v4165_v30 = vadd.f32 %v6103_v16, %v4164_v62  ;;  %v4180_v20 = vmax.f32 %v4162_v49, 0.0  ;;  %v2656_v16 = vmul.f32 1.442695, %v2648_v47 }
 0x619   : > { %v4183_v52 = vmax.f32 %v4173_v61, 0.0 }
 0x61a   : > { %v4181_v23 = vmax.f32 %v4165_v30, 0.0  ;;  %7144 = vpow2.f32 %v2656_v16  ;;  %v7143_v45 = vpop.eup %7142 }
 0x61b   : > { %v8555_v4 = vpack.i.bf16 %v4183_v52, %v4182_v29  ;;  %7146 = vpow2.f32 %v2662_v40  ;;  %v2674_v59 = vadd.f32 1.0, %v7143_v45  ;;  %v6055_v29 = vld [vmem:[%s9274_s26] ss:$0 sm:$0xff] }
 0x61c   : > { %v8558_v33 = vpack.i.bf16 %v4181_v23, %v4180_v20  ;;  %7148 = vpow2.f32 %v2658_v35  ;;  %v3373_v23 = vadd.f32 %v8522_v25, %v6055_v29  ;;  %v3365_v24 = vadd.f32 %v8518_v9, %v6055_v29 }
 0x61d   : > { %7150 = vpow2.f32 %v2668_v34  ;;  %v3376_v39 = vadd.f32 %v8524_v5, %v6055_v29  ;;  %v3368_v35 = vadd.f32 %v8520_v53, %v6055_v29  ;;  %v3381_v45 = vadd.f32 %v8526_v12, %v6055_v29 }
 0x61e   : > { %7152 = vpow2.f32 %v2664_v41  ;;  %v3389_v41 = vadd.f32 %v8530_v50, %v6055_v29  ;;  %v3384_v50 = vadd.f32 %v8528_v15, %v6055_v29 }
 0x61f   : > { %7154 = vpow2.f32 %v2670_v18 }
 0x620   : > { %7156 = vpow2.f32 %v2666_v63 }
 0x624   : > { %v7145_v13 = vpop.eup %7144 }
 0x625   : > { %v7147_v26 = vpop.eup %7146  ;;  %v2672_v38 = vadd.f32 1.0, %v7145_v13 }
 0x626   : > { %v7149_v54 = vpop.eup %7148  ;;  %v2675_v61 = vadd.f32 1.0, %v7147_v26 }
 0x627   : > { %v7151_v44 = vpop.eup %7150  ;;  %v2673_v30 = vadd.f32 1.0, %v7149_v54 }
 0x628   : > { %v7153_v60 = vpop.eup %7152  ;;  %v2678_v55 = vadd.f32 1.0, %v7151_v44 }
 0x629   : > { %v7155_v62 = vpop.eup %7154  ;;  %v2676_v20 = vadd.f32 1.0, %v7153_v60 }
 0x62a   : > { %v7157_v52 = vpop.eup %7156  ;;  %v2679_v47 = vadd.f32 1.0, %v7155_v62 }
 0x62b   : > { %v2677_v0 = vadd.f32 1.0, %v7157_v52 }
 0x62c   : > { %v2824_v37 = vpop.f32.mrb[48].mxu1 }
 0x62d   : > { %v2830_v36 = vsub.f32 0.0, %v2824_v37  ;;  %v6517_v3 = vpop.f32.mrb[49].mxu1  ;;  %v2835_v37 = vlaneseq }
 0x62e   : > { %v2827_v32 = vpop.f32.mrb[50].mxu1 }
 0x62f   : > { %v2831_v17 = vmul.f32 1.442695, %v2830_v36  ;;  %v6518_v49 = vpop.f32.mrb[51].mxu1  ;;  %v3392_v36 = vadd.f32 %v8532_v11, %v6055_v29  ;;  %v2836_v60 = vshrl.u32 %v2835_v37, 7 }
 0x631   : > { %7158 = vpow2.f32 %v2831_v17  ;;  %v2837_v29 = vsub.s32 0, %v2836_v60 }
 0x632   : > { %7160 = vrcp.f32 %v2674_v59 }
 0x633   : > { %7162 = vrcp.f32 %v2672_v38 }
 0x634   : > { %7164 = vrcp.f32 %v2675_v61  ;;  %v6525_v1 = vpop.f32.mrb[52].mxu1 }
 0x635   : > { %7166 = vrcp.f32 %v2673_v30  ;;  %v8568_v22 = vadd.f32 %v6525_v1, %v3373_v23  ;;  %v3429_v16 = vpop.f32.mrb[53].mxu1  ;;  %v6127_v30 = vld [vmem:[%s9275_s2] ss:$0 sm:$0xff]  ;;  %s9278_s2 = sld [smem:[#allocation22_spill]] }
 0x636   : > { %7168 = vrcp.f32 %v2678_v55  ;;  %v8571_v40 = vadd.f32 %v3429_v16, %v3365_v24  ;;  %v6526_v14 = vpop.f32.mrb[54].mxu1 }
 0x637   : > { %7170 = vrcp.f32 %v2676_v20  ;;  %v8574_v25 = vadd.f32 %v6526_v14, %v3376_v39  ;;  %v3432_v31 = vpop.f32.mrb[55].mxu1 }
 0x638   : > { %7172 = vrcp.f32 %v2679_v47  ;;  %v8576_v34 = vadd.f32 %v3432_v31, %v3368_v35 }
 0x639   : > { %7174 = vrcp.f32 %v2677_v0 }
 0x63b   : > { %v7159_v9 = vpop.eup %7158 }
 0x63c   : > { %v7161_v18 = vpop.eup %7160  ;;  %v2833_v63 = vadd.f32 1.0, %v7159_v9  ;;  %v6529_v5 = vpop.f32.mrb[56].mxu1 }
 0x63d   : > { %v7163_v13 = vpop.eup %7162  ;;  %v8580_v26 = vadd.f32 %v6529_v5, %v3389_v41  ;;  %v3445_v53 = vpop.f32.mrb[57].mxu1  ;;  %v2690_v11 = vmul.f32 %v7161_v18, %v8041_v6 }
 0x63e   : > { %v7165_v3 = vpop.eup %7164  ;;  %7176 = vrcp.f32 %v2833_v63  ;;  %v8583_v54 = vadd.f32 %v3445_v53, %v3381_v45  ;;  %v6530_v59 = vpop.f32.mrb[58].mxu1  ;;  %v2688_v52 = vmul.f32 %v7163_v13, %v8043_v7  ;;  %v6128_v63 = vld [vmem:[%s9276_s1] ss:$0 sm:$0xff]  ;;  %s9282_s1 = sld [smem:[#allocation24_spill]] }
 0x63f   : > { %v7167_v32 = vpop.eup %7166  ;;  %v8586_v44 = vadd.f32 %v6530_v59, %v3392_v36  ;;  %v3448_v38 = vpop.f32.mrb[59].mxu1  ;;  %v2691_v55 = vmul.f32 %v7165_v3, %v8047_v8  ;;  %v4550_v0 = vmul.f32 %v6127_v30, %v2690_v11 }
 0x640   : > { %v7169_v12 = vpop.eup %7168  ;;  %v8588_v17 = vadd.f32 %v3448_v38, %v3384_v50  ;;  %v2689_v15 = vmul.f32 %v7167_v32, %v8051_v10  ;;  %v4548_v16 = vmul.f32 %v6127_v30, %v2688_v52 }
 0x641   : > { %v7171_v49 = vpop.eup %7170  ;;  %v2694_v20 = vmul.f32 %v7169_v12, %v8081_v19  ;;  %v4551_v39 = vmul.f32 %v6127_v30, %v2691_v55 }
 0x642   : > { %v7173_v61 = vpop.eup %7172  ;;  %v2692_v23 = vmul.f32 %v7171_v49, %v8086_v43  ;;  %v4549_v14 = vmul.f32 %v6127_v30, %v2689_v15 }
 0x643   : > { %v7175_v62 = vpop.eup %7174  ;;  %v2695_v47 = vmul.f32 %v7173_v61, %v8093_v28  ;;  %v4554_v31 = vmul.f32 %v6127_v30, %v2694_v20 }
 0x644   : > { %v2693_v1 = vmul.f32 %v7175_v62, %v8099_v48  ;;  %v4552_v9 = vmul.f32 %v6127_v30, %v2692_v23 }
 0x645   : > { %v4555_v41 = vmul.f32 %v6127_v30, %v2695_v47 }
 0x646   : > { %v4553_v18 = vmul.f32 %v6127_v30, %v2693_v1  ;;  %v8625_v1 = vld [vmem:[%s9274_s26 + $0x1] ss:$0 sm:$0xff] }
 0x648   : > { %v7177_v24 = vpop.eup %7176 }
 0x649   : > { %v2838_v35 = vrot.slane %v7177_v24, %v2837_v29 }
 0x64b   : > { %v2841_v5 = vmul.f32 %v2838_v35, %v8041_v6  ;;  %v2839_v45 = vmul.f32 %v2838_v35, %v8043_v7  ;;  %v2842_v13 = vmul.f32 %v2838_v35, %v8047_v8  ;;  %v2840_v37 = vmul.f32 %v2838_v35, %v8051_v10 }
 0x64c   : > { %v2845_v53 = vmul.f32 %v2838_v35, %v8081_v19  ;;  %v2843_v36 = vmul.f32 %v2838_v35, %v8086_v43  ;;  %v2846_v3 = vmul.f32 %v2838_v35, %v8093_v28  ;;  %v2844_v59 = vmul.f32 %v2838_v35, %v8099_v48 }
 0x64d   : > { %v4565_v50 = vmul.f32 %v6128_v63, %v2841_v5  ;;  %v4563_v32 = vmul.f32 %v6128_v63, %v2839_v45  ;;  %v4566_v38 = vmul.f32 %v6128_v63, %v2842_v13  ;;  %v4564_v12 = vmul.f32 %v6128_v63, %v2840_v37 }
 0x64e   : > { %v4569_v49 = vmul.f32 %v6128_v63, %v2845_v53  ;;  %v4567_v60 = vmul.f32 %v6128_v63, %v2843_v36  ;;  %v4570_v61 = vmul.f32 %v6128_v63, %v2846_v3  ;;  %v4568_v62 = vmul.f32 %v6128_v63, %v2844_v59  ;;  %v7078_v63 = vld [vmem:[%s9277_s15] sm:$0xff]   ;;  %v7080_v59 = vld [vmem:[%s9277_s15 + $0x10] sm:$0xff]  }
 0x64f   : > { %v8608_v11 = vadd.f32 %v4565_v50, %v4550_v0  ;;  %v8610_v30 = vadd.f32 %v4563_v32, %v4548_v16  ;;  %v8612_v52 = vadd.f32 %v4566_v38, %v4551_v39  ;;  %v8614_v55 = vadd.f32 %v4564_v12, %v4549_v14  ;;  %v7079_v39 = vld [vmem:[%s9277_s15 + $0x8] sm:$0xff]   ;;  %6567 = vmatprep.subr.bf16.mxu0 %v7078_v63  ;;  %v7081_v50 = vld [vmem:[%s9277_s15 + $0x18] sm:$0xff]  }
 0x650   : > { %v8616_v15 = vadd.f32 %v4569_v49, %v4554_v31  ;;  %v8618_v29 = vadd.f32 %v4567_v60, %v4552_v9  ;;  %v8620_v20 = vadd.f32 %v4570_v61, %v4555_v41  ;;  %v8622_v23 = vadd.f32 %v4568_v62, %v4553_v18  ;;  %6568 = vmatpush3.bf16.msra.mxu0 %v7078_v63  ;;  %v7083_v63 = vld [vmem:[%s9277_s15 + $0x28] sm:$0xff]  }
 0x651   : > { %6569 = vmatprep.subr.bf16.mxu0 %v7079_v39 }
 0x654   : > { %v6311_v47 = vpop.f32.mrb[60].mxu1  ;;  %6570 = vmatpush3.bf16.msra.mxu0 %v7079_v39 }
 0x655   : > { %v6312_v24 = vpop.f32.mrb[61].mxu1  ;;  %6571 = vmatprep.subr.bf16.mxu0 %v7080_v59 }
 0x656   : > { %v6313_v0 = vadd.f32 %v6312_v24, %v6311_v47  ;;  %v6314_v35 = vpop.f32.mrb[62].mxu1 }
 0x657   : > { %v6315_v16 = vpop.f32.mrb[63].mxu1 }
 0x658   : > { %v3984_v14 = vadd.f32 %v6313_v0, %v8625_v1  ;;  %v6316_v31 = vadd.f32 %v6315_v16, %v6314_v35  ;;  %6572 = vmatpush3.bf16.msra.mxu0 %v7080_v59  ;;  %v7082_v16 = vld [vmem:[%s9277_s15 + $0x20] sm:$0xff]  }
 0x659   : > { %6573 = vmatprep.subr.bf16.mxu0 %v7081_v50 }
 0x65a   : > { %v4049_v9 = vadd.f32 %v8536_v58, %v3984_v14  ;;  %v3987_v41 = vadd.f32 %v6316_v31, %v8625_v1 }
 0x65c   : > { %v4052_v18 = vadd.f32 %v8540_v56, %v3987_v41  ;;  %v6317_v5 = vpop.f32.mrb[64].mxu1  ;;  %v4079_v13 = vmax.f32 %v4049_v9, 0.0  ;;  %6574 = vmatpush3.bf16.msra.mxu0 %v7081_v50 }
 0x65d   : > { %v6318_v45 = vpop.f32.mrb[65].mxu1  ;;  %6575 = vmatprep.subr.bf16.mxu0 %v7082_v16 }
 0x65e   : > { %v4080_v37 = vmax.f32 %v4052_v18, 0.0  ;;  %v6319_v53 = vadd.f32 %v6318_v45, %v6317_v5  ;;  %v6320_v36 = vpop.f32.mrb[66].mxu1 }
 0x65f   : > { %v6321_v3 = vpop.f32.mrb[67].mxu1 }
 0x660   : > { %v3992_v32 = vadd.f32 %v6319_v53, %v8625_v1  ;;  %v6322_v38 = vadd.f32 %v6321_v3, %v6320_v36  ;;  %v6974_v58 = vpack.i.bf16 %v4080_v37, %v4079_v13  ;;  %6576 = vmatpush3.bf16.msra.mxu0 %v7082_v16  ;;  %v7084_v36 = vld [vmem:[%s9277_s15 + $0x30] sm:$0xff]  }
 0x661   : > { %6577 = vmatprep.subr.bf16.mxu0 %v7083_v63 }
 0x662   : > { %v4057_v12 = vadd.f32 %v8534_v51, %v3992_v32  ;;  %v3995_v56 = vadd.f32 %v6322_v38, %v8625_v1  ;;  %6975 = vrot.lane.b32.xlu0 %v6974_v58, %s7406_s10  ;;  %v6111_v32 = vld [vmem:[%s9274_s26 + $0x3] ss:$0 sm:$0xff] }
 0x664   : > { %v4060_v49 = vadd.f32 %v8538_v27, %v3995_v56  ;;  %v6323_v60 = vpop.f32.mrb[68].mxu1  ;;  %v4081_v62 = vmax.f32 %v4057_v12, 0.0  ;;  %6578 = vmatpush3.bf16.msra.mxu0 %v7083_v63  ;;  %v7085_v12 = vld [vmem:[%s9277_s15 + $0x38] sm:$0xff]  }
 0x665   : > { %v6324_v61 = vpop.f32.mrb[69].mxu1  ;;  %6579 = vmatprep.subr.bf16.mxu0 %v7084_v36 }
 0x666   : > { %v4082_v47 = vmax.f32 %v4060_v49, 0.0  ;;  %v6325_v24 = vadd.f32 %v6324_v61, %v6323_v60  ;;  %v6326_v0 = vpop.f32.mrb[70].mxu1 }
 0x667   : > { %v6327_v35 = vpop.f32.mrb[71].mxu1 }
 0x668   : > { %v4000_v51 = vadd.f32 %v6325_v24, %v8625_v1  ;;  %v6328_v39 = vadd.f32 %v6327_v35, %v6326_v0  ;;  %v6979_v14 = vpack.i.bf16 %v4082_v47, %v4081_v62  ;;  %6580 = vmatpush3.bf16.msra.mxu0 %v7084_v36 }
 0x669   : > { %6581 = vmatprep.subr.bf16.mxu0 %v7085_v12 }
 0x66a   : > { %v4065_v31 = vadd.f32 %v8544_v46, %v4000_v51  ;;  %v4003_v27 = vadd.f32 %v6328_v39, %v8625_v1  ;;  %6980 = vrot.lane.b32.xlu1 %v6979_v14, %s7406_s10 }
 0x66c   : > { %v4068_v9 = vadd.f32 %v8548_v2, %v4003_v27  ;;  %v6329_v41 = vpop.f32.mrb[72].mxu1  ;;  %v4083_v5 = vmax.f32 %v4065_v31, 0.0  ;;  %6582 = vmatpush3.bf16.msra.mxu0 %v7085_v12 }
 0x66d   : > { %v6330_v18 = vpop.f32.mrb[73].mxu1 }
 0x66e   : > { %v4084_v45 = vmax.f32 %v4068_v9, 0.0  ;;  %v6331_v13 = vadd.f32 %v6330_v18, %v6329_v41  ;;  %v6332_v37 = vpop.f32.mrb[74].mxu1 }
 0x66f   : > { %v6333_v53 = vpop.f32.mrb[75].mxu1 }
 0x670   : > { %v4008_v46 = vadd.f32 %v6331_v13, %v8625_v1  ;;  %v6334_v3 = vadd.f32 %v6333_v53, %v6332_v37  ;;  %v6984_v59 = vpack.i.bf16 %v4084_v45, %v4083_v5  ;;  %v7086_v45 = vld [vmem:[%s9278_s2] sm:$0xff]  }
 0x671   : > { %6591 = vmatprep.subr.bf16.mxu1 %v7086_v45 }
 0x672   : > { %v4073_v50 = vadd.f32 %v8542_v42, %v4008_v46  ;;  %v4011_v2 = vadd.f32 %v6334_v3, %v8625_v1  ;;  %6985 = vrot.lane.b32.xlu0 %v6984_v59, %s7406_s10  ;;  %6592 = vmatpush3.bf16.msra.mxu1 %v7086_v45 }
 0x674   : > { %v4076_v38 = vadd.f32 %v8546_v57, %v4011_v2  ;;  %v6561_v58 = vpop.f32.mrb[76].mxu1  ;;  %v4085_v60 = vmax.f32 %v4073_v50, 0.0 }
 0x675   : > { %v4251_v56 = vadd.f32 %v6561_v58, %v6111_v32  ;;  %v4242_v49 = vpop.f32.mrb[77].mxu1 }
 0x676   : > { %v4086_v61 = vmax.f32 %v4076_v38, 0.0  ;;  %v4243_v62 = vadd.f32 %v6111_v32, %v4242_v49  ;;  %v6562_v47 = vpop.f32.mrb[78].mxu1 }
 0x677   : > { %v4254_v24 = vadd.f32 %v6562_v47, %v6111_v32  ;;  %v4245_v0 = vpop.f32.mrb[79].mxu1  ;;  %v4275_v35 = vmax.f32 %v4251_v56, 0.0  ;;  %v3460_v56 = vmax.f32 %v8571_v40, 0.0  ;;  %v3463_v47 = vmax.f32 %v8574_v25, 0.0 }
 0x678   : > { %v4246_v42 = vadd.f32 %v6111_v32, %v4245_v0  ;;  %v6989_v1 = vpack.i.bf16 %v4086_v61, %v4085_v60  ;;  %v4273_v63 = vmax.f32 %v4243_v62, 0.0  ;;  %v3462_v62 = vmax.f32 %v8568_v22, 0.0 }
 0x679   : > { %v4276_v16 = vmax.f32 %v4254_v24, 0.0 }
 0x67a   : > { %v4274_v51 = vmax.f32 %v4246_v42, 0.0  ;;  %6990 = vrot.lane.b32.xlu1 %v6989_v1, %s7406_s10  ;;  %s9280_s10 = sld [smem:[#allocation28_spill]] }
 0x67b   : > { %v6994_v57 = vpack.i.bf16 %v4276_v16, %v4275_v35 }
 0x67c   : > { %v6999_v39 = vpack.i.bf16 %v4274_v51, %v4273_v63  ;;  %v6565_v14 = vpop.f32.mrb[80].mxu1 }
 0x67d   : > { %v4267_v31 = vadd.f32 %v6565_v14, %v6111_v32  ;;  %v4258_v27 = vpop.f32.mrb[81].mxu1 }
 0x67e   : > { %v4259_v9 = vadd.f32 %v6111_v32, %v4258_v27  ;;  %v6566_v41 = vpop.f32.mrb[82].mxu1  ;;  %6995 = vrot.lane.b32.xlu1 %v6994_v57, %s7407_s16  ;;  %7000 = vrot.lane.b32.xlu0 %v6999_v39, %s7407_s16 }
 0x67f   : > { %v4270_v18 = vadd.f32 %v6566_v41, %v6111_v32  ;;  %v4261_v5 = vpop.f32.mrb[83].mxu1  ;;  %v4279_v37 = vmax.f32 %v4267_v31, 0.0 }
 0x680   : > { %v4262_v13 = vadd.f32 %v6111_v32, %v4261_v5  ;;  %v4277_v36 = vmax.f32 %v4259_v9, 0.0 }
 0x681   : > { %v4280_v53 = vmax.f32 %v4270_v18, 0.0 }
 0x682   : > { %v4278_v46 = vmax.f32 %v4262_v13, 0.0  ;;  %7010 = vrot.lane.b32.xlu1 %v8555_v4, %s7405_s23  ;;  %7005 = vrot.lane.b32.xlu0 %v8558_v33, %s7405_s23  ;;  %v3461_v4 = vmax.f32 %v8576_v34, 0.0  ;;  %s9279_s23 = sld [smem:[#allocation21_spill]] }
 0x683   : > { %v7019_v3 = vpack.i.bf16 %v4280_v53, %v4279_v37 }
 0x684   : > { %v7014_v59 = vpack.i.bf16 %v4278_v46, %v4277_v36 }
 0x686   : > { %7020 = vrot.lane.b32.xlu1 %v7019_v3, %s7407_s16  ;;  %7015 = vrot.lane.b32.xlu0 %v7014_v59, %s7407_s16  ;;  %s9281_s16 = sld [smem:[#allocation23_spill]] }
 0x687   : > { %v6966_v2 = vpop.permute.xlu1 %6965 }
 0x688   : > { %v6971_v50 = vpop.permute.xlu0 %6970  ;;  %v6968_v16 = vunpack.i.h.bf16 %v6966_v2  ;;  %v6967_v34 = vunpack.i.l.bf16 %v6966_v2  ;;  %v3466_v2 = vmax.f32 %v8580_v26, 0.0 }
 0x689   : > { %v6973_v42 = vunpack.i.h.bf16 %v6971_v50  ;;  %v6972_v1 = vunpack.i.l.bf16 %v6971_v50 }
 0x6d4   : > { %v6976_v32 = vpop.permute.xlu0 %6975 }
 0x6d5   : > { %v6978_v58 = vunpack.i.h.bf16 %v6976_v32  ;;  %v6977_v12 = vunpack.i.l.bf16 %v6976_v32  ;;  %v3464_v32 = vmax.f32 %v8583_v54, 0.0 }
 0x6d7   : > { %v4378_v24 = vsel %vm1529_vm0, %v3461_v4, %v6978_v58  ;;  %v4377_v0 = vsel %vm1529_vm0, %v3460_v56, %v6977_v12  ;;  %v3465_v58 = vmax.f32 %v8588_v17, 0.0 }
 0x6d8   : > { %v4385_v57 = vsel %vm3113_vm5, %v4377_v0, %v6972_v1  ;;  %v4386_v22 = vsel %vm3113_vm5, %v4378_v24, %v6973_v42 }
 0x6dc   : > { %v6981_v38 = vpop.permute.xlu1 %6980 }
 0x6dd   : > { %v6983_v49 = vunpack.i.h.bf16 %v6981_v38  ;;  %v6982_v60 = vunpack.i.l.bf16 %v6981_v38  ;;  %v3467_v38 = vmax.f32 %v8586_v44, 0.0 }
 0x6df   : > { %v4380_v35 = vsel %vm1529_vm0, %v3463_v47, %v6983_v49  ;;  %v4379_v40 = vsel %vm1529_vm0, %v3462_v62, %v6982_v60 }
 0x6e0   : > { %v4387_v41 = vsel %vm3113_vm5, %v4379_v40, %v6967_v34  ;;  %v4388_v18 = vsel %vm3113_vm5, %v4380_v35, %v6968_v16 }
 0x6e4   : > { %v6986_v33 = vpop.permute.xlu0 %6985 }
 0x6e5   : > { %v6988_v27 = vunpack.i.h.bf16 %v6986_v33  ;;  %v6987_v9 = vunpack.i.l.bf16 %v6986_v33 }
 0x6e7   : > { %v4381_v60 = vsel %vm1529_vm0, %v3464_v32, %v6987_v9  ;;  %v4382_v33 = vsel %vm1529_vm0, %v3465_v58, %v6988_v27  ;;  %v4586_v27 = vsel %vm1529_vm0, %v8614_v55, -inf }
 0x6ec   : > { %v6991_v61 = vpop.permute.xlu1 %6990 }
 0x6ed   : > { %v6993_v53 = vunpack.i.h.bf16 %v6991_v61  ;;  %v6992_v36 = vunpack.i.l.bf16 %v6991_v61 }
 0x6ef   : > { %v4383_v61 = vsel %vm1529_vm0, %v3466_v2, %v6992_v36  ;;  %v4384_v26 = vsel %vm1529_vm0, %v3467_v38, %v6993_v53  ;;  %v4607_v53 = vsel %vm1529_vm0, %v8618_v29, -inf }
 0x6f0   : > { %v6996_v63 = vpop.permute.xlu1 %6995  ;;  %v7001_v51 = vpop.permute.xlu0 %7000  ;;  %v4608_v32 = vrot.slane %v4607_v53, 4 }
 0x6f1   : > { %v6998_v39 = vunpack.i.h.bf16 %v6996_v63  ;;  %v6997_v25 = vunpack.i.l.bf16 %v6996_v63  ;;  %v7003_v14 = vunpack.i.h.bf16 %v7001_v51  ;;  %v7002_v31 = vunpack.i.l.bf16 %v7001_v51 }
 0x6f3   : > { %v4395_v5 = vsel %vm3122_vm7, %v4387_v41, %v6997_v25  ;;  %v4396_v45 = vsel %vm3122_vm7, %v4388_v18, %v6998_v39  ;;  %v4393_v13 = vsel %vm3122_vm7, %v4385_v57, %v7002_v31  ;;  %v4394_v37 = vsel %vm3122_vm7, %v4386_v22, %v7003_v14  ;;  %v7087_v22 = vld [vmem:[%s9278_s2 + $0x8] sm:$0xff]   ;;  %s9288_s2 = sld [smem:[#allocation11_spill]] }
 0x6f4   : > { %v4418_v46 = vpack.c.bf16 %v4396_v45, %v4395_v5  ;;  %v7011_v3 = vpop.permute.xlu1 %7010  ;;  %v7006_v59 = vpop.permute.xlu0 %7005  ;;  %v4417_v50 = vpack.c.bf16 %v4394_v37, %v4393_v13  ;;  %6593 = vmatprep.subr.bf16.mxu1 %v7087_v22  ;;  %v4593_v39 = vsel %vm1529_vm0, %v8608_v11, -inf  ;;  %v4579_v25 = vsel %vm1529_vm0, %v8610_v30, -inf }
 0x6f5   : > { %v7013_v12 = vunpack.i.h.bf16 %v7011_v3  ;;  %v7012_v56 = vunpack.i.l.bf16 %v7011_v3  ;;  %v7008_v4 = vunpack.i.h.bf16 %v7006_v59  ;;  %v7007_v49 = vunpack.i.l.bf16 %v7006_v59  ;;  %6594 = vmatpush3.bf16.msra.mxu1 %v7087_v22 }
 0x6f6   : > { %6583 = vmatprep.mubr.bf16.mxu0 %v4417_v50  ;;  %v4600_v14 = vsel %vm1529_vm0, %v8612_v52, -inf  ;;  %v4594_v31 = vrot.slane %v4593_v39, 4  ;;  %v4580_v9 = vrot.slane %v4579_v25, 4  ;;  %v4587_v18 = vrot.slane %v4586_v27, 4 }
 0x6f7   : > { %6584 = vmatmul.mubr.bf16.vlgmr.msra.gmra.mrb[76].mxu0 %v4418_v46  ;;  %v4391_v0 = vsel %vm3113_vm5, %v4383_v61, %v7012_v56  ;;  %v4392_v42 = vsel %vm3113_vm5, %v4384_v26, %v7013_v12  ;;  %v4389_v1 = vsel %vm3113_vm5, %v4381_v60, %v7007_v49  ;;  %v4390_v35 = vsel %vm3113_vm5, %v4382_v33, %v7008_v4 }
 0x6f8   : > { %v7021_v62 = vpop.permute.xlu1 %7020  ;;  %v7016_v54 = vpop.permute.xlu0 %7015  ;;  %v4601_v41 = vrot.slane %v4600_v14, 4  ;;  %v4595_v5 = vmax.f32 %v4593_v39, %v4594_v31  ;;  %v4581_v45 = vmax.f32 %v4579_v25, %v4580_v9  ;;  %v4621_v13 = vsel %vm1529_vm0, %v8616_v15, -inf }
 0x6f9   : > { %v7023_v47 = vunpack.i.h.bf16 %v7021_v62  ;;  %v7022_v44 = vunpack.i.l.bf16 %v7021_v62  ;;  %v7018_v17 = vunpack.i.h.bf16 %v7016_v54  ;;  %v7017_v24 = vunpack.i.l.bf16 %v7016_v54  ;;  %s8836_s3 = scalar_lea.vmem %s9288_s2, %s7721_s0  ;;  %s9289_s2 = sld [smem:[#allocation36_spill]] }
 0x6fa   : > { %v4602_v37 = vmax.f32 %v4600_v14, %v4601_v41  ;;  %v4588_v36 = vmax.f32 %v4586_v27, %v4587_v18  ;;  %v4628_v46 = vsel %vm1529_vm0, %v8620_v20, -inf  ;;  %v4596_v3 = vrot.slane %v4595_v5, 2 }
 0x6fb   : > { %v4397_v40 = vsel %vm3122_vm7, %v4389_v1, %v7017_v24  ;;  %v4398_v16 = vsel %vm3122_vm7, %v4390_v35, %v7018_v17  ;;  %v4399_v34 = vsel %vm3122_vm7, %v4391_v0, %v7022_v44  ;;  %v4400_v63 = vsel %vm3122_vm7, %v4392_v42, %v7023_v47 }
 0x6fc   : > { %v4419_v51 = vpack.c.bf16 %v4398_v16, %v4397_v40  ;;  %v4420_v57 = vpack.c.bf16 %v4400_v63, %v4399_v34  ;;  %v4622_v59 = vrot.slane %v4621_v13, 4  ;;  %v4614_v50 = vsel %vm1529_vm0, %v8622_v23, -inf }
 0x6fd   : > { %v4582_v2 = vrot.slane %v4581_v45, 2  ;;  %v4603_v38 = vrot.slane %v4602_v37, 2  ;;  %v4629_v58 = vrot.slane %v4628_v46, 4  ;;  %v4589_v12 = vrot.slane %v4588_v36, 2 }
 0x6fe   : > { %6587 = vmatprep.mubr.bf16.mxu0 %v4419_v51  ;;  %v4615_v56 = vrot.slane %v4614_v50, 4  ;;  %v4597_v4 = vmax.f32 %v4595_v5, %v4596_v3  ;;  %v4623_v49 = vmax.f32 %v4621_v13, %v4622_v59  ;;  %v4609_v33 = vmax.f32 %v4607_v53, %v4608_v32 }
 0x6ff   : > { %6588 = vmatmul.mubr.bf16.gmra.mrb[80].mxu0 %v4420_v57  ;;  %v4583_v60 = vmax.f32 %v4581_v45, %v4582_v2  ;;  %v4604_v61 = vmax.f32 %v4602_v37, %v4603_v38  ;;  %v4630_v26 = vmax.f32 %v4628_v46, %v4629_v58  ;;  %v4590_v62 = vmax.f32 %v4588_v36, %v4589_v12 }
 0x700   : > { %v4616_v54 = vmax.f32 %v4614_v50, %v4615_v56  ;;  %v4598_v47 = vrot.slane %v4597_v4, 1  ;;  %v4624_v44 = vrot.slane %v4623_v49, 2  ;;  %v4610_v24 = vrot.slane %v4609_v33, 2 }
 0x701   : > { %v4584_v17 = vrot.slane %v4583_v60, 1  ;;  %v4605_v0 = vrot.slane %v4604_v61, 1  ;;  %v4631_v42 = vrot.slane %v4630_v26, 2  ;;  %v4591_v1 = vrot.slane %v4590_v62, 1 }
 0x702   : > { %v4617_v35 = vrot.slane %v4616_v54, 2  ;;  %v4599_v40 = vmax.f32 %v4597_v4, %v4598_v47  ;;  %v4625_v16 = vmax.f32 %v4623_v49, %v4624_v44  ;;  %v4611_v63 = vmax.f32 %v4609_v33, %v4610_v24 }
 0x703   : > { %v4585_v34 = vmax.f32 %v4583_v60, %v4584_v17  ;;  %v4606_v51 = vmax.f32 %v4604_v61, %v4605_v0  ;;  %v4632_v57 = vmax.f32 %v4630_v26, %v4631_v42  ;;  %v4592_v22 = vmax.f32 %v4590_v62, %v4591_v1 }
 0x704   : > { %v4618_v39 = vmax.f32 %v4616_v54, %v4617_v35  ;;  %v4637_v25 = vsub.f32 %v8608_v11, %v4599_v40  ;;  %v4626_v14 = vrot.slane %v4625_v16, 1  ;;  %v4612_v27 = vrot.slane %v4611_v63, 1 }
 0x705   : > { %v4635_v31 = vsub.f32 %v8610_v30, %v4585_v34  ;;  %v4638_v9 = vsub.f32 %v8612_v52, %v4606_v51  ;;  %v4633_v41 = vrot.slane %v4632_v57, 1  ;;  %v4636_v18 = vsub.f32 %v8614_v55, %v4592_v22 }
 0x706   : > { %v4619_v5 = vrot.slane %v4618_v39, 1  ;;  %v4647_v45 = vmul.f32 1.442695, %v4637_v25  ;;  %v4627_v13 = vmax.f32 %v4625_v16, %v4626_v14  ;;  %v4613_v53 = vmax.f32 %v4611_v63, %v4612_v27 }
 0x707   : > { %v4643_v37 = vmul.f32 1.442695, %v4635_v31  ;;  %v4649_v36 = vmul.f32 1.442695, %v4638_v9  ;;  %v4634_v46 = vmax.f32 %v4632_v57, %v4633_v41  ;;  %v4645_v3 = vmul.f32 1.442695, %v4636_v18 }
 0x708   : > { %v4620_v59 = vmax.f32 %v4618_v39, %v4619_v5  ;;  %7178 = vpow2.f32 %v4647_v45  ;;  %v4641_v11 = vsub.f32 %v8616_v15, %v4627_v13  ;;  %v4639_v30 = vsub.f32 %v8618_v29, %v4613_v53 }
 0x709   : > { %7180 = vpow2.f32 %v4643_v37  ;;  %v4642_v52 = vsub.f32 %v8620_v20, %v4634_v46 }
 0x70a   : > { %7182 = vpow2.f32 %v4649_v36  ;;  %v4640_v55 = vsub.f32 %v8622_v23, %v4620_v59  ;;  %v4655_v50 = vmul.f32 1.442695, %v4641_v11  ;;  %v4651_v2 = vmul.f32 1.442695, %v4639_v30 }
 0x70b   : > { %7184 = vpow2.f32 %v4645_v3  ;;  %v4657_v32 = vmul.f32 1.442695, %v4642_v52 }
 0x70c   : > { %v4653_v38 = vmul.f32 1.442695, %v4640_v55  ;;  %7186 = vpow2.f32 %v4655_v50 }
 0x70d   : > { %7188 = vpow2.f32 %v4651_v2 }
 0x70e   : > { %7190 = vpow2.f32 %v4657_v32 }
 0x70f   : > { %7192 = vpow2.f32 %v4653_v38 }
 0x712   : > { %v8722_v58 = vpop.eup %7178 }
 0x713   : > { %v8724_v12 = vpop.eup %7180  ;;  %v4673_v20 = vsel %vm1529_vm0, %v8722_v58, 0.0 }
 0x714   : > { %v8726_v15 = vpop.eup %7182  ;;  %v4659_v23 = vsel %vm1529_vm0, %v8724_v12, 0.0  ;;  %v4674_v4 = vrot.slane %v4673_v20, 4 }
 0x715   : > { %v8728_v29 = vpop.eup %7184  ;;  %v4680_v56 = vsel %vm1529_vm0, %v8726_v15, 0.0  ;;  %v4660_v60 = vrot.slane %v4659_v23, 4 }
 0x716   : > { %v4666_v49 = vsel %vm1529_vm0, %v8728_v29, 0.0  ;;  %v8738_v33 = vpop.eup %7186  ;;  %v4681_v61 = vrot.slane %v4680_v56, 4  ;;  %v4675_v47 = vadd.f32 %v4674_v4, %v4673_v20 }
 0x717   : > { %v8740_v26 = vpop.eup %7188  ;;  %v4667_v62 = vrot.slane %v4666_v49, 4  ;;  %v4661_v17 = vadd.f32 %v4660_v60, %v4659_v23  ;;  %v4701_v24 = vsel %vm1529_vm0, %v8738_v33, 0.0 }
 0x718   : > { %v8742_v54 = vpop.eup %7190  ;;  %v4682_v0 = vadd.f32 %v4681_v61, %v4680_v56  ;;  %v4687_v42 = vsel %vm1529_vm0, %v8740_v26, 0.0  ;;  %v4676_v40 = vrot.slane %v4675_v47, 2  ;;  %v4702_v16 = vrot.slane %v4701_v24, 4 }
 0x719   : > { %v8744_v44 = vpop.eup %7192  ;;  %v4668_v1 = vadd.f32 %v4667_v62, %v4666_v49  ;;  %v4708_v35 = vsel %vm1529_vm0, %v8742_v54, 0.0  ;;  %v4662_v63 = vrot.slane %v4661_v17, 2  ;;  %v4688_v51 = vrot.slane %v4687_v42, 4 }
 0x71a   : > { %v4694_v34 = vsel %vm1529_vm0, %v8744_v44, 0.0  ;;  %v4683_v57 = vrot.slane %v4682_v0, 2  ;;  %v4709_v22 = vrot.slane %v4708_v35, 4  ;;  %v4677_v14 = vadd.f32 %v4676_v40, %v4675_v47 }
 0x71b   : > { %v4669_v39 = vrot.slane %v4668_v1, 2  ;;  %v4695_v25 = vrot.slane %v4694_v34, 4  ;;  %v4703_v31 = vadd.f32 %v4702_v16, %v4701_v24  ;;  %v4663_v27 = vadd.f32 %v4662_v63, %v4661_v17  ;;  %v6118_v17 = vld [vmem:[%s9279_s23] ss:$0 sm:$0xff]  ;;  %s9283_s23 = sld [smem:[#allocation25_spill]] }
 0x71c   : > { %v4689_v9 = vadd.f32 %v4688_v51, %v4687_v42  ;;  %v4684_v41 = vadd.f32 %v4683_v57, %v4682_v0  ;;  %v4710_v18 = vadd.f32 %v4709_v22, %v4708_v35  ;;  %v4678_v13 = vrot.slane %v4677_v14, 1  ;;  %v6129_v42 = vld [vmem:[%s9280_s10] ss:$0 sm:$0xff]  ;;  %s9284_s10 = sld [smem:[#allocation32_spill]] }
 0x71d   : > { %v4670_v5 = vadd.f32 %v4669_v39, %v4668_v1  ;;  %v4696_v45 = vadd.f32 %v4695_v25, %v4694_v34  ;;  %v4704_v37 = vrot.slane %v4703_v31, 2  ;;  %v4664_v53 = vrot.slane %v4663_v27, 1 }
 0x71e   : > { %v4690_v36 = vrot.slane %v4689_v9, 2  ;;  %v4685_v46 = vrot.slane %v4684_v41, 1  ;;  %v4711_v3 = vrot.slane %v4710_v18, 2  ;;  %v4679_v30 = vadd.f32 %v4678_v13, %v4677_v14 }
 0x71f   : > { %v4671_v59 = vrot.slane %v4670_v5, 1  ;;  %v4697_v11 = vrot.slane %v4696_v45, 2  ;;  %v4705_v52 = vadd.f32 %v4704_v37, %v4703_v31  ;;  %v4665_v55 = vadd.f32 %v4664_v53, %v4663_v27 }
 0x720   : > { %v4691_v50 = vadd.f32 %v4690_v36, %v4689_v9  ;;  %v4686_v2 = vadd.f32 %v4685_v46, %v4684_v41  ;;  %v4712_v32 = vadd.f32 %v4711_v3, %v4710_v18  ;;  %7194 = vrcp.f32 %v4679_v30 }
 0x721   : > { %v4672_v38 = vadd.f32 %v4671_v59, %v4670_v5  ;;  %v4698_v20 = vadd.f32 %v4697_v11, %v4696_v45  ;;  %v4706_v23 = vrot.slane %v4705_v52, 1  ;;  %7196 = vrcp.f32 %v4665_v55 }
 0x722   : > { %v4692_v56 = vrot.slane %v4691_v50, 1  ;;  %7198 = vrcp.f32 %v4686_v2  ;;  %v4713_v4 = vrot.slane %v4712_v32, 1 }
 0x723   : > { %7200 = vrcp.f32 %v4672_v38  ;;  %v4699_v49 = vrot.slane %v4698_v20, 1  ;;  %v4707_v60 = vadd.f32 %v4706_v23, %v4705_v52 }
 0x724   : > { %v4693_v61 = vadd.f32 %v4692_v56, %v4691_v50  ;;  %v4714_v62 = vadd.f32 %v4713_v4, %v4712_v32 }
 0x725   : > { %v4700_v47 = vadd.f32 %v4699_v49, %v4698_v20  ;;  %7202 = vrcp.f32 %v4707_v60 }
 0x726   : > { %7204 = vrcp.f32 %v4693_v61 }
 0x727   : > { %7206 = vrcp.f32 %v4714_v62 }
 0x728   : > { %7208 = vrcp.f32 %v4700_v47 }
 0x72a   : > { %v7195_v24 = vpop.eup %7194 }
 0x72b   : > { %v7197_v1 = vpop.eup %7196  ;;  %v4725_v57 = vmul.f32 %v7195_v24, %v8722_v58 }
 0x72c   : > { %v7199_v16 = vpop.eup %7198  ;;  %v4723_v14 = vmul.f32 %v7197_v1, %v8724_v12  ;;  %v6137_v1 = vld [vmem:[%s9282_s1] ss:$0 sm:$0xff]  ;;  %s9286_s1 = sld [smem:[#allocation30_spill]] }
 0x72d   : > { %v7201_v51 = vpop.eup %7200  ;;  %v4726_v41 = vmul.f32 %v7199_v16, %v8726_v15 }
 0x72e   : > { %v4724_v45 = vmul.f32 %v7201_v51, %v8728_v29 }
 0x72f   : > { %v7203_v53 = vpop.eup %7202 }
 0x730   : > { %v7205_v58 = vpop.eup %7204  ;;  %v4729_v15 = vmul.f32 %v7203_v53, %v8738_v33 }
 0x731   : > { %v7207_v30 = vpop.eup %7206  ;;  %v4727_v29 = vmul.f32 %v7205_v58, %v8740_v26 }
 0x732   : > { %v7209_v50 = vpop.eup %7208  ;;  %v4730_v4 = vmul.f32 %v7207_v30, %v8742_v54 }
 0x733   : > { %v4728_v33 = vmul.f32 %v7209_v50, %v8744_v44 }
 0x7ca   : > { %v6585_v0 = vpop.f32.mrb[76].mxu0 }
 0x7cb   : > { %v4519_v35 = vadd.f32 %v6585_v0, %v6118_v17  ;;  %v4510_v40 = vpop.f32.mrb[77].mxu0 }
 0x7cc   : > { %v4511_v34 = vadd.f32 %v6118_v17, %v4510_v40  ;;  %v6586_v63 = vpop.f32.mrb[78].mxu0  ;;  %v6138_v40 = vld [vmem:[%s9283_s23] ss:$0 sm:$0xff]  ;;  %s9287_s23 = sld [smem:[#allocation31_spill]] }
 0x7cd   : > { %v4740_v22 = vmul.f32 %v6129_v42, %v4519_v35  ;;  %v4522_v39 = vadd.f32 %v6586_v63, %v6118_v17  ;;  %v4513_v25 = vpop.f32.mrb[79].mxu0  ;;  %v4884_v58 = vmul.f32 %v6138_v40, %v8086_v43  ;;  %v4887_v43 = vmul.f32 %v6138_v40, %v8093_v28 }
 0x7ce   : > { %v4738_v31 = vmul.f32 %v6129_v42, %v4511_v34  ;;  %v4514_v27 = vadd.f32 %v6118_v17, %v4513_v25 }
 0x7cf   : > { %v4748_v9 = vadd.f32 %v4740_v22, %v4725_v57  ;;  %v4741_v18 = vmul.f32 %v6129_v42, %v4522_v39  ;;  %v4880_v22 = vmul.f32 %v6138_v40, %v8043_v7  ;;  %v4882_v39 = vmul.f32 %v6138_v40, %v8041_v6 }
 0x7d0   : > { %v4746_v5 = vadd.f32 %v4738_v31, %v4723_v14  ;;  %v4739_v13 = vmul.f32 %v6129_v42, %v4514_v27  ;;  %v4881_v31 = vmul.f32 %v6138_v40, %v8051_v10 }
 0x7d1   : > { %v4749_v37 = vadd.f32 %v4741_v18, %v4726_v41 }
 0x7d2   : > { %v4747_v36 = vadd.f32 %v4739_v13, %v4724_v45  ;;  %v6589_v46 = vpop.f32.mrb[80].mxu0 }
 0x7d3   : > { %v4759_v3 = vpack.c.bf16 %v4749_v37, %v4748_v9  ;;  %v4535_v59 = vadd.f32 %v6589_v46, %v6118_v17  ;;  %v4526_v11 = vpop.f32.mrb[81].mxu0  ;;  %v4883_v37 = vmul.f32 %v6138_v40, %v8047_v8  ;;  %v4885_v8 = vmul.f32 %v6138_v40, %v8099_v48 }
 0x7d4   : > { %v4758_v12 = vpack.c.bf16 %v4747_v36, %v4746_v5  ;;  %v4527_v52 = vadd.f32 %v6118_v17, %v4526_v11  ;;  %v6590_v55 = vpop.f32.mrb[82].mxu0 }
 0x7d5   : > { %v4744_v2 = vmul.f32 %v6129_v42, %v4535_v59  ;;  %v4538_v32 = vadd.f32 %v6590_v55, %v6118_v17  ;;  %v4529_v38 = vpop.f32.mrb[83].mxu0  ;;  %v4886_v55 = vmul.f32 %v6138_v40, %v8081_v19 }
 0x7d6   : > { %v4742_v20 = vmul.f32 %v6129_v42, %v4527_v52  ;;  %v4530_v23 = vadd.f32 %v6118_v17, %v4529_v38  ;;  %6595 = vmatprep.mubr.msk.bf16.mxu1 %vm1529_vm0, %v4758_v12  ;;  %v6130_v17 = vld [vmem:[%s9281_s16] ss:$0 sm:$0xff]  ;;  %s9285_s16 = sld [smem:[#allocation29_spill]] }
 0x7d7   : > { %v4752_v56 = vadd.f32 %v4744_v2, %v4729_v15  ;;  %v4745_v49 = vmul.f32 %v6129_v42, %v4538_v32  ;;  %6596 = vmatmul.mubr.msk.bf16.vlgmr.msra.gmra.mrb[84].mxu1 %vm1529_vm0, %v4759_v3 }
 0x7d8   : > { %v4750_v60 = vadd.f32 %v4742_v20, %v4727_v29  ;;  %v4743_v61 = vmul.f32 %v6129_v42, %v4530_v23 }
 0x7d9   : > { %v4753_v62 = vadd.f32 %v4745_v49, %v4730_v4 }
 0x7da   : > { %v4751_v47 = vadd.f32 %v4743_v61, %v4728_v33 }
 0x7db   : > { %v4761_v26 = vpack.c.bf16 %v4753_v62, %v4752_v56 }
 0x7dc   : > { %v4760_v24 = vpack.c.bf16 %v4751_v47, %v4750_v60 }
 0x7de   : > { %6599 = vmatprep.mubr.msk.bf16.mxu1 %vm1529_vm0, %v4760_v24 }
 0x7df   : > { %6600 = vmatmul.mubr.msk.bf16.gmra.mrb[88].mxu1 %vm1529_vm0, %v4761_v26 }
 0x8aa   : > { %v6597_v0 = vpop.f32.mrb[84].mxu1 }
 0x8ab   : > { %v4836_v54 = vadd.f32 %v6597_v0, %v6130_v17  ;;  %v4827_v35 = vpop.f32.mrb[85].mxu1 }
 0x8ac   : > { %v4828_v16 = vadd.f32 %v6130_v17, %v4827_v35  ;;  %v6598_v34 = vpop.f32.mrb[86].mxu1 }
 0x8ad   : > { %v4867_v63 = vadd.f32 %v6137_v1, %v4836_v54  ;;  %v4839_v51 = vadd.f32 %v6598_v34, %v6130_v17  ;;  %v4830_v44 = vpop.f32.mrb[87].mxu1 }
 0x8ae   : > { %v4865_v42 = vadd.f32 %v6137_v1, %v4828_v16  ;;  %v4831_v57 = vadd.f32 %v6130_v17, %v4830_v44 }
 0x8af   : > { %v4868_v27 = vadd.f32 %v6137_v1, %v4839_v51  ;;  %v4890_v9 = vadd.f32 %v4882_v39, %v4867_v63 }
 0x8b0   : > { %v4866_v25 = vadd.f32 %v6137_v1, %v4831_v57  ;;  %v4888_v14 = vadd.f32 %v4880_v22, %v4865_v42 }
 0x8b1   : > { %v4905_v46 = vsel %vm1529_vm0, %v4890_v9, 0.0  ;;  %v4891_v10 = vadd.f32 %v4883_v37, %v4868_v27 }
 0x8b2   : > { %v6601_v41 = vpop.f32.mrb[88].mxu1  ;;  %v4899_v18 = vsel %vm1529_vm0, %v4888_v14, 0.0  ;;  %v4889_v5 = vadd.f32 %v4881_v31, %v4866_v25 }
 0x8b3   : > { %v4852_v45 = vadd.f32 %v6601_v41, %v6130_v17  ;;  %4900 = vadd.xlane.f32.xlu0 %v4899_v18  ;;  %v4843_v13 = vpop.f32.mrb[89].mxu1  ;;  %v4908_v50 = vsel %vm1529_vm0, %v4891_v10, 0.0 }
 0x8b4   : > { %v4844_v53 = vadd.f32 %v6130_v17, %v4843_v13  ;;  %v6602_v36 = vpop.f32.mrb[90].mxu1  ;;  %v4902_v7 = vsel %vm1529_vm0, %v4889_v5, 0.0 }
 0x8b5   : > { %4903 = vadd.xlane.f32.xlu1 %v4902_v7  ;;  %v4846_v6 = vpop.f32.mrb[91].mxu1  ;;  %v4871_v3 = vadd.f32 %v6137_v1, %v4852_v45  ;;  %v4855_v11 = vadd.f32 %v6602_v36, %v6130_v17  ;;  %v7088_v7 = vld [vmem:[%s9284_s10] sm:$0xff]  }
 0x8b6   : > { %v4869_v59 = vadd.f32 %v6137_v1, %v4844_v53  ;;  %v4847_v30 = vadd.f32 %v6130_v17, %v4846_v6  ;;  %v7089_v6 = vld [vmem:[%s9284_s10 + $0x8] sm:$0xff]   ;;  %6603 = vmatprep.subr.bf16.mxu1 %v7088_v7 }
 0x8b7   : > { %4906 = vadd.xlane.f32.xlu0 %v4905_v46  ;;  %v4872_v15 = vadd.f32 %v6137_v1, %v4855_v11  ;;  %v4894_v38 = vadd.f32 %v4886_v55, %v4871_v3  ;;  %6604 = vmatpush3.bf16.msra.mxu1 %v7088_v7 }
 0x8b8   : > { %v4870_v12 = vadd.f32 %v6137_v1, %v4847_v30  ;;  %v4892_v52 = vadd.f32 %v4884_v58, %v4869_v59  ;;  %6605 = vmatprep.subr.bf16.mxu1 %v7089_v6 }
 0x8b9   : > { %v4917_v20 = vsel %vm1529_vm0, %v4894_v38, 0.0  ;;  %v4895_v23 = vadd.f32 %v4887_v43, %v4872_v15 }
 0x8ba   : > { %v4911_v2 = vsel %vm1529_vm0, %v4892_v52, 0.0  ;;  %v4893_v32 = vadd.f32 %v4885_v8, %v4870_v12 }
 0x8bb   : > { %4909 = vadd.xlane.f32.xlu0 %v4908_v50  ;;  %4912 = vadd.xlane.f32.xlu1 %v4911_v2  ;;  %v4920_v19 = vsel %vm1529_vm0, %v4895_v23, 0.0 }
 0x8bc   : > { %v4914_v29 = vsel %vm1529_vm0, %v4893_v32, 0.0  ;;  %6606 = vmatpush3.bf16.msra.mxu1 %v7089_v6  ;;  %v1441_v6 = vld [vmem:[%s8836_s3 + $0x18] sm:$0xff] }
 0x8bf   : > { %4915 = vadd.xlane.f32.xlu0 %v4914_v29  ;;  %4918 = vadd.xlane.f32.xlu1 %v4917_v20 }
 0x8c3   : > { %4921 = vadd.xlane.f32.xlu0 %v4920_v19  ;;  %v6139_v19 = vld [vmem:[%s9285_s16] ss:$0 sm:$0xff]  ;;  %s9291_s16 = sld [smem:[#allocation34_spill]] }
 0x940   : > { %v4901_v48 = vpop.xlane.xlu0 %4900 }
 0x941   : > { %v4924_v56 = vmul.f32 0.03125, %v4901_v48 }
 0x942   : > { %v4904_v4 = vpop.xlane.xlu1 %4903 }
 0x943   : > { %v8787_v49 = vsub.f32 %v4888_v14, %v4924_v56  ;;  %v4925_v60 = vmul.f32 0.03125, %v4904_v4 }
 0x944   : > { %v4907_v33 = vpop.xlane.xlu0 %4906 }
 0x945   : > { %v8789_v61 = vsub.f32 %v4889_v5, %v4925_v60  ;;  %v4926_v28 = vmul.f32 0.03125, %v4907_v33  ;;  %v4940_v62 = vmul.f32 %v8787_v49, %v8787_v49 }
 0x947   : > { %v8793_v47 = vsub.f32 %v4890_v9, %v4926_v28  ;;  %v4948_v26 = vsel %vm1529_vm0, %v4940_v62, 0.0  ;;  %v4941_v24 = vmul.f32 %v8789_v61, %v8789_v61  ;;  %v6140_v28 = vld [vmem:[%s9286_s1] ss:$0 sm:$0xff]  ;;  %s9292_s1 = sld [smem:[#allocation35_spill]] }
 0x948   : > { %v4910_v17 = vpop.xlane.xlu0 %4909  ;;  %4949 = vadd.xlane.f32.xlu1 %v4948_v26  ;;  %v4913_v0 = vpop.xlane.xlu1 %4912 }
 0x949   : > { %v4927_v1 = vmul.f32 0.03125, %v4910_v17  ;;  %v4928_v54 = vmul.f32 0.03125, %v4913_v0  ;;  %v4951_v35 = vsel %vm1529_vm0, %v4941_v24, 0.0  ;;  %v4942_v40 = vmul.f32 %v8793_v47, %v8793_v47  ;;  %v6141_v0 = vld [vmem:[%s9287_s23] ss:$0 sm:$0xff]  ;;  %s9293_s23 = sld [smem:[#allocation37_spill]] }
 0x94a   : > { %4952 = vadd.xlane.f32.xlu0 %v4951_v35 }
 0x94b   : > { %v8801_v16 = vsub.f32 %v4891_v10, %v4927_v1  ;;  %v8803_v34 = vsub.f32 %v4892_v52, %v4928_v54  ;;  %v4954_v63 = vsel %vm1529_vm0, %v4942_v40, 0.0 }
 0x94c   : > { %v4916_v51 = vpop.xlane.xlu0 %4915  ;;  %4955 = vadd.xlane.f32.xlu1 %v4954_v63  ;;  %v4919_v44 = vpop.xlane.xlu1 %4918 }
 0x94d   : > { %v4929_v42 = vmul.f32 0.03125, %v4916_v51  ;;  %v4930_v57 = vmul.f32 0.03125, %v4919_v44  ;;  %v4943_v22 = vmul.f32 %v8801_v16, %v8801_v16  ;;  %v4944_v39 = vmul.f32 %v8803_v34, %v8803_v34 }
 0x94f   : > { %v8810_v25 = vsub.f32 %v4893_v32, %v4929_v42  ;;  %v8812_v14 = vsub.f32 %v4894_v38, %v4930_v57  ;;  %v4957_v31 = vsel %vm1529_vm0, %v4943_v22, 0.0  ;;  %v4960_v27 = vsel %vm1529_vm0, %v4944_v39, 0.0  ;;  %v1438_v42 = vld [vmem:[%s8836_s3] sm:$0xff]  ;;  %v1439_v57 = vld [vmem:[%s8836_s3 + $0x8] sm:$0xff] }
 0x950   : > { %4958 = vadd.xlane.f32.xlu0 %v4957_v31  ;;  %v4922_v9 = vpop.xlane.xlu0 %4921  ;;  %4961 = vadd.xlane.f32.xlu1 %v4960_v27 }
 0x951   : > { %v4931_v41 = vmul.f32 0.03125, %v4922_v9  ;;  %v4945_v18 = vmul.f32 %v8810_v25, %v8810_v25  ;;  %v4946_v5 = vmul.f32 %v8812_v14, %v8812_v14 }
 0x953   : > { %v8820_v45 = vsub.f32 %v4895_v23, %v4931_v41  ;;  %v4963_v13 = vsel %vm1529_vm0, %v4945_v18, 0.0  ;;  %v4966_v37 = vsel %vm1529_vm0, %v4946_v5, 0.0 }
 0x954   : > { %4964 = vadd.xlane.f32.xlu0 %v4963_v13  ;;  %4967 = vadd.xlane.f32.xlu1 %v4966_v37 }
 0x955   : > { %v4947_v53 = vmul.f32 %v8820_v45, %v8820_v45 }
 0x957   : > { %v4969_v36 = vsel %vm1529_vm0, %v4947_v53, 0.0 }
 0x958   : > { %4970 = vadd.xlane.f32.xlu0 %v4969_v36 }
 0x9d5   : > { %v4950_v46 = vpop.xlane.xlu1 %4949 }
 0x9d6   : > { %v4972_v10 = vmul.f32 0.03125, %v4950_v46 }
 0x9d7   : > { %v4953_v58 = vpop.xlane.xlu0 %4952 }
 0x9d8   : > { %v4980_v3 = vadd.f32 1e-05, %v4972_v10  ;;  %v4973_v59 = vmul.f32 0.03125, %v4953_v58 }
 0x9d9   : > { %v4956_v11 = vpop.xlane.xlu1 %4955 }
 0x9da   : > { %7210 = vrsqrt.f32 %v4980_v3  ;;  %v4981_v30 = vadd.f32 1e-05, %v4973_v59  ;;  %v4974_v12 = vmul.f32 0.03125, %v4956_v11 }
 0x9dc   : > { %7212 = vrsqrt.f32 %v4981_v30  ;;  %v4982_v52 = vadd.f32 1e-05, %v4974_v12 }
 0x9dd   : > { %v4959_v8 = vpop.xlane.xlu0 %4958  ;;  %v4962_v55 = vpop.xlane.xlu1 %4961 }
 0x9de   : > { %7214 = vrsqrt.f32 %v4982_v52  ;;  %v4975_v50 = vmul.f32 0.03125, %v4959_v8  ;;  %v4976_v15 = vmul.f32 0.03125, %v4962_v55  ;;  %v1442_v8 = vld [vmem:[%s8836_s3 + $0x20] sm:$0xff] }
 0x9e0   : > { %v4983_v2 = vadd.f32 1e-05, %v4975_v50  ;;  %v4984_v32 = vadd.f32 1e-05, %v4976_v15 }
 0x9e1   : > { %v4965_v38 = vpop.xlane.xlu0 %4964  ;;  %v4968_v43 = vpop.xlane.xlu1 %4967 }
 0x9e2   : > { %7216 = vrsqrt.f32 %v4983_v2  ;;  %v4977_v29 = vmul.f32 0.03125, %v4965_v38  ;;  %v4978_v20 = vmul.f32 0.03125, %v4968_v43 }
 0x9e3   : > { %7218 = vrsqrt.f32 %v4984_v32 }
 0x9e4   : > { %v7211_v23 = vpop.eup %7210  ;;  %v4985_v48 = vadd.f32 1e-05, %v4977_v29  ;;  %v4986_v56 = vadd.f32 1e-05, %v4978_v20  ;;  %v1444_v29 = vld [vmem:[%s8836_s3 + $0x30] sm:$0xff]  ;;  %v1445_v20 = vld [vmem:[%s8836_s3 + $0x38] sm:$0xff] }
 0x9e5   : > { %v4996_v4 = vmul.f32 %v7211_v23, %v8787_v49  ;;  %v4971_v60 = vpop.xlane.xlu0 %4970 }
 0x9e6   : > { %v7213_v33 = vpop.eup %7212  ;;  %7220 = vrsqrt.f32 %v4985_v48  ;;  %v4979_v62 = vmul.f32 0.03125, %v4971_v60  ;;  %v7090_v60 = vld [vmem:[%s9289_s2] sm:$0xff]  }
 0x9e7   : > { %v5010_v26 = vmul.f32 %v6139_v19, %v4996_v4  ;;  %v4997_v24 = vmul.f32 %v7213_v33, %v8789_v61  ;;  %7222 = vrsqrt.f32 %v4986_v56  ;;  %v7091_v33 = vld [vmem:[%s9289_s2 + $0x8] sm:$0xff]   ;;  %6615 = vmatprep.subr.bf16.mxu0 %v7090_v60 }
 0x9e8   : > { %v7215_v17 = vpop.eup %7214  ;;  %v4987_v1 = vadd.f32 1e-05, %v4979_v62  ;;  %6616 = vmatpush3.bf16.msra.mxu0 %v7090_v60  ;;  %v7093_v62 = vld [vmem:[%s9289_s2 + $0x18] sm:$0xff]  }
 0x9e9   : > { %v5011_v54 = vmul.f32 %v6139_v19, %v4997_v24  ;;  %v4998_v35 = vmul.f32 %v7215_v17, %v8793_v47  ;;  %v5024_v49 = vadd.f32 %v6140_v28, %v5010_v26  ;;  %6617 = vmatprep.subr.bf16.mxu0 %v7091_v33 }
 0x9ea   : > { %7224 = vrsqrt.f32 %v4987_v1 }
 0x9eb   : > { %v5012_v40 = vmul.f32 %v6139_v19, %v4998_v35  ;;  %v5025_v63 = vadd.f32 %v6140_v28, %v5011_v54  ;;  %v5038_v51 = vmul.f32 %v6141_v0, %v5024_v49 }
 0x9ec   : > { %v7217_v44 = vpop.eup %7216  ;;  %6618 = vmatpush3.bf16.msra.mxu0 %v7091_v33  ;;  %v8942_v33 = vld [vmem:[%s9291_s16] ss:$0 sm:$0xff] }
 0x9ed   : > { %v7219_v61 = vpop.eup %7218  ;;  %v5026_v22 = vadd.f32 %v6140_v28, %v5012_v40  ;;  %v4999_v39 = vmul.f32 %v7217_v44, %v8801_v16  ;;  %v5039_v31 = vmul.f32 %v6141_v0, %v5025_v63  ;;  %v8843_v41 = vadd.f32 %v5038_v51, %v1438_v42  ;;  %v1440_v16 = vld [vmem:[%s8836_s3 + $0x10] sm:$0xff] }
 0x9ee   : > { %v5000_v27 = vmul.f32 %v7219_v61, %v8803_v34 }
 0x9ef   : > { %v5013_v9 = vmul.f32 %v6139_v19, %v4999_v39  ;;  %v8845_v47 = vadd.f32 %v5039_v31, %v1439_v57  ;;  %v5040_v5 = vmul.f32 %v6141_v0, %v5026_v22 }
 0x9f0   : > { %v7221_v18 = vpop.eup %7220  ;;  %v5014_v13 = vmul.f32 %v6139_v19, %v5000_v27 }
 0x9f1   : > { %v7223_v37 = vpop.eup %7222  ;;  %v5027_v53 = vadd.f32 %v6140_v28, %v5013_v9  ;;  %v5001_v36 = vmul.f32 %v7221_v18, %v8810_v25  ;;  %v5058_v7 = vpack.c.bf16 %v8845_v47, %v8843_v41  ;;  %v8854_v11 = vadd.f32 %v5040_v5, %v1440_v16 }
 0x9f2   : > { %v5002_v34 = vmul.f32 %v7223_v37, %v8812_v14  ;;  %v5028_v46 = vadd.f32 %v6140_v28, %v5014_v13  ;;  %v1443_v14 = vld [vmem:[%s8836_s3 + $0x28] sm:$0xff]  ;;  %s9290_s3 = sld [smem:[#allocation33_spill]] }
 0x9f3   : > { %v5041_v10 = vmul.f32 %v6141_v0, %v5027_v53  ;;  %v5015_v58 = vmul.f32 %v6139_v19, %v5001_v36  ;;  %6607 = vmatprep.mubr.msk.bf16.mxu1 %vm1529_vm0, %v5058_v7 }
 0x9f4   : > { %v7225_v3 = vpop.eup %7224  ;;  %v5016_v59 = vmul.f32 %v6139_v19, %v5002_v34  ;;  %v5042_v52 = vmul.f32 %v6141_v0, %v5028_v46 }
 0x9f5   : > { %v5003_v25 = vmul.f32 %v7225_v3, %v8820_v45  ;;  %v8857_v30 = vadd.f32 %v5041_v10, %v1441_v6  ;;  %v5029_v12 = vadd.f32 %v6140_v28, %v5015_v58 }
 0x9f6   : > { %v5030_v55 = vadd.f32 %v6140_v28, %v5016_v59  ;;  %v8864_v32 = vadd.f32 %v5042_v52, %v1442_v8 }
 0x9f7   : > { %v5017_v50 = vmul.f32 %v6139_v19, %v5003_v25  ;;  %v5059_v15 = vpack.c.bf16 %v8857_v30, %v8854_v11  ;;  %v5043_v2 = vmul.f32 %v6141_v0, %v5029_v12 }
 0x9f8   : > { %v5044_v43 = vmul.f32 %v6141_v0, %v5030_v55  ;;  %v6142_v26 = vld [vmem:[%s9290_s3] ss:$0 sm:$0xff]  ;;  %s9174_s3 = scalar_lea.vmem %s7632_s24, %s7721_s0 }
 0x9f9   : > { %6608 = vmatmul.mubr.msk.bf16.vlgmr.msra.gmra.mrb[92].mxu1 %vm1529_vm0, %v5059_v15  ;;  %v8866_v38 = vadd.f32 %v5043_v2, %v1443_v14  ;;  %v5031_v45 = vadd.f32 %v6140_v28, %v5017_v50  ;;  %v7092_v28 = vld [vmem:[%s9289_s2 + $0x10] sm:$0xff]  }
 0x9fa   : > { %v8873_v19 = vadd.f32 %v5044_v43, %v1444_v29  ;;  %6619 = vmatprep.subr.bf16.mxu0 %v7092_v28 }
 0x9fb   : > { %v5060_v23 = vpack.c.bf16 %v8866_v38, %v8864_v32  ;;  %v5045_v48 = vmul.f32 %v6141_v0, %v5031_v45  ;;  %6620 = vmatpush3.bf16.msra.mxu0 %v7092_v28 }
 0x9fc   : > { %6621 = vmatprep.subr.bf16.mxu0 %v7093_v62 }
 0x9fd   : > { %6611 = vmatprep.mubr.msk.bf16.mxu1 %vm1529_vm0, %v5060_v23  ;;  %v8875_v56 = vadd.f32 %v5045_v48, %v1445_v20 }
 0x9ff   : > { %v5061_v4 = vpack.c.bf16 %v8875_v56, %v8873_v19  ;;  %6622 = vmatpush3.bf16.msra.mxu0 %v7093_v62  ;;  %v5268_v62 = vld [vmem:[#allocation3] sm:$0xff] }
 0xa01   : > { %6612 = vmatmul.mubr.msk.bf16.gmra.mrb[96].mxu1 %vm1529_vm0, %v5061_v4 }
 0xacc   : > { %v6609_v24 = vpop.f32.mrb[92].mxu1 }
 0xacd   : > { %v8895_v17 = vadd.f32 %v6609_v24, %v6142_v26  ;;  %v5127_v0 = vpop.f32.mrb[93].mxu1 }
 0xace   : > { %v8897_v1 = vadd.f32 %v6142_v26, %v5127_v0  ;;  %v6610_v21 = vpop.f32.mrb[94].mxu1 }
 0xacf   : > { %v5168_v54 = vmul.f32 0.044715, %v8895_v17  ;;  %v8900_v35 = vadd.f32 %v6610_v21, %v6142_v26  ;;  %v5130_v49 = vpop.f32.mrb[95].mxu1 }
 0xad0   : > { %v5166_v40 = vmul.f32 0.044715, %v8897_v1  ;;  %v8903_v63 = vadd.f32 %v6142_v26, %v5130_v49 }
 0xad1   : > { %v5176_v51 = vmul.f32 %v5168_v54, %v8895_v17  ;;  %v5169_v44 = vmul.f32 0.044715, %v8900_v35  ;;  %v5160_v54 = vmul.f32 0.5, %v8895_v17 }
 0xad2   : > { %v5174_v42 = vmul.f32 %v5166_v40, %v8897_v1  ;;  %v5167_v57 = vmul.f32 0.044715, %v8903_v63  ;;  %v8948_v40 = vld [vmem:[%s9292_s1] ss:$0 sm:$0xff] }
 0xad3   : > { %v5184_v61 = vmul.f32 %v5176_v51, %v8895_v17  ;;  %v5177_v22 = vmul.f32 %v5169_v44, %v8900_v35  ;;  %v5283_v44 = vmul.f32 %v8942_v33, %v5268_v62 }
 0xad4   : > { %v5182_v39 = vmul.f32 %v5174_v42, %v8897_v1  ;;  %v5175_v31 = vmul.f32 %v5167_v57, %v8903_v63  ;;  %v6613_v27 = vpop.f32.mrb[96].mxu1  ;;  %v5158_v57 = vmul.f32 0.5, %v8897_v1 }
 0xad5   : > { %v5192_v9 = vadd.f32 %v5184_v61, %v8895_v17  ;;  %v5185_v18 = vmul.f32 %v5177_v22, %v8900_v35  ;;  %v8915_v5 = vadd.f32 %v6613_v27, %v6142_v26  ;;  %v5143_v13 = vpop.f32.mrb[97].mxu1  ;;  %v8953_v22 = vld [vmem:[%s9291_s16 + $0x1] ss:$0 sm:$0xff] }
 0xad6   : > { %v5190_v37 = vadd.f32 %v5182_v39, %v8897_v1  ;;  %v5183_v53 = vmul.f32 %v5175_v31, %v8903_v63  ;;  %v8919_v36 = vadd.f32 %v6142_v26, %v5143_v13  ;;  %v6614_v7 = vpop.f32.mrb[98].mxu1  ;;  %v5299_v39 = vld [vmem:[#allocation3 + $0x1] sm:$0xff]  ;;  %v5159_v13 = vmul.f32 0.5, %v8903_v63 }
 0xad7   : > { %v5200_v16 = vmul.f32 0.7978846, %v5192_v9  ;;  %v5193_v34 = vadd.f32 %v5185_v18, %v8900_v35  ;;  %v5172_v6 = vmul.f32 0.044715, %v8915_v5  ;;  %v5146_v46 = vpop.f32.mrb[99].mxu1  ;;  %v8926_v12 = vadd.f32 %v6614_v7, %v6142_v26 }
 0xad8   : > { %v5198_v10 = vmul.f32 0.7978846, %v5190_v37  ;;  %v5191_v58 = vadd.f32 %v5183_v53, %v8903_v63  ;;  %v5170_v3 = vmul.f32 0.044715, %v8919_v36  ;;  %v8929_v14 = vadd.f32 %v6142_v26, %v5146_v46 }
 0xad9   : > { %7226 = vtanh.f32 %v5200_v16  ;;  %v5201_v59 = vmul.f32 0.7978846, %v5193_v34  ;;  %v5180_v25 = vmul.f32 %v5172_v6, %v8915_v5  ;;  %v5173_v50 = vmul.f32 0.044715, %v8926_v12  ;;  %v8962_v16 = vld [vmem:[%s9291_s16 + $0x2] ss:$0 sm:$0xff] }
 0xada   : > { %7228 = vtanh.f32 %v5198_v10  ;;  %v5199_v52 = vmul.f32 0.7978846, %v5191_v58  ;;  %v5178_v8 = vmul.f32 %v5170_v3, %v8919_v36  ;;  %v5171_v2 = vmul.f32 0.044715, %v8929_v14 }
 0xadb   : > { %7230 = vtanh.f32 %v5201_v59  ;;  %v5188_v55 = vmul.f32 %v5180_v25, %v8915_v5  ;;  %v5181_v43 = vmul.f32 %v5173_v50, %v8926_v12  ;;  %v5161_v9 = vmul.f32 0.5, %v8900_v35  ;;  %v5331_v35 = vld [vmem:[#allocation3 + $0x2] sm:$0xff] }
 0xadc   : > { %7232 = vtanh.f32 %v5199_v52  ;;  %v5186_v15 = vmul.f32 %v5178_v8, %v8919_v36  ;;  %v5179_v20 = vmul.f32 %v5171_v2, %v8929_v14  ;;  %v5291_v1 = vadd.f32 %v8948_v40, %v5283_v44  ;;  %v8970_v52 = vld [vmem:[%s9291_s16 + $0x4] ss:$0 sm:$0xff] }
 0xadd   : > { %v5196_v45 = vadd.f32 %v5188_v55, %v8915_v5  ;;  %v5189_v48 = vmul.f32 %v5181_v43, %v8926_v12  ;;  %v5315_v7 = vmul.f32 %v8953_v22, %v5299_v39  ;;  %v5164_v46 = vmul.f32 0.5, %v8915_v5 }
 0xade   : > { %v5194_v29 = vadd.f32 %v5186_v15, %v8919_v36  ;;  %v5187_v60 = vmul.f32 %v5179_v20, %v8929_v14  ;;  %v5347_v3 = vmul.f32 %v8962_v16, %v5331_v35  ;;  %v5162_v59 = vmul.f32 0.5, %v8919_v36 }
 0xadf   : > { %v5204_v23 = vmul.f32 0.7978846, %v5196_v45  ;;  %v5197_v28 = vadd.f32 %v5189_v48, %v8926_v12  ;;  %v5323_v58 = vadd.f32 %v5315_v7, %v5291_v1  ;;  %v5165_v36 = vmul.f32 0.5, %v8926_v12 }
 0xae0   : > { %v5202_v4 = vmul.f32 0.7978846, %v5194_v29  ;;  %v5195_v26 = vadd.f32 %v5187_v60, %v8929_v14  ;;  %v5163_v43 = vmul.f32 0.5, %v8929_v14  ;;  %v8988_v60 = vld [vmem:[%s9291_s16 + $0x3] ss:$0 sm:$0xff] }
 0xae1   : > { %7234 = vtanh.f32 %v5204_v23  ;;  %v5205_v0 = vmul.f32 0.7978846, %v5197_v28  ;;  %v5355_v23 = vadd.f32 %v5347_v3, %v5323_v58 }
 0xae2   : > { %7236 = vtanh.f32 %v5202_v4  ;;  %v5203_v51 = vmul.f32 0.7978846, %v5195_v26 }
 0xae3   : > { %v7227_v24 = vpop.eup %7226  ;;  %7238 = vtanh.f32 %v5205_v0 }
 0xae4   : > { %v7229_v21 = vpop.eup %7228  ;;  %v5216_v49 = vadd.f32 1.0, %v7227_v24  ;;  %7240 = vtanh.f32 %v5203_v51 }
 0xae5   : > { %v7231_v42 = vpop.eup %7230  ;;  %v5214_v61 = vadd.f32 1.0, %v7229_v21 }
 0xae6   : > { %v7233_v31 = vpop.eup %7232  ;;  %v5224_v27 = vmul.f32 %v5216_v49, %v5160_v54  ;;  %v5217_v17 = vadd.f32 1.0, %v7231_v42 }
 0xae7   : > { %v5222_v18 = vmul.f32 %v5214_v61, %v5158_v57  ;;  %v5215_v37 = vadd.f32 1.0, %v7233_v31 }
 0xae8   : > { %5254 = vst.msk [vmem:[#allocation3 + $0x31] sm:$0xff] %vm3113_vm5, %v5224_v27  ;;  %v5225_v53 = vmul.f32 %v5217_v17, %v5161_v9  ;;  %v8983_v48 = vmul.f32 %v8970_v52, %v5224_v27  ;;  %v9007_v27 = vld [vmem:[%s9291_s16 + $0x5] ss:$0 sm:$0xff] }
 0xae9   : > { %5252 = vst.msk [vmem:[#allocation3 + $0x11] sm:$0xff] %vm3113_vm5, %v5222_v18  ;;  %v5223_v34 = vmul.f32 %v5215_v37, %v5159_v13  ;;  %v5403_v12 = vmul.f32 %v8970_v52, %v5222_v18 }
 0xaea   : > { %5255 = vst.msk [vmem:[#allocation3 + $0x41] sm:$0xff] %vm3113_vm5, %v5225_v53  ;;  %v5406_v21 = vmul.f32 %v8970_v52, %v5225_v53 }
 0xaeb   : > { %v7235_v6 = vpop.eup %7234  ;;  %5253 = vst.msk [vmem:[#allocation3 + $0x21] sm:$0xff] %vm3113_vm5, %v5223_v34  ;;  %v5404_v9 = vmul.f32 %v8970_v52, %v5223_v34 }
 0xaec   : > { %v7237_v63 = vpop.eup %7236  ;;  %v5220_v10 = vadd.f32 1.0, %v7235_v6 }
 0xaed   : > { %v5218_v25 = vadd.f32 1.0, %v7237_v63  ;;  %v7239_v55 = vpop.eup %7238  ;;  %v9024_v63 = vld [vmem:[%s9291_s16 + $0x6] ss:$0 sm:$0xff] }
 0xaee   : > { %v8972_v8 = vmul.f32 %v5220_v10, %v5164_v46  ;;  %v7241_v45 = vpop.eup %7240  ;;  %v5221_v28 = vadd.f32 1.0, %v7239_v55  ;;  %v9027_v10 = vld [vmem:[%s9291_s16 + $0x7] ss:$0 sm:$0xff] }
 0xaef   : > { %v8974_v50 = vld [vmem:[#allocation3 + $0x30] sm:$0xff]  ;;  %v5226_v2 = vmul.f32 %v5218_v25, %v5162_v59  ;;  %v5219_v62 = vadd.f32 1.0, %v7241_v45 }
 0xaf0   : > { %v5302_v15 = vld [vmem:[#allocation3 + $0x31] sm:$0xff]  ;;  %v5286_v5 = vmul.f32 %v8942_v33, %v8974_v50  ;;  %5258 = vst.msk [vmem:[#allocation3 + $0x71] sm:$0xff] %vm3113_vm5, %v8972_v8  ;;  %v9000_v51 = vmul.f32 %v5221_v28, %v5165_v36 }
 0xaf1   : > { %v5269_v29 = vld [vmem:[#allocation3 + $0x10] sm:$0xff]  ;;  %5256 = vst.msk [vmem:[#allocation3 + $0x51] sm:$0xff] %vm3113_vm5, %v5226_v2  ;;  %v5318_v24 = vmul.f32 %v8953_v22, %v5302_v15  ;;  %v8995_v0 = vld [vmem:[#allocation3 + $0x40] sm:$0xff]  ;;  %v5227_v44 = vmul.f32 %v5219_v62, %v5163_v43  ;;  %v9014_v37 = vmul.f32 %v8970_v52, %v5226_v2 }
 0xaf2   : > { %v5300_v20 = vld [vmem:[#allocation3 + $0x11] sm:$0xff]  ;;  %v5284_v26 = vmul.f32 %v8942_v33, %v5269_v29  ;;  %v5294_v14 = vadd.f32 %v8948_v40, %v5286_v5  ;;  %v8998_v49 = vld [vmem:[#allocation3 + $0x42] sm:$0xff]  ;;  %v5379_v17 = vmul.f32 %v8988_v60, %v5269_v29  ;;  %v5382_v13 = vmul.f32 %v8988_v60, %v8995_v0  ;;  %5259 = vst.msk [vmem:[#allocation3 + $0x81] sm:$0xff] %vm3113_vm5, %v9000_v51 }
 0xaf3   : > { %v8985_v4 = vld [vmem:[#allocation3 + $0x32] sm:$0xff]  ;;  %v5316_v57 = vmul.f32 %v8953_v22, %v5300_v20  ;;  %v5364_v61 = vld [vmem:[#allocation3 + $0x20] sm:$0xff]  ;;  %5257 = vst.msk [vmem:[#allocation3 + $0x61] sm:$0xff] %vm3113_vm5, %v5227_v44  ;;  %v5438_v34 = vmul.f32 %v9007_v27, %v8998_v49  ;;  %v9030_v58 = vmul.f32 %v8970_v52, %v5227_v44  ;;  %v9036_v5 = vld [vmem:[%s9291_s16 + $0x8] ss:$0 sm:$0xff]  ;;  %v5469_v29 = vmul.f32 %v9024_v63, %v8974_v50 }
 0xaf4   : > { %v5332_v54 = vld [vmem:[#allocation3 + $0x12] sm:$0xff]  ;;  %v5292_v42 = vadd.f32 %v8948_v40, %v5284_v26  ;;  %v5326_v39 = vadd.f32 %v5318_v24, %v5294_v14  ;;  %v5350_v31 = vmul.f32 %v8962_v16, %v8985_v4  ;;  %v5420_v18 = vld [vmem:[#allocation3 + $0x22] sm:$0xff]  ;;  %v5380_v35 = vmul.f32 %v8988_v60, %v5364_v61 }
 0xaf5   : > { %v5348_v1 = vmul.f32 %v8962_v16, %v5332_v54  ;;  %v5387_v6 = vadd.f32 %v5379_v17, %v5355_v23  ;;  %v5484_v46 = vld [vmem:[#allocation3 + $0x21] sm:$0xff]  ;;  %v5435_v59 = vmul.f32 %v9007_v27, %v5332_v54  ;;  %v5436_v25 = vmul.f32 %v9007_v27, %v5420_v18 }
 0xaf6   : > { %v5324_v53 = vadd.f32 %v5316_v57, %v5292_v42  ;;  %v5358_v7 = vadd.f32 %v5350_v31, %v5326_v39  ;;  %v5468_v45 = vmul.f32 %v9024_v63, %v5364_v61  ;;  %v5285_v36 = vmul.f32 %v8942_v33, %v5364_v61 }
 0xaf7   : > { %v5411_v2 = vadd.f32 %v5403_v12, %v5387_v6  ;;  %v5500_v20 = vmul.f32 %v9027_v10, %v5484_v46  ;;  %v5501_v23 = vmul.f32 %v9027_v10, %v5302_v15  ;;  %v5317_v12 = vmul.f32 %v8953_v22, %v5484_v46 }
 0xaf8   : > { %v5356_v3 = vadd.f32 %v5348_v1, %v5324_v53  ;;  %v5390_v55 = vadd.f32 %v5382_v13, %v5358_v7  ;;  %v5455_v28 = vld [vmem:[#allocation3 + $0x50] sm:$0xff]  ;;  %v5293_v14 = vadd.f32 %v8948_v40, %v5285_v36  ;;  %v5532_v54 = vmul.f32 %v9036_v5, %v5420_v18 }
 0xaf9   : > { %v5443_v26 = vadd.f32 %v5435_v59, %v5411_v2  ;;  %v5533_v44 = vmul.f32 %v9036_v5, %v8985_v4  ;;  %v5349_v42 = vmul.f32 %v8962_v16, %v5420_v18  ;;  %v5487_v57 = vld [vmem:[#allocation3 + $0x51] sm:$0xff]  ;;  %v5471_v15 = vmul.f32 %v9024_v63, %v5455_v28 }
 0xafa   : > { %v5388_v43 = vadd.f32 %v5380_v35, %v5356_v3  ;;  %v5414_v62 = vadd.f32 %v5406_v21, %v5390_v55  ;;  %v5325_v31 = vadd.f32 %v5317_v12, %v5293_v14  ;;  %v5486_v21 = vld [vmem:[#allocation3 + $0x41] sm:$0xff]  ;;  %v5381_v13 = vmul.f32 %v8988_v60, %v8974_v50  ;;  %v5519_v46 = vld [vmem:[#allocation3 + $0x52] sm:$0xff] }
 0xafb   : > { %v5476_v39 = vadd.f32 %v5468_v45, %v5443_v26  ;;  %v5287_v53 = vmul.f32 %v8942_v33, %v8995_v0  ;;  %v5503_v18 = vmul.f32 %v9027_v10, %v5487_v57  ;;  %v5319_v59 = vmul.f32 %v8953_v22, %v5486_v21 }
 0xafc   : > { %v5412_v24 = vadd.f32 %v5404_v9, %v5388_v43  ;;  %v5446_v61 = vadd.f32 %v5438_v34, %v5414_v62  ;;  %v5437_v9 = vmul.f32 %v9007_v27, %v8985_v4  ;;  %v5357_v1 = vadd.f32 %v5349_v42, %v5325_v31 }
 0xafd   : > { %v5288_v34 = vmul.f32 %v8942_v33, %v5455_v28  ;;  %v5508_v6 = vadd.f32 %v5500_v20, %v5476_v39  ;;  %v5295_v3 = vadd.f32 %v8948_v40, %v5287_v53  ;;  %v5470_v4 = vmul.f32 %v9024_v63, %v8995_v0 }
 0xafe   : > { %v5444_v17 = vadd.f32 %v5436_v25, %v5412_v24  ;;  %v5479_v7 = vadd.f32 %v5471_v15, %v5446_v61  ;;  %v5389_v50 = vadd.f32 %v5381_v13, %v5357_v1  ;;  %v5320_v55 = vmul.f32 %v8953_v22, %v5487_v57  ;;  %v5424_v57 = vld [vmem:[#allocation3 + $0x62] sm:$0xff]  ;;  %v5457_v15 = vld [vmem:[#allocation3 + $0x70] sm:$0xff] }
 0xaff   : > { %v5296_v25 = vadd.f32 %v8948_v40, %v5288_v34  ;;  %v5327_v36 = vadd.f32 %v5319_v59, %v5295_v3  ;;  %v5351_v43 = vmul.f32 %v8962_v16, %v8998_v49  ;;  %v5352_v26 = vmul.f32 %v8962_v16, %v5519_v46  ;;  %v5521_v59 = vld [vmem:[#allocation3 + $0x72] sm:$0xff] }
 0xb00   : > { %v5477_v35 = vadd.f32 %v5469_v29, %v5444_v17  ;;  %v5511_v45 = vadd.f32 %v5503_v18, %v5479_v7  ;;  %v5368_v29 = vld [vmem:[#allocation3 + $0x60] sm:$0xff]  ;;  %v5413_v20 = vadd.f32 %v8983_v48, %v5389_v50  ;;  %v5383_v14 = vmul.f32 %v8988_v60, %v5455_v28 }
 0xb01   : > { %v5328_v62 = vadd.f32 %v5320_v55, %v5296_v25  ;;  %v5540_v12 = vadd.f32 %v5532_v54, %v5508_v6  ;;  %v5535_v24 = vmul.f32 %v9036_v5, %v5519_v46  ;;  %v5359_v42 = vadd.f32 %v5351_v43, %v5327_v36  ;;  %v5488_v28 = vld [vmem:[#allocation3 + $0x61] sm:$0xff] }
 0xb02   : > { %v5509_v2 = vadd.f32 %v5501_v23, %v5477_v35  ;;  %v5445_v23 = vadd.f32 %v5437_v9, %v5413_v20  ;;  %v5502_v61 = vmul.f32 %v9027_v10, %v5486_v21  ;;  %v5384_v31 = vmul.f32 %v8988_v60, %v5368_v29  ;;  %v5489_v9 = vld [vmem:[#allocation3 + $0x71] sm:$0xff]  ;;  %v5370_v36 = vld [vmem:[#allocation3 + $0x80] sm:$0xff] }
 0xb03   : > { %v5360_v39 = vadd.f32 %v5352_v26, %v5328_v62  ;;  %v5534_v48 = vmul.f32 %v9036_v5, %v8998_v49  ;;  %v5543_v13 = vadd.f32 %v5535_v24, %v5511_v45  ;;  %v5391_v53 = vadd.f32 %v5383_v14, %v5359_v42  ;;  %v5459_v42 = vld [vmem:[#allocation3 + $0x90] sm:$0xff] }
 0xb04   : > { %v5541_v0 = vadd.f32 %v5533_v44, %v5509_v2  ;;  %v5478_v54 = vadd.f32 %v5470_v4, %v5445_v23  ;;  %v5439_v1 = vmul.f32 %v9007_v27, %v5519_v46  ;;  %v5440_v7 = vmul.f32 %v9007_v27, %v5424_v57 }
 0xb05   : > { %v5392_v44 = vadd.f32 %v5384_v31, %v5360_v39  ;;  %v5415_v21 = vadd.f32 %v9014_v37, %v5391_v53  ;;  %v5472_v18 = vmul.f32 %v9024_v63, %v5368_v29  ;;  %v5289_v34 = vmul.f32 %v8942_v33, %v5368_v29 }
 0xb06   : > { %v5556_v17 = vpack.c.bf16 %v5541_v0, %v5540_v12  ;;  %v5290_v49 = vmul.f32 %v8942_v33, %v5457_v15  ;;  %v5510_v35 = vadd.f32 %v5502_v61, %v5478_v54  ;;  %v5473_v3 = vmul.f32 %v9024_v63, %v5457_v15 }
 0xb07   : > { %v5416_v6 = vadd.f32 %v9030_v58, %v5392_v44  ;;  %v5321_v46 = vmul.f32 %v8953_v22, %v5488_v28  ;;  %v5447_v50 = vadd.f32 %v5439_v1, %v5415_v21  ;;  %v5297_v4 = vadd.f32 %v8948_v40, %v5289_v34  ;;  %v5523_v21 = vld [vmem:[#allocation3 + $0x92] sm:$0xff] }
 0xb08   : > { %6623 = vmatprep.mubr.msk.bf16.mxu0 %vm3113_vm5, %v5556_v17  ;;  %v5298_v25 = vadd.f32 %v8948_v40, %v5290_v49  ;;  %v5322_v37 = vmul.f32 %v8953_v22, %v5489_v9  ;;  %v5542_v55 = vadd.f32 %v5534_v48, %v5510_v35  ;;  %v5504_v45 = vmul.f32 %v9027_v10, %v5488_v28  ;;  %v5491_v28 = vld [vmem:[#allocation3 + $0x91] sm:$0xff] }
 0xb09   : > { %v5448_v2 = vadd.f32 %v5440_v7, %v5416_v6  ;;  %v5353_v33 = vmul.f32 %v8962_v16, %v5424_v57  ;;  %v5480_v58 = vadd.f32 %v5472_v18, %v5447_v50  ;;  %v5329_v43 = vadd.f32 %v5321_v46, %v5297_v4 }
 0xb0a   : > { %v5330_v29 = vadd.f32 %v5322_v37, %v5298_v25  ;;  %v5354_v20 = vmul.f32 %v8962_v16, %v5521_v59  ;;  %v5557_v62 = vpack.c.bf16 %v5543_v13, %v5542_v55  ;;  %v5505_v14 = vmul.f32 %v9027_v10, %v5489_v9  ;;  %v5426_v16 = vld [vmem:[#allocation3 + $0x82] sm:$0xff] }
 0xb0b   : > { %v5481_v26 = vadd.f32 %v5473_v3, %v5448_v2  ;;  %v5385_v40 = vmul.f32 %v8988_v60, %v5457_v15  ;;  %v5512_v12 = vadd.f32 %v5504_v45, %v5480_v58  ;;  %v5361_v22 = vadd.f32 %v5353_v33, %v5329_v43  ;;  %v5490_v9 = vld [vmem:[#allocation3 + $0x81] sm:$0xff] }
 0xb0c   : > { %v5362_v0 = vadd.f32 %v5354_v20, %v5330_v29  ;;  %v5386_v24 = vmul.f32 %v8988_v60, %v5370_v36  ;;  %6624 = vmatmul.mubr.msk.bf16.vlgmr.msra.gmra.mrb[84].mxu0 %vm3113_vm5, %v5557_v62  ;;  %v5536_v61 = vmul.f32 %v9036_v5, %v5424_v57  ;;  %v5537_v39 = vmul.f32 %v9036_v5, %v5521_v59 }
 0xb0d   : > { %v5513_v23 = vadd.f32 %v5505_v14, %v5481_v26  ;;  %v5409_v31 = vmul.f32 %v8970_v52, %v8972_v8  ;;  %v5410_v15 = vmul.f32 %v8970_v52, %v9000_v51  ;;  %v5393_v17 = vadd.f32 %v5385_v40, %v5361_v22 }
 0xb0e   : > { %v5394_v48 = vadd.f32 %v5386_v24, %v5362_v0  ;;  %v5544_v13 = vadd.f32 %v5536_v61, %v5512_v12  ;;  %v5475_v60 = vmul.f32 %v9024_v63, %v5459_v42  ;;  %v5441_v57 = vmul.f32 %v9007_v27, %v5521_v59 }
 0xb0f   : > { %v5545_v53 = vadd.f32 %v5537_v39, %v5513_v23  ;;  %v5417_v54 = vadd.f32 %v5409_v31, %v5393_v17  ;;  %v5442_v1 = vmul.f32 %v9007_v27, %v5426_v16  ;;  %v5474_v52 = vmul.f32 %v9024_v63, %v5370_v36  ;;  %v6167_v63 = vld [vmem:[%s9293_s23] ss:$0 sm:$0xff] }
 0xb10   : > { %v5418_v44 = vadd.f32 %v5410_v15, %v5394_v48  ;;  %v5507_v51 = vmul.f32 %v9027_v10, %v5491_v28  ;;  %v5506_v35 = vmul.f32 %v9027_v10, %v5490_v9  ;;  %v5539_v6 = vmul.f32 %v9036_v5, %v5523_v21 }
 0xb11   : > { %v5558_v7 = vpack.c.bf16 %v5545_v53, %v5544_v13  ;;  %v5449_v8 = vadd.f32 %v5441_v57, %v5417_v54  ;;  %v5538_v59 = vmul.f32 %v9036_v5, %v5426_v16 }
 0xb12   : > { %v5450_v18 = vadd.f32 %v5442_v1, %v5418_v44 }
 0xb13   : > { %6627 = vmatprep.mubr.msk.bf16.mxu0 %vm3113_vm5, %v5558_v7  ;;  %v5482_v34 = vadd.f32 %v5474_v52, %v5449_v8 }
 0xb14   : > { %v5483_v49 = vadd.f32 %v5475_v60, %v5450_v18 }
 0xb15   : > { %v5514_v3 = vadd.f32 %v5506_v35, %v5482_v34 }
 0xb16   : > { %v5515_v27 = vadd.f32 %v5507_v51, %v5483_v49 }
 0xb17   : > { %v5546_v46 = vadd.f32 %v5538_v59, %v5514_v3 }
 0xb18   : > { %v5547_v50 = vadd.f32 %v5539_v6, %v5515_v27 }
 0xb1a   : > { %v5559_v4 = vpack.c.bf16 %v5547_v50, %v5546_v46 }
 0xb1c   : > { %6628 = vmatmul.mubr.msk.bf16.gmra.mrb[88].mxu0 %vm3113_vm5, %v5559_v4 }
 0xbdf   : > { %v6625_v25 = vpop.f32.mrb[84].mxu0 }
 0xbe0   : > { %v5646_v37 = vadd.f32 %v6625_v25, %v6167_v63  ;;  %v5637_v55 = vpop.f32.mrb[85].mxu0 }
 0xbe1   : > { %v6626_v2 = vpop.f32.mrb[86].mxu0  ;;  %v5638_v45 = vadd.f32 %v6167_v63, %v5637_v55 }
 0xbe2   : > { %v5649_v33 = vadd.f32 %v6626_v2, %v6167_v63  ;;  %v5640_v36 = vpop.f32.mrb[87].mxu0  ;;  %v5677_v10 = vsel %vm1529_vm0, %v5646_v37, 0.0 }
 0xbe3   : > { %5678 = vadd.xlane.f32.xlu1 %v5677_v10  ;;  %v5641_v58 = vadd.f32 %v6167_v63, %v5640_v36  ;;  %v5671_v5 = vsel %vm1529_vm0, %v5638_v45, 0.0 }
 0xbe4   : > { %v5680_v43 = vsel %vm1529_vm0, %v5649_v33, 0.0 }
 0xbe5   : > { %5681 = vadd.xlane.f32.xlu0 %v5680_v43  ;;  %v5674_v29 = vsel %vm1529_vm0, %v5641_v58, 0.0 }
 0xbe7   : > { %5672 = vadd.xlane.f32.xlu1 %v5671_v5 }
 0xbe9   : > { %5675 = vadd.xlane.f32.xlu0 %v5674_v29 }
 0xbef   : > { %v6629_v20 = vpop.f32.mrb[88].mxu0 }
 0xbf0   : > { %v5653_v62 = vpop.f32.mrb[89].mxu0  ;;  %v5662_v12 = vadd.f32 %v6629_v20, %v6167_v63 }
 0xbf1   : > { %v5654_v26 = vadd.f32 %v6167_v63, %v5653_v62  ;;  %v6630_v14 = vpop.f32.mrb[90].mxu0 }
 0xbf2   : > { %v5656_v40 = vpop.f32.mrb[91].mxu0  ;;  %v5665_v24 = vadd.f32 %v6630_v14, %v6167_v63  ;;  %v5689_v23 = vsel %vm1529_vm0, %v5662_v12, 0.0 }
 0xbf3   : > { %v5657_v22 = vadd.f32 %v6167_v63, %v5656_v40  ;;  %v5683_v0 = vsel %vm1529_vm0, %v5654_v26, 0.0 }
 0xbf4   : > { %5684 = vadd.xlane.f32.xlu1 %v5683_v0  ;;  %v5692_v61 = vsel %vm1529_vm0, %v5665_v24, 0.0 }
 0xbf5   : > { %v5686_v42 = vsel %vm1529_vm0, %v5657_v22, 0.0 }
 0xbf6   : > { %5687 = vadd.xlane.f32.xlu0 %v5686_v42  ;;  %v9159_v42 = vld [vmem:[#allocation4] ss:$0 sm:$0xff] }
 0xbf8   : > { %5690 = vadd.xlane.f32.xlu1 %v5689_v23 }
 0xbfa   : > { %5693 = vadd.xlane.f32.xlu0 %v5692_v61 }
 0xc70   : > { %v5679_v39 = vpop.xlane.xlu1 %5678 }
 0xc71   : > { %v5697_v16 = vmul.f32 0.03125, %v5679_v39 }
 0xc72   : > { %v5682_v31 = vpop.xlane.xlu0 %5681 }
 0xc73   : > { %v9119_v15 = vsub.f32 %v5646_v37, %v5697_v16  ;;  %v5698_v17 = vmul.f32 0.03125, %v5682_v31  ;;  %v9162_v16 = vld [vmem:[#allocation6] ss:$0 sm:$0xff] }
 0xc74   : > { %v5673_v48 = vpop.xlane.xlu1 %5672 }
 0xc75   : > { %v9121_v13 = vsub.f32 %v5649_v33, %v5698_v17  ;;  %v5695_v53 = vmul.f32 0.03125, %v5673_v48  ;;  %v5713_v60 = vmul.f32 %v9119_v15, %v9119_v15 }
 0xc76   : > { %v5676_v28 = vpop.xlane.xlu0 %5675 }
 0xc77   : > { %v9125_v54 = vsub.f32 %v5638_v45, %v5695_v53  ;;  %v5696_v44 = vmul.f32 0.03125, %v5676_v28  ;;  %v5725_v57 = vsel %vm1529_vm0, %v5713_v60, 0.0  ;;  %v5714_v1 = vmul.f32 %v9121_v13, %v9121_v13  ;;  %v6178_v28 = vld [vmem:[#allocation8] ss:$0 sm:$0xff] }
 0xc78   : > { %5726 = vadd.xlane.f32.xlu1 %v5725_v57 }
 0xc79   : > { %v9130_v7 = vsub.f32 %v5641_v58, %v5696_v44  ;;  %v5728_v9 = vsel %vm1529_vm0, %v5714_v1, 0.0  ;;  %v5711_v21 = vmul.f32 %v9125_v54, %v9125_v54 }
 0xc7a   : > { %5729 = vadd.xlane.f32.xlu0 %v5728_v9 }
 0xc7b   : > { %v5719_v8 = vsel %vm1529_vm0, %v5711_v21, 0.0  ;;  %v5712_v18 = vmul.f32 %v9130_v7, %v9130_v7 }
 0xc7c   : > { %5720 = vadd.xlane.f32.xlu1 %v5719_v8 }
 0xc7d   : > { %v5722_v52 = vsel %vm1529_vm0, %v5712_v18, 0.0 }
 0xc7e   : > { %5723 = vadd.xlane.f32.xlu0 %v5722_v52 }
 0xc81   : > { %v5685_v51 = vpop.xlane.xlu1 %5684 }
 0xc82   : > { %v5699_v34 = vmul.f32 0.03125, %v5685_v51 }
 0xc83   : > { %v5688_v49 = vpop.xlane.xlu0 %5687 }
 0xc84   : > { %v9139_v35 = vsub.f32 %v5654_v26, %v5699_v34  ;;  %v5700_v6 = vmul.f32 0.03125, %v5688_v49 }
 0xc85   : > { %v5691_v3 = vpop.xlane.xlu1 %5690 }
 0xc86   : > { %v9141_v27 = vsub.f32 %v5657_v22, %v5700_v6  ;;  %v5701_v59 = vmul.f32 0.03125, %v5691_v3  ;;  %v5715_v46 = vmul.f32 %v9139_v35, %v9139_v35 }
 0xc87   : > { %v5694_v50 = vpop.xlane.xlu0 %5693 }
 0xc88   : > { %v9145_v4 = vsub.f32 %v5662_v12, %v5701_v59  ;;  %v5702_v63 = vmul.f32 0.03125, %v5694_v50  ;;  %v5731_v25 = vsel %vm1529_vm0, %v5715_v46, 0.0  ;;  %v5716_v37 = vmul.f32 %v9141_v27, %v9141_v27 }
 0xc89   : > { %5732 = vadd.xlane.f32.xlu1 %v5731_v25 }
 0xc8a   : > { %v9150_v55 = vsub.f32 %v5665_v24, %v5702_v63  ;;  %v5734_v2 = vsel %vm1529_vm0, %v5716_v37, 0.0  ;;  %v5717_v45 = vmul.f32 %v9145_v4, %v9145_v4 }
 0xc8b   : > { %5735 = vadd.xlane.f32.xlu0 %v5734_v2 }
 0xc8c   : > { %v5737_v33 = vsel %vm1529_vm0, %v5717_v45, 0.0  ;;  %v5718_v36 = vmul.f32 %v9150_v55, %v9150_v55 }
 0xc8d   : > { %5738 = vadd.xlane.f32.xlu1 %v5737_v33 }
 0xc8e   : > { %v5740_v10 = vsel %vm1529_vm0, %v5718_v36, 0.0 }
 0xc8f   : > { %5741 = vadd.xlane.f32.xlu0 %v5740_v10 }
 0xd05   : > { %v5727_v58 = vpop.xlane.xlu1 %5726 }
 0xd06   : > { %v5745_v43 = vmul.f32 0.03125, %v5727_v58 }
 0xd07   : > { %v5730_v5 = vpop.xlane.xlu0 %5729 }
 0xd08   : > { %v5753_v29 = vadd.f32 1e-05, %v5745_v43  ;;  %v5746_v20 = vmul.f32 0.03125, %v5730_v5 }
 0xd09   : > { %v5721_v62 = vpop.xlane.xlu1 %5720 }
 0xd0a   : > { %7242 = vrsqrt.f32 %v5753_v29  ;;  %v5754_v26 = vadd.f32 1e-05, %v5746_v20  ;;  %v5743_v14 = vmul.f32 0.03125, %v5721_v62 }
 0xd0b   : > { %v5724_v40 = vpop.xlane.xlu0 %5723 }
 0xd0c   : > { %7244 = vrsqrt.f32 %v5754_v26  ;;  %v5751_v12 = vadd.f32 1e-05, %v5743_v14  ;;  %v5744_v22 = vmul.f32 0.03125, %v5724_v40 }
 0xd0e   : > { %7246 = vrsqrt.f32 %v5751_v12  ;;  %v5752_v0 = vadd.f32 1e-05, %v5744_v22 }
 0xd10   : > { %7248 = vrsqrt.f32 %v5752_v0 }
 0xd14   : > { %v7243_v24 = vpop.eup %7242 }
 0xd15   : > { %v5769_v23 = vmul.f32 %v7243_v24, %v9119_v15 }
 0xd16   : > { %v5733_v61 = vpop.xlane.xlu1 %5732  ;;  %v7245_v39 = vpop.eup %7244 }
 0xd17   : > { %v5747_v31 = vmul.f32 0.03125, %v5733_v61  ;;  %v5783_v17 = vmul.f32 %v9159_v42, %v5769_v23  ;;  %v5770_v48 = vmul.f32 %v7245_v39, %v9121_v13 }
 0xd18   : > { %v5736_v53 = vpop.xlane.xlu0 %5735  ;;  %v7247_v60 = vpop.eup %7246 }
 0xd19   : > { %v5755_v44 = vadd.f32 1e-05, %v5747_v31  ;;  %v5748_v57 = vmul.f32 0.03125, %v5736_v53  ;;  %v5797_v1 = vadd.f32 %v9162_v16, %v5783_v17  ;;  %v5784_v15 = vmul.f32 %v9159_v42, %v5770_v48 }
 0xd1a   : > { %v5767_v9 = vmul.f32 %v7247_v60, %v9125_v54  ;;  %v5739_v21 = vpop.xlane.xlu1 %5738  ;;  %v7249_v8 = vpop.eup %7248 }
 0xd1b   : > { %7250 = vrsqrt.f32 %v5755_v44  ;;  %v5756_v18 = vadd.f32 1e-05, %v5748_v57  ;;  %v5749_v52 = vmul.f32 0.03125, %v5739_v21  ;;  %v5811_v51 = vmul.f32 %v6178_v28, %v5797_v1 }
 0xd1c   : > { %v5798_v13 = vadd.f32 %v9162_v16, %v5784_v15  ;;  %v5781_v34 = vmul.f32 %v9159_v42, %v5767_v9  ;;  %v5768_v49 = vmul.f32 %v7249_v8, %v9130_v7  ;;  %v5742_v6 = vpop.xlane.xlu0 %5741 }
 0xd1d   : > { %7252 = vrsqrt.f32 %v5756_v18  ;;  %v5757_v3 = vadd.f32 1e-05, %v5749_v52  ;;  %v5750_v54 = vmul.f32 0.03125, %v5742_v6  ;;  %v5819_v59 = vadd.f32 %v5811_v51, %v8854_v11 }
 0xd1e   : > { %v5812_v46 = vmul.f32 %v6178_v28, %v5798_v13  ;;  %v5795_v50 = vadd.f32 %v9162_v16, %v5781_v34  ;;  %v5782_v63 = vmul.f32 %v9159_v42, %v5768_v49 }
 0xd1f   : > { %7254 = vrsqrt.f32 %v5757_v3  ;;  %v5758_v25 = vadd.f32 1e-05, %v5750_v54  ;;  %5827 = vst.msk [vmem:[%s9174_s3 + $0x10] sm:$0xff] %vm1529_vm0, %v5819_v59 }
 0xd20   : > { %v5820_v7 = vadd.f32 %v5812_v46, %v8857_v30  ;;  %v5809_v37 = vmul.f32 %v6178_v28, %v5795_v50  ;;  %v5796_v2 = vadd.f32 %v9162_v16, %v5782_v63 }
 0xd21   : > { %7256 = vrsqrt.f32 %v5758_v25 }
 0xd22   : > { %5828 = vst.msk [vmem:[%s9174_s3 + $0x18] sm:$0xff] %vm1529_vm0, %v5820_v7  ;;  %v5817_v11 = vadd.f32 %v5809_v37, %v8843_v41  ;;  %v5810_v45 = vmul.f32 %v6178_v28, %v5796_v2 }
 0xd24   : > { %5825 = vst.msk [vmem:[%s9174_s3] sm:$0xff] %vm1529_vm0, %v5817_v11  ;;  %v5818_v33 = vadd.f32 %v5810_v45, %v8845_v47 }
 0xd25   : > { %v7251_v36 = vpop.eup %7250 }
 0xd26   : > { %5826 = vst.msk [vmem:[%s9174_s3 + $0x8] sm:$0xff] %vm1529_vm0, %v5818_v33  ;;  %v5771_v10 = vmul.f32 %v7251_v36, %v9139_v35 }
 0xd27   : > { %v7253_v58 = vpop.eup %7252 }
 0xd28   : > { %v5785_v30 = vmul.f32 %v9159_v42, %v5771_v10  ;;  %v5772_v43 = vmul.f32 %v7253_v58, %v9141_v27 }
 0xd29   : > { %v7255_v5 = vpop.eup %7254 }
 0xd2a   : > { %v5799_v29 = vadd.f32 %v9162_v16, %v5785_v30  ;;  %v5786_v41 = vmul.f32 %v9159_v42, %v5772_v43  ;;  %v5773_v20 = vmul.f32 %v7255_v5, %v9145_v4 }
 0xd2b   : > { %v7257_v47 = vpop.eup %7256 }
 0xd2c   : > { %v5813_v62 = vmul.f32 %v6178_v28, %v5799_v29  ;;  %v5800_v26 = vadd.f32 %v9162_v16, %v5786_v41  ;;  %v5787_v35 = vmul.f32 %v9159_v42, %v5773_v20  ;;  %v5774_v14 = vmul.f32 %v7257_v47, %v9150_v55 }
 0xd2e   : > { %v5821_v27 = vadd.f32 %v5813_v62, %v8864_v32  ;;  %v5814_v40 = vmul.f32 %v6178_v28, %v5800_v26  ;;  %v5801_v12 = vadd.f32 %v9162_v16, %v5787_v35  ;;  %v5788_v22 = vmul.f32 %v9159_v42, %v5774_v14 }
 0xd30   : > { %5829 = vst.msk [vmem:[%s9174_s3 + $0x20] sm:$0xff] %vm1529_vm0, %v5821_v27  ;;  %v5822_v4 = vadd.f32 %v5814_v40, %v8866_v38  ;;  %v5815_v0 = vmul.f32 %v6178_v28, %v5801_v12  ;;  %v5802_v24 = vadd.f32 %v9162_v16, %v5788_v22 }
 0xd32   : > { %5830 = vst.msk [vmem:[%s9174_s3 + $0x28] sm:$0xff] %vm1529_vm0, %v5822_v4  ;;  %v5823_v23 = vadd.f32 %v5815_v0, %v8873_v19  ;;  %v5816_v61 = vmul.f32 %v6178_v28, %v5802_v24 }
 0xd34   : > { %5831 = vst.msk [vmem:[%s9174_s3 + $0x30] sm:$0xff] %vm1529_vm0, %v5823_v23  ;;  %v5824_v32 = vadd.f32 %v5816_v61, %v8875_v56 }
 0xd36   : > { %5832 = vst.msk [vmem:[%s9174_s3 + $0x38] sm:$0xff] %vm1529_vm0, %v5824_v32 }
 0xd37 PF: > { %s105_s22 = sadd.s32 1, %s7356_s22  }
 0xd38   : > { %p102_p11 = scmp.ge.s32.totalorder %s105_s22, 4  }
 0xd3a   :  { %104 = sbr.rel (!%p102_p11) target bundleno = 86 (0x56), region = 313 }
 0xd41   :  { %5854 = vsyncpa [#allocation5], 1 }
 0xd42   :  { %5856 = vsyncpa [#allocation5 + $0x1], 1 }
 0xd43   :  { %5857 = vsyncpa [#allocation7], 1 }

</bundles_post_ra>
